<compile_context>
chip_gen: v7x
topology: tpu7x:2x2x1
jax: 0.10.0
libtpu: 0.0.40
codegen_flags: <defaults>
</compile_context>

<pallas_src>
import functools

import jax
import jax.numpy as jnp
from jax import lax
from jax.experimental import pallas as pl
from jax.experimental.pallas import tpu as pltpu

EPS = 1e-5
LANES = 128


def _round_up(x, m):
    return (x + m - 1) // m * m


# ----------------------------------------------------------------------------
# Fused kernel: conv1 + IN + ReLU -> (in-VMEM reflect pad of y1) ->
#               conv2 + IN + residual + ReLU
# ----------------------------------------------------------------------------
def _resconv_kernel(x_ref, w1_ref, w2_ref, g1_ref, b1_ref, g2_ref, b2_ref,
                    o_ref, plane_ref, lhs_ref, *, H, W, K, Wp, Cp):
    p = K // 2
    Hp = H + 2 * p
    HpWp = Hp * Wp
    M = (H - 1) * Wp + W            # rows of the flattened padded-stride output
    base = p * Wp + p               # flat offset of pixel (0, 0) in the plane
    inv_cnt = 1.0 / float(H * W)
    cdt = plane_ref.dtype           # MXU operand dtype (bf16 by default)

    # column (within the padded-stride row) of every output row; stride-pad
    # columns (col >= W) carry garbage and are excluded from the IN statistics.
    col = lax.broadcasted_iota(jnp.int32, (M, 1), 0) % Wp
    valid = col < W

    def build_lhs(src_ref):
        # lhs[r, kj*Cp:(kj+1)*Cp] = plane[r + kj]  (horizontally unrolled taps)
        for kj in range(K):
            n = HpWp - kj
            lhs_ref[0:n, kj * Cp:(kj + 1) * Cp] = src_ref[kj:HpWp, :].astype(cdt)

    def conv(w_ref):
        # K matmuls with contraction K*Cp (fills a 256-wide MXU), f32 accum.
        acc = None
        for ki in range(K):
            s = ki * Wp
            y = jnp.dot(lhs_ref[s:s + M, :], w_ref[ki],
                        preferred_element_type=jnp.float32)
            acc = y if acc is None else acc + y
        return acc                                       # (M, Cp) f32

    def inorm(acc, g_ref, b_ref):
        # one-pass masked stats; where() (not multiply) so garbage rows can
        # never poison the sums even if they were non-finite.
        am = jnp.where(valid, acc, 0.0)
        mean = jnp.sum(am, axis=0, keepdims=True) * inv_cnt
        ex2 = jnp.sum(am * am, axis=0, keepdims=True) * inv_cnt
        var = jnp.maximum(ex2 - mean * mean, 0.0)
        scale = g_ref[...] * lax.rsqrt(var + EPS)
        shift = b_ref[...] - mean * scale
        return acc * scale + shift

    # ---- block 1: conv1 + InstanceNorm + ReLU -------------------------------
    build_lhs(x_ref)
    y1 = jnp.maximum(inorm(conv(w1_ref), g1_ref, b1_ref), 0.0)

    # ---- fold y1's reflected left/right halos into its stride-pad columns ---
    #   right halo of row i   (col W + t)      <- y1[m - 2*(t+1)]
    #   left  halo of row i+1 (col Wp - p + t) <- y1[m + 2*(p-t)]
    y1h = y1
    for t in range(p):
        y1h = jnp.where(col == W + t,
                        pltpu.roll(y1, 2 * (t + 1), axis=0), y1h)
        y1h = jnp.where(col == Wp - p + t,
                        pltpu.roll(y1, M - 2 * (p - t), axis=0), y1h)
    y1c = y1h.astype(cdt)

    # ---- write y1's reflection-padded plane into VMEM -----------------------
    plane_ref[base:base + M, :] = y1c                     # interior + halos
    for u in range(p):                                    # left halo, first row
        plane_ref[p * Wp + u:p * Wp + u + 1, :] = y1c[p - u:p - u + 1, :]
    for t in range(p):                                    # right halo, last row
        d = (p + H - 1) * Wp + p + W + t
        plane_ref[d:d + 1, :] = y1c[M - 2 - t:M - 1 - t, :]
    if Wp > W + 2 * p:                                    # keep stride-pad tail finite
        d = (p + H - 1) * Wp + W + 2 * p
        plane_ref[d:(p + H) * Wp, :] = jnp.zeros(((p + H) * Wp - d, Cp), cdt)
    for r in range(p):                                    # top reflected rows
        s = (2 * p - r) * Wp
        plane_ref[r * Wp:(r + 1) * Wp, :] = plane_ref[s:s + Wp, :]
    for t in range(p):                                    # bottom reflected rows
        dst = (H + p + t) * Wp
        s = (H + p - 2 - t) * Wp
        plane_ref[dst:dst + Wp, :] = plane_ref[s:s + Wp, :]

    # ---- block 2: conv2 + InstanceNorm + residual + ReLU --------------------
    build_lhs(plane_ref)
    y2 = inorm(conv(w2_ref), g2_ref, b2_ref)
    y2 = y2 + x_ref[base:base + M, :]                     # exact f32 skip
    o_ref[...] = jnp.maximum(y2, 0.0).astype(o_ref.dtype)


# ----------------------------------------------------------------------------
# Wrapper (layout plumbing only; all compute happens in the kernel)
# ----------------------------------------------------------------------------
def resconv_pallas(x_nchw, params, K, *, compute_dtype=jnp.bfloat16):
    """x_nchw: (N, C, H, W) f32 -> (N, C, H, W) f32.

    NOTE: conv biases params["b1"]/["b2"] are intentionally ignored - a
    per-channel constant added before InstanceNorm is exactly cancelled by its
    mean subtraction.
    """
    N, C, H, W = x_nchw.shape
    Cout = params["w1"].shape[0]
    assert Cout == C, "residual add requires in_dim == out_dim"
    p = K // 2
    Cp = _round_up(C, LANES)            # lane-dense channel axis
    Wp = _round_up(W + 2 * p, 8)        # sublane-aligned padded row stride
    Hp = H + 2 * p
    M = (H - 1) * Wp + W

    # Reflection-pad + channel / stride zero-pad in the wrapper (NHWC, flat).
    x_nhwc = jnp.transpose(x_nchw, (0, 2, 3, 1)).astype(jnp.float32)
    xp = jnp.pad(x_nhwc, ((0, 0), (p, p), (p, p), (0, 0)), mode="reflect")
    xp = jnp.pad(xp, ((0, 0), (0, 0), (0, Wp - (W + 2 * p)), (0, Cp - C)))
    xf = xp.reshape(N, Hp * Wp, Cp)

    def as_rows(w):  # (Cout, Cin, K, K) -> (K, K*Cp, Cp), channel zero-padded
        wt = jnp.transpose(w, (2, 3, 1, 0))                  # (K, K, Cin, Cout)
        wt = jnp.pad(wt, ((0, 0), (0, 0), (0, Cp - C), (0, Cp - Cout)))
        return wt.reshape(K, K * Cp, Cp).astype(compute_dtype)

    def as_vec(v):
        return jnp.pad(v.astype(jnp.float32), (0, Cp - Cout)).reshape(1, Cp)

    w1, w2 = as_rows(params["w1"]), as_rows(params["w2"])
    g1, b1 = as_vec(params["g1"]), as_vec(params["be1"])
    g2, b2 = as_vec(params["g2"]), as_vec(params["be2"])

    kernel = functools.partial(_resconv_kernel, H=H, W=W, K=K, Wp=Wp, Cp=Cp)

    grid_spec = pltpu.PrefetchScalarGridSpec(
        num_scalar_prefetch=0,
        grid=(N,),   # >= 2 steps so v7x megacore can split across TensorCores
        in_specs=[
            pl.BlockSpec((None, Hp * Wp, Cp), lambda n: (n, 0, 0)),  # padded x
            pl.BlockSpec((K, K * Cp, Cp), lambda n: (0, 0, 0)),      # w1 rows
            pl.BlockSpec((K, K * Cp, Cp), lambda n: (0, 0, 0)),      # w2 rows
            pl.BlockSpec((1, Cp), lambda n: (0, 0)),                 # g1
            pl.BlockSpec((1, Cp), lambda n: (0, 0)),                 # b1
            pl.BlockSpec((1, Cp), lambda n: (0, 0)),                 # g2
            pl.BlockSpec((1, Cp), lambda n: (0, 0)),                 # b2
        ],
        out_specs=pl.BlockSpec((None, M, Cp), lambda n: (n, 0, 0)),
        scratch_shapes=[
            pltpu.VMEM((Hp * Wp, Cp), compute_dtype),       # y1 padded plane
            pltpu.VMEM((Hp * Wp, K * Cp), compute_dtype),   # unrolled-tap LHS
        ],
    )

    # generation-aware VMEM limit (128 MiB on v5e/v6e, 64 MiB on v7x)
    vmem_cap = 128 * 1024 * 1024
    try:
        vmem_cap = int(getattr(pltpu.get_tpu_info(), "vmem_capacity_bytes",
                               vmem_cap))
    except Exception:
        pass
    vmem_limit = max(32 * 1024 * 1024,
                     min(int(0.9 * vmem_cap), 127 * 1024 * 1024))

    itemsize = jnp.dtype(compute_dtype).itemsize
    flops = 4 * N * M * K * K * Cp * Cp           # two convs
    bytes_accessed = (N * Hp * Wp * Cp * 4        # input (f32)
                      + N * M * Cp * 4            # output (f32)
                      + 2 * K * K * Cp * Cp * itemsize
                      + 4 * Cp * 4)

    out = pl.pallas_call(
        kernel,
        out_shape=jax.ShapeDtypeStruct((N, M, Cp), jnp.float32),
        grid_spec=grid_spec,
        compiler_params=pltpu.CompilerParams(
            dimension_semantics=("parallel",),
            vmem_limit_bytes=int(vmem_limit)),
        cost_estimate=pl.CostEstimate(flops=flops,
                                      transcendentals=2 * N * Cp,
                                      bytes_accessed=bytes_accessed),
    )(xf, w1, w2, g1, b1, g2, b2)

    # un-flatten: drop the stride-pad columns and channel padding, back to NCHW.
    # (The NCHW interface forces an XLA transpose pass anyway, so the pad/slice
    #  fuses into it; the kernel keeps a fully lane/sublane-dense writeback.)
    out = jnp.pad(out, ((0, 0), (0, Wp - W), (0, 0)))
    out = out.reshape(N, H, Wp, Cp)[:, :, :W, :C]
    return jnp.transpose(out, (0, 3, 1, 2))


# ----------------------------------------------------------------------------
# Pure-JAX reference (matches the PyTorch module, including conv bias)
# ----------------------------------------------------------------------------
def resconv_ref(x, params, K):
    pad = K // 2

    def conv(z, w, b):
        zp = jnp.pad(z, ((0, 0), (0, 0), (pad, pad), (pad, pad)), mode="reflect")
        y = lax.conv_general_dilated(zp, w, (1, 1), "VALID",
                                     dimension_numbers=("NCHW", "OIHW", "NCHW"))
        return y + b[None, :, None, None]

    def inorm(z, g, be):
        mean = jnp.mean(z, axis=(2, 3), keepdims=True)
        var = jnp.mean((z - mean) ** 2, axis=(2, 3), keepdims=True)
        zn = (z - mean) * lax.rsqrt(var + EPS)
        return zn * g[None, :, None, None] + be[None, :, None, None]

    out = jnp.maximum(inorm(conv(x, params["w1"], params["b1"]),
                            params["g1"], params["be1"]), 0.0)
    out = inorm(conv(out, params["w2"], params["b2"]),
                params["g2"], params["be2"])
    out = out + x
    return jnp.maximum(out, 0.0)


# ----------------------------------------------------------------------------
if __name__ == "__main__":
    N, C, H, W = 2, 4, 16, 16
    K = 3

    key = jax.random.PRNGKey(0)
    k1, k2, k3, k4, k5, k6, k7, k8, kx = jax.random.split(key, 9)
    params = {
        "w1": jax.random.normal(k1, (C, C, K, K), jnp.float32) * 0.1,
        "b1": jax.random.normal(k2, (C,), jnp.float32) * 0.1,   # reference only
        "g1": 1.0 + 0.1 * jax.random.normal(k3, (C,), jnp.float32),
        "be1": 0.1 * jax.random.normal(k4, (C,), jnp.float32),
        "w2": jax.random.normal(k5, (C, C, K, K), jnp.float32) * 0.1,
        "b2": jax.random.normal(k6, (C,), jnp.float32) * 0.1,   # reference only
        "g2": 1.0 + 0.1 * jax.random.normal(k7, (C,), jnp.float32),
        "be2": 0.1 * jax.random.normal(k8, (C,), jnp.float32),
    }
    x = jax.random.normal(kx, (N, C, H, W), jnp.float32)

    ref = jax.block_until_ready(resconv_ref(x, params, K))

    # exactness check: f32 compute path must match the reference tightly
    out_f32 = jax.block_until_ready(
        resconv_pallas(x, params, K, compute_dtype=jnp.float32))
    assert out_f32.shape == (N, C, H, W)
    err_f32 = float(jnp.max(jnp.abs(out_f32 - ref)))
    assert err_f32 < 1e-3, err_f32

    # default fast path: bf16 MXU operands, f32 accumulation / norm / residual
    out_bf16 = jax.block_until_ready(resconv_pallas(x, params, K))
    err_bf16 = float(jnp.max(jnp.abs(out_bf16 - ref)))
    assert err_bf16 < 1e-1, err_bf16

    print("KERNEL_OK")
</pallas_src>

<mosaic_0001>
module attributes {stable_mosaic.version = 11 : i64} {
  func.func @_resconv_kernel(%arg0: i32, %arg1: memref<1x432x128xf32, #tpu.memory_space<vmem>>, %arg2: memref<3x384x128xf32, #tpu.memory_space<vmem>>, %arg3: memref<3x384x128xf32, #tpu.memory_space<vmem>>, %arg4: memref<1x128xf32, #tpu.memory_space<vmem>>, %arg5: memref<1x128xf32, #tpu.memory_space<vmem>>, %arg6: memref<1x128xf32, #tpu.memory_space<vmem>>, %arg7: memref<1x128xf32, #tpu.memory_space<vmem>>, %arg8: memref<1x376x128xf32, #tpu.memory_space<vmem>>, %arg9: memref<432x128xf32, #tpu.memory_space<vmem>>, %arg10: memref<432x384xf32, #tpu.memory_space<vmem>>) attributes {dimension_semantics = [#tpu.dimension_semantics<parallel>], iteration_bounds = array<i64: 2>, scalar_prefetch = 0 : i64, scratch_operands = 2 : i64, tpu.core_type = #tpu.core_type<tc>, window_params = [{transform_indices = @transform_0, window_bounds = array<i64: 1, 432, 128>}, {pipeline_mode = #tpu.pipeline_mode<synchronous>, transform_indices = @transform_1, window_bounds = array<i64: 3, 384, 128>}, {pipeline_mode = #tpu.pipeline_mode<synchronous>, transform_indices = @transform_2, window_bounds = array<i64: 3, 384, 128>}, {pipeline_mode = #tpu.pipeline_mode<synchronous>, transform_indices = @transform_3, window_bounds = array<i64: 1, 128>}, {pipeline_mode = #tpu.pipeline_mode<synchronous>, transform_indices = @transform_4, window_bounds = array<i64: 1, 128>}, {pipeline_mode = #tpu.pipeline_mode<synchronous>, transform_indices = @transform_5, window_bounds = array<i64: 1, 128>}, {pipeline_mode = #tpu.pipeline_mode<synchronous>, transform_indices = @transform_6, window_bounds = array<i64: 1, 128>}, {transform_indices = @transform_7, window_bounds = array<i64: 1, 376, 128>}]} {
    %0 = tpu.iota {dimensions = array<i32: 0>} : vector<376x1xi32>
    %c24_i32 = arith.constant 24 : i32
    %c0_i32 = arith.constant 0 : i32
    %1 = arith.cmpi eq, %c24_i32, %c0_i32 : i32
    %c1_i32 = arith.constant 1 : i32
    %2 = arith.select %1, %c1_i32, %c24_i32 : i32
    %3 = vector.broadcast %2 : i32 to vector<376x1xi32>
    %4 = arith.remsi %0, %3 : vector<376x1xi32>
    %c0_i32_0 = arith.constant 0 : i32
    %5 = vector.broadcast %c0_i32_0 : i32 to vector<376x1xi32>
    %6 = arith.cmpi ne, %4, %5 : vector<376x1xi32>
    %c0_i32_1 = arith.constant 0 : i32
    %7 = vector.broadcast %c0_i32_1 : i32 to vector<376x1xi32>
    %8 = arith.cmpi slt, %4, %7 : vector<376x1xi32>
    %c0_i32_2 = arith.constant 0 : i32
    %9 = arith.cmpi slt, %2, %c0_i32_2 : i32
    %10 = vector.broadcast %9 : i1 to vector<376x1xi1>
    %11 = vector.broadcast %10 : vector<376x1xi1> to vector<376x1xi1>
    %12 = arith.xori %8, %11 : vector<376x1xi1>
    %13 = arith.andi %12, %6 : vector<376x1xi1>
    %14 = vector.broadcast %2 : i32 to vector<376x1xi32>
    %15 = arith.addi %4, %14 : vector<376x1xi32>
    %16 = arith.select %13, %15, %4 : vector<376x1xi1>, vector<376x1xi32>
    %c16_i32 = arith.constant 16 : i32
    %17 = vector.broadcast %c16_i32 : i32 to vector<376x1xi32>
    %18 = arith.cmpi slt, %16, %17 : vector<376x1xi32>
    %c0 = arith.constant 0 : index
    %c0_3 = arith.constant 0 : index
    %c0_4 = arith.constant 0 : index
    %19 = vector.load %arg1[%c0, %c0_3, %c0_4] : memref<1x432x128xf32, #tpu.memory_space<vmem>>, vector<1x432x128xf32>
    %20 = vector.shape_cast %19 : vector<1x432x128xf32> to vector<432x128xf32>
    %c0_5 = arith.constant 0 : index
    %c0_6 = arith.constant 0 : index
    %21 = vector.load %arg10[%c0_5, %c0_6] : memref<432x384xf32, #tpu.memory_space<vmem>>, vector<432x128xf32>
    tpu.vector_store %arg10[%c0_5, %c0_6], %20 {strides = array<i32>} : memref<432x384xf32, #tpu.memory_space<vmem>>, vector<432x128xf32>,
    %c0_7 = arith.constant 0 : index
    %c1 = arith.constant 1 : index
    %c0_8 = arith.constant 0 : index
    %22 = vector.load %arg1[%c0_7, %c1, %c0_8] : memref<1x432x128xf32, #tpu.memory_space<vmem>>, vector<1x431x128xf32>
    %23 = vector.shape_cast %22 : vector<1x431x128xf32> to vector<431x128xf32>
    %c0_9 = arith.constant 0 : index
    %c128 = arith.constant 128 : index
    %24 = vector.load %arg10[%c0_9, %c128] : memref<432x384xf32, #tpu.memory_space<vmem>>, vector<431x128xf32>
    tpu.vector_store %arg10[%c0_9, %c128], %23 {strides = array<i32>} : memref<432x384xf32, #tpu.memory_space<vmem>>, vector<431x128xf32>,
    %c0_10 = arith.constant 0 : index
    %c2 = arith.constant 2 : index
    %c0_11 = arith.constant 0 : index
    %25 = vector.load %arg1[%c0_10, %c2, %c0_11] : memref<1x432x128xf32, #tpu.memory_space<vmem>>, vector<1x430x128xf32>
    %26 = vector.shape_cast %25 : vector<1x430x128xf32> to vector<430x128xf32>
    %c0_12 = arith.constant 0 : index
    %c256 = arith.constant 256 : index
    %27 = vector.load %arg10[%c0_12, %c256] : memref<432x384xf32, #tpu.memory_space<vmem>>, vector<430x128xf32>
    tpu.vector_store %arg10[%c0_12, %c256], %26 {strides = array<i32>} : memref<432x384xf32, #tpu.memory_space<vmem>>, vector<430x128xf32>,
    %c0_13 = arith.constant 0 : index
    %c0_14 = arith.constant 0 : index
    %28 = vector.load %arg10[%c0_13, %c0_14] : memref<432x384xf32, #tpu.memory_space<vmem>>, vector<376x384xf32>
    %c0_15 = arith.constant 0 : index
    %c0_16 = arith.constant 0 : index
    %c0_17 = arith.constant 0 : index
    %29 = vector.load %arg2[%c0_15, %c0_16, %c0_17] : memref<3x384x128xf32, #tpu.memory_space<vmem>>, vector<1x384x128xf32>
    %30 = vector.shape_cast %29 : vector<1x384x128xf32> to vector<384x128xf32>
    %cst = arith.constant dense<0.000000e+00> : vector<376x128xf32>
    %31 = tpu.matmul %28, %30, %cst {dimension_numbers = #tpu.dot_dimension_numbers<[1], [0], [0], [1], [0, 0, 1, 1], [], []>} : vector<376x384xf32>, vector<384x128xf32>, vector<376x128xf32> -> vector<376x128xf32>
    %c24 = arith.constant 24 : index
    %c0_18 = arith.constant 0 : index
    %32 = vector.load %arg10[%c24, %c0_18] : memref<432x384xf32, #tpu.memory_space<vmem>>, vector<376x384xf32>
    %c1_19 = arith.constant 1 : index
    %c0_20 = arith.constant 0 : index
    %c0_21 = arith.constant 0 : index
    %33 = vector.load %arg2[%c1_19, %c0_20, %c0_21] : memref<3x384x128xf32, #tpu.memory_space<vmem>>, vector<1x384x128xf32>
    %34 = vector.shape_cast %33 : vector<1x384x128xf32> to vector<384x128xf32>
    %cst_22 = arith.constant dense<0.000000e+00> : vector<376x128xf32>
    %35 = tpu.matmul %32, %34, %cst_22 {dimension_numbers = #tpu.dot_dimension_numbers<[1], [0], [0], [1], [0, 0, 1, 1], [], []>} : vector<376x384xf32>, vector<384x128xf32>, vector<376x128xf32> -> vector<376x128xf32>
    %36 = arith.addf %31, %35 : vector<376x128xf32>
    %c48 = arith.constant 48 : index
    %c0_23 = arith.constant 0 : index
    %37 = vector.load %arg10[%c48, %c0_23] : memref<432x384xf32, #tpu.memory_space<vmem>>, vector<376x384xf32>
    %c2_24 = arith.constant 2 : index
    %c0_25 = arith.constant 0 : index
    %c0_26 = arith.constant 0 : index
    %38 = vector.load %arg2[%c2_24, %c0_25, %c0_26] : memref<3x384x128xf32, #tpu.memory_space<vmem>>, vector<1x384x128xf32>
    %39 = vector.shape_cast %38 : vector<1x384x128xf32> to vector<384x128xf32>
    %cst_27 = arith.constant dense<0.000000e+00> : vector<376x128xf32>
    %40 = tpu.matmul %37, %39, %cst_27 {dimension_numbers = #tpu.dot_dimension_numbers<[1], [0], [0], [1], [0, 0, 1, 1], [], []>} : vector<376x384xf32>, vector<384x128xf32>, vector<376x128xf32> -> vector<376x128xf32>
    %41 = arith.addf %36, %40 : vector<376x128xf32>
    %cst_28 = arith.constant 0.000000e+00 : f32
    %42 = vector.shape_cast %18 : vector<376x1xi1> to vector<376x1xi1>
    %43 = vector.broadcast %42 : vector<376x1xi1> to vector<376x128xi1>
    %44 = vector.broadcast %cst_28 : f32 to vector<376x128xf32>
    %45 = arith.select %43, %41, %44 : vector<376x128xi1>, vector<376x128xf32>
    %cst_29 = arith.constant dense<0.000000e+00> : vector<128xf32>
    %46 = vector.multi_reduction <add>, %45, %cst_29 [0] : vector<376x128xf32> to vector<128xf32>
    %47 = vector.shape_cast %46 : vector<128xf32> to vector<1x128xf32>
    %cst_30 = arith.constant 3.906250e-03 : f32
    %48 = vector.broadcast %cst_30 : f32 to vector<1x128xf32>
    %49 = arith.mulf %47, %48 : vector<1x128xf32>
    %50 = arith.mulf %45, %45 : vector<376x128xf32>
    %cst_31 = arith.constant dense<0.000000e+00> : vector<128xf32>
    %51 = vector.multi_reduction <add>, %50, %cst_31 [0] : vector<376x128xf32> to vector<128xf32>
    %52 = vector.shape_cast %51 : vector<128xf32> to vector<1x128xf32>
    %cst_32 = arith.constant 3.906250e-03 : f32
    %53 = vector.broadcast %cst_32 : f32 to vector<1x128xf32>
    %54 = arith.mulf %52, %53 : vector<1x128xf32>
    %55 = arith.mulf %49, %49 : vector<1x128xf32>
    %56 = arith.subf %54, %55 : vector<1x128xf32>
    %cst_33 = arith.constant 0.000000e+00 : f32
    %57 = vector.broadcast %cst_33 : f32 to vector<1x128xf32>
    %58 = arith.maximumf %56, %57 : vector<1x128xf32>
    %c0_34 = arith.constant 0 : index
    %c0_35 = arith.constant 0 : index
    %59 = vector.load %arg4[%c0_34, %c0_35] : memref<1x128xf32, #tpu.memory_space<vmem>>, vector<1x128xf32>
    %cst_36 = arith.constant 9.99999974E-6 : f32
    %60 = vector.broadcast %cst_36 : f32 to vector<1x128xf32>
    %61 = arith.addf %58, %60 : vector<1x128xf32>
    %62 = math.rsqrt %61 : vector<1x128xf32>
    %63 = arith.mulf %59, %62 : vector<1x128xf32>
    %c0_37 = arith.constant 0 : index
    %c0_38 = arith.constant 0 : index
    %64 = vector.load %arg5[%c0_37, %c0_38] : memref<1x128xf32, #tpu.memory_space<vmem>>, vector<1x128xf32>
    %65 = arith.mulf %49, %63 : vector<1x128xf32>
    %66 = arith.subf %64, %65 : vector<1x128xf32>
    %67 = vector.broadcast %63 : vector<1x128xf32> to vector<376x128xf32>
    %68 = arith.mulf %41, %67 : vector<376x128xf32>
    %69 = vector.broadcast %66 : vector<1x128xf32> to vector<376x128xf32>
    %70 = arith.addf %68, %69 : vector<376x128xf32>
    %cst_39 = arith.constant 0.000000e+00 : f32
    %71 = vector.broadcast %cst_39 : f32 to vector<376x128xf32>
    %72 = arith.maximumf %70, %71 : vector<376x128xf32>
    %c16_i32_40 = arith.constant 16 : i32
    %73 = vector.broadcast %c16_i32_40 : i32 to vector<376x1xi32>
    %74 = arith.cmpi eq, %16, %73 : vector<376x1xi32>
    %c2_i32 = arith.constant 2 : i32
    %75 = tpu.dynamic_rotate %72 by %c2_i32 dim 0 : vector<376x128xf32>, i32 -> vector<376x128xf32>
    %76 = vector.shape_cast %74 : vector<376x1xi1> to vector<376x1xi1>
    %77 = vector.broadcast %76 : vector<376x1xi1> to vector<376x128xi1>
    %78 = arith.select %77, %75, %72 : vector<376x128xi1>, vector<376x128xf32>
    %c23_i32 = arith.constant 23 : i32
    %79 = vector.broadcast %c23_i32 : i32 to vector<376x1xi32>
    %80 = arith.cmpi eq, %16, %79 : vector<376x1xi32>
    %c374_i32 = arith.constant 374 : i32
    %81 = tpu.dynamic_rotate %72 by %c374_i32 dim 0 : vector<376x128xf32>, i32 -> vector<376x128xf32>
    %82 = vector.shape_cast %80 : vector<376x1xi1> to vector<376x1xi1>
    %83 = vector.broadcast %82 : vector<376x1xi1> to vector<376x128xi1>
    %84 = arith.select %83, %81, %78 : vector<376x128xi1>, vector<376x128xf32>
    %c25 = arith.constant 25 : index
    %c0_41 = arith.constant 0 : index
    %85 = vector.load %arg9[%c25, %c0_41] : memref<432x128xf32, #tpu.memory_space<vmem>>, vector<376x128xf32>
    tpu.vector_store %arg9[%c25, %c0_41], %84 {strides = array<i32>} : memref<432x128xf32, #tpu.memory_space<vmem>>, vector<376x128xf32>,
    %86 = vector.extract_strided_slice %84 {offsets = [1, 0], sizes = [1, 128], strides = [1, 1]} : vector<376x128xf32> to vector<1x128xf32>
    %c24_42 = arith.constant 24 : index
    %c0_43 = arith.constant 0 : index
    %87 = vector.load %arg9[%c24_42, %c0_43] : memref<432x128xf32, #tpu.memory_space<vmem>>, vector<1x128xf32>
    tpu.vector_store %arg9[%c24_42, %c0_43], %86 {strides = array<i32>} : memref<432x128xf32, #tpu.memory_space<vmem>>, vector<1x128xf32>,
    %88 = vector.extract_strided_slice %84 {offsets = [374, 0], sizes = [1, 128], strides = [1, 1]} : vector<376x128xf32> to vector<1x128xf32>
    %c401 = arith.constant 401 : index
    %c0_44 = arith.constant 0 : index
    %89 = vector.load %arg9[%c401, %c0_44] : memref<432x128xf32, #tpu.memory_space<vmem>>, vector<1x128xf32>
    tpu.vector_store %arg9[%c401, %c0_44], %88 {strides = array<i32>} : memref<432x128xf32, #tpu.memory_space<vmem>>, vector<1x128xf32>,
    %cst_45 = arith.constant 0.000000e+00 : f32
    %90 = vector.broadcast %cst_45 : f32 to vector<6x128xf32>
    %c402 = arith.constant 402 : index
    %c0_46 = arith.constant 0 : index
    %91 = vector.load %arg9[%c402, %c0_46] : memref<432x128xf32, #tpu.memory_space<vmem>>, vector<6x128xf32>
    tpu.vector_store %arg9[%c402, %c0_46], %90 {strides = array<i32>} : memref<432x128xf32, #tpu.memory_space<vmem>>, vector<6x128xf32>,
    %c48_47 = arith.constant 48 : index
    %c0_48 = arith.constant 0 : index
    %92 = vector.load %arg9[%c48_47, %c0_48] : memref<432x128xf32, #tpu.memory_space<vmem>>, vector<24x128xf32>
    %c0_49 = arith.constant 0 : index
    %c0_50 = arith.constant 0 : index
    %93 = vector.load %arg9[%c0_49, %c0_50] : memref<432x128xf32, #tpu.memory_space<vmem>>, vector<24x128xf32>
    tpu.vector_store %arg9[%c0_49, %c0_50], %92 {strides = array<i32>} : memref<432x128xf32, #tpu.memory_space<vmem>>, vector<24x128xf32>,
    %c360 = arith.constant 360 : index
    %c0_51 = arith.constant 0 : index
    %94 = vector.load %arg9[%c360, %c0_51] : memref<432x128xf32, #tpu.memory_space<vmem>>, vector<24x128xf32>
    %c408 = arith.constant 408 : index
    %c0_52 = arith.constant 0 : index
    %95 = vector.load %arg9[%c408, %c0_52] : memref<432x128xf32, #tpu.memory_space<vmem>>, vector<24x128xf32>
    tpu.vector_store %arg9[%c408, %c0_52], %94 {strides = array<i32>} : memref<432x128xf32, #tpu.memory_space<vmem>>, vector<24x128xf32>,
    %c0_53 = arith.constant 0 : index
    %c0_54 = arith.constant 0 : index
    %96 = vector.load %arg9[%c0_53, %c0_54] : memref<432x128xf32, #tpu.memory_space<vmem>>, vector<432x128xf32>
    %c0_55 = arith.constant 0 : index
    %c0_56 = arith.constant 0 : index
    %97 = vector.load %arg10[%c0_55, %c0_56] : memref<432x384xf32, #tpu.memory_space<vmem>>, vector<432x128xf32>
    tpu.vector_store %arg10[%c0_55, %c0_56], %96 {strides = array<i32>} : memref<432x384xf32, #tpu.memory_space<vmem>>, vector<432x128xf32>,
    %c1_57 = arith.constant 1 : index
    %c0_58 = arith.constant 0 : index
    %98 = vector.load %arg9[%c1_57, %c0_58] : memref<432x128xf32, #tpu.memory_space<vmem>>, vector<431x128xf32>
    %c0_59 = arith.constant 0 : index
    %c128_60 = arith.constant 128 : index
    %99 = vector.load %arg10[%c0_59, %c128_60] : memref<432x384xf32, #tpu.memory_space<vmem>>, vector<431x128xf32>
    tpu.vector_store %arg10[%c0_59, %c128_60], %98 {strides = array<i32>} : memref<432x384xf32, #tpu.memory_space<vmem>>, vector<431x128xf32>,
    %c2_61 = arith.constant 2 : index
    %c0_62 = arith.constant 0 : index
    %100 = vector.load %arg9[%c2_61, %c0_62] : memref<432x128xf32, #tpu.memory_space<vmem>>, vector<430x128xf32>
    %c0_63 = arith.constant 0 : index
    %c256_64 = arith.constant 256 : index
    %101 = vector.load %arg10[%c0_63, %c256_64] : memref<432x384xf32, #tpu.memory_space<vmem>>, vector<430x128xf32>
    tpu.vector_store %arg10[%c0_63, %c256_64], %100 {strides = array<i32>} : memref<432x384xf32, #tpu.memory_space<vmem>>, vector<430x128xf32>,
    %c0_65 = arith.constant 0 : index
    %c0_66 = arith.constant 0 : index
    %102 = vector.load %arg10[%c0_65, %c0_66] : memref<432x384xf32, #tpu.memory_space<vmem>>, vector<376x384xf32>
    %c0_67 = arith.constant 0 : index
    %c0_68 = arith.constant 0 : index
    %c0_69 = arith.constant 0 : index
    %103 = vector.load %arg3[%c0_67, %c0_68, %c0_69] : memref<3x384x128xf32, #tpu.memory_space<vmem>>, vector<1x384x128xf32>
    %104 = vector.shape_cast %103 : vector<1x384x128xf32> to vector<384x128xf32>
    %cst_70 = arith.constant dense<0.000000e+00> : vector<376x128xf32>
    %105 = tpu.matmul %102, %104, %cst_70 {dimension_numbers = #tpu.dot_dimension_numbers<[1], [0], [0], [1], [0, 0, 1, 1], [], []>} : vector<376x384xf32>, vector<384x128xf32>, vector<376x128xf32> -> vector<376x128xf32>
    %c24_71 = arith.constant 24 : index
    %c0_72 = arith.constant 0 : index
    %106 = vector.load %arg10[%c24_71, %c0_72] : memref<432x384xf32, #tpu.memory_space<vmem>>, vector<376x384xf32>
    %c1_73 = arith.constant 1 : index
    %c0_74 = arith.constant 0 : index
    %c0_75 = arith.constant 0 : index
    %107 = vector.load %arg3[%c1_73, %c0_74, %c0_75] : memref<3x384x128xf32, #tpu.memory_space<vmem>>, vector<1x384x128xf32>
    %108 = vector.shape_cast %107 : vector<1x384x128xf32> to vector<384x128xf32>
    %cst_76 = arith.constant dense<0.000000e+00> : vector<376x128xf32>
    %109 = tpu.matmul %106, %108, %cst_76 {dimension_numbers = #tpu.dot_dimension_numbers<[1], [0], [0], [1], [0, 0, 1, 1], [], []>} : vector<376x384xf32>, vector<384x128xf32>, vector<376x128xf32> -> vector<376x128xf32>
    %110 = arith.addf %105, %109 : vector<376x128xf32>
    %c48_77 = arith.constant 48 : index
    %c0_78 = arith.constant 0 : index
    %111 = vector.load %arg10[%c48_77, %c0_78] : memref<432x384xf32, #tpu.memory_space<vmem>>, vector<376x384xf32>
    %c2_79 = arith.constant 2 : index
    %c0_80 = arith.constant 0 : index
    %c0_81 = arith.constant 0 : index
    %112 = vector.load %arg3[%c2_79, %c0_80, %c0_81] : memref<3x384x128xf32, #tpu.memory_space<vmem>>, vector<1x384x128xf32>
    %113 = vector.shape_cast %112 : vector<1x384x128xf32> to vector<384x128xf32>
    %cst_82 = arith.constant dense<0.000000e+00> : vector<376x128xf32>
    %114 = tpu.matmul %111, %113, %cst_82 {dimension_numbers = #tpu.dot_dimension_numbers<[1], [0], [0], [1], [0, 0, 1, 1], [], []>} : vector<376x384xf32>, vector<384x128xf32>, vector<376x128xf32> -> vector<376x128xf32>
    %115 = arith.addf %110, %114 : vector<376x128xf32>
    %cst_83 = arith.constant 0.000000e+00 : f32
    %116 = vector.shape_cast %18 : vector<376x1xi1> to vector<376x1xi1>
    %117 = vector.broadcast %116 : vector<376x1xi1> to vector<376x128xi1>
    %118 = vector.broadcast %cst_83 : f32 to vector<376x128xf32>
    %119 = arith.select %117, %115, %118 : vector<376x128xi1>, vector<376x128xf32>
    %cst_84 = arith.constant dense<0.000000e+00> : vector<128xf32>
    %120 = vector.multi_reduction <add>, %119, %cst_84 [0] : vector<376x128xf32> to vector<128xf32>
    %121 = vector.shape_cast %120 : vector<128xf32> to vector<1x128xf32>
    %cst_85 = arith.constant 3.906250e-03 : f32
    %122 = vector.broadcast %cst_85 : f32 to vector<1x128xf32>
    %123 = arith.mulf %121, %122 : vector<1x128xf32>
    %124 = arith.mulf %119, %119 : vector<376x128xf32>
    %cst_86 = arith.constant dense<0.000000e+00> : vector<128xf32>
    %125 = vector.multi_reduction <add>, %124, %cst_86 [0] : vector<376x128xf32> to vector<128xf32>
    %126 = vector.shape_cast %125 : vector<128xf32> to vector<1x128xf32>
    %cst_87 = arith.constant 3.906250e-03 : f32
    %127 = vector.broadcast %cst_87 : f32 to vector<1x128xf32>
    %128 = arith.mulf %126, %127 : vector<1x128xf32>
    %129 = arith.mulf %123, %123 : vector<1x128xf32>
    %130 = arith.subf %128, %129 : vector<1x128xf32>
    %cst_88 = arith.constant 0.000000e+00 : f32
    %131 = vector.broadcast %cst_88 : f32 to vector<1x128xf32>
    %132 = arith.maximumf %130, %131 : vector<1x128xf32>
    %c0_89 = arith.constant 0 : index
    %c0_90 = arith.constant 0 : index
    %133 = vector.load %arg6[%c0_89, %c0_90] : memref<1x128xf32, #tpu.memory_space<vmem>>, vector<1x128xf32>
    %cst_91 = arith.constant 9.99999974E-6 : f32
    %134 = vector.broadcast %cst_91 : f32 to vector<1x128xf32>
    %135 = arith.addf %132, %134 : vector<1x128xf32>
    %136 = math.rsqrt %135 : vector<1x128xf32>
    %137 = arith.mulf %133, %136 : vector<1x128xf32>
    %c0_92 = arith.constant 0 : index
    %c0_93 = arith.constant 0 : index
    %138 = vector.load %arg7[%c0_92, %c0_93] : memref<1x128xf32, #tpu.memory_space<vmem>>, vector<1x128xf32>
    %139 = arith.mulf %123, %137 : vector<1x128xf32>
    %140 = arith.subf %138, %139 : vector<1x128xf32>
    %141 = vector.broadcast %137 : vector<1x128xf32> to vector<376x128xf32>
    %142 = arith.mulf %115, %141 : vector<376x128xf32>
    %143 = vector.broadcast %140 : vector<1x128xf32> to vector<376x128xf32>
    %144 = arith.addf %142, %143 : vector<376x128xf32>
    %c0_94 = arith.constant 0 : index
    %c25_95 = arith.constant 25 : index
    %c0_96 = arith.constant 0 : index
    %145 = vector.load %arg1[%c0_94, %c25_95, %c0_96] : memref<1x432x128xf32, #tpu.memory_space<vmem>>, vector<1x376x128xf32>
    %146 = vector.shape_cast %145 : vector<1x376x128xf32> to vector<376x128xf32>
    %147 = arith.addf %144, %146 : vector<376x128xf32>
    %cst_97 = arith.constant 0.000000e+00 : f32
    %148 = vector.broadcast %cst_97 : f32 to vector<376x128xf32>
    %149 = arith.maximumf %147, %148 : vector<376x128xf32>
    %c0_98 = arith.constant 0 : index
    %c0_99 = arith.constant 0 : index
    %c0_100 = arith.constant 0 : index
    %150 = vector.load %arg8[%c0_98, %c0_99, %c0_100] : memref<1x376x128xf32, #tpu.memory_space<vmem>>, vector<1x376x128xf32>
    %151 = vector.shape_cast %150 : vector<1x376x128xf32> to vector<376x128xf32>
    %152 = vector.shape_cast %149 : vector<376x128xf32> to vector<1x376x128xf32>
    tpu.vector_store %arg8[%c0_98, %c0_99, %c0_100], %152 {strides = array<i32>} : memref<1x376x128xf32, #tpu.memory_space<vmem>>, vector<1x376x128xf32>,
    return
  }
  func.func @transform_0(%arg0: i32) -> (i32, i32, i32) {
    %c0_i32 = arith.constant 0 : i32
    %c0_i32_0 = arith.constant 0 : i32
    %c0_i32_1 = arith.constant 0 : i32
    return %arg0, %c0_i32, %c0_i32_0 : i32, i32, i32
  }
  func.func @transform_1(%arg0: i32) -> (i32, i32, i32) {
    %c0_i32 = arith.constant 0 : i32
    %c0_i32_0 = arith.constant 0 : i32
    %c0_i32_1 = arith.constant 0 : i32
    %c0_i32_2 = arith.constant 0 : i32
    return %c0_i32, %c0_i32_0, %c0_i32_1 : i32, i32, i32
  }
  func.func @transform_2(%arg0: i32) -> (i32, i32, i32) {
    %c0_i32 = arith.constant 0 : i32
    %c0_i32_0 = arith.constant 0 : i32
    %c0_i32_1 = arith.constant 0 : i32
    %c0_i32_2 = arith.constant 0 : i32
    return %c0_i32, %c0_i32_0, %c0_i32_1 : i32, i32, i32
  }
  func.func @transform_3(%arg0: i32) -> (i32, i32) {
    %c0_i32 = arith.constant 0 : i32
    %c0_i32_0 = arith.constant 0 : i32
    %c0_i32_1 = arith.constant 0 : i32
    return %c0_i32, %c0_i32_0 : i32, i32
  }
  func.func @transform_4(%arg0: i32) -> (i32, i32) {
    %c0_i32 = arith.constant 0 : i32
    %c0_i32_0 = arith.constant 0 : i32
    %c0_i32_1 = arith.constant 0 : i32
    return %c0_i32, %c0_i32_0 : i32, i32
  }
  func.func @transform_5(%arg0: i32) -> (i32, i32) {
    %c0_i32 = arith.constant 0 : i32
    %c0_i32_0 = arith.constant 0 : i32
    %c0_i32_1 = arith.constant 0 : i32
    return %c0_i32, %c0_i32_0 : i32, i32
  }
  func.func @transform_6(%arg0: i32) -> (i32, i32) {
    %c0_i32 = arith.constant 0 : i32
    %c0_i32_0 = arith.constant 0 : i32
    %c0_i32_1 = arith.constant 0 : i32
    return %c0_i32, %c0_i32_0 : i32, i32
  }
  func.func @transform_7(%arg0: i32) -> (i32, i32, i32) {
    %c0_i32 = arith.constant 0 : i32
    %c0_i32_0 = arith.constant 0 : i32
    %c0_i32_1 = arith.constant 0 : i32
    return %arg0, %c0_i32, %c0_i32_0 : i32, i32, i32
  }
}

</mosaic_0001>

<bundles_post_ra>
// kernel: tpu_custom_call.1
= control target key start
LH: loop header
LB: loop body
LE: loop exit
PB: predicated region body
PF: predicated region fallthrough
CT: control target
= control target key end

     0   :  { %s17267_s0 = inlined_call_operand.hbm [shape: f32[2,432,128], index: 0, kind: input, shape index: {}]   ;;  %s17268_s1 = inlined_call_operand.hbm [shape: f32[3,384,128], index: 1, kind: input, shape index: {}]   ;;  %s17269_s2 = inlined_call_operand.hbm [shape: f32[3,384,128], index: 2, kind: input, shape index: {}]   ;;  %s17270_s3 = inlined_call_operand.hbm [shape: f32[1,128], index: 3, kind: input, shape index: {}]   ;;  %s17271_s4 = inlined_call_operand.hbm [shape: f32[1,128], index: 4, kind: input, shape index: {}]   ;;  %s17272_s5 = inlined_call_operand.hbm [shape: f32[1,128], index: 5, kind: input, shape index: {}]   ;;  %s17273_s6 = inlined_call_operand.hbm [shape: f32[1,128], index: 6, kind: input, shape index: {}]   ;;  %s17274_s7 = inlined_call_operand.hbm [shape: f32[2,376,128], index: 7, kind: output, shape index: {}]  }
   0x1   :  { %17615 = sst [smem:[#allocation139_spill]] %s17268_s1 }
   0x2   :  { %12 = vsyncpa [#allocation5], 0 }
   0x3   :  { %14 = vsyncpa [#allocation5 + $0x1], 0 }
   0x4   :  { %15 = vsyncpa [#allocation8], 0 }
   0x5   :  { %16 = vsyncpa [#allocation11], 0 }
   0x6   :  { %17 = vsyncpa [#allocation14], 0 }
   0x7   :  { %18 = vsyncpa [#allocation6], 0 }
   0x8   :  { %20 = vsyncpa [#allocation6 + $0x1], 0  ;;  %s11775_s24 = smov 0   ;;  %s11777_s25 = smov 0  }
   0x9   :  { %s11779_s26 = smov 0   ;;  %s11781_s27 = smov 0  }
   0xa LB: > { %s11720_s28 = smov [#allocation7]   ;;  %s11796_s30 = sadd.s32 4294967295, %s11718_s27   ;;  %s11718_s27 = sphi %s11781_s27, %s18571_s27   ;;  %s11714_s26 = sphi %s11779_s26, %s18570_s26   ;;  %s11710_s25 = sphi %s11777_s25, %s18569_s25   ;;  %s11706_s24 = sphi %s11775_s24, %s18568_s24  }
   0xb   : > { %s221_s29 = sshll.u32 %s11720_s28, 4  ;;  %p8173_p0 = scmp.ge.s32.totalorder %s11718_s27, 1  ;;  %s11801_s29 = int_to_ptr.vmem [resolvable:$true] %s221_s29 }
   0xc   : > { %p17275_p1 = scmp.eq.s32.totalorder %s11796_s30, 0  ;;  %p209_p2 = scmp.lt.s32.totalorder %s11718_s27, 3 }
   0xd   : > { %s11721_s9 = smov [#allocation10]   ;;  %s11722_s12 = smov [#allocation13]  }
   0xe   : > { %p11803_p3 = pnand %p8173_p0, %p209_p2  ;;  %s248_s10 = sshll.u32 %s11721_s9, 4  ;;  %s11816_s10 = int_to_ptr.vmem [resolvable:$true] %s248_s10 }
   0xf   : > { %s270_s13 = sshll.u32 %s11722_s12, 4  ;;  %s17618_s1 = sld [smem:[#allocation139_spill]]  ;;  %s11818_s13 = int_to_ptr.vmem [resolvable:$true] %s270_s13 }
  0x10   : > { %s17616_s8 = scalar_select %p11803_p3, 1, 0 }
  0x11   : > { %p11107_p5 = pneg %p11803_p3 }
  0x13   : > { %p11812_p6 = pnand %p11107_p5, %p17275_p1 }
  0x15   : > { %s11442_s16 = scalar_lea.hbm %s17618_s1, 18432  ;;  %p11828_p8 = pneg %p11812_p6 }
  0x16   : > { %p11443_p7 = scmp.ne.s32.totalorder %s17618_s1, %s11442_s16  ;;  %p11449_p11 = scmp.lt.u32.totalorder %s11442_s16, %s17618_s1 }
  0x18   : > { %p11445_p9 = pnand %p11828_p8, %p11443_p7 }
  0x1a   : > { %p11446_p10 = pneg %p11445_p9 }
  0x1c   : > { %p11451_p12 = pnand %p11449_p11, %p11446_p10 }
  0x1e   : > { %11454 = shalt.err (!%p11451_p12)
}
  0x1f   : > { %s11455_s22 = scalar_lea.vmem %s11801_s29, 18432  ;;  %p11463_p5 = scmp.lt.s32.totalorder %s11801_s29, %s11801_s29 }
  0x20   : > { %p11456_p13 = scmp.ne.s32.totalorder %s11801_s29, %s11455_s22  ;;  %p11464_p4 = scmp.lt.s32.totalorder %s11455_s22, %s11455_s22 }
  0x22   : > { %p11458_p0 = pnand %p11456_p13, %p11828_p8  ;;  %p11465_p7 = por %p11464_p4, %p11463_p5 }
  0x24   : > { %p11459_p2 = pneg %p11458_p0 }
  0x26   : > { %p11466_p9 = pnand %p11465_p7, %p11459_p2 }
  0x28   : > { %11469 = shalt.err (!%p11466_p9)
}
  0x29   : > { %s17277_s23 = smov 128   ;;  %s17278_s28 = smov 8  }
  0x2a   : > { %11110 = dma.hbm_to_vmem [thread:$0]  (!%p11812_p6), %s17618_s1, 18432, %s11801_s29, [#allocation8], %s17277_s23, %s17277_s23, %s17278_s28  }
  0x2b   : > { %s11470_s16 = scalar_lea.hbm %s17270_s3, 16 }
  0x2c   : > { %p11471_p4 = scmp.ne.s32.totalorder %s17270_s3, %s11470_s16  ;;  %p11477_p12 = scmp.lt.u32.totalorder %s11470_s16, %s17270_s3 }
  0x2e   : > { %p11473_p10 = pnand %p11471_p4, %p11828_p8 }
  0x30   : > { %p11474_p11 = pneg %p11473_p10 }
  0x32   : > { %p11479_p13 = pnand %p11477_p12, %p11474_p11 }
  0x34   : > { %11482 = shalt.err (!%p11479_p13)
}
  0x35   : > { %s11483_s29 = scalar_lea.vmem %s11816_s10, 16  ;;  %s11490_s22 = scalar_lea.vmem %s11816_s10, 32 }
  0x36   : > { %p11484_p0 = scmp.ne.s32.totalorder %s11816_s10, %s11483_s29  ;;  %p11491_p7 = scmp.lt.s32.totalorder %s11816_s10, %s11816_s10 }
  0x37   : > { %p11492_p9 = scmp.lt.s32.totalorder %s11490_s22, %s11483_s29 }
  0x38   : > { %p11486_p2 = pnand %p11484_p0, %p11828_p8 }
  0x39   : > { %p11493_p4 = por %p11492_p9, %p11491_p7 }
  0x3a   : > { %p11487_p5 = pneg %p11486_p2 }
  0x3c   : > { %p11494_p10 = pnand %p11493_p4, %p11487_p5 }
  0x3e   : > { %11497 = shalt.err (!%p11494_p10)
}
  0x3f   : > { %11116 = dma.hbm_to_vmem [thread:$0]  (!%p11812_p6), %s17270_s3, 16, %s11816_s10, [#allocation11]  }
  0x40   : > { %s11498_s16 = scalar_lea.hbm %s17272_s5, 16 }
  0x41   : > { %p11499_p11 = scmp.ne.s32.totalorder %s17272_s5, %s11498_s16  ;;  %p11505_p0 = scmp.lt.u32.totalorder %s11498_s16, %s17272_s5 }
  0x43   : > { %p11501_p12 = pnand %p11499_p11, %p11828_p8 }
  0x45   : > { %p11502_p13 = pneg %p11501_p12 }
  0x47   : > { %p11507_p2 = pnand %p11505_p0, %p11502_p13 }
  0x49   : > { %11510 = shalt.err (!%p11507_p2)
}
  0x4a   : > { %s11511_s10 = scalar_lea.vmem %s11818_s13, 16  ;;  %s11518_s29 = scalar_lea.vmem %s11818_s13, 32 }
  0x4b   : > { %p11512_p5 = scmp.ne.s32.totalorder %s11818_s13, %s11511_s10  ;;  %p11519_p4 = scmp.lt.s32.totalorder %s11818_s13, %s11818_s13 }
  0x4c   : > { %p11520_p10 = scmp.lt.s32.totalorder %s11518_s29, %s11511_s10 }
  0x4d   : > { %p11514_p7 = pnand %p11512_p5, %p11828_p8 }
  0x4e   : > { %p11521_p11 = por %p11520_p10, %p11519_p4 }
  0x4f   : > { %p11515_p9 = pneg %p11514_p7 }
  0x51   : > { %p11522_p12 = pnand %p11521_p11, %p11515_p9 }
  0x53   : > { %11525 = shalt.err (!%p11522_p12)
}
  0x54   : > { %11122 = dma.hbm_to_vmem [thread:$0]  (!%p11812_p6), %s17272_s5, 16, %s11818_s13, [#allocation14]  }
  0x55   : > { %s11725_s12 = smov [#allocation9]   ;;  %s11726_s15 = smov [#allocation12]  }
  0x56   : > { %s234_s14 = sshll.u32 %s11725_s12, 4  ;;  %s259_s16 = sshll.u32 %s11726_s15, 4  ;;  %s235_s14 = int_to_ptr.vmem [resolvable:$true] %s234_s14  ;;  %s260_s16 = int_to_ptr.vmem [resolvable:$true] %s259_s16 }
  0x57   : > { %s11526_s20 = scalar_lea.hbm %s17269_s2, 18432 }
  0x58   : > { %p11527_p13 = scmp.ne.s32.totalorder %s17269_s2, %s11526_s20  ;;  %p11533_p5 = scmp.lt.u32.totalorder %s11526_s20, %s17269_s2 }
  0x5a   : > { %p11529_p0 = pnand %p11527_p13, %p11828_p8 }
  0x5c   : > { %p11530_p2 = pneg %p11529_p0 }
  0x5e   : > { %p11535_p7 = pnand %p11533_p5, %p11530_p2 }
  0x60   : > { %11538 = shalt.err (!%p11535_p7)
}
  0x61   : > { %s11539_s13 = scalar_lea.vmem %s235_s14, 18432  ;;  %p11547_p11 = scmp.lt.s32.totalorder %s235_s14, %s235_s14 }
  0x62   : > { %p11540_p9 = scmp.ne.s32.totalorder %s235_s14, %s11539_s13  ;;  %p11548_p12 = scmp.lt.s32.totalorder %s11539_s13, %s11539_s13 }
  0x64   : > { %p11542_p4 = pnand %p11540_p9, %p11828_p8  ;;  %p11549_p1 = por %p11548_p12, %p11547_p11 }
  0x66   : > { %p11543_p10 = pneg %p11542_p4 }
  0x68   : > { %p11550_p3 = pnand %p11549_p1, %p11543_p10 }
  0x6a   : > { %11553 = shalt.err (!%p11550_p3)
}
  0x6b   : > { %11113 = dma.hbm_to_vmem [thread:$0]  (!%p11812_p6), %s17269_s2, 18432, %s235_s14, [#allocation8], %s17277_s23, %s17277_s23, %s17278_s28  }
  0x6c   : > { %s11554_s18 = scalar_lea.hbm %s17271_s4, 16 }
  0x6d   : > { %p11555_p1 = scmp.ne.s32.totalorder %s17271_s4, %s11554_s18  ;;  %p11561_p0 = scmp.lt.u32.totalorder %s11554_s18, %s17271_s4 }
  0x6f   : > { %p11557_p3 = pnand %p11555_p1, %p11828_p8 }
  0x71   : > { %p11558_p13 = pneg %p11557_p3 }
  0x73   : > { %p11563_p2 = pnand %p11561_p0, %p11558_p13 }
  0x75   : > { %11566 = shalt.err (!%p11563_p2)
}
  0x76   : > { %s11567_s22 = scalar_lea.vmem %s260_s16, 16  ;;  %s11574_s14 = scalar_lea.vmem %s260_s16, 32 }
  0x77   : > { %p11568_p5 = scmp.ne.s32.totalorder %s260_s16, %s11567_s22  ;;  %p11575_p4 = scmp.lt.s32.totalorder %s260_s16, %s260_s16 }
  0x78   : > { %p11576_p10 = scmp.lt.s32.totalorder %s11574_s14, %s11567_s22 }
  0x79   : > { %p11570_p7 = pnand %p11568_p5, %p11828_p8 }
  0x7a   : > { %p11577_p11 = por %p11576_p10, %p11575_p4 }
  0x7b   : > { %p11571_p9 = pneg %p11570_p7 }
  0x7d   : > { %p11578_p12 = pnand %p11577_p11, %p11571_p9 }
  0x7f   : > { %11581 = shalt.err (!%p11578_p12)
}
  0x80   : > { %11119 = dma.hbm_to_vmem [thread:$0]  (!%p11812_p6), %s17271_s4, 16, %s260_s16, [#allocation11]  }
  0x81   : > { %s11727_s12 = smov [#allocation15]   ;;  %s11582_s20 = scalar_lea.hbm %s17273_s6, 16 }
  0x82   : > { %s281_s15 = sshll.u32 %s11727_s12, 4  ;;  %p11583_p1 = scmp.ne.s32.totalorder %s17273_s6, %s11582_s20  ;;  %s282_s15 = int_to_ptr.vmem [resolvable:$true] %s281_s15 }
  0x83   : > { %p11589_p0 = scmp.lt.u32.totalorder %s11582_s20, %s17273_s6 }
  0x84   : > { %p11585_p3 = pnand %p11583_p1, %p11828_p8 }
  0x86   : > { %p11586_p13 = pneg %p11585_p3 }
  0x88   : > { %p11591_p2 = pnand %p11589_p0, %p11586_p13 }
  0x8a   : > { %11594 = shalt.err (!%p11591_p2)
}
  0x8b   : > { %s11595_s16 = scalar_lea.vmem %s282_s15, 16  ;;  %s11602_s14 = scalar_lea.vmem %s282_s15, 32 }
  0x8c   : > { %p11596_p5 = scmp.ne.s32.totalorder %s282_s15, %s11595_s16  ;;  %p11603_p4 = scmp.lt.s32.totalorder %s282_s15, %s282_s15 }
  0x8d   : > { %p11604_p10 = scmp.lt.s32.totalorder %s11602_s14, %s11595_s16 }
  0x8e   : > { %p11598_p7 = pnand %p11596_p5, %p11828_p8 }
  0x8f   : > { %p11605_p11 = por %p11604_p10, %p11603_p4 }
  0x90   : > { %p11599_p9 = pneg %p11598_p7 }
  0x92   : > { %p11606_p12 = pnand %p11605_p11, %p11599_p9 }
  0x94   : > { %11609 = shalt.err (!%p11606_p12)
}
  0x95   : > { %11125 = dma.hbm_to_vmem [thread:$0]  (!%p11812_p6), %s17273_s6, 16, %s282_s15, [#allocation14]  }
  0x96   : > { %s8172_s19 = sadd.s32 4294967294, %s11718_s27   ;;  %s11959_s11 = sadd.s32 1, %s11718_s27  }
  0x97   : > { %s30_s12 = ssub.s32 %s11718_s27, %s11959_s11  ;;  %s33_s17 = sadd.s32 1, %s11714_s26 }
  0x98   : > { %p31_p8 = scmp.eq.s32.totalorder %s30_s12, 0  ;;  %p40_p1 = scmp.ne.s32.totalorder %s11714_s26, %s11710_s25 }
  0x99   : > { %p41_p3 = scmp.eq.s32.totalorder %s11718_s27, 0  ;;  %p46_p13 = scmp.ne.s32.totalorder %s11710_s25, %s11706_s24 }
  0x9a   : > { %s11970_s18 = scalar_select %p31_p8, %s11714_s26, %s33_s17  }
  0x9b   : > { %p42_p0 = por %p41_p3, %p40_p1  ;;  %p17620_p2 = scmp.eq.s32.totalorder %s11796_s30, 0 }
  0x9c   : > { %p196_p6 = scmp.eq.s32.totalorder %s11796_s30, 1  ;;  %p202_p7 = scmp.eq.s32.totalorder %s8172_s19, 1 }
  0x9d   : > { %p11974_p5 = por %p17620_p2, %p46_p13  ;;  %p11140_p9 = scmp.lt.s32.totalorder %s11718_s27, 2 }
  0x9e   : > { %s292_s15 = sand.u32 1, %s11714_s26   ;;  %p11981_p4 = por %p196_p6, %p40_p1 }
  0x9f   : > { %p11985_p10 = por %p202_p7, %p46_p13  ;;  %s10980_s29 = smul.u32 432, %s292_s15 }
  0xa0   : > { %s17622_s21 = scalar_select %p11981_p4, 1, 0 }
  0xa1   : > { %s17623_s10 = scalar_select %p11985_p10, 1, 0 }
  0xa2   : > { %s10981_s22 = smul.u32 6912, %s11718_s27  ;;  %p11990_p11 = pnand %p11140_p9, %p42_p0 }
  0xa3   : > { %s296_s19 = scalar_lea.vmem [#allocation4], %s10980_s29  ;;  %s12001_s17 = scalar_lea.sflag [#allocation5], %s292_s15 }
  0xa4   : > { %s11997_s9 = scalar_lea.hbm %s17267_s0, %s10981_s22  ;;  %s303_s12 = sshll.u32 %s296_s19, 4  ;;  %s11999_s12 = int_to_ptr.vmem [resolvable:$true] %s303_s12 }
  0xa5   : > { %s11610_s23 = scalar_lea.hbm %s11997_s9, 6912  ;;  %p11612_p8 = pneg %p11990_p11 }
  0xa6   : > { %p11611_p12 = scmp.ne.s32.totalorder %s11997_s9, %s11610_s23  ;;  %s11615_s13 = scalar_lea.hbm %s17267_s0, 13824 }
  0xa7   : > { %p11616_p13 = scmp.lt.u32.totalorder %s11997_s9, %s17267_s0  ;;  %p11617_p0 = scmp.lt.u32.totalorder %s11615_s13, %s11610_s23 }
  0xa8   : > { %p11613_p1 = pnand %p11612_p8, %p11611_p12  ;;  %p11619_p6 = scmp.lt.u32.totalorder %s11610_s23, %s11997_s9 }
  0xa9   : > { %p11618_p2 = por %p11617_p0, %p11616_p13 }
  0xaa   : > { %p11614_p3 = pneg %p11613_p1 }
  0xab   : > { %p11620_p7 = por %p11619_p6, %p11618_p2 }
  0xad   : > { %p11621_p9 = pnand %p11620_p7, %p11614_p3 }
  0xaf   : > { %11624 = shalt.err (!%p11621_p9)
}
  0xb0   : > { %s11625_s15 = scalar_lea.vmem %s11999_s12, 6912  ;;  %s11728_s29 = smov [#allocation4]  }
  0xb1   : > { %p11626_p12 = scmp.ne.s32.totalorder %s11999_s12, %s11625_s15  ;;  %s11630_s19 = sshll.u32 %s11728_s29, 4  ;;  %s11631_s19 = int_to_ptr.vmem [resolvable:$false] %s11630_s19 }
  0xb2   : > { %s11632_s1 = scalar_lea.vmem %s11631_s19, 13824  ;;  %p11633_p4 = scmp.lt.s32.totalorder %s11999_s12, %s11631_s19 }
  0xb3   : > { %p11628_p1 = pnand %p11626_p12, %p11612_p8  ;;  %p11634_p13 = scmp.lt.s32.totalorder %s11632_s1, %s11625_s15 }
  0xb5   : > { %p11629_p10 = pneg %p11628_p1  ;;  %p11635_p0 = por %p11634_p13, %p11633_p4 }
  0xb7   : > { %p11636_p2 = pnand %p11635_p0, %p11629_p10 }
  0xb9   : > { %11639 = shalt.err (!%p11636_p2)
}
  0xba   : > { %s17625_s23 = smov 8   ;;  %s17626_s28 = smov 128  }
  0xbb   : > { %11129 = dma.hbm_to_vmem [thread:$0]  (!%p11990_p11), %s11997_s9, 6912, %s11999_s12, %s12001_s17, %s17626_s28, %s17626_s28, %s17625_s23  }
  0xbc   : > { %p17627_p8 = scmp.ne.s32.totalorder %s17616_s8, 0 }
  0xbe   : > { %315 = sbr.rel (%p17627_p8) target bundleno = 3291 (0xcdb), region = 48 }
  0xc5   : > { %s12035_s22 = sand.u32 1, %s11710_s25  }
  0xc6   : > { %s10982_s14 = smul.u32 432, %s12035_s22  ;;  %s318_s13 = scalar_lea.sflag [#allocation5], %s12035_s22 }
  0xc8   : > { %s12039_s15 = scalar_lea.vmem [#allocation4], %s10982_s14 }
  0xc9   : > { %11685 = dma.done.wait (%p11974_p5), %s318_s13, 6912  }
  0xca   : > { %11687 = vsyncadd (%p11974_p5), %s318_s13, 4294960384  ;;  %p17628_p4 = scmp.eq.s32.totalorder %s11796_s30, 0 }
  0xcc   : > { %11689 = dma.done.wait (%p17628_p4), [#allocation8], 36864   ;;  %p17629_p10 = pmov %p17628_p4 }
  0xcd   : > { %p17630_p11 = pmov %p17628_p4 }
  0xce   : > { %11691 = vsyncadd (%p17629_p10), [#allocation8], 4294930432 }
  0xcf   : > { %11693 = dma.done.wait (%p17630_p11), [#allocation11], 32   ;;  %p17631_p3 = pmov %p17628_p4 }
  0xd1   : > { %11695 = vsyncadd (%p17631_p3), [#allocation11], 4294967264  ;;  %p17632_p6 = pmov %p17631_p3 }
  0xd2   : > { %p17633_p7 = pmov %p17631_p3 }
  0xd3   : > { %11697 = dma.done.wait (%p17632_p6), [#allocation14], 32  }
  0xd4   : > { %11699 = vsyncadd (%p17633_p7), [#allocation14], 4294967264  ;;  %v17285_v0 = vmov 0.0|0.0   ;;  %v1746_v1 = vld [vmem:[#allocation7 + $0x180] sm:$0xff]  ;;  %v1747_v2 = vld [vmem:[#allocation7 + $0x188] sm:$0xff]  ;;  %vm17480_vm0 = vmmov 0  }
  0xd5   : > { %9608 = vmatprep.subr.bf16.mxu0 %v17285_v0  ;;  %9824 = vmatprep.subr.bf16.mxu1 %v17285_v0  ;;  %v1748_v3 = vld [vmem:[#allocation7 + $0x190] sm:$0xff]  ;;  %v9609_v4 = vpack.c.bf16 %v1747_v2, %v1746_v1  ;;  %v1749_v5 = vld [vmem:[#allocation7 + $0x198] sm:$0xff]  ;;  %v1750_v7 = vld [vmem:[#allocation7 + $0x1a0] sm:$0xff]  ;;  %s10983_s8 = smul.u32 376, %s12035_s22  ;;  %p18565_p9 = scmp.ne.s32.totalorder %s17622_s21, 0 }
  0xd6   : > { %v9612_v6 = vpack.c.bf16 %v1749_v5, %v1748_v3  ;;  %v1751_v8 = vld [vmem:[#allocation7 + $0x1a8] sm:$0xff]  ;;  %v1752_v10 = vld [vmem:[#allocation7 + $0x1b0] sm:$0xff]  ;;  %v1753_v11 = vld [vmem:[#allocation7 + $0x1b8] sm:$0xff]  ;;  %s11078_s16 = smul.u32 6016, %s11796_s30  ;;  %s8029_s30 = scalar_lea.sflag [#allocation6], %s12035_s22 }
  0xd7   : > { %9610 = vmatpush1.bf16.msra.mxu0 %v9609_v4  ;;  %v9615_v9 = vpack.c.bf16 %v1751_v8, %v1750_v7  ;;  %v1334_v12 = vld [vmem:[%s12039_s15 + $0x19] sm:$0xff]  ;;  %v9618_v13 = vpack.c.bf16 %v1753_v11, %v1752_v10  ;;  %v12064_v16 = vld [vmem:[%s12039_s15 + $0x31] sm:$0xff]  ;;  %v12078_v20 = vld [vmem:[%s12039_s15 + $0x41] sm:$0xff]  ;;  %s16767_s20 = scalar_lea.vmem [#allocation16], %s10983_s8  ;;  %s11732_s1 = smov [#allocation16]  }
  0xd8   : > { %9611 = vmatprep.subr.bf16.mxu0 %v17285_v0  ;;  %1858 = vmatprep.mubr.f32.mxu0 %v1334_v12  ;;  %v1754_v14 = vld [vmem:[#allocation7 + $0x1c0] sm:$0xff]  ;;  %v1755_v15 = vld [vmem:[#allocation7 + $0x1c8] sm:$0xff]  ;;  %1391 = vst [vmem:[#allocation3 + $0x98] sm:$0xff] %v12064_v16  ;;  %1393 = vst [vmem:[#allocation3 + $0xc8] sm:$0xff] %v12078_v20  ;;  %s8042_s9 = sshll.u32 %s16767_s20, 4  ;;  %s17209_s29 = scalar_lea.hbm %s17274_s7, %s11078_s16  ;;  %s17217_s9 = int_to_ptr.vmem [resolvable:$true] %s8042_s9 }
  0xd9   : > { %v12067_v17 = vld [vmem:[%s12039_s15 + $0x30] sm:$0xff]  ;;  %v12072_v18 = vld [vmem:[%s12039_s15 + $0x39] sm:$0xff]  ;;  %v9621_v21 = vpack.c.bf16 %v1755_v15, %v1754_v14  ;;  %v12090_v24 = vld [vmem:[%s12039_s15 + $0x48] sm:$0xff]  ;;  %s11640_s19 = scalar_lea.vmem %s17217_s9, 6016  ;;  %s11644_s23 = sshll.u32 %s11732_s1, 4  ;;  %s11645_s23 = int_to_ptr.vmem [resolvable:$false] %s11644_s23 }
  0xda   : > { %1283 = vst [vmem:[#allocation3 + $0x90] sm:$0xff] %v12067_v17  ;;  %v12075_v19 = vld [vmem:[%s12039_s15 + $0x38] sm:$0xff]  ;;  %1392 = vst [vmem:[#allocation3 + $0xb0] sm:$0xff] %v12072_v18  ;;  %v12084_v22 = vld [vmem:[%s12039_s15 + $0x40] sm:$0xff]  ;;  %p11641_p5 = scmp.ne.s32.totalorder %s17217_s9, %s11640_s19  ;;  %s11646_s28 = scalar_lea.vmem %s11645_s23, 12032 }
  0xdb   : > { %9613 = vmatpush1.bf16.msra.mxu0 %v9612_v6  ;;  %1284 = vst [vmem:[#allocation3 + $0xa8] sm:$0xff] %v12075_v19  ;;  %v12087_v23 = vld [vmem:[%s12039_s15 + $0x49] sm:$0xff]  ;;  %1285 = vst [vmem:[#allocation3 + $0xc0] sm:$0xff] %v12084_v22  ;;  %v12097_v27 = vld [vmem:[%s12039_s15 + $0x51] sm:$0xff]  ;;  %p11647_p13 = scmp.lt.s32.totalorder %s17217_s9, %s11645_s23  ;;  %p11648_p0 = scmp.lt.s32.totalorder %s11646_s28, %s11640_s19 }
  0xdc   : > { %9614 = vmatprep.subr.bf16.mxu0 %v17285_v0  ;;  %v1756_v25 = vld [vmem:[#allocation7 + $0x1d0] sm:$0xff]  ;;  %v1757_v26 = vld [vmem:[#allocation7 + $0x1d8] sm:$0xff]  ;;  %1394 = vst [vmem:[#allocation3 + $0xe0] sm:$0xff] %v12087_v23  ;;  %1286 = vst [vmem:[#allocation3 + $0xd8] sm:$0xff] %v12090_v24  ;;  %p11642_p12 = pnand %p11641_p5, %p18565_p9 }
  0xdd   : > { %1395 = vst [vmem:[#allocation3 + $0xf8] sm:$0xff] %v12097_v27  ;;  %v12101_v28 = vld [vmem:[%s12039_s15 + $0x50] sm:$0xff]  ;;  %v12104_v29 = vld [vmem:[%s12039_s15 + $0x59] sm:$0xff]  ;;  %v12113_v32 = vld [vmem:[%s12039_s15 + $0x61] sm:$0xff]  ;;  %v9624_v35 = vpack.c.bf16 %v1757_v26, %v1756_v25  ;;  %p11649_p2 = por %p11648_p0, %p11647_p13 }
  0xde   : > { %v12107_v30 = vld [vmem:[%s12039_s15 + $0x58] sm:$0xff]  ;;  %v1758_v31 = vld [vmem:[#allocation7 + $0x1e0] sm:$0xff]  ;;  %1287 = vst [vmem:[#allocation3 + $0xf0] sm:$0xff] %v12101_v28  ;;  %1396 = vst [vmem:[#allocation3 + $0x110] sm:$0xff] %v12104_v29  ;;  %p11643_p1 = pneg %p11642_p12 }
  0xdf   : > { %9616 = vmatpush1.bf16.msra.mxu0 %v9615_v9  ;;  %1288 = vst [vmem:[#allocation3 + $0x108] sm:$0xff] %v12107_v30  ;;  %v12116_v33 = vld [vmem:[%s12039_s15 + $0x60] sm:$0xff]  ;;  %v12119_v34 = vld [vmem:[%s12039_s15 + $0x69] sm:$0xff]  ;;  %1397 = vst [vmem:[#allocation3 + $0x128] sm:$0xff] %v12113_v32 }
  0xe0   : > { %9617 = vmatprep.subr.bf16.mxu0 %v17285_v0  ;;  %1289 = vst [vmem:[#allocation3 + $0x120] sm:$0xff] %v12116_v33  ;;  %1398 = vst [vmem:[#allocation3 + $0x140] sm:$0xff] %v12119_v34  ;;  %v12125_v36 = vld [vmem:[%s12039_s15 + $0x68] sm:$0xff]  ;;  %v12128_v37 = vld [vmem:[%s12039_s15 + $0x71] sm:$0xff]  ;;  %p11650_p8 = pnand %p11649_p2, %p11643_p1 }
  0xe1   : > { %v12131_v38 = vld [vmem:[%s12039_s15 + $0x70] sm:$0xff]  ;;  %v1759_v39 = vld [vmem:[#allocation7 + $0x1e8] sm:$0xff]  ;;  %1290 = vst [vmem:[#allocation3 + $0x138] sm:$0xff] %v12125_v36  ;;  %1399 = vst [vmem:[#allocation3 + $0x158] sm:$0xff] %v12128_v37 }
  0xe2   : > { %1291 = vst [vmem:[#allocation3 + $0x150] sm:$0xff] %v12131_v38  ;;  %v12138_v40 = vld [vmem:[%s12039_s15 + $0x79] sm:$0xff]  ;;  %v12146_v42 = vld [vmem:[%s12039_s15 + $0x81] sm:$0xff]  ;;  %v12154_v46 = vld [vmem:[%s12039_s15 + $0x89] sm:$0xff]  ;;  %v9627_v49 = vpack.c.bf16 %v1759_v39, %v1758_v31 }
  0xe3   : > { %9619 = vmatpush1.bf16.msra.mxu0 %v9618_v13  ;;  %v12141_v41 = vld [vmem:[%s12039_s15 + $0x78] sm:$0xff]  ;;  %1400 = vst [vmem:[#allocation3 + $0x170] sm:$0xff] %v12138_v40  ;;  %v12149_v43 = vld [vmem:[%s12039_s15 + $0x80] sm:$0xff]  ;;  %1401 = vst [vmem:[#allocation3 + $0x188] sm:$0xff] %v12146_v42 }
  0xe4   : > { %9620 = vmatprep.subr.bf16.mxu0 %v17285_v0  ;;  %1292 = vst [vmem:[#allocation3 + $0x168] sm:$0xff] %v12141_v41  ;;  %v1760_v44 = vld [vmem:[#allocation7 + $0x1f0] sm:$0xff]  ;;  %v1761_v45 = vld [vmem:[#allocation7 + $0x1f8] sm:$0xff]  ;;  %1293 = vst [vmem:[#allocation3 + $0x180] sm:$0xff] %v12149_v43 }
  0xe5   : > { %v12157_v47 = vld [vmem:[%s12039_s15 + $0x88] sm:$0xff]  ;;  %v12160_v48 = vld [vmem:[%s12039_s15 + $0x91] sm:$0xff]  ;;  %1402 = vst [vmem:[#allocation3 + $0x1a0] sm:$0xff] %v12154_v46  ;;  %v12169_v51 = vld [vmem:[%s12039_s15 + $0x99] sm:$0xff]  ;;  %v9630_v62 = vpack.c.bf16 %v1761_v45, %v1760_v44 }
  0xe6   : > { %1294 = vst [vmem:[#allocation3 + $0x198] sm:$0xff] %v12157_v47  ;;  %1403 = vst [vmem:[#allocation3 + $0x1b8] sm:$0xff] %v12160_v48  ;;  %v12166_v50 = vld [vmem:[%s12039_s15 + $0x90] sm:$0xff]  ;;  %v12172_v52 = vld [vmem:[%s12039_s15 + $0x98] sm:$0xff] }
  0xe7   : > { %9622 = vmatpush1.bf16.msra.mxu0 %v9621_v21  ;;  %1295 = vst [vmem:[#allocation3 + $0x1b0] sm:$0xff] %v12166_v50  ;;  %1404 = vst [vmem:[#allocation3 + $0x1d0] sm:$0xff] %v12169_v51  ;;  %v12179_v53 = vld [vmem:[%s12039_s15 + $0xa1] sm:$0xff]  ;;  %v12185_v55 = vld [vmem:[%s12039_s15 + $0xa9] sm:$0xff] }
  0xe8   : > { %9623 = vmatprep.subr.bf16.mxu0 %v17285_v0  ;;  %1296 = vst [vmem:[#allocation3 + $0x1c8] sm:$0xff] %v12172_v52  ;;  %v12182_v54 = vld [vmem:[%s12039_s15 + $0xa0] sm:$0xff]  ;;  %1405 = vst [vmem:[#allocation3 + $0x1e8] sm:$0xff] %v12179_v53  ;;  %v12191_v56 = vld [vmem:[%s12039_s15 + $0xa8] sm:$0xff] }
  0xe9   : > { %1297 = vst [vmem:[#allocation3 + $0x1e0] sm:$0xff] %v12182_v54  ;;  %1406 = vst [vmem:[#allocation3 + $0x200] sm:$0xff] %v12185_v55  ;;  %v1762_v57 = vld [vmem:[#allocation7 + $0x200] sm:$0xff]  ;;  %v1763_v58 = vld [vmem:[#allocation7 + $0x208] sm:$0xff] }
  0xea   : > { %1298 = vst [vmem:[#allocation3 + $0x1f8] sm:$0xff] %v12191_v56  ;;  %v12195_v59 = vld [vmem:[%s12039_s15 + $0xb1] sm:$0xff]  ;;  %v12201_v61 = vld [vmem:[%s12039_s15 + $0xb9] sm:$0xff]  ;;  %v12210_v1 = vld [vmem:[%s12039_s15 + $0xc1] sm:$0xff]  ;;  %v9633_v8 = vpack.c.bf16 %v1763_v58, %v1762_v57 }
  0xeb   : > { %9625 = vmatpush1.bf16.msra.mxu0 %v9624_v35  ;;  %v12198_v60 = vld [vmem:[%s12039_s15 + $0xb0] sm:$0xff]  ;;  %1407 = vst [vmem:[#allocation3 + $0x218] sm:$0xff] %v12195_v59  ;;  %1408 = vst [vmem:[#allocation3 + $0x230] sm:$0xff] %v12201_v61  ;;  %v12207_v63 = vld [vmem:[%s12039_s15 + $0xb8] sm:$0xff] }
  0xec   : > { %9626 = vmatprep.subr.bf16.mxu0 %v17285_v0  ;;  %1299 = vst [vmem:[#allocation3 + $0x210] sm:$0xff] %v12198_v60  ;;  %v12213_v2 = vld [vmem:[%s12039_s15 + $0xc0] sm:$0xff]  ;;  %1300 = vst [vmem:[#allocation3 + $0x228] sm:$0xff] %v12207_v63  ;;  %v12220_v3 = vld [vmem:[%s12039_s15 + $0xc9] sm:$0xff] }
  0xed   : > { %1409 = vst [vmem:[#allocation3 + $0x248] sm:$0xff] %v12210_v1  ;;  %1301 = vst [vmem:[#allocation3 + $0x240] sm:$0xff] %v12213_v2  ;;  %v12223_v4 = vld [vmem:[%s12039_s15 + $0xc8] sm:$0xff]  ;;  %v12226_v5 = vld [vmem:[%s12039_s15 + $0xd1] sm:$0xff] }
  0xee   : > { %1410 = vst [vmem:[#allocation3 + $0x260] sm:$0xff] %v12220_v3  ;;  %1302 = vst [vmem:[#allocation3 + $0x258] sm:$0xff] %v12223_v4  ;;  %v12232_v6 = vld [vmem:[%s12039_s15 + $0xd0] sm:$0xff]  ;;  %v12236_v7 = vld [vmem:[%s12039_s15 + $0xd9] sm:$0xff] }
  0xef   : > { %9628 = vmatpush1.bf16.msra.mxu0 %v9627_v49  ;;  %1411 = vst [vmem:[#allocation3 + $0x278] sm:$0xff] %v12226_v5  ;;  %1303 = vst [vmem:[#allocation3 + $0x270] sm:$0xff] %v12232_v6  ;;  %v12240_v9 = vld [vmem:[%s12039_s15 + $0xd8] sm:$0xff]  ;;  %v1764_v10 = vld [vmem:[#allocation7 + $0x210] sm:$0xff] }
  0xf0   : > { %9629 = vmatprep.subr.bf16.mxu0 %v17285_v0  ;;  %1412 = vst [vmem:[#allocation3 + $0x290] sm:$0xff] %v12236_v7  ;;  %v1765_v11 = vld [vmem:[#allocation7 + $0x218] sm:$0xff]  ;;  %1304 = vst [vmem:[#allocation3 + $0x288] sm:$0xff] %v12240_v9  ;;  %v12249_v14 = vld [vmem:[%s12039_s15 + $0xe0] sm:$0xff] }
  0xf1   : > { %v12245_v12 = vld [vmem:[%s12039_s15 + $0xe1] sm:$0xff]  ;;  %v9636_v13 = vpack.c.bf16 %v1765_v11, %v1764_v10  ;;  %1305 = vst [vmem:[#allocation3 + $0x2a0] sm:$0xff] %v12249_v14  ;;  %v12254_v25 = vld [vmem:[%s12039_s15 + $0xe9] sm:$0xff]  ;;  %v12263_v44 = vld [vmem:[%s12039_s15 + $0xf1] sm:$0xff] }
  0xf2   : > { %1413 = vst [vmem:[#allocation3 + $0x2a8] sm:$0xff] %v12245_v12  ;;  %v1766_v15 = vld [vmem:[#allocation7 + $0x220] sm:$0xff]  ;;  %v1767_v21 = vld [vmem:[#allocation7 + $0x228] sm:$0xff]  ;;  %1414 = vst [vmem:[#allocation3 + $0x2c0] sm:$0xff] %v12254_v25 }
  0xf3   : > { %9631 = vmatpush1.bf16.msra.mxu0 %v9630_v62  ;;  %v9639_v26 = vpack.c.bf16 %v1767_v21, %v1766_v15  ;;  %v12258_v31 = vld [vmem:[%s12039_s15 + $0xe8] sm:$0xff]  ;;  %v1768_v35 = vld [vmem:[#allocation7 + $0x230] sm:$0xff]  ;;  %1415 = vst [vmem:[#allocation3 + $0x2d8] sm:$0xff] %v12263_v44  ;;  %v1770_v57 = vld [vmem:[#allocation7 + $0x240] sm:$0xff] }
  0xf4   : > { %9632 = vmatprep.subr.bf16.mxu0 %v17285_v0  ;;  %v1769_v39 = vld [vmem:[#allocation7 + $0x238] sm:$0xff]  ;;  %1306 = vst [vmem:[#allocation3 + $0x2b8] sm:$0xff] %v12258_v31  ;;  %v12267_v49 = vld [vmem:[%s12039_s15 + $0xf0] sm:$0xff]  ;;  %v1771_v58 = vld [vmem:[#allocation7 + $0x248] sm:$0xff] }
  0xf5   : > { %v9642_v45 = vpack.c.bf16 %v1769_v39, %v1768_v35  ;;  %1307 = vst [vmem:[#allocation3 + $0x2d0] sm:$0xff] %v12267_v49  ;;  %v12272_v62 = vld [vmem:[%s12039_s15 + $0xf9] sm:$0xff]  ;;  %v12281_v15 = vld [vmem:[%s12039_s15 + $0x101] sm:$0xff] }
  0xf6   : > { %1416 = vst [vmem:[#allocation3 + $0x2f0] sm:$0xff] %v12272_v62  ;;  %v12276_v10 = vld [vmem:[%s12039_s15 + $0xf8] sm:$0xff]  ;;  %v1772_v11 = vld [vmem:[#allocation7 + $0x250] sm:$0xff]  ;;  %17634 = vst [vmem:[#allocation22_spill] sm:$0xff] %v12281_v15 }
  0xf7   : > { %9634 = vmatpush1.bf16.msra.mxu0 %v9633_v8  ;;  %v9645_v8 = vpack.c.bf16 %v1771_v58, %v1770_v57  ;;  %1308 = vst [vmem:[#allocation3 + $0x2e8] sm:$0xff] %v12276_v10  ;;  %1417 = vst [vmem:[#allocation3 + $0x308] sm:$0xff] %v12281_v15  ;;  %v1774_v35 = vld [vmem:[#allocation7 + $0x260] sm:$0xff]  ;;  %v1775_v39 = vld [vmem:[#allocation7 + $0x268] sm:$0xff] }
  0xf8   : > { %9635 = vmatprep.subr.bf16.mxu0 %v17285_v0  ;;  %v9651_v57 = vpack.c.bf16 %v1775_v39, %v1774_v35  ;;  %v12294_v58 = vld [vmem:[%s12039_s15 + $0x108] sm:$0xff]  ;;  %v1778_v35 = vld [vmem:[#allocation7 + $0x280] sm:$0xff] }
  0xf9   : > { %17637 = vst [vmem:[#allocation25_spill] sm:$0xff] %v12294_v58  ;;  %1310 = vst [vmem:[#allocation3 + $0x318] sm:$0xff] %v12294_v58  ;;  %v1779_v39 = vld [vmem:[#allocation7 + $0x288] sm:$0xff]  ;;  %v1781_v15 = vld [vmem:[#allocation7 + $0x298] sm:$0xff] }
  0xfa   : > { %v12311_v58 = vld [vmem:[%s12039_s15 + $0x18] sm:$0xff] }
  0xfb   : > { %9637 = vmatpush1.bf16.msra.mxu0 %v9636_v13  ;;  %v1773_v13 = vld [vmem:[#allocation7 + $0x258] sm:$0xff]  ;;  %17641 = vst [vmem:[#allocation29_spill] sm:$0xff] %v12311_v58 }
  0xfc   : > { %9638 = vmatprep.subr.bf16.mxu0 %v17285_v0  ;;  %v9648_v21 = vpack.c.bf16 %v1773_v13, %v1772_v11  ;;  %v1777_v11 = vld [vmem:[#allocation7 + $0x278] sm:$0xff] }
  0xfd   : > { %v12299_v13 = vld [vmem:[%s12039_s15 + $0x111] sm:$0xff] }
  0xfe   : > { %17638 = vst [vmem:[#allocation26_spill] sm:$0xff] %v12299_v13  ;;  %1419 = vst [vmem:[#allocation3 + $0x338] sm:$0xff] %v12299_v13  ;;  %v1780_v13 = vld [vmem:[#allocation7 + $0x290] sm:$0xff] }
  0xff   : > { %9640 = vmatpush1.bf16.msra.mxu0 %v9639_v26  ;;  %v12285_v26 = vld [vmem:[%s12039_s15 + $0x100] sm:$0xff] }
 0x100   : > { %9641 = vmatprep.subr.bf16.mxu0 %v17285_v0  ;;  %17635 = vst [vmem:[#allocation23_spill] sm:$0xff] %v12285_v26  ;;  %1309 = vst [vmem:[#allocation3 + $0x300] sm:$0xff] %v12285_v26 }
 0x103   : > { %9643 = vmatpush1.bf16.msra.mxu0 %v9642_v45  ;;  %v12290_v45 = vld [vmem:[%s12039_s15 + $0x109] sm:$0xff] }
 0x104   : > { %9644 = vmatprep.subr.bf16.mxu0 %v17285_v0  ;;  %17636 = vst [vmem:[#allocation24_spill] sm:$0xff] %v12290_v45  ;;  %1418 = vst [vmem:[#allocation3 + $0x320] sm:$0xff] %v12290_v45  ;;  %v12308_v45 = vld [vmem:[%s12039_s15 + $0x119] sm:$0xff] }
 0x105   : > { %17640 = vst [vmem:[#allocation28_spill] sm:$0xff] %v12308_v45  ;;  %1420 = vst [vmem:[#allocation3 + $0x350] sm:$0xff] %v12308_v45  ;;  %v12335_v45 = vld [vmem:[%s12039_s15 + $0x29] sm:$0xff] }
 0x106   : > { %17647 = vst [vmem:[#allocation35_spill] sm:$0xff] %v12335_v45 }
 0x107   : > { %9646 = vmatpush1.bf16.msra.mxu0 %v9645_v8  ;;  %v1776_v8 = vld [vmem:[#allocation7 + $0x270] sm:$0xff] }
 0x108   : > { %9647 = vmatprep.subr.bf16.mxu0 %v17285_v0  ;;  %v9654_v26 = vpack.c.bf16 %v1777_v11, %v1776_v8  ;;  %v12315_v8 = vld [vmem:[%s12039_s15 + $0x118] sm:$0xff]  ;;  %v12319_v11 = vld [vmem:[%s12039_s15 + $0x21] sm:$0xff] }
 0x109   : > { %17642 = vst [vmem:[#allocation30_spill] sm:$0xff] %v12315_v8  ;;  %17643 = vst [vmem:[#allocation31_spill] sm:$0xff] %v12319_v11 }
 0x10a   : > { %1312 = vst [vmem:[#allocation3 + $0x348] sm:$0xff] %v12315_v8  ;;  %v1782_v8 = vld [vmem:[#allocation7 + $0x2a0] sm:$0xff] }
 0x10b   : > { %9649 = vmatpush1.bf16.msra.mxu0 %v9648_v21  ;;  %v12303_v21 = vld [vmem:[%s12039_s15 + $0x110] sm:$0xff] }
 0x10c   : > { %9650 = vmatprep.subr.bf16.mxu0 %v17285_v0  ;;  %17639 = vst [vmem:[#allocation27_spill] sm:$0xff] %v12303_v21  ;;  %1311 = vst [vmem:[#allocation3 + $0x330] sm:$0xff] %v12303_v21  ;;  %v17648_v21 = vmov 0.0|0.0  }
 0x10f   : > { %9652 = vmatpush1.bf16.msra.mxu0 %v9651_v57  ;;  %v9657_v57 = vpack.c.bf16 %v1779_v39, %v1778_v35  ;;  %v12328_v35 = vld [vmem:[%s12039_s15 + $0x20] sm:$0xff]  ;;  %v9660_v39 = vpack.c.bf16 %v1781_v15, %v1780_v13  ;;  %v12345_v15 = vld [vmem:[%s12039_s15 + $0x28] sm:$0xff] }
 0x110   : > { %9653 = vmatprep.subr.bf16.mxu0 %v17285_v0  ;;  %17645 = vst [vmem:[#allocation33_spill] sm:$0xff] %v12328_v35  ;;  %17649 = vst [vmem:[#allocation36_spill] sm:$0xff] %v12345_v15 }
 0x113   : > { %9655 = vmatpush1.bf16.msra.mxu0 %v9654_v26  ;;  %v12324_v26 = vld [vmem:[%s12039_s15 + $0x121] sm:$0xff] }
 0x114   : > { %9656 = vmatprep.subr.bf16.mxu0 %v17285_v0  ;;  %17644 = vst [vmem:[#allocation32_spill] sm:$0xff] %v12324_v26  ;;  %1421 = vst [vmem:[#allocation3 + $0x368] sm:$0xff] %v12324_v26  ;;  %v12332_v0 = vld [vmem:[%s12039_s15 + $0x120] sm:$0xff] }
 0x115   : > { %17646 = vst [vmem:[#allocation34_spill] sm:$0xff] %v12332_v0  ;;  %1313 = vst [vmem:[#allocation3 + $0x360] sm:$0xff] %v12332_v0  ;;  %v1784_v26 = vld [vmem:[#allocation7 + $0x2b0] sm:$0xff]  ;;  %v1785_v0 = vld [vmem:[#allocation7 + $0x2b8] sm:$0xff] }
 0x116   : > { %1859 = vmatmul.mubr.f32.vlgmr.msra.gmra.mrb[0].mxu0 %v12311_v58  ;;  %v1783_v58 = vld [vmem:[#allocation7 + $0x2a8] sm:$0xff] }
 0x117   : > { %9658 = vmatpush3.bf16.msra.mxu0 %v9657_v57  ;;  %1863 = vmatprep.mubr.f32.mxu0 %v12319_v11  ;;  %v12341_v57 = vld [vmem:[%s12039_s15 + $0x129] sm:$0xff]  ;;  %v9663_v13 = vpack.c.bf16 %v1783_v58, %v1782_v8  ;;  %v9666_v58 = vpack.c.bf16 %v1785_v0, %v1784_v26 }
 0x118   : > { %9659 = vmatprep.subr.bf16.mxu0 %v17648_v21  ;;  %1422 = vst [vmem:[#allocation3 + $0x380] sm:$0xff] %v12341_v57  ;;  %v12349_v11 = vld [vmem:[%s12039_s15 + $0x128] sm:$0xff]  ;;  %v12360_v8 = vld [vmem:[%s12039_s15 + $0x130] sm:$0xff] }
 0x119   : > { %1314 = vst [vmem:[#allocation3 + $0x378] sm:$0xff] %v12349_v11  ;;  %1315 = vst [vmem:[#allocation3 + $0x390] sm:$0xff] %v12360_v8  ;;  %v1788_v26 = vld [vmem:[#allocation7 + $0x2d0] sm:$0xff] }
 0x11a   : > { %1864 = vmatmul.mubr.f32.gmra.mrb[2].mxu0 %v12328_v35  ;;  %v12355_v35 = vld [vmem:[%s12039_s15 + $0x131] sm:$0xff] }
 0x11b   : > { %1868 = vmatprep.mubr.f32.mxu0 %v12335_v45  ;;  %9661 = vmatpush3.bf16.msra.mxu0 %v9660_v39  ;;  %1423 = vst [vmem:[#allocation3 + $0x398] sm:$0xff] %v12355_v35  ;;  %v1786_v39 = vld [vmem:[#allocation7 + $0x2c0] sm:$0xff]  ;;  %v1787_v45 = vld [vmem:[#allocation7 + $0x2c8] sm:$0xff] }
 0x11c   : > { %9662 = vmatprep.subr.bf16.mxu0 %v17648_v21  ;;  %v9669_v0 = vpack.c.bf16 %v1787_v45, %v1786_v39  ;;  %v12382_v45 = vld [vmem:[%s12039_s15 + $0x140] sm:$0xff]  ;;  %v1791_v39 = vld [vmem:[#allocation7 + $0x2e8] sm:$0xff] }
 0x11d   : > { %1317 = vst [vmem:[#allocation3 + $0x3c0] sm:$0xff] %v12382_v45 }
 0x11e   : > { %1869 = vmatmul.mubr.f32.gmra.mrb[4].mxu0 %v12345_v15  ;;  %v12366_v15 = vld [vmem:[%s12039_s15 + $0x139] sm:$0xff] }
 0x11f   : > { %1873 = vmatprep.mubr.f32.mxu0 %v12064_v16  ;;  %9664 = vmatpush3.bf16.msra.mxu0 %v9663_v13  ;;  %1424 = vst [vmem:[#allocation3 + $0x3b0] sm:$0xff] %v12366_v15  ;;  %v12371_v16 = vld [vmem:[%s12039_s15 + $0x138] sm:$0xff] }
 0x120   : > { %9665 = vmatprep.subr.bf16.mxu0 %v17648_v21  ;;  %v1789_v13 = vld [vmem:[#allocation7 + $0x2d8] sm:$0xff]  ;;  %1316 = vst [vmem:[#allocation3 + $0x3a8] sm:$0xff] %v12371_v16 }
 0x122   : > { %1874 = vmatmul.mubr.f32.gmra.mrb[6].mxu0 %v12067_v17  ;;  %v12377_v17 = vld [vmem:[%s12039_s15 + $0x141] sm:$0xff] }
 0x123   : > { %1878 = vmatprep.mubr.f32.mxu0 %v12072_v18  ;;  %9667 = vmatpush3.bf16.msra.mxu0 %v9666_v58  ;;  %v9672_v18 = vpack.c.bf16 %v1789_v13, %v1788_v26  ;;  %1425 = vst [vmem:[#allocation3 + $0x3c8] sm:$0xff] %v12377_v17  ;;  %v1790_v58 = vld [vmem:[#allocation7 + $0x2e0] sm:$0xff]  ;;  %v1793_v13 = vld [vmem:[#allocation7 + $0x2f8] sm:$0xff] }
 0x124   : > { %9668 = vmatprep.subr.bf16.mxu0 %v17648_v21  ;;  %v12410_v26 = vld [vmem:[%s12039_s15 + $0x159] sm:$0xff] }
 0x125   : > { %1428 = vst [vmem:[#allocation3 + $0x410] sm:$0xff] %v12410_v26 }
 0x126   : > { %1879 = vmatmul.mubr.f32.gmra.mrb[8].mxu0 %v12075_v19  ;;  %v12388_v19 = vld [vmem:[%s12039_s15 + $0x149] sm:$0xff] }
 0x127   : > { %1883 = vmatprep.mubr.f32.mxu0 %v12078_v20  ;;  %9670 = vmatpush3.bf16.msra.mxu0 %v9669_v0  ;;  %v9675_v20 = vpack.c.bf16 %v1791_v39, %v1790_v58  ;;  %1426 = vst [vmem:[#allocation3 + $0x3e0] sm:$0xff] %v12388_v19  ;;  %v12393_v0 = vld [vmem:[%s12039_s15 + $0x148] sm:$0xff]  ;;  %v12451_v58 = vld [vmem:[%s12039_s15 + $0x179] sm:$0xff] }
 0x128   : > { %9671 = vmatprep.subr.bf16.mxu0 %v17648_v21  ;;  %1318 = vst [vmem:[#allocation3 + $0x3d8] sm:$0xff] %v12393_v0  ;;  %1432 = vst [vmem:[#allocation3 + $0x470] sm:$0xff] %v12451_v58  ;;  %v1688_v39 = vld [vmem:[#allocation7] sm:$0xff] }
 0x12a   : > { %1884 = vmatmul.mubr.f32.gmra.mrb[10].mxu0 %v12084_v22  ;;  %v12399_v22 = vld [vmem:[%s12039_s15 + $0x151] sm:$0xff] }
 0x12b   : > { %1888 = vmatprep.mubr.f32.mxu0 %v12087_v23  ;;  %9673 = vmatpush3.bf16.msra.mxu0 %v9672_v18  ;;  %1427 = vst [vmem:[#allocation3 + $0x3f8] sm:$0xff] %v12399_v22  ;;  %v12404_v23 = vld [vmem:[%s12039_s15 + $0x150] sm:$0xff] }
 0x12c   : > { %9674 = vmatprep.subr.bf16.mxu0 %v17648_v21  ;;  %1319 = vst [vmem:[#allocation3 + $0x3f0] sm:$0xff] %v12404_v23  ;;  %v12430_v18 = vld [vmem:[%s12039_s15 + $0x169] sm:$0xff] }
 0x12d   : > { %1430 = vst [vmem:[#allocation3 + $0x440] sm:$0xff] %v12430_v18 }
 0x12e   : > { %1889 = vmatmul.mubr.f32.gmra.mrb[12].mxu0 %v12090_v24  ;;  %v12415_v24 = vld [vmem:[%s12039_s15 + $0x158] sm:$0xff] }
 0x12f   : > { %1893 = vmatprep.mubr.f32.mxu0 %v12097_v27  ;;  %9676 = vmatpush3.bf16.msra.mxu0 %v9675_v20  ;;  %1320 = vst [vmem:[#allocation3 + $0x408] sm:$0xff] %v12415_v24  ;;  %v12420_v27 = vld [vmem:[%s12039_s15 + $0x161] sm:$0xff] }
 0x130   : > { %9677 = vmatprep.subr.bf16.mxu0 %v17648_v21  ;;  %1429 = vst [vmem:[#allocation3 + $0x428] sm:$0xff] %v12420_v27  ;;  %v12664_v20 = vld [vmem:[%s12039_s15 + $0x1a] sm:$0xff] }
 0x132   : > { %1894 = vmatmul.mubr.f32.gmra.mrb[14].mxu0 %v12101_v28  ;;  %v12425_v28 = vld [vmem:[%s12039_s15 + $0x160] sm:$0xff] }
 0x133   : > { %1898 = vmatprep.mubr.f32.mxu0 %v12104_v29  ;;  %1321 = vst [vmem:[#allocation3 + $0x420] sm:$0xff] %v12425_v28  ;;  %v1792_v29 = vld [vmem:[#allocation7 + $0x2f0] sm:$0xff] }
 0x136   : > { %1899 = vmatmul.mubr.f32.gmra.mrb[16].mxu0 %v12107_v30  ;;  %v9678_v30 = vpack.c.bf16 %v1793_v13, %v1792_v29  ;;  %v1691_v29 = vld [vmem:[#allocation7 + $0x18] sm:$0xff] }
 0x137   : > { %1903 = vmatprep.mubr.f32.mxu0 %v12113_v32  ;;  %v12435_v32 = vld [vmem:[%s12039_s15 + $0x168] sm:$0xff] }
 0x138   : > { %1322 = vst [vmem:[#allocation3 + $0x438] sm:$0xff] %v12435_v32  ;;  %9679 = vmatpush3.bf16.msra.mxu0 %v9678_v30  ;;  %v12674_v13 = vld [vmem:[%s12039_s15 + $0x22] sm:$0xff] }
 0x139   : > { %9680 = vmatprep.subr.bf16.mxu0 %v17648_v21 }
 0x13a   : > { %1904 = vmatmul.mubr.f32.gmra.mrb[18].mxu0 %v12116_v33  ;;  %v12440_v33 = vld [vmem:[%s12039_s15 + $0x171] sm:$0xff] }
 0x13b   : > { %1908 = vmatprep.mubr.f32.mxu0 %v12119_v34  ;;  %1431 = vst [vmem:[#allocation3 + $0x458] sm:$0xff] %v12440_v33  ;;  %v12446_v34 = vld [vmem:[%s12039_s15 + $0x170] sm:$0xff] }
 0x13c   : > { %1323 = vst [vmem:[#allocation3 + $0x450] sm:$0xff] %v12446_v34 }
 0x13e   : > { %1909 = vmatmul.mubr.f32.gmra.mrb[20].mxu0 %v12125_v36  ;;  %v12456_v36 = vld [vmem:[%s12039_s15 + $0x178] sm:$0xff] }
 0x13f   : > { %1913 = vmatprep.mubr.f32.mxu0 %v12128_v37  ;;  %1324 = vst [vmem:[#allocation3 + $0x468] sm:$0xff] %v12456_v36  ;;  %v12461_v37 = vld [vmem:[%s12039_s15 + $0x181] sm:$0xff] }
 0x140   : > { %1433 = vst [vmem:[#allocation3 + $0x488] sm:$0xff] %v12461_v37 }
 0x142   : > { %1914 = vmatmul.mubr.f32.gmra.mrb[22].mxu0 %v12131_v38  ;;  %v12466_v38 = vld [vmem:[%s12039_s15 + $0x180] sm:$0xff] }
 0x143   : > { %1918 = vmatprep.mubr.f32.mxu0 %v12138_v40  ;;  %1325 = vst [vmem:[#allocation3 + $0x480] sm:$0xff] %v12466_v38  ;;  %v12471_v40 = vld [vmem:[%s12039_s15 + $0x189] sm:$0xff] }
 0x144   : > { %1434 = vst [vmem:[#allocation3 + $0x4a0] sm:$0xff] %v12471_v40 }
 0x146   : > { %1919 = vmatmul.mubr.f32.gmra.mrb[24].mxu0 %v12141_v41  ;;  %v12476_v41 = vld [vmem:[%s12039_s15 + $0x188] sm:$0xff] }
 0x147   : > { %1923 = vmatprep.mubr.f32.mxu0 %v12146_v42  ;;  %1326 = vst [vmem:[#allocation3 + $0x498] sm:$0xff] %v12476_v41  ;;  %v17309_v42 = vmov 0.0  }
 0x148   : > { %4903 = vst [vmem:[#allocation2 + $0x192] sm:$0x3f] %v17309_v42 }
 0x14a   : > { %1924 = vmatmul.mubr.f32.gmra.mrb[26].mxu0 %v12149_v43  ;;  %v12489_v43 = vld [vmem:[%s12039_s15 + $0x32] sm:$0xff] }
 0x14b   : > { %1928 = vmatprep.mubr.f32.mxu0 %v12154_v46  ;;  %1499 = vst [vmem:[#allocation3 + $0xa0] sm:$0xff] %v12489_v43  ;;  %v12495_v46 = vld [vmem:[%s12039_s15 + $0x3a] sm:$0xff] }
 0x14c   : > { %1500 = vst [vmem:[#allocation3 + $0xb8] sm:$0xff] %v12495_v46 }
 0x14e   : > { %1929 = vmatmul.mubr.f32.gmra.mrb[28].mxu0 %v12157_v47  ;;  %v12501_v47 = vld [vmem:[%s12039_s15 + $0x42] sm:$0xff] }
 0x14f   : > { %1933 = vmatprep.mubr.f32.mxu0 %v12160_v48  ;;  %1501 = vst [vmem:[#allocation3 + $0xd0] sm:$0xff] %v12501_v47  ;;  %v12507_v48 = vld [vmem:[%s12039_s15 + $0x4a] sm:$0xff] }
 0x150   : > { %1502 = vst [vmem:[#allocation3 + $0xe8] sm:$0xff] %v12507_v48 }
 0x152   : > { %1934 = vmatmul.mubr.f32.gmra.mrb[30].mxu0 %v12166_v50  ;;  %v12513_v50 = vld [vmem:[%s12039_s15 + $0x52] sm:$0xff] }
 0x153   : > { %1938 = vmatprep.mubr.f32.mxu0 %v12169_v51  ;;  %1503 = vst [vmem:[#allocation3 + $0x100] sm:$0xff] %v12513_v50  ;;  %v12519_v51 = vld [vmem:[%s12039_s15 + $0x5a] sm:$0xff] }
 0x154   : > { %1504 = vst [vmem:[#allocation3 + $0x118] sm:$0xff] %v12519_v51 }
 0x156   : > { %1939 = vmatmul.mubr.f32.gmra.mrb[32].mxu0 %v12172_v52  ;;  %v12525_v52 = vld [vmem:[%s12039_s15 + $0x62] sm:$0xff] }
 0x157   : > { %1943 = vmatprep.mubr.f32.mxu0 %v12179_v53  ;;  %1505 = vst [vmem:[#allocation3 + $0x130] sm:$0xff] %v12525_v52  ;;  %v12531_v53 = vld [vmem:[%s12039_s15 + $0x6a] sm:$0xff] }
 0x158   : > { %1506 = vst [vmem:[#allocation3 + $0x148] sm:$0xff] %v12531_v53 }
 0x15a   : > { %1944 = vmatmul.mubr.f32.gmra.mrb[34].mxu0 %v12182_v54  ;;  %v12537_v54 = vld [vmem:[%s12039_s15 + $0x72] sm:$0xff] }
 0x15b   : > { %1948 = vmatprep.mubr.f32.mxu0 %v12185_v55  ;;  %1507 = vst [vmem:[#allocation3 + $0x160] sm:$0xff] %v12537_v54  ;;  %v12543_v55 = vld [vmem:[%s12039_s15 + $0x7a] sm:$0xff] }
 0x15c   : > { %1508 = vst [vmem:[#allocation3 + $0x178] sm:$0xff] %v12543_v55 }
 0x15e   : > { %1949 = vmatmul.mubr.f32.gmra.mrb[36].mxu0 %v12191_v56  ;;  %v12549_v56 = vld [vmem:[%s12039_s15 + $0x82] sm:$0xff] }
 0x15f   : > { %1953 = vmatprep.mubr.f32.mxu0 %v12195_v59  ;;  %1509 = vst [vmem:[#allocation3 + $0x190] sm:$0xff] %v12549_v56  ;;  %v17650_v59 = vld [vmem:[#allocation22_spill] sm:$0xff] }
 0x162   : > { %1954 = vmatmul.mubr.f32.gmra.mrb[38].mxu0 %v12198_v60  ;;  %v12555_v60 = vld [vmem:[%s12039_s15 + $0x8a] sm:$0xff] }
 0x163   : > { %1958 = vmatprep.mubr.f32.mxu0 %v12201_v61  ;;  %1510 = vst [vmem:[#allocation3 + $0x1a8] sm:$0xff] %v12555_v60  ;;  %v17651_v61 = vld [vmem:[#allocation23_spill] sm:$0xff] }
 0x166   : > { %1959 = vmatmul.mubr.f32.gmra.mrb[40].mxu0 %v12207_v63  ;;  %v17652_v63 = vld [vmem:[#allocation24_spill] sm:$0xff] }
 0x167   : > { %1963 = vmatprep.mubr.f32.mxu0 %v12210_v1  ;;  %v12561_v1 = vld [vmem:[%s12039_s15 + $0x92] sm:$0xff] }
 0x168   : > { %1511 = vst [vmem:[#allocation3 + $0x1c0] sm:$0xff] %v12561_v1 }
 0x16a   : > { %1964 = vmatmul.mubr.f32.gmra.mrb[42].mxu0 %v12213_v2  ;;  %v17653_v2 = vld [vmem:[#allocation25_spill] sm:$0xff] }
 0x16b   : > { %1968 = vmatprep.mubr.f32.mxu0 %v12220_v3  ;;  %v17654_v3 = vld [vmem:[#allocation26_spill] sm:$0xff] }
 0x16e   : > { %1969 = vmatmul.mubr.f32.gmra.mrb[44].mxu0 %v12223_v4  ;;  %v12567_v4 = vld [vmem:[%s12039_s15 + $0x9a] sm:$0xff] }
 0x16f   : > { %1973 = vmatprep.mubr.f32.mxu0 %v12226_v5  ;;  %1512 = vst [vmem:[#allocation3 + $0x1d8] sm:$0xff] %v12567_v4  ;;  %v17655_v5 = vld [vmem:[#allocation27_spill] sm:$0xff] }
 0x172   : > { %1974 = vmatmul.mubr.f32.gmra.mrb[46].mxu0 %v12232_v6  ;;  %v17656_v6 = vld [vmem:[#allocation28_spill] sm:$0xff] }
 0x173   : > { %1978 = vmatprep.mubr.f32.mxu0 %v12236_v7  ;;  %v12573_v7 = vld [vmem:[%s12039_s15 + $0xa2] sm:$0xff] }
 0x174   : > { %1513 = vst [vmem:[#allocation3 + $0x1f0] sm:$0xff] %v12573_v7 }
 0x176   : > { %1979 = vmatmul.mubr.f32.gmra.mrb[48].mxu0 %v12240_v9  ;;  %v17657_v9 = vld [vmem:[#allocation30_spill] sm:$0xff] }
 0x177   : > { %1983 = vmatprep.mubr.f32.mxu0 %v12245_v12  ;;  %v17658_v12 = vld [vmem:[#allocation32_spill] sm:$0xff] }
 0x17a   : > { %1984 = vmatmul.mubr.f32.gmra.mrb[50].mxu0 %v12249_v14  ;;  %v12579_v14 = vld [vmem:[%s12039_s15 + $0xaa] sm:$0xff] }
 0x17b   : > { %1988 = vmatprep.mubr.f32.mxu0 %v12254_v25  ;;  %1514 = vst [vmem:[#allocation3 + $0x208] sm:$0xff] %v12579_v14  ;;  %v17659_v25 = vld [vmem:[#allocation34_spill] sm:$0xff] }
 0x17e   : > { %1989 = vmatmul.mubr.f32.gmra.mrb[52].mxu0 %v12258_v31  ;;  %v12585_v31 = vld [vmem:[%s12039_s15 + $0xb2] sm:$0xff] }
 0x17f   : > { %1993 = vmatprep.mubr.f32.mxu0 %v12263_v44  ;;  %1515 = vst [vmem:[#allocation3 + $0x220] sm:$0xff] %v12585_v31  ;;  %v12591_v44 = vld [vmem:[%s12039_s15 + $0xba] sm:$0xff] }
 0x180   : > { %1516 = vst [vmem:[#allocation3 + $0x238] sm:$0xff] %v12591_v44 }
 0x182   : > { %1994 = vmatmul.mubr.f32.gmra.mrb[54].mxu0 %v12267_v49  ;;  %v12597_v49 = vld [vmem:[%s12039_s15 + $0xc2] sm:$0xff] }
 0x183   : > { %1998 = vmatprep.mubr.f32.mxu0 %v12272_v62  ;;  %1517 = vst [vmem:[#allocation3 + $0x250] sm:$0xff] %v12597_v49  ;;  %v12603_v62 = vld [vmem:[%s12039_s15 + $0xca] sm:$0xff] }
 0x184   : > { %1518 = vst [vmem:[#allocation3 + $0x268] sm:$0xff] %v12603_v62 }
 0x186   : > { %1999 = vmatmul.mubr.f32.gmra.mrb[56].mxu0 %v12276_v10  ;;  %v12609_v10 = vld [vmem:[%s12039_s15 + $0xd2] sm:$0xff] }
 0x187   : > { %2003 = vmatprep.mubr.f32.mxu0 %v17650_v59  ;;  %1519 = vst [vmem:[#allocation3 + $0x280] sm:$0xff] %v12609_v10  ;;  %v1694_v59 = vld [vmem:[#allocation7 + $0x30] sm:$0xff] }
 0x18a   : > { %2004 = vmatmul.mubr.f32.gmra.mrb[58].mxu0 %v17651_v61  ;;  %v1695_v61 = vld [vmem:[#allocation7 + $0x38] sm:$0xff] }
 0x18b   : > { %2008 = vmatprep.mubr.f32.mxu0 %v17652_v63  ;;  %v9690_v63 = vpack.c.bf16 %v1695_v61, %v1694_v59  ;;  %v12736_v59 = vld [vmem:[%s12039_s15 + $0x15a] sm:$0xff] }
 0x18c   : > { %v1706_v61 = vld [vmem:[#allocation7 + $0x90] sm:$0xff]  ;;  %1536 = vst [vmem:[#allocation3 + $0x418] sm:$0xff] %v12736_v59 }
 0x18e   : > { %2009 = vmatmul.mubr.f32.gmra.mrb[60].mxu0 %v17653_v2  ;;  %v12696_v2 = vld [vmem:[%s12039_s15 + $0x132] sm:$0xff] }
 0x18f   : > { %2013 = vmatprep.mubr.f32.mxu0 %v17654_v3  ;;  %v1696_v3 = vld [vmem:[#allocation7 + $0x40] sm:$0xff]  ;;  %1531 = vst [vmem:[#allocation3 + $0x3a0] sm:$0xff] %v12696_v2 }
 0x192   : > { %2014 = vmatmul.mubr.f32.gmra.mrb[62].mxu0 %v17655_v5  ;;  %v1697_v5 = vld [vmem:[#allocation7 + $0x48] sm:$0xff] }
 0x193   : > { %2018 = vmatprep.mubr.f32.mxu0 %v17656_v6  ;;  %v9693_v6 = vpack.c.bf16 %v1697_v5, %v1696_v3  ;;  %v12744_v3 = vld [vmem:[%s12039_s15 + $0x162] sm:$0xff] }
 0x194   : > { %v1708_v5 = vld [vmem:[#allocation7 + $0xa0] sm:$0xff]  ;;  %1537 = vst [vmem:[#allocation3 + $0x430] sm:$0xff] %v12744_v3 }
 0x196   : > { %2019 = vmatmul.mubr.f32.gmra.mrb[64].mxu0 %v17657_v9  ;;  %v12704_v9 = vld [vmem:[%s12039_s15 + $0x13a] sm:$0xff] }
 0x197   : > { %2023 = vmatprep.mubr.f32.mxu0 %v17658_v12  ;;  %v1698_v12 = vld [vmem:[#allocation7 + $0x50] sm:$0xff]  ;;  %1532 = vst [vmem:[#allocation3 + $0x3b8] sm:$0xff] %v12704_v9 }
 0x19a   : > { %2024 = vmatmul.mubr.f32.gmra.mrb[66].mxu0 %v17659_v25  ;;  %v1699_v25 = vld [vmem:[#allocation7 + $0x58] sm:$0xff] }
 0x19b   : > { %2028 = vmatprep.mubr.f32.mxu0 %v12341_v57  ;;  %v12627_v57 = vld [vmem:[%s12039_s15 + $0xea] sm:$0xff] }
 0x19c   : > { %1522 = vst [vmem:[#allocation3 + $0x2c8] sm:$0xff] %v12627_v57 }
 0x19e   : > { %2029 = vmatmul.mubr.f32.gmra.mrb[68].mxu0 %v12349_v11  ;;  %v12615_v11 = vld [vmem:[%s12039_s15 + $0xda] sm:$0xff] }
 0x19f   : > { %2033 = vmatprep.mubr.f32.mxu0 %v12355_v35  ;;  %1520 = vst [vmem:[#allocation3 + $0x298] sm:$0xff] %v12615_v11  ;;  %v12621_v35 = vld [vmem:[%s12039_s15 + $0xe2] sm:$0xff] }
 0x1a0   : > { %1521 = vst [vmem:[#allocation3 + $0x2b0] sm:$0xff] %v12621_v35 }
 0x1a2   : > { %2034 = vmatmul.mubr.f32.gmra.mrb[70].mxu0 %v12360_v8  ;;  %v12639_v8 = vld [vmem:[%s12039_s15 + $0xfa] sm:$0xff] }
 0x1a3   : > { %2038 = vmatprep.mubr.f32.mxu0 %v12366_v15  ;;  %v12633_v15 = vld [vmem:[%s12039_s15 + $0xf2] sm:$0xff]  ;;  %1524 = vst [vmem:[#allocation3 + $0x2f8] sm:$0xff] %v12639_v8 }
 0x1a4   : > { %1523 = vst [vmem:[#allocation3 + $0x2e0] sm:$0xff] %v12633_v15 }
 0x1a6   : > { %2039 = vmatmul.mubr.f32.gmra.mrb[72].mxu0 %v12371_v16  ;;  %v12645_v16 = vld [vmem:[%s12039_s15 + $0x102] sm:$0xff] }
 0x1a7   : > { %2043 = vmatprep.mubr.f32.mxu0 %v12377_v17  ;;  %1525 = vst [vmem:[#allocation3 + $0x310] sm:$0xff] %v12645_v16  ;;  %v12651_v17 = vld [vmem:[%s12039_s15 + $0x10a] sm:$0xff] }
 0x1a8   : > { %1526 = vst [vmem:[#allocation3 + $0x328] sm:$0xff] %v12651_v17 }
 0x1aa   : > { %2044 = vmatmul.mubr.f32.gmra.mrb[74].mxu0 %v12382_v45  ;;  %v12657_v45 = vld [vmem:[%s12039_s15 + $0x112] sm:$0xff] }
 0x1ab   : > { %2048 = vmatprep.mubr.f32.mxu0 %v12388_v19  ;;  %v1689_v19 = vld [vmem:[#allocation7 + $0x8] sm:$0xff]  ;;  %1527 = vst [vmem:[#allocation3 + $0x340] sm:$0xff] %v12657_v45 }
 0x1ae   : > { %2049 = vmatmul.mubr.f32.gmra.mrb[76].mxu0 %v12393_v0  ;;  %v9681_v0 = vpack.c.bf16 %v1689_v19, %v1688_v39  ;;  %v12712_v39 = vld [vmem:[%s12039_s15 + $0x142] sm:$0xff] }
 0x1af   : > { %2053 = vmatprep.mubr.f32.mxu0 %v12399_v22  ;;  %v12667_v22 = vld [vmem:[%s12039_s15 + $0x11a] sm:$0xff]  ;;  %1533 = vst [vmem:[#allocation3 + $0x3d0] sm:$0xff] %v12712_v39 }
 0x1b0   : > { %1528 = vst [vmem:[#allocation3 + $0x358] sm:$0xff] %v12667_v22  ;;  %v1700_v19 = vld [vmem:[#allocation7 + $0x60] sm:$0xff] }
 0x1b2   : > { %2054 = vmatmul.mubr.f32.gmra.mrb[78].mxu0 %v12404_v23  ;;  %v1690_v23 = vld [vmem:[#allocation7 + $0x10] sm:$0xff] }
 0x1b3   : > { %2058 = vmatprep.mubr.f32.mxu0 %v12410_v26  ;;  %v9684_v30 = vpack.c.bf16 %v1691_v29, %v1690_v23  ;;  %v12720_v23 = vld [vmem:[%s12039_s15 + $0x14a] sm:$0xff] }
 0x1b4   : > { %v1702_v29 = vld [vmem:[#allocation7 + $0x70] sm:$0xff]  ;;  %1534 = vst [vmem:[#allocation3 + $0x3e8] sm:$0xff] %v12720_v23 }
 0x1b6   : > { %2059 = vmatmul.mubr.f32.gmra.mrb[80].mxu0 %v12415_v24 }
 0x1b7   : > { %2063 = vmatprep.mubr.f32.mxu0 %v12420_v27 }
 0x1ba   : > { %2064 = vmatmul.mubr.f32.gmra.mrb[82].mxu0 %v12425_v28 }
 0x1bb   : > { %2068 = vmatprep.mubr.f32.mxu0 %v12430_v18 }
 0x1be   : > { %2069 = vmatmul.mubr.f32.gmra.mrb[84].mxu0 %v12435_v32 }
 0x1bf   : > { %2073 = vmatprep.mubr.f32.mxu0 %v12440_v33 }
 0x1c2   : > { %2074 = vmatmul.mubr.f32.gmra.mrb[86].mxu0 %v12446_v34 }
 0x1c3   : > { %2078 = vmatprep.mubr.f32.mxu0 %v12451_v58  ;;  %v12677_v58 = vld [vmem:[%s12039_s15 + $0x122] sm:$0xff] }
 0x1c4   : > { %1529 = vst [vmem:[#allocation3 + $0x370] sm:$0xff] %v12677_v58 }
 0x1c6   : > { %2079 = vmatmul.mubr.f32.gmra.mrb[88].mxu0 %v12456_v36  ;;  %v1692_v36 = vld [vmem:[#allocation7 + $0x20] sm:$0xff] }
 0x1c7   : > { %2083 = vmatprep.mubr.f32.mxu0 %v12461_v37  ;;  %v1693_v37 = vld [vmem:[#allocation7 + $0x28] sm:$0xff] }
 0x1ca   : > { %2084 = vmatmul.mubr.f32.gmra.mrb[90].mxu0 %v12466_v38  ;;  %v12685_v38 = vld [vmem:[%s12039_s15 + $0x2a] sm:$0xff] }
 0x1cb   : > { %2088 = vmatprep.mubr.f32.mxu0 %v12471_v40  ;;  %v9687_v40 = vpack.c.bf16 %v1693_v37, %v1692_v36  ;;  %v12728_v36 = vld [vmem:[%s12039_s15 + $0x152] sm:$0xff] }
 0x1cc   : > { %v1704_v37 = vld [vmem:[#allocation7 + $0x80] sm:$0xff]  ;;  %1535 = vst [vmem:[#allocation3 + $0x400] sm:$0xff] %v12728_v36 }
 0x1ce   : > { %2089 = vmatmul.mubr.f32.gmra.mrb[92].mxu0 %v12476_v41  ;;  %v12688_v41 = vld [vmem:[%s12039_s15 + $0x12a] sm:$0xff] }
 0x1cf   : > { %8602 = vmatprep.mubr.msk.f32.mxu0 %vm17480_vm0, %v17309_v42  ;;  %1530 = vst [vmem:[#allocation3 + $0x388] sm:$0xff] %v12688_v41 }
 0x1d2   : > { %8603 = vmatmul.mubr.f32.vlgmr.msra.gmra.mrb[0].mxu0 %v12664_v20 }
 0x1d3   : > { %9682 = vmatpush1.bf16.msra.mxu0 %v9681_v0  ;;  %8605 = vmatprep.mubr.msk.f32.mxu0 %vm17480_vm0, %v17309_v42  ;;  %v1701_v0 = vld [vmem:[#allocation7 + $0x68] sm:$0xff] }
 0x1d4   : > { %9683 = vmatprep.subr.bf16.mxu0 %v17648_v21 }
 0x1d6   : > { %8606 = vmatmul.mubr.f32.gmra.mrb[2].mxu0 %v12674_v13 }
 0x1d7   : > { %8608 = vmatprep.mubr.msk.f32.mxu0 %vm17480_vm0, %v17309_v42  ;;  %9685 = vmatpush1.bf16.msra.mxu0 %v9684_v30  ;;  %v1703_v30 = vld [vmem:[#allocation7 + $0x78] sm:$0xff] }
 0x1d8   : > { %9686 = vmatprep.subr.bf16.mxu0 %v17648_v21 }
 0x1da   : > { %8609 = vmatmul.mubr.f32.gmra.mrb[4].mxu0 %v12685_v38 }
 0x1db   : > { %8611 = vmatprep.mubr.msk.f32.mxu0 %vm17480_vm0, %v17309_v42  ;;  %9688 = vmatpush1.bf16.msra.mxu0 %v9687_v40  ;;  %v1705_v40 = vld [vmem:[#allocation7 + $0x88] sm:$0xff] }
 0x1dc   : > { %9689 = vmatprep.subr.bf16.mxu0 %v17648_v21 }
 0x1de   : > { %8612 = vmatmul.mubr.f32.gmra.mrb[6].mxu0 %v12489_v43  ;;  %v9696_v43 = vpack.c.bf16 %v1699_v25, %v1698_v12  ;;  %v12752_v12 = vld [vmem:[%s12039_s15 + $0x16a] sm:$0xff] }
 0x1df   : > { %8614 = vmatprep.mubr.msk.f32.mxu0 %vm17480_vm0, %v17309_v42  ;;  %9691 = vmatpush1.bf16.msra.mxu0 %v9690_v63  ;;  %v1707_v63 = vld [vmem:[#allocation7 + $0x98] sm:$0xff]  ;;  %v1710_v25 = vld [vmem:[#allocation7 + $0xb0] sm:$0xff]  ;;  %1538 = vst [vmem:[#allocation3 + $0x448] sm:$0xff] %v12752_v12 }
 0x1e0   : > { %9692 = vmatprep.subr.bf16.mxu0 %v17648_v21 }
 0x1e2   : > { %8615 = vmatmul.mubr.f32.gmra.mrb[8].mxu0 %v12495_v46  ;;  %v9699_v46 = vpack.c.bf16 %v1701_v0, %v1700_v19  ;;  %v12760_v19 = vld [vmem:[%s12039_s15 + $0x172] sm:$0xff] }
 0x1e3   : > { %8617 = vmatprep.mubr.msk.f32.mxu0 %vm17480_vm0, %v17309_v42  ;;  %9694 = vmatpush1.bf16.msra.mxu0 %v9693_v6  ;;  %v1709_v6 = vld [vmem:[#allocation7 + $0xa8] sm:$0xff]  ;;  %v1712_v0 = vld [vmem:[#allocation7 + $0xc0] sm:$0xff]  ;;  %1539 = vst [vmem:[#allocation3 + $0x460] sm:$0xff] %v12760_v19 }
 0x1e4   : > { %9695 = vmatprep.subr.bf16.mxu0 %v17648_v21 }
 0x1e6   : > { %8618 = vmatmul.mubr.f32.gmra.mrb[10].mxu0 %v12501_v47  ;;  %v9702_v47 = vpack.c.bf16 %v1703_v30, %v1702_v29  ;;  %v12768_v29 = vld [vmem:[%s12039_s15 + $0x17a] sm:$0xff] }
 0x1e7   : > { %8620 = vmatprep.mubr.msk.f32.mxu0 %vm17480_vm0, %v17309_v42  ;;  %9697 = vmatpush1.bf16.msra.mxu0 %v9696_v43  ;;  %v1711_v43 = vld [vmem:[#allocation7 + $0xb8] sm:$0xff]  ;;  %v1714_v30 = vld [vmem:[#allocation7 + $0xd0] sm:$0xff]  ;;  %1540 = vst [vmem:[#allocation3 + $0x478] sm:$0xff] %v12768_v29 }
 0x1e8   : > { %9698 = vmatprep.subr.bf16.mxu0 %v17648_v21 }
 0x1ea   : > { %8621 = vmatmul.mubr.f32.gmra.mrb[12].mxu0 %v12507_v48  ;;  %v9705_v48 = vpack.c.bf16 %v1705_v40, %v1704_v37  ;;  %v12776_v37 = vld [vmem:[%s12039_s15 + $0x182] sm:$0xff] }
 0x1eb   : > { %8623 = vmatprep.mubr.msk.f32.mxu0 %vm17480_vm0, %v17309_v42  ;;  %9700 = vmatpush1.bf16.msra.mxu0 %v9699_v46  ;;  %v1713_v46 = vld [vmem:[#allocation7 + $0xc8] sm:$0xff]  ;;  %v1716_v40 = vld [vmem:[#allocation7 + $0xe0] sm:$0xff]  ;;  %1541 = vst [vmem:[#allocation3 + $0x490] sm:$0xff] %v12776_v37 }
 0x1ec   : > { %9701 = vmatprep.subr.bf16.mxu0 %v17648_v21 }
 0x1ee   : > { %8624 = vmatmul.mubr.f32.gmra.mrb[14].mxu0 %v12513_v50  ;;  %v9708_v50 = vpack.c.bf16 %v1707_v63, %v1706_v61  ;;  %v12784_v61 = vld [vmem:[%s12039_s15 + $0x18a] sm:$0xff] }
 0x1ef   : > { %8626 = vmatprep.mubr.msk.f32.mxu0 %vm17480_vm0, %v17309_v42  ;;  %9703 = vmatpush1.bf16.msra.mxu0 %v9702_v47  ;;  %v1715_v47 = vld [vmem:[#allocation7 + $0xd8] sm:$0xff]  ;;  %v1718_v63 = vld [vmem:[#allocation7 + $0xf0] sm:$0xff]  ;;  %1542 = vst [vmem:[#allocation3 + $0x4a8] sm:$0xff] %v12784_v61 }
 0x1f0   : > { %9704 = vmatprep.subr.bf16.mxu0 %v17648_v21 }
 0x1f2   : > { %8627 = vmatmul.mubr.f32.gmra.mrb[16].mxu0 %v12519_v51  ;;  %v9711_v51 = vpack.c.bf16 %v1709_v6, %v1708_v5  ;;  %v1225_v5 = vld [vmem:[%s12039_s15 + $0x10] sm:$0xff] }
 0x1f3   : > { %8629 = vmatprep.mubr.msk.f32.mxu0 %vm17480_vm0, %v17309_v42  ;;  %9706 = vmatpush1.bf16.msra.mxu0 %v9705_v48  ;;  %v1717_v48 = vld [vmem:[#allocation7 + $0xe8] sm:$0xff] }
 0x1f4   : > { %9707 = vmatprep.subr.bf16.mxu0 %v17648_v21 }
 0x1f6   : > { %8630 = vmatmul.mubr.f32.gmra.mrb[18].mxu0 %v12525_v52  ;;  %v9714_v52 = vpack.c.bf16 %v1711_v43, %v1710_v25  ;;  %v1727_v25 = vld [vmem:[#allocation7 + $0x138] sm:$0xff] }
 0x1f7   : > { %8632 = vmatprep.mubr.msk.f32.mxu0 %vm17480_vm0, %v17309_v42  ;;  %9709 = vmatpush1.bf16.msra.mxu0 %v9708_v50  ;;  %v1719_v50 = vld [vmem:[#allocation7 + $0xf8] sm:$0xff] }
 0x1f8   : > { %9710 = vmatprep.subr.bf16.mxu0 %v17648_v21  ;;  %v11197_v43 = vld [vmem:[%s12039_s15 + $0x19] sm:$0xff] }
 0x1fa   : > { %8633 = vmatmul.mubr.f32.gmra.mrb[20].mxu0 %v12531_v53  ;;  %v9717_v53 = vpack.c.bf16 %v1713_v46, %v1712_v0  ;;  %v1728_v0 = vld [vmem:[#allocation7 + $0x140] sm:$0xff]  ;;  %v1729_v46 = vld [vmem:[#allocation7 + $0x148] sm:$0xff] }
 0x1fb   : > { %8635 = vmatprep.mubr.msk.f32.mxu0 %vm17480_vm0, %v17309_v42  ;;  %9712 = vmatpush1.bf16.msra.mxu0 %v9711_v51  ;;  %v1726_v51 = vld [vmem:[#allocation7 + $0x130] sm:$0xff] }
 0x1fc   : > { %9713 = vmatprep.subr.bf16.mxu0 %v17648_v21 }
 0x1fe   : > { %8636 = vmatmul.mubr.f32.gmra.mrb[22].mxu0 %v12537_v54  ;;  %v9720_v54 = vpack.c.bf16 %v1715_v47, %v1714_v30  ;;  %v9741_v30 = vpack.c.bf16 %v1729_v46, %v1728_v0  ;;  %v1730_v47 = vld [vmem:[#allocation7 + $0x150] sm:$0xff]  ;;  %v11215_v0 = vld [vmem:[#allocation3 + $0x150] sm:$0xff] }
 0x1ff   : > { %8638 = vmatprep.mubr.msk.f32.mxu0 %vm17480_vm0, %v17309_v42  ;;  %9715 = vmatpush1.bf16.msra.mxu0 %v9714_v52  ;;  %v9738_v52 = vpack.c.bf16 %v1727_v25, %v1726_v51  ;;  %v11211_v51 = vld [vmem:[#allocation3 + $0x120] sm:$0xff]  ;;  %v11216_v46 = vld [vmem:[#allocation3 + $0x170] sm:$0xff] }
 0x200   : > { %9716 = vmatprep.subr.bf16.mxu0 %v17648_v21  ;;  %v11212_v25 = vld [vmem:[#allocation3 + $0x140] sm:$0xff] }
 0x202   : > { %8639 = vmatmul.mubr.f32.gmra.mrb[24].mxu0 %v12543_v55  ;;  %v9723_v55 = vpack.c.bf16 %v1717_v48, %v1716_v40  ;;  %v17663_v40 = vld [vmem:[#allocation35_spill] sm:$0xff] }
 0x203   : > { %8641 = vmatprep.mubr.msk.f32.mxu0 %vm17480_vm0, %v17309_v42  ;;  %9718 = vmatpush1.bf16.msra.mxu0 %v9717_v53  ;;  %v17660_v53 = vld [vmem:[#allocation29_spill] sm:$0xff] }
 0x204   : > { %9719 = vmatprep.subr.bf16.mxu0 %v17648_v21 }
 0x206   : > { %8642 = vmatmul.mubr.f32.gmra.mrb[26].mxu0 %v12549_v56  ;;  %v9726_v56 = vpack.c.bf16 %v1719_v50, %v1718_v63  ;;  %v17664_v63 = vld [vmem:[#allocation36_spill] sm:$0xff] }
 0x207   : > { %8644 = vmatprep.mubr.msk.f32.mxu0 %vm17480_vm0, %v17309_v42  ;;  %9721 = vmatpush1.bf16.msra.mxu0 %v9720_v54  ;;  %v1731_v54 = vld [vmem:[#allocation7 + $0x158] sm:$0xff]  ;;  %v11198_v50 = vld [vmem:[#allocation3 + $0x98] sm:$0xff] }
 0x208   : > { %9722 = vmatprep.subr.bf16.mxu0 %v17648_v21  ;;  %v9744_v48 = vpack.c.bf16 %v1731_v54, %v1730_v47  ;;  %v11220_v47 = vld [vmem:[#allocation3 + $0x1a0] sm:$0xff]  ;;  %v11221_v54 = vld [vmem:[#allocation3 + $0x198] sm:$0xff] }
 0x20a   : > { %8645 = vmatmul.mubr.f32.gmra.mrb[28].mxu0 %v12555_v60  ;;  %v1331_v60 = vld [vmem:[%s12039_s15 + $0x1] sm:$0xff] }
 0x20b   : > { %8647 = vmatprep.mubr.msk.f32.mxu0 %vm17480_vm0, %v17309_v42  ;;  %9724 = vmatpush1.bf16.msra.mxu0 %v9723_v55  ;;  %v1732_v55 = vld [vmem:[#allocation7 + $0x160] sm:$0xff] }
 0x20c   : > { %9725 = vmatprep.subr.bf16.mxu0 %v17648_v21 }
 0x20e   : > { %8648 = vmatmul.mubr.f32.gmra.mrb[30].mxu0 %v12561_v1  ;;  %v1720_v1 = vld [vmem:[#allocation7 + $0x100] sm:$0xff] }
 0x20f   : > { %8650 = vmatprep.mubr.msk.f32.mxu0 %vm17480_vm0, %v17309_v42  ;;  %9727 = vmatpush1.bf16.msra.mxu0 %v9726_v56 }
 0x210   : > { %9728 = vmatprep.subr.bf16.mxu0 %v17648_v21 }
 0x212   : > { %8651 = vmatmul.mubr.f32.gmra.mrb[32].mxu0 %v12567_v4  ;;  %v1721_v4 = vld [vmem:[#allocation7 + $0x108] sm:$0xff] }
 0x213   : > { %8653 = vmatprep.mubr.msk.f32.mxu0 %vm17480_vm0, %v17309_v42 }
 0x216   : > { %8654 = vmatmul.mubr.f32.gmra.mrb[34].mxu0 %v12573_v7  ;;  %v1223_v7 = vld [vmem:[%s12039_s15] sm:$0xff] }
 0x217   : > { %8656 = vmatprep.mubr.msk.f32.mxu0 %vm17480_vm0, %v17309_v42 }
 0x21a   : > { %8657 = vmatmul.mubr.f32.gmra.mrb[36].mxu0 %v12579_v14  ;;  %v9729_v14 = vpack.c.bf16 %v1721_v4, %v1720_v1  ;;  %v11200_v1 = vld [vmem:[#allocation3 + $0xb0] sm:$0xff]  ;;  %v11201_v4 = vld [vmem:[#allocation3 + $0xa8] sm:$0xff] }
 0x21b   : > { %8659 = vmatprep.mubr.msk.f32.mxu0 %vm17480_vm0, %v17309_v42 }
 0x21e   : > { %8660 = vmatmul.mubr.f32.gmra.mrb[38].mxu0 %v12585_v31  ;;  %v1332_v31 = vld [vmem:[%s12039_s15 + $0x9] sm:$0xff] }
 0x21f   : > { %8662 = vmatprep.mubr.msk.f32.mxu0 %vm17480_vm0, %v17309_v42 }
 0x222   : > { %8663 = vmatmul.mubr.f32.gmra.mrb[40].mxu0 %v12591_v44  ;;  %v1722_v44 = vld [vmem:[#allocation7 + $0x110] sm:$0xff] }
 0x223   : > { %8665 = vmatprep.mubr.msk.f32.mxu0 %vm17480_vm0, %v17309_v42 }
 0x226   : > { %8666 = vmatmul.mubr.f32.gmra.mrb[42].mxu0 %v12597_v49  ;;  %v1723_v49 = vld [vmem:[#allocation7 + $0x118] sm:$0xff] }
 0x227   : > { %8668 = vmatprep.mubr.msk.f32.mxu0 %vm17480_vm0, %v17309_v42 }
 0x22a   : > { %8669 = vmatmul.mubr.f32.gmra.mrb[44].mxu0 %v12603_v62  ;;  %v1224_v62 = vld [vmem:[%s12039_s15 + $0x8] sm:$0xff] }
 0x22b   : > { %8671 = vmatprep.mubr.msk.f32.mxu0 %vm17480_vm0, %v17309_v42 }
 0x22e   : > { %8672 = vmatmul.mubr.f32.gmra.mrb[46].mxu0 %v12609_v10  ;;  %v9732_v10 = vpack.c.bf16 %v1723_v49, %v1722_v44  ;;  %v11205_v44 = vld [vmem:[#allocation3 + $0xd8] sm:$0xff]  ;;  %v1734_v49 = vld [vmem:[#allocation7 + $0x170] sm:$0xff] }
 0x22f   : > { %8674 = vmatprep.mubr.msk.f32.mxu0 %vm17480_vm0, %v17309_v42 }
 0x232   : > { %8675 = vmatmul.mubr.f32.gmra.mrb[48].mxu0 %v12615_v11  ;;  %v1333_v11 = vld [vmem:[%s12039_s15 + $0x11] sm:$0xff] }
 0x233   : > { %8677 = vmatprep.mubr.msk.f32.mxu0 %vm17480_vm0, %v17309_v42 }
 0x236   : > { %8678 = vmatmul.mubr.f32.gmra.mrb[50].mxu0 %v12621_v35  ;;  %v1724_v35 = vld [vmem:[#allocation7 + $0x120] sm:$0xff] }
 0x237   : > { %8680 = vmatprep.mubr.msk.f32.mxu0 %vm17480_vm0, %v17309_v42 }
 0x23a   : > { %8681 = vmatmul.mubr.f32.gmra.mrb[52].mxu0 %v12627_v57  ;;  %v1725_v57 = vld [vmem:[#allocation7 + $0x128] sm:$0xff] }
 0x23b   : > { %8683 = vmatprep.mubr.msk.f32.mxu0 %vm17480_vm0, %v17309_v42  ;;  %v9735_v6 = vpack.c.bf16 %v1725_v57, %v1724_v35  ;;  %v11207_v35 = vld [vmem:[#allocation3 + $0xf0] sm:$0xff] }
 0x23c   : > { %v11208_v57 = vld [vmem:[#allocation3 + $0x110] sm:$0xff] }
 0x23e   : > { %8684 = vmatmul.mubr.f32.gmra.mrb[54].mxu0 %v12633_v15 }
 0x23f   : > { %8686 = vmatprep.mubr.msk.f32.mxu0 %vm17480_vm0, %v17309_v42 }
 0x242   : > { %8687 = vmatmul.mubr.f32.gmra.mrb[56].mxu0 %v12639_v8 }
 0x243   : > { %8689 = vmatprep.mubr.msk.f32.mxu0 %vm17480_vm0, %v17309_v42 }
 0x246   : > { %8690 = vmatmul.mubr.f32.gmra.mrb[58].mxu0 %v12645_v16 }
 0x247   : > { %8692 = vmatprep.mubr.msk.f32.mxu0 %vm17480_vm0, %v17309_v42 }
 0x24a   : > { %8693 = vmatmul.mubr.f32.gmra.mrb[60].mxu0 %v12651_v17 }
 0x24b   : > { %8695 = vmatprep.mubr.msk.f32.mxu0 %vm17480_vm0, %v17309_v42 }
 0x24e   : > { %8696 = vmatmul.mubr.f32.gmra.mrb[62].mxu0 %v12657_v45 }
 0x24f   : > { %8698 = vmatprep.mubr.msk.f32.mxu0 %vm17480_vm0, %v17309_v42 }
 0x252   : > { %8699 = vmatmul.mubr.f32.gmra.mrb[64].mxu0 %v12667_v22 }
 0x253   : > { %8701 = vmatprep.mubr.msk.f32.mxu0 %vm17480_vm0, %v17309_v42 }
 0x256   : > { %8702 = vmatmul.mubr.f32.gmra.mrb[66].mxu0 %v12677_v58 }
 0x257   : > { %8704 = vmatprep.mubr.msk.f32.mxu0 %vm17480_vm0, %v17309_v42 }
 0x25a   : > { %8705 = vmatmul.mubr.f32.gmra.mrb[68].mxu0 %v12688_v41 }
 0x25b   : > { %8707 = vmatprep.mubr.msk.f32.mxu0 %vm17480_vm0, %v17309_v42 }
 0x25e   : > { %8708 = vmatmul.mubr.f32.gmra.mrb[70].mxu0 %v12696_v2 }
 0x25f   : > { %8710 = vmatprep.mubr.msk.f32.mxu0 %vm17480_vm0, %v17309_v42 }
 0x262   : > { %8711 = vmatmul.mubr.f32.gmra.mrb[72].mxu0 %v12704_v9 }
 0x263   : > { %8713 = vmatprep.mubr.msk.f32.mxu0 %vm17480_vm0, %v17309_v42 }
 0x266   : > { %8714 = vmatmul.mubr.f32.gmra.mrb[74].mxu0 %v12712_v39 }
 0x267   : > { %8716 = vmatprep.mubr.msk.f32.mxu0 %vm17480_vm0, %v17309_v42 }
 0x26a   : > { %8717 = vmatmul.mubr.f32.gmra.mrb[76].mxu0 %v12720_v23 }
 0x26b   : > { %8719 = vmatprep.mubr.msk.f32.mxu0 %vm17480_vm0, %v17309_v42 }
 0x26e   : > { %8720 = vmatmul.mubr.f32.gmra.mrb[78].mxu0 %v12728_v36 }
 0x26f   : > { %8722 = vmatprep.mubr.msk.f32.mxu0 %vm17480_vm0, %v17309_v42 }
 0x272   : > { %8723 = vmatmul.mubr.f32.gmra.mrb[80].mxu0 %v12736_v59 }
 0x273   : > { %8725 = vmatprep.mubr.msk.f32.mxu0 %vm17480_vm0, %v17309_v42 }
 0x276   : > { %8726 = vmatmul.mubr.f32.gmra.mrb[82].mxu0 %v12744_v3 }
 0x277   : > { %8728 = vmatprep.mubr.msk.f32.mxu0 %vm17480_vm0, %v17309_v42 }
 0x27a   : > { %8729 = vmatmul.mubr.f32.gmra.mrb[84].mxu0 %v12752_v12 }
 0x27b   : > { %8731 = vmatprep.mubr.msk.f32.mxu0 %vm17480_vm0, %v17309_v42 }
 0x27e   : > { %8732 = vmatmul.mubr.f32.gmra.mrb[86].mxu0 %v12760_v19 }
 0x27f   : > { %8734 = vmatprep.mubr.msk.f32.mxu0 %vm17480_vm0, %v17309_v42 }
 0x282   : > { %8735 = vmatmul.mubr.f32.gmra.mrb[88].mxu0 %v12768_v29  ;;  %v17661_v29 = vld [vmem:[#allocation31_spill] sm:$0xff] }
 0x283   : > { %8737 = vmatprep.mubr.msk.f32.mxu0 %vm17480_vm0, %v17309_v42 }
 0x286   : > { %8738 = vmatmul.mubr.f32.gmra.mrb[90].mxu0 %v12776_v37  ;;  %v17662_v37 = vld [vmem:[#allocation33_spill] sm:$0xff] }
 0x287   : > { %8740 = vmatprep.mubr.msk.f32.mxu0 %vm17480_vm0, %v17309_v42 }
 0x28a   : > { %8741 = vmatmul.mubr.f32.gmra.mrb[92].mxu0 %v12784_v61  ;;  %v1733_v61 = vld [vmem:[#allocation7 + $0x168] sm:$0xff] }
 0x28b   : > { %2458 = vmatprep.mubr.f32.mxu0 %v1331_v60  ;;  %v9747_v56 = vpack.c.bf16 %v1733_v61, %v1732_v55  ;;  %v11199_v60 = vld [vmem:[#allocation3 + $0x90] sm:$0xff]  ;;  %v11225_v55 = vld [vmem:[#allocation3 + $0x1c8] sm:$0xff] }
 0x28c   : > { %v11226_v61 = vld [vmem:[#allocation3 + $0x1e8] sm:$0xff] }
 0x28e   : > { %2459 = vmatmul.mubr.f32.vlgmr.msra.gmra.mrb[0].mxu0 %v1223_v7  ;;  %v11202_v7 = vld [vmem:[#allocation3 + $0xc8] sm:$0xff] }
 0x28f   : > { %9730 = vmatpush3.bf16.msra.mxu0 %v9729_v14  ;;  %2463 = vmatprep.mubr.f32.mxu0 %v1332_v31  ;;  %v11203_v14 = vld [vmem:[#allocation3 + $0xc0] sm:$0xff] }
 0x290   : > { %9731 = vmatprep.subr.bf16.mxu0 %v17648_v21  ;;  %v11204_v31 = vld [vmem:[#allocation3 + $0xe0] sm:$0xff] }
 0x292   : > { %2464 = vmatmul.mubr.f32.gmra.mrb[2].mxu0 %v1224_v62  ;;  %v1735_v62 = vld [vmem:[#allocation7 + $0x178] sm:$0xff] }
 0x293   : > { %2468 = vmatprep.mubr.f32.mxu0 %v1333_v11  ;;  %9733 = vmatpush3.bf16.msra.mxu0 %v9732_v10  ;;  %v11206_v10 = vld [vmem:[#allocation3 + $0xf8] sm:$0xff]  ;;  %v9750_v11 = vpack.c.bf16 %v1735_v62, %v1734_v49 }
 0x294   : > { %9734 = vmatprep.subr.bf16.mxu0 %v17648_v21  ;;  %v11237_v49 = vld [vmem:[#allocation3 + $0x258] sm:$0xff] }
 0x295   : > { %v11238_v62 = vld [vmem:[#allocation3 + $0x278] sm:$0xff] }
 0x296   : > { %2469 = vmatmul.mubr.f32.gmra.mrb[4].mxu0 %v1225_v5  ;;  %v11209_v5 = vld [vmem:[#allocation3 + $0x108] sm:$0xff] }
 0x297   : > { %2473 = vmatprep.mubr.f32.mxu0 %v11197_v43  ;;  %9736 = vmatpush3.bf16.msra.mxu0 %v9735_v6  ;;  %v11210_v6 = vld [vmem:[#allocation3 + $0x128] sm:$0xff]  ;;  %v11213_v43 = vld [vmem:[#allocation3 + $0x138] sm:$0xff] }
 0x298   : > { %9737 = vmatprep.subr.bf16.mxu0 %v17648_v21 }
 0x29a   : > { %2474 = vmatmul.mubr.f32.gmra.mrb[6].mxu0 %v17660_v53  ;;  %v11217_v53 = vld [vmem:[#allocation3 + $0x168] sm:$0xff] }
 0x29b   : > { %2478 = vmatprep.mubr.f32.mxu0 %v17661_v29  ;;  %9739 = vmatpush3.bf16.msra.mxu0 %v9738_v52  ;;  %v11214_v52 = vld [vmem:[#allocation3 + $0x158] sm:$0xff]  ;;  %v11218_v29 = vld [vmem:[#allocation3 + $0x188] sm:$0xff] }
 0x29c   : > { %9740 = vmatprep.subr.bf16.mxu0 %v17648_v21 }
 0x29e   : > { %2479 = vmatmul.mubr.f32.gmra.mrb[8].mxu0 %v17662_v37  ;;  %v11222_v37 = vld [vmem:[#allocation3 + $0x1b8] sm:$0xff] }
 0x29f   : > { %2483 = vmatprep.mubr.f32.mxu0 %v17663_v40  ;;  %9742 = vmatpush3.bf16.msra.mxu0 %v9741_v30  ;;  %v11219_v30 = vld [vmem:[#allocation3 + $0x180] sm:$0xff]  ;;  %v11223_v40 = vld [vmem:[#allocation3 + $0x1b0] sm:$0xff] }
 0x2a0   : > { %9743 = vmatprep.subr.bf16.mxu0 %v17648_v21 }
 0x2a2   : > { %2484 = vmatmul.mubr.f32.gmra.mrb[10].mxu0 %v17664_v63  ;;  %v11227_v63 = vld [vmem:[#allocation3 + $0x1e0] sm:$0xff] }
 0x2a3   : > { %2488 = vmatprep.mubr.f32.mxu0 %v11198_v50  ;;  %9745 = vmatpush3.bf16.msra.mxu0 %v9744_v48  ;;  %v11224_v48 = vld [vmem:[#allocation3 + $0x1d0] sm:$0xff]  ;;  %v11228_v50 = vld [vmem:[#allocation3 + $0x200] sm:$0xff] }
 0x2a4   : > { %9746 = vmatprep.subr.bf16.mxu0 %v17648_v21 }
 0x2a6   : > { %2489 = vmatmul.mubr.f32.gmra.mrb[12].mxu0 %v11199_v60  ;;  %v11230_v60 = vld [vmem:[#allocation3 + $0x218] sm:$0xff] }
 0x2a7   : > { %2493 = vmatprep.mubr.f32.mxu0 %v11200_v1  ;;  %9748 = vmatpush3.bf16.msra.mxu0 %v9747_v56  ;;  %v11229_v56 = vld [vmem:[#allocation3 + $0x1f8] sm:$0xff]  ;;  %v11231_v1 = vld [vmem:[#allocation3 + $0x210] sm:$0xff] }
 0x2a8   : > { %9749 = vmatprep.subr.bf16.mxu0 %v17648_v21 }
 0x2aa   : > { %2494 = vmatmul.mubr.f32.gmra.mrb[14].mxu0 %v11201_v4  ;;  %v11232_v4 = vld [vmem:[#allocation3 + $0x230] sm:$0xff] }
 0x2ab   : > { %2498 = vmatprep.mubr.f32.mxu0 %v11202_v7  ;;  %9751 = vmatpush3.bf16.msra.mxu0 %v9750_v11  ;;  %v11233_v7 = vld [vmem:[#allocation3 + $0x228] sm:$0xff]  ;;  %v11240_v11 = vld [vmem:[#allocation3 + $0x290] sm:$0xff] }
 0x2ac   : > { %9752 = vmatprep.subr.bf16.mxu0 %v17648_v21 }
 0x2ae   : > { %2499 = vmatmul.mubr.f32.gmra.mrb[16].mxu0 %v11203_v14  ;;  %v11234_v14 = vld [vmem:[#allocation3 + $0x248] sm:$0xff] }
 0x2af   : > { %2503 = vmatprep.mubr.f32.mxu0 %v11204_v31  ;;  %v11235_v31 = vld [vmem:[#allocation3 + $0x240] sm:$0xff] }
 0x2b2   : > { %2504 = vmatmul.mubr.f32.gmra.mrb[18].mxu0 %v11205_v44  ;;  %v11236_v44 = vld [vmem:[#allocation3 + $0x260] sm:$0xff] }
 0x2b3   : > { %2508 = vmatprep.mubr.f32.mxu0 %v11206_v10  ;;  %v11239_v10 = vld [vmem:[#allocation3 + $0x270] sm:$0xff] }
 0x2b6   : > { %2509 = vmatmul.mubr.f32.gmra.mrb[20].mxu0 %v11207_v35  ;;  %v11241_v35 = vld [vmem:[#allocation3 + $0x288] sm:$0xff] }
 0x2b7   : > { %2513 = vmatprep.mubr.f32.mxu0 %v11208_v57  ;;  %v11242_v57 = vld [vmem:[#allocation3 + $0x2a8] sm:$0xff] }
 0x2ba   : > { %2514 = vmatmul.mubr.f32.gmra.mrb[22].mxu0 %v11209_v5  ;;  %v11243_v5 = vld [vmem:[#allocation3 + $0x2a0] sm:$0xff] }
 0x2bb   : > { %2518 = vmatprep.mubr.f32.mxu0 %v11210_v6  ;;  %v11244_v6 = vld [vmem:[#allocation3 + $0x2c0] sm:$0xff] }
 0x2be   : > { %2519 = vmatmul.mubr.f32.gmra.mrb[24].mxu0 %v11211_v51  ;;  %v11245_v51 = vld [vmem:[#allocation3 + $0x2b8] sm:$0xff] }
 0x2bf   : > { %2523 = vmatprep.mubr.f32.mxu0 %v11212_v25  ;;  %v11246_v25 = vld [vmem:[#allocation3 + $0x2d8] sm:$0xff] }
 0x2c2   : > { %2524 = vmatmul.mubr.f32.gmra.mrb[26].mxu0 %v11213_v43  ;;  %v11247_v43 = vld [vmem:[#allocation3 + $0x2d0] sm:$0xff] }
 0x2c3   : > { %2528 = vmatprep.mubr.f32.mxu0 %v11214_v52  ;;  %v11248_v52 = vld [vmem:[#allocation3 + $0x2f0] sm:$0xff] }
 0x2c6   : > { %2529 = vmatmul.mubr.f32.gmra.mrb[28].mxu0 %v11215_v0  ;;  %v11249_v0 = vld [vmem:[#allocation3 + $0x2e8] sm:$0xff] }
 0x2c7   : > { %2533 = vmatprep.mubr.f32.mxu0 %v11216_v46  ;;  %v11250_v46 = vld [vmem:[#allocation3 + $0x308] sm:$0xff] }
 0x2ca   : > { %2534 = vmatmul.mubr.f32.gmra.mrb[30].mxu0 %v11217_v53  ;;  %v11251_v53 = vld [vmem:[#allocation3 + $0x300] sm:$0xff] }
 0x2cb   : > { %2538 = vmatprep.mubr.f32.mxu0 %v11218_v29  ;;  %v11252_v29 = vld [vmem:[#allocation3 + $0x320] sm:$0xff] }
 0x2ce   : > { %2539 = vmatmul.mubr.f32.gmra.mrb[32].mxu0 %v11219_v30  ;;  %v11253_v30 = vld [vmem:[#allocation3 + $0x318] sm:$0xff] }
 0x2cf   : > { %2543 = vmatprep.mubr.f32.mxu0 %v11220_v47  ;;  %v11254_v47 = vld [vmem:[#allocation3 + $0x338] sm:$0xff] }
 0x2d2   : > { %2544 = vmatmul.mubr.f32.gmra.mrb[34].mxu0 %v11221_v54  ;;  %v11255_v54 = vld [vmem:[#allocation3 + $0x330] sm:$0xff] }
 0x2d3   : > { %2548 = vmatprep.mubr.f32.mxu0 %v11222_v37  ;;  %v11256_v37 = vld [vmem:[#allocation3 + $0x350] sm:$0xff] }
 0x2d6   : > { %2549 = vmatmul.mubr.f32.gmra.mrb[36].mxu0 %v11223_v40  ;;  %v11257_v40 = vld [vmem:[#allocation3 + $0x348] sm:$0xff] }
 0x2d7   : > { %2553 = vmatprep.mubr.f32.mxu0 %v11224_v48  ;;  %v11258_v48 = vld [vmem:[#allocation3 + $0x368] sm:$0xff] }
 0x2da   : > { %2554 = vmatmul.mubr.f32.gmra.mrb[38].mxu0 %v11225_v55  ;;  %v11259_v55 = vld [vmem:[#allocation3 + $0x360] sm:$0xff] }
 0x2db   : > { %2558 = vmatprep.mubr.f32.mxu0 %v11226_v61  ;;  %v11260_v61 = vld [vmem:[#allocation3 + $0x380] sm:$0xff] }
 0x2de   : > { %2559 = vmatmul.mubr.f32.gmra.mrb[40].mxu0 %v11227_v63  ;;  %v11261_v63 = vld [vmem:[#allocation3 + $0x378] sm:$0xff] }
 0x2df   : > { %2563 = vmatprep.mubr.f32.mxu0 %v11228_v50  ;;  %v11262_v50 = vld [vmem:[#allocation3 + $0x398] sm:$0xff] }
 0x2e2   : > { %2564 = vmatmul.mubr.f32.gmra.mrb[42].mxu0 %v11229_v56  ;;  %v11263_v56 = vld [vmem:[#allocation3 + $0x390] sm:$0xff] }
 0x2e3   : > { %2568 = vmatprep.mubr.f32.mxu0 %v11230_v60  ;;  %v11264_v60 = vld [vmem:[#allocation3 + $0x3b0] sm:$0xff] }
 0x2e6   : > { %2569 = vmatmul.mubr.f32.gmra.mrb[44].mxu0 %v11231_v1  ;;  %v11265_v1 = vld [vmem:[#allocation3 + $0x3a8] sm:$0xff] }
 0x2e7   : > { %2573 = vmatprep.mubr.f32.mxu0 %v11232_v4  ;;  %v11266_v4 = vld [vmem:[#allocation3 + $0x3c8] sm:$0xff] }
 0x2ea   : > { %2574 = vmatmul.mubr.f32.gmra.mrb[46].mxu0 %v11233_v7  ;;  %v11267_v7 = vld [vmem:[#allocation3 + $0x3c0] sm:$0xff] }
 0x2eb   : > { %2578 = vmatprep.mubr.f32.mxu0 %v11234_v14  ;;  %v11268_v14 = vld [vmem:[#allocation3 + $0x3e0] sm:$0xff] }
 0x2ee   : > { %2579 = vmatmul.mubr.f32.gmra.mrb[48].mxu0 %v11235_v31  ;;  %v11269_v31 = vld [vmem:[#allocation3 + $0x3d8] sm:$0xff] }
 0x2ef   : > { %2583 = vmatprep.mubr.f32.mxu0 %v11236_v44  ;;  %v11270_v44 = vld [vmem:[#allocation3 + $0x3f8] sm:$0xff] }
 0x2f2   : > { %2584 = vmatmul.mubr.f32.gmra.mrb[50].mxu0 %v11237_v49  ;;  %v11271_v49 = vld [vmem:[#allocation3 + $0x3f0] sm:$0xff] }
 0x2f3   : > { %2588 = vmatprep.mubr.f32.mxu0 %v11238_v62  ;;  %v3136_v62 = vld [vmem:[#allocation7 + $0x300] sm:$0xff] }
 0x2f6   : > { %2589 = vmatmul.mubr.f32.gmra.mrb[52].mxu0 %v11239_v10  ;;  %v3137_v10 = vld [vmem:[#allocation7 + $0x308] sm:$0xff] }
 0x2f7   : > { %2593 = vmatprep.mubr.f32.mxu0 %v11240_v11  ;;  %v3139_v11 = vld [vmem:[#allocation7 + $0x318] sm:$0xff] }
 0x2fa   : > { %2594 = vmatmul.mubr.f32.gmra.mrb[54].mxu0 %v11241_v35 }
 0x2fb   : > { %2598 = vmatprep.mubr.f32.mxu0 %v11242_v57  ;;  %v3142_v57 = vld [vmem:[#allocation7 + $0x330] sm:$0xff] }
 0x2fe   : > { %2599 = vmatmul.mubr.f32.gmra.mrb[56].mxu0 %v11243_v5  ;;  %v3143_v5 = vld [vmem:[#allocation7 + $0x338] sm:$0xff] }
 0x2ff   : > { %2603 = vmatprep.mubr.f32.mxu0 %v11244_v6  ;;  %v9762_v6 = vpack.c.bf16 %v3143_v5, %v3142_v57  ;;  %v3167_v57 = vld [vmem:[#allocation7 + $0x3f8] sm:$0xff]  ;;  %v11280_v5 = vld [vmem:[#allocation3 + $0x160] sm:$0xff] }
 0x302   : > { %2604 = vmatmul.mubr.f32.gmra.mrb[58].mxu0 %v11245_v51  ;;  %v3144_v51 = vld [vmem:[#allocation7 + $0x340] sm:$0xff] }
 0x303   : > { %2608 = vmatprep.mubr.f32.mxu0 %v11246_v25  ;;  %v3145_v25 = vld [vmem:[#allocation7 + $0x348] sm:$0xff] }
 0x306   : > { %2609 = vmatmul.mubr.f32.gmra.mrb[60].mxu0 %v11247_v43  ;;  %v9765_v43 = vpack.c.bf16 %v3145_v25, %v3144_v51  ;;  %v11281_v51 = vld [vmem:[#allocation3 + $0x178] sm:$0xff]  ;;  %v11282_v25 = vld [vmem:[#allocation3 + $0x190] sm:$0xff] }
 0x307   : > { %2613 = vmatprep.mubr.f32.mxu0 %v11248_v52  ;;  %v3146_v52 = vld [vmem:[#allocation7 + $0x350] sm:$0xff] }
 0x30a   : > { %2614 = vmatmul.mubr.f32.gmra.mrb[62].mxu0 %v11249_v0  ;;  %v3147_v0 = vld [vmem:[#allocation7 + $0x358] sm:$0xff] }
 0x30b   : > { %2618 = vmatprep.mubr.f32.mxu0 %v11250_v46  ;;  %v9768_v46 = vpack.c.bf16 %v3147_v0, %v3146_v52  ;;  %v11284_v52 = vld [vmem:[#allocation3 + $0x1c0] sm:$0xff]  ;;  %v11285_v0 = vld [vmem:[#allocation3 + $0x1d8] sm:$0xff] }
 0x30e   : > { %2619 = vmatmul.mubr.f32.gmra.mrb[64].mxu0 %v11251_v53  ;;  %v3148_v53 = vld [vmem:[#allocation7 + $0x360] sm:$0xff] }
 0x30f   : > { %2623 = vmatprep.mubr.f32.mxu0 %v11252_v29 }
 0x312   : > { %2624 = vmatmul.mubr.f32.gmra.mrb[66].mxu0 %v11253_v30  ;;  %v3150_v30 = vld [vmem:[#allocation7 + $0x370] sm:$0xff] }
 0x313   : > { %2628 = vmatprep.mubr.f32.mxu0 %v11254_v47  ;;  %v11272_v47 = vld [vmem:[#allocation3 + $0xa0] sm:$0xff] }
 0x316   : > { %2629 = vmatmul.mubr.f32.gmra.mrb[68].mxu0 %v11255_v54 }
 0x317   : > { %2633 = vmatprep.mubr.f32.mxu0 %v11256_v37  ;;  %v3152_v37 = vld [vmem:[#allocation7 + $0x380] sm:$0xff] }
 0x31a   : > { %2634 = vmatmul.mubr.f32.gmra.mrb[70].mxu0 %v11257_v40  ;;  %v11273_v40 = vld [vmem:[#allocation3 + $0xb8] sm:$0xff] }
 0x31b   : > { %2638 = vmatprep.mubr.f32.mxu0 %v11258_v48 }
 0x31e   : > { %2639 = vmatmul.mubr.f32.gmra.mrb[72].mxu0 %v11259_v55  ;;  %v3154_v55 = vld [vmem:[#allocation7 + $0x390] sm:$0xff] }
 0x31f   : > { %2643 = vmatprep.mubr.f32.mxu0 %v11260_v61  ;;  %v3155_v61 = vld [vmem:[#allocation7 + $0x398] sm:$0xff] }
 0x322   : > { %2644 = vmatmul.mubr.f32.gmra.mrb[74].mxu0 %v11261_v63  ;;  %v11274_v63 = vld [vmem:[#allocation3 + $0xd0] sm:$0xff] }
 0x323   : > { %2648 = vmatprep.mubr.f32.mxu0 %v11262_v50  ;;  %v9780_v50 = vpack.c.bf16 %v3155_v61, %v3154_v55  ;;  %v3007_v61 = vld [vmem:[#allocation3 + $0xf8] sm:$0xff] }
 0x326   : > { %2649 = vmatmul.mubr.f32.gmra.mrb[76].mxu0 %v11263_v56  ;;  %v3156_v56 = vld [vmem:[#allocation7 + $0x3a0] sm:$0xff] }
 0x327   : > { %2653 = vmatprep.mubr.f32.mxu0 %v11264_v60  ;;  %v3157_v60 = vld [vmem:[#allocation7 + $0x3a8] sm:$0xff] }
 0x32a   : > { %2654 = vmatmul.mubr.f32.gmra.mrb[78].mxu0 %v11265_v1  ;;  %v11275_v1 = vld [vmem:[#allocation3 + $0xe8] sm:$0xff] }
 0x32b   : > { %2658 = vmatprep.mubr.f32.mxu0 %v11266_v4  ;;  %v9783_v4 = vpack.c.bf16 %v3157_v60, %v3156_v56  ;;  %v3006_v56 = vld [vmem:[#allocation3 + $0xf0] sm:$0xff] }
 0x32e   : > { %2659 = vmatmul.mubr.f32.gmra.mrb[80].mxu0 %v11267_v7  ;;  %v3158_v7 = vld [vmem:[#allocation7 + $0x3b0] sm:$0xff] }
 0x32f   : > { %2663 = vmatprep.mubr.f32.mxu0 %v11268_v14  ;;  %v3159_v14 = vld [vmem:[#allocation7 + $0x3b8] sm:$0xff] }
 0x332   : > { %2664 = vmatmul.mubr.f32.gmra.mrb[82].mxu0 %v11269_v31  ;;  %v11276_v31 = vld [vmem:[#allocation3 + $0x100] sm:$0xff] }
 0x333   : > { %2668 = vmatprep.mubr.f32.mxu0 %v11270_v44  ;;  %v9786_v44 = vpack.c.bf16 %v3159_v14, %v3158_v7  ;;  %v3179_v7 = vld [vmem:[#allocation7 + $0x458] sm:$0xff] }
 0x334   : > { %v3009_v14 = vld [vmem:[#allocation3 + $0x108] sm:$0xff] }
 0x336   : > { %2669 = vmatmul.mubr.f32.gmra.mrb[84].mxu0 %v11271_v49  ;;  %v3160_v49 = vld [vmem:[#allocation7 + $0x3c0] sm:$0xff] }
 0x337   : > { %2673 = vmatprep.mubr.f32.mxu0 %v12410_v26  ;;  %v1439_v26 = vld [vmem:[%s12039_s15 + $0x2] sm:$0xff] }
 0x33a   : > { %2674 = vmatmul.mubr.f32.gmra.mrb[86].mxu0 %v12415_v24  ;;  %v9753_v24 = vpack.c.bf16 %v3137_v10, %v3136_v62  ;;  %v3161_v62 = vld [vmem:[#allocation7 + $0x3c8] sm:$0xff] }
 0x33b   : > { %2678 = vmatprep.mubr.f32.mxu0 %v12420_v27  ;;  %v3138_v27 = vld [vmem:[#allocation7 + $0x310] sm:$0xff]  ;;  %v11277_v10 = vld [vmem:[#allocation3 + $0x118] sm:$0xff] }
 0x33e   : > { %2679 = vmatmul.mubr.f32.gmra.mrb[88].mxu0 %v12425_v28  ;;  %v1440_v28 = vld [vmem:[%s12039_s15 + $0xa] sm:$0xff] }
 0x33f   : > { %2683 = vmatprep.mubr.f32.mxu0 %v12430_v18  ;;  %v9756_v18 = vpack.c.bf16 %v3139_v11, %v3138_v27  ;;  %v3163_v27 = vld [vmem:[#allocation7 + $0x3d8] sm:$0xff]  ;;  %v11278_v11 = vld [vmem:[#allocation3 + $0x130] sm:$0xff] }
 0x342   : > { %2684 = vmatmul.mubr.f32.gmra.mrb[90].mxu0 %v12435_v32  ;;  %v3140_v32 = vld [vmem:[#allocation7 + $0x320] sm:$0xff] }
 0x343   : > { %2688 = vmatprep.mubr.f32.mxu0 %v12440_v33  ;;  %v3141_v33 = vld [vmem:[#allocation7 + $0x328] sm:$0xff] }
 0x344   : > { %v9759_v35 = vpack.c.bf16 %v3141_v33, %v3140_v32  ;;  %v3165_v32 = vld [vmem:[#allocation7 + $0x3e8] sm:$0xff]  ;;  %v11279_v33 = vld [vmem:[#allocation3 + $0x148] sm:$0xff] }
 0x346   : > { %2689 = vmatmul.mubr.f32.gmra.mrb[92].mxu0 %v12446_v34  ;;  %v1441_v34 = vld [vmem:[%s12039_s15 + $0x12] sm:$0xff] }
 0x347   : > { %8775 = vmatprep.mubr.msk.f32.mxu0 %vm17480_vm0, %v17309_v42 }
 0x34a   : > { %8776 = vmatmul.mubr.f32.vlgmr.msra.gmra.mrb[0].mxu0 %v1439_v26  ;;  %v9789_v26 = vpack.c.bf16 %v3161_v62, %v3160_v49  ;;  %v3180_v49 = vld [vmem:[#allocation7 + $0x460] sm:$0xff]  ;;  %v3181_v62 = vld [vmem:[#allocation7 + $0x468] sm:$0xff] }
 0x34b   : > { %9754 = vmatpush1.bf16.msra.mxu0 %v9753_v24  ;;  %8778 = vmatprep.mubr.msk.f32.mxu0 %vm17480_vm0, %v17309_v42  ;;  %v3162_v24 = vld [vmem:[#allocation7 + $0x3d0] sm:$0xff] }
 0x34c   : > { %9755 = vmatprep.subr.bf16.mxu0 %v17648_v21 }
 0x34e   : > { %8779 = vmatmul.mubr.f32.gmra.mrb[2].mxu0 %v1440_v28  ;;  %v9792_v28 = vpack.c.bf16 %v3163_v27, %v3162_v24  ;;  %v3016_v24 = vld [vmem:[#allocation3 + $0x140] sm:$0xff]  ;;  %v3015_v27 = vld [vmem:[#allocation3 + $0x138] sm:$0xff] }
 0x34f   : > { %8781 = vmatprep.mubr.msk.f32.mxu0 %vm17480_vm0, %v17309_v42  ;;  %9757 = vmatpush1.bf16.msra.mxu0 %v9756_v18  ;;  %v3164_v18 = vld [vmem:[#allocation7 + $0x3e0] sm:$0xff] }
 0x350   : > { %9758 = vmatprep.subr.bf16.mxu0 %v17648_v21 }
 0x352   : > { %8782 = vmatmul.mubr.f32.gmra.mrb[4].mxu0 %v1441_v34  ;;  %v9795_v34 = vpack.c.bf16 %v3165_v32, %v3164_v18  ;;  %v3022_v18 = vld [vmem:[#allocation3 + $0x170] sm:$0xff]  ;;  %v3021_v32 = vld [vmem:[#allocation3 + $0x168] sm:$0xff] }
 0x353   : > { %8784 = vmatprep.mubr.msk.f32.mxu0 %vm17480_vm0, %v17309_v42  ;;  %9760 = vmatpush1.bf16.msra.mxu0 %v9759_v35  ;;  %v3166_v35 = vld [vmem:[#allocation7 + $0x3f0] sm:$0xff] }
 0x354   : > { %9761 = vmatprep.subr.bf16.mxu0 %v17648_v21 }
 0x356   : > { %8785 = vmatmul.mubr.f32.gmra.mrb[6].mxu0 %v12664_v20  ;;  %v3149_v20 = vld [vmem:[#allocation7 + $0x368] sm:$0xff] }
 0x357   : > { %8787 = vmatprep.mubr.msk.f32.mxu0 %vm17480_vm0, %v17309_v42  ;;  %9763 = vmatpush1.bf16.msra.mxu0 %v9762_v6  ;;  %v9771_v29 = vpack.c.bf16 %v3149_v20, %v3148_v53  ;;  %v9798_v6 = vpack.c.bf16 %v3167_v57, %v3166_v35  ;;  %v11287_v53 = vld [vmem:[#allocation3 + $0x208] sm:$0xff]  ;;  %v11288_v20 = vld [vmem:[#allocation3 + $0x220] sm:$0xff] }
 0x358   : > { %9764 = vmatprep.subr.bf16.mxu0 %v17648_v21  ;;  %v3183_v35 = vld [vmem:[#allocation7 + $0x478] sm:$0xff]  ;;  %v3024_v57 = vld [vmem:[#allocation3 + $0x180] sm:$0xff] }
 0x35a   : > { %8788 = vmatmul.mubr.f32.gmra.mrb[8].mxu0 %v12674_v13  ;;  %v3151_v13 = vld [vmem:[#allocation7 + $0x378] sm:$0xff] }
 0x35b   : > { %8790 = vmatprep.mubr.msk.f32.mxu0 %vm17480_vm0, %v17309_v42  ;;  %9766 = vmatpush1.bf16.msra.mxu0 %v9765_v43  ;;  %v9774_v54 = vpack.c.bf16 %v3151_v13, %v3150_v30  ;;  %v11283_v43 = vld [vmem:[#allocation3 + $0x1a8] sm:$0xff]  ;;  %v11290_v30 = vld [vmem:[#allocation3 + $0x250] sm:$0xff] }
 0x35c   : > { %9767 = vmatprep.subr.bf16.mxu0 %v17648_v21  ;;  %v11291_v13 = vld [vmem:[#allocation3 + $0x268] sm:$0xff] }
 0x35e   : > { %8791 = vmatmul.mubr.f32.gmra.mrb[10].mxu0 %v12685_v38  ;;  %v3153_v38 = vld [vmem:[#allocation7 + $0x388] sm:$0xff] }
 0x35f   : > { %8793 = vmatprep.mubr.msk.f32.mxu0 %vm17480_vm0, %v17309_v42  ;;  %9769 = vmatpush1.bf16.msra.mxu0 %v9768_v46  ;;  %v9777_v48 = vpack.c.bf16 %v3153_v38, %v3152_v37  ;;  %v11286_v46 = vld [vmem:[#allocation3 + $0x1f0] sm:$0xff]  ;;  %v11295_v38 = vld [vmem:[#allocation3 + $0x2c8] sm:$0xff] }
 0x360   : > { %9770 = vmatprep.subr.bf16.mxu0 %v17648_v21  ;;  %v11294_v37 = vld [vmem:[#allocation3 + $0x2b0] sm:$0xff] }
 0x362   : > { %8794 = vmatmul.mubr.f32.gmra.mrb[12].mxu0 %v11272_v47  ;;  %v11292_v47 = vld [vmem:[#allocation3 + $0x280] sm:$0xff] }
 0x363   : > { %8796 = vmatprep.mubr.msk.f32.mxu0 %vm17480_vm0, %v17309_v42  ;;  %9772 = vmatpush1.bf16.msra.mxu0 %v9771_v29  ;;  %v11289_v29 = vld [vmem:[#allocation3 + $0x238] sm:$0xff] }
 0x364   : > { %9773 = vmatprep.subr.bf16.mxu0 %v17648_v21 }
 0x366   : > { %8797 = vmatmul.mubr.f32.gmra.mrb[14].mxu0 %v11273_v40  ;;  %v3175_v40 = vld [vmem:[#allocation7 + $0x438] sm:$0xff] }
 0x367   : > { %8799 = vmatprep.mubr.msk.f32.mxu0 %vm17480_vm0, %v17309_v42  ;;  %9775 = vmatpush1.bf16.msra.mxu0 %v9774_v54  ;;  %v11293_v54 = vld [vmem:[#allocation3 + $0x298] sm:$0xff] }
 0x368   : > { %9776 = vmatprep.subr.bf16.mxu0 %v17648_v21 }
 0x36a   : > { %8800 = vmatmul.mubr.f32.gmra.mrb[16].mxu0 %v11274_v63  ;;  %v3176_v63 = vld [vmem:[#allocation7 + $0x440] sm:$0xff] }
 0x36b   : > { %8802 = vmatprep.mubr.msk.f32.mxu0 %vm17480_vm0, %v17309_v42  ;;  %9778 = vmatpush1.bf16.msra.mxu0 %v9777_v48  ;;  %v3003_v48 = vld [vmem:[#allocation3 + $0xd8] sm:$0xff] }
 0x36c   : > { %9779 = vmatprep.subr.bf16.mxu0 %v17648_v21 }
 0x36e   : > { %8803 = vmatmul.mubr.f32.gmra.mrb[18].mxu0 %v11275_v1  ;;  %v3010_v1 = vld [vmem:[#allocation3 + $0x110] sm:$0xff] }
 0x36f   : > { %8805 = vmatprep.mubr.msk.f32.mxu0 %vm17480_vm0, %v17309_v42  ;;  %9781 = vmatpush1.bf16.msra.mxu0 %v9780_v50  ;;  %v3177_v50 = vld [vmem:[#allocation7 + $0x448] sm:$0xff] }
 0x370   : > { %9782 = vmatprep.subr.bf16.mxu0 %v17648_v21  ;;  %v9813_v60 = vpack.c.bf16 %v3177_v50, %v3176_v63  ;;  %v3081_v63 = vld [vmem:[#allocation3 + $0x348] sm:$0xff] }
 0x371   : > { %v3085_v50 = vld [vmem:[#allocation3 + $0x368] sm:$0xff] }
 0x372   : > { %8806 = vmatmul.mubr.f32.gmra.mrb[20].mxu0 %v11276_v31 }
 0x373   : > { %8808 = vmatprep.mubr.msk.f32.mxu0 %vm17480_vm0, %v17309_v42  ;;  %9784 = vmatpush1.bf16.msra.mxu0 %v9783_v4  ;;  %v3178_v4 = vld [vmem:[#allocation7 + $0x450] sm:$0xff] }
 0x374   : > { %9785 = vmatprep.subr.bf16.mxu0 %v17648_v21  ;;  %v9816_v31 = vpack.c.bf16 %v3179_v7, %v3178_v4  ;;  %v3091_v4 = vld [vmem:[#allocation3 + $0x398] sm:$0xff]  ;;  %v3090_v7 = vld [vmem:[#allocation3 + $0x390] sm:$0xff] }
 0x376   : > { %8809 = vmatmul.mubr.f32.gmra.mrb[22].mxu0 %v11277_v10  ;;  %v3012_v10 = vld [vmem:[#allocation3 + $0x120] sm:$0xff] }
 0x377   : > { %8811 = vmatprep.mubr.msk.f32.mxu0 %vm17480_vm0, %v17309_v42  ;;  %9787 = vmatpush1.bf16.msra.mxu0 %v9786_v44  ;;  %v3013_v44 = vld [vmem:[#allocation3 + $0x128] sm:$0xff] }
 0x378   : > { %9788 = vmatprep.subr.bf16.mxu0 %v17648_v21 }
 0x37a   : > { %8812 = vmatmul.mubr.f32.gmra.mrb[24].mxu0 %v11278_v11  ;;  %v3019_v11 = vld [vmem:[#allocation3 + $0x158] sm:$0xff] }
 0x37b   : > { %8814 = vmatprep.mubr.msk.f32.mxu0 %vm17480_vm0, %v17309_v42  ;;  %9790 = vmatpush1.bf16.msra.mxu0 %v9789_v26  ;;  %v9819_v26 = vpack.c.bf16 %v3181_v62, %v3180_v49  ;;  %v3096_v49 = vld [vmem:[#allocation3 + $0x3c0] sm:$0xff] }
 0x37c   : > { %9791 = vmatprep.subr.bf16.mxu0 %v17648_v21  ;;  %v3100_v62 = vld [vmem:[#allocation3 + $0x3e0] sm:$0xff] }
 0x37e   : > { %8815 = vmatmul.mubr.f32.gmra.mrb[26].mxu0 %v11279_v33  ;;  %v3025_v33 = vld [vmem:[#allocation3 + $0x188] sm:$0xff] }
 0x37f   : > { %8817 = vmatprep.mubr.msk.f32.mxu0 %vm17480_vm0, %v17309_v42  ;;  %9793 = vmatpush1.bf16.msra.mxu0 %v9792_v28  ;;  %v3018_v28 = vld [vmem:[#allocation3 + $0x150] sm:$0xff] }
 0x380   : > { %9794 = vmatprep.subr.bf16.mxu0 %v17648_v21 }
 0x382   : > { %8818 = vmatmul.mubr.f32.gmra.mrb[28].mxu0 %v11280_v5 }
 0x383   : > { %8820 = vmatprep.mubr.msk.f32.mxu0 %vm17480_vm0, %v17309_v42  ;;  %9796 = vmatpush1.bf16.msra.mxu0 %v9795_v34  ;;  %v3182_v34 = vld [vmem:[#allocation7 + $0x470] sm:$0xff] }
 0x384   : > { %9797 = vmatprep.subr.bf16.mxu0 %v17648_v21  ;;  %v9822_v5 = vpack.c.bf16 %v3183_v35, %v3182_v34  ;;  %v3115_v34 = vld [vmem:[#allocation3 + $0x458] sm:$0xff]  ;;  %v3114_v35 = vld [vmem:[#allocation3 + $0x450] sm:$0xff] }
 0x386   : > { %8821 = vmatmul.mubr.f32.gmra.mrb[30].mxu0 %v11281_v51  ;;  %v3027_v51 = vld [vmem:[#allocation3 + $0x198] sm:$0xff] }
 0x387   : > { %8823 = vmatprep.mubr.msk.f32.mxu0 %vm17480_vm0, %v17309_v42  ;;  %9799 = vmatpush1.bf16.msra.mxu0 %v9798_v6  ;;  %v3028_v6 = vld [vmem:[#allocation3 + $0x1a0] sm:$0xff] }
 0x388   : > { %9800 = vmatprep.subr.bf16.mxu0 %v17648_v21 }
 0x38a   : > { %8824 = vmatmul.mubr.f32.gmra.mrb[32].mxu0 %v11282_v25  ;;  %v3031_v25 = vld [vmem:[#allocation3 + $0x1b8] sm:$0xff] }
 0x38b   : > { %8826 = vmatprep.mubr.msk.f32.mxu0 %vm17480_vm0, %v17309_v42 }
 0x38e   : > { %8827 = vmatmul.mubr.f32.gmra.mrb[34].mxu0 %v11283_v43  ;;  %v3030_v43 = vld [vmem:[#allocation3 + $0x1b0] sm:$0xff] }
 0x38f   : > { %8829 = vmatprep.mubr.msk.f32.mxu0 %vm17480_vm0, %v17309_v42 }
 0x392   : > { %8830 = vmatmul.mubr.f32.gmra.mrb[36].mxu0 %v11284_v52  ;;  %v3034_v52 = vld [vmem:[#allocation3 + $0x1d0] sm:$0xff] }
 0x393   : > { %8832 = vmatprep.mubr.msk.f32.mxu0 %vm17480_vm0, %v17309_v42 }
 0x396   : > { %8833 = vmatmul.mubr.f32.gmra.mrb[38].mxu0 %v11285_v0  ;;  %v3033_v0 = vld [vmem:[#allocation3 + $0x1c8] sm:$0xff] }
 0x397   : > { %8835 = vmatprep.mubr.msk.f32.mxu0 %vm17480_vm0, %v17309_v42 }
 0x39a   : > { %8836 = vmatmul.mubr.f32.gmra.mrb[40].mxu0 %v11286_v46  ;;  %v3037_v46 = vld [vmem:[#allocation3 + $0x1e8] sm:$0xff] }
 0x39b   : > { %8838 = vmatprep.mubr.msk.f32.mxu0 %vm17480_vm0, %v17309_v42 }
 0x39e   : > { %8839 = vmatmul.mubr.f32.gmra.mrb[42].mxu0 %v11287_v53  ;;  %v3036_v53 = vld [vmem:[#allocation3 + $0x1e0] sm:$0xff] }
 0x39f   : > { %8841 = vmatprep.mubr.msk.f32.mxu0 %vm17480_vm0, %v17309_v42 }
 0x3a2   : > { %8842 = vmatmul.mubr.f32.gmra.mrb[44].mxu0 %v11288_v20  ;;  %v3040_v20 = vld [vmem:[#allocation3 + $0x200] sm:$0xff] }
 0x3a3   : > { %8844 = vmatprep.mubr.msk.f32.mxu0 %vm17480_vm0, %v17309_v42 }
 0x3a6   : > { %8845 = vmatmul.mubr.f32.gmra.mrb[46].mxu0 %v11289_v29  ;;  %v3039_v29 = vld [vmem:[#allocation3 + $0x1f8] sm:$0xff] }
 0x3a7   : > { %8847 = vmatprep.mubr.msk.f32.mxu0 %vm17480_vm0, %v17309_v42 }
 0x3aa   : > { %8848 = vmatmul.mubr.f32.gmra.mrb[48].mxu0 %v11290_v30  ;;  %v3043_v30 = vld [vmem:[#allocation3 + $0x218] sm:$0xff] }
 0x3ab   : > { %8850 = vmatprep.mubr.msk.f32.mxu0 %vm17480_vm0, %v17309_v42 }
 0x3ae   : > { %8851 = vmatmul.mubr.f32.gmra.mrb[50].mxu0 %v11291_v13  ;;  %v3042_v13 = vld [vmem:[#allocation3 + $0x210] sm:$0xff] }
 0x3af   : > { %8853 = vmatprep.mubr.msk.f32.mxu0 %vm17480_vm0, %v17309_v42 }
 0x3b2   : > { %8854 = vmatmul.mubr.f32.gmra.mrb[52].mxu0 %v11292_v47  ;;  %v3046_v47 = vld [vmem:[#allocation3 + $0x230] sm:$0xff] }
 0x3b3   : > { %8856 = vmatprep.mubr.msk.f32.mxu0 %vm17480_vm0, %v17309_v42 }
 0x3b6   : > { %8857 = vmatmul.mubr.f32.gmra.mrb[54].mxu0 %v11293_v54  ;;  %v3045_v54 = vld [vmem:[#allocation3 + $0x228] sm:$0xff] }
 0x3b7   : > { %8859 = vmatprep.mubr.msk.f32.mxu0 %vm17480_vm0, %v17309_v42 }
 0x3ba   : > { %8860 = vmatmul.mubr.f32.gmra.mrb[56].mxu0 %v11294_v37  ;;  %v3049_v37 = vld [vmem:[#allocation3 + $0x248] sm:$0xff] }
 0x3bb   : > { %8862 = vmatprep.mubr.msk.f32.mxu0 %vm17480_vm0, %v17309_v42 }
 0x3be   : > { %8863 = vmatmul.mubr.f32.gmra.mrb[58].mxu0 %v11295_v38  ;;  %v3048_v38 = vld [vmem:[#allocation3 + $0x240] sm:$0xff] }
 0x3bf   : > { %8865 = vmatprep.mubr.msk.f32.mxu0 %vm17480_vm0, %v17309_v42 }
 0x3c2   : > { %8866 = vmatmul.mubr.f32.gmra.mrb[60].mxu0 %v12633_v15  ;;  %v2995_v15 = vld [vmem:[#allocation3 + $0x98] sm:$0xff] }
 0x3c3   : > { %8868 = vmatprep.mubr.msk.f32.mxu0 %vm17480_vm0, %v17309_v42 }
 0x3c6   : > { %8869 = vmatmul.mubr.f32.gmra.mrb[62].mxu0 %v12639_v8  ;;  %v3168_v8 = vld [vmem:[#allocation7 + $0x400] sm:$0xff] }
 0x3c7   : > { %8871 = vmatprep.mubr.msk.f32.mxu0 %vm17480_vm0, %v17309_v42 }
 0x3ca   : > { %8872 = vmatmul.mubr.f32.gmra.mrb[64].mxu0 %v12645_v16  ;;  %v3169_v16 = vld [vmem:[#allocation7 + $0x408] sm:$0xff] }
 0x3cb   : > { %8874 = vmatprep.mubr.msk.f32.mxu0 %vm17480_vm0, %v17309_v42 }
 0x3ce   : > { %8875 = vmatmul.mubr.f32.gmra.mrb[66].mxu0 %v12651_v17  ;;  %v2994_v17 = vld [vmem:[#allocation3 + $0x90] sm:$0xff] }
 0x3cf   : > { %8877 = vmatprep.mubr.msk.f32.mxu0 %vm17480_vm0, %v17309_v42 }
 0x3d2   : > { %8878 = vmatmul.mubr.f32.gmra.mrb[68].mxu0 %v12657_v45  ;;  %v9801_v45 = vpack.c.bf16 %v3169_v16, %v3168_v8  ;;  %v3051_v8 = vld [vmem:[#allocation3 + $0x258] sm:$0xff] }
 0x3d3   : > { %8880 = vmatprep.mubr.msk.f32.mxu0 %vm17480_vm0, %v17309_v42  ;;  %v3055_v16 = vld [vmem:[#allocation3 + $0x278] sm:$0xff] }
 0x3d6   : > { %8881 = vmatmul.mubr.f32.gmra.mrb[70].mxu0 %v12667_v22  ;;  %v2998_v22 = vld [vmem:[#allocation3 + $0xb0] sm:$0xff] }
 0x3d7   : > { %8883 = vmatprep.mubr.msk.f32.mxu0 %vm17480_vm0, %v17309_v42 }
 0x3da   : > { %8884 = vmatmul.mubr.f32.gmra.mrb[72].mxu0 %v12677_v58  ;;  %v3170_v58 = vld [vmem:[#allocation7 + $0x410] sm:$0xff] }
 0x3db   : > { %8886 = vmatprep.mubr.msk.f32.mxu0 %vm17480_vm0, %v17309_v42 }
 0x3de   : > { %8887 = vmatmul.mubr.f32.gmra.mrb[74].mxu0 %v12688_v41  ;;  %v3171_v41 = vld [vmem:[#allocation7 + $0x418] sm:$0xff] }
 0x3df   : > { %8889 = vmatprep.mubr.msk.f32.mxu0 %vm17480_vm0, %v17309_v42 }
 0x3e2   : > { %8890 = vmatmul.mubr.f32.gmra.mrb[76].mxu0 %v12696_v2  ;;  %v2997_v2 = vld [vmem:[#allocation3 + $0xa8] sm:$0xff] }
 0x3e3   : > { %8892 = vmatprep.mubr.msk.f32.mxu0 %vm17480_vm0, %v17309_v42 }
 0x3e6   : > { %8893 = vmatmul.mubr.f32.gmra.mrb[78].mxu0 %v12704_v9  ;;  %v9804_v9 = vpack.c.bf16 %v3171_v41, %v3170_v58  ;;  %v3061_v58 = vld [vmem:[#allocation3 + $0x2a8] sm:$0xff]  ;;  %v3060_v41 = vld [vmem:[#allocation3 + $0x2a0] sm:$0xff] }
 0x3e7   : > { %8895 = vmatprep.mubr.msk.f32.mxu0 %vm17480_vm0, %v17309_v42 }
 0x3ea   : > { %8896 = vmatmul.mubr.f32.gmra.mrb[80].mxu0 %v12712_v39  ;;  %v3001_v39 = vld [vmem:[#allocation3 + $0xc8] sm:$0xff] }
 0x3eb   : > { %8898 = vmatprep.mubr.msk.f32.mxu0 %vm17480_vm0, %v17309_v42 }
 0x3ee   : > { %8899 = vmatmul.mubr.f32.gmra.mrb[82].mxu0 %v12720_v23  ;;  %v3172_v23 = vld [vmem:[#allocation7 + $0x420] sm:$0xff] }
 0x3ef   : > { %8901 = vmatprep.mubr.msk.f32.mxu0 %vm17480_vm0, %v17309_v42 }
 0x3f2   : > { %8902 = vmatmul.mubr.f32.gmra.mrb[84].mxu0 %v12728_v36  ;;  %v3173_v36 = vld [vmem:[#allocation7 + $0x428] sm:$0xff] }
 0x3f3   : > { %8904 = vmatprep.mubr.msk.f32.mxu0 %vm17480_vm0, %v17309_v42 }
 0x3f6   : > { %8905 = vmatmul.mubr.f32.gmra.mrb[86].mxu0 %v12736_v59  ;;  %v3000_v59 = vld [vmem:[#allocation3 + $0xc0] sm:$0xff] }
 0x3f7   : > { %8907 = vmatprep.mubr.msk.f32.mxu0 %vm17480_vm0, %v17309_v42 }
 0x3fa   : > { %8908 = vmatmul.mubr.f32.gmra.mrb[88].mxu0 %v12744_v3  ;;  %v9807_v3 = vpack.c.bf16 %v3173_v36, %v3172_v23  ;;  %v3066_v23 = vld [vmem:[#allocation3 + $0x2d0] sm:$0xff] }
 0x3fb   : > { %8910 = vmatprep.mubr.msk.f32.mxu0 %vm17480_vm0, %v17309_v42  ;;  %v3070_v36 = vld [vmem:[#allocation3 + $0x2f0] sm:$0xff] }
 0x3fe   : > { %8911 = vmatmul.mubr.f32.gmra.mrb[90].mxu0 %v12752_v12  ;;  %v3004_v12 = vld [vmem:[#allocation3 + $0xe0] sm:$0xff] }
 0x3ff   : > { %8913 = vmatprep.mubr.msk.f32.mxu0 %vm17480_vm0, %v17309_v42 }
 0x402   : > { %8914 = vmatmul.mubr.f32.gmra.mrb[92].mxu0 %v12760_v19  ;;  %v3174_v19 = vld [vmem:[#allocation7 + $0x430] sm:$0xff] }
 0x403   : > { %3248 = vmatprep.mubr.f32.mxu0 %v2995_v15  ;;  %v9810_v55 = vpack.c.bf16 %v3175_v40, %v3174_v19  ;;  %v3052_v15 = vld [vmem:[#allocation3 + $0x260] sm:$0xff]  ;;  %v3075_v40 = vld [vmem:[#allocation3 + $0x318] sm:$0xff] }
 0x404   : > { %v3076_v19 = vld [vmem:[#allocation3 + $0x320] sm:$0xff] }
 0x406   : > { %3249 = vmatmul.mubr.f32.vlgmr.msra.gmra.mrb[0].mxu0 %v2994_v17  ;;  %v3054_v17 = vld [vmem:[#allocation3 + $0x270] sm:$0xff] }
 0x407   : > { %9802 = vmatpush3.bf16.msra.mxu0 %v9801_v45  ;;  %3253 = vmatprep.mubr.f32.mxu0 %v2998_v22  ;;  %v3058_v45 = vld [vmem:[#allocation3 + $0x290] sm:$0xff]  ;;  %v3057_v22 = vld [vmem:[#allocation3 + $0x288] sm:$0xff] }
 0x408   : > { %9803 = vmatprep.subr.bf16.mxu0 %v17648_v21 }
 0x40a   : > { %3254 = vmatmul.mubr.f32.gmra.mrb[2].mxu0 %v2997_v2  ;;  %v3064_v2 = vld [vmem:[#allocation3 + $0x2c0] sm:$0xff] }
 0x40b   : > { %3258 = vmatprep.mubr.f32.mxu0 %v3001_v39  ;;  %9805 = vmatpush3.bf16.msra.mxu0 %v9804_v9  ;;  %v3063_v9 = vld [vmem:[#allocation3 + $0x2b8] sm:$0xff] }
 0x40c   : > { %9806 = vmatprep.subr.bf16.mxu0 %v17648_v21  ;;  %v3067_v39 = vld [vmem:[#allocation3 + $0x2d8] sm:$0xff] }
 0x40e   : > { %3259 = vmatmul.mubr.f32.gmra.mrb[4].mxu0 %v3000_v59  ;;  %v3069_v59 = vld [vmem:[#allocation3 + $0x2e8] sm:$0xff] }
 0x40f   : > { %3263 = vmatprep.mubr.f32.mxu0 %v3004_v12  ;;  %9808 = vmatpush3.bf16.msra.mxu0 %v9807_v3  ;;  %v3073_v3 = vld [vmem:[#allocation3 + $0x308] sm:$0xff]  ;;  %v3072_v12 = vld [vmem:[#allocation3 + $0x300] sm:$0xff] }
 0x410   : > { %9809 = vmatprep.subr.bf16.mxu0 %v17648_v21 }
 0x412   : > { %3264 = vmatmul.mubr.f32.gmra.mrb[6].mxu0 %v3003_v48  ;;  %v3079_v48 = vld [vmem:[#allocation3 + $0x338] sm:$0xff] }
 0x413   : > { %3268 = vmatprep.mubr.f32.mxu0 %v3007_v61  ;;  %9811 = vmatpush3.bf16.msra.mxu0 %v9810_v55  ;;  %v3078_v55 = vld [vmem:[#allocation3 + $0x330] sm:$0xff] }
 0x414   : > { %9812 = vmatprep.subr.bf16.mxu0 %v17648_v21  ;;  %v3082_v61 = vld [vmem:[#allocation3 + $0x350] sm:$0xff] }
 0x416   : > { %3269 = vmatmul.mubr.f32.gmra.mrb[8].mxu0 %v3006_v56  ;;  %v3084_v56 = vld [vmem:[#allocation3 + $0x360] sm:$0xff] }
 0x417   : > { %3273 = vmatprep.mubr.f32.mxu0 %v3010_v1  ;;  %9814 = vmatpush3.bf16.msra.mxu0 %v9813_v60  ;;  %v3088_v60 = vld [vmem:[#allocation3 + $0x380] sm:$0xff]  ;;  %v3087_v1 = vld [vmem:[#allocation3 + $0x378] sm:$0xff] }
 0x418   : > { %9815 = vmatprep.subr.bf16.mxu0 %v17648_v21 }
 0x41a   : > { %3274 = vmatmul.mubr.f32.gmra.mrb[10].mxu0 %v3009_v14  ;;  %v3094_v14 = vld [vmem:[#allocation3 + $0x3b0] sm:$0xff] }
 0x41b   : > { %3278 = vmatprep.mubr.f32.mxu0 %v3013_v44  ;;  %9817 = vmatpush3.bf16.msra.mxu0 %v9816_v31  ;;  %v3093_v31 = vld [vmem:[#allocation3 + $0x3a8] sm:$0xff] }
 0x41c   : > { %9818 = vmatprep.subr.bf16.mxu0 %v17648_v21  ;;  %v3097_v44 = vld [vmem:[#allocation3 + $0x3c8] sm:$0xff] }
 0x41e   : > { %3279 = vmatmul.mubr.f32.gmra.mrb[12].mxu0 %v3012_v10  ;;  %v3099_v10 = vld [vmem:[#allocation3 + $0x3d8] sm:$0xff] }
 0x41f   : > { %3283 = vmatprep.mubr.f32.mxu0 %v3016_v24  ;;  %9820 = vmatpush3.bf16.msra.mxu0 %v9819_v26  ;;  %v3103_v26 = vld [vmem:[#allocation3 + $0x3f8] sm:$0xff]  ;;  %v3102_v24 = vld [vmem:[#allocation3 + $0x3f0] sm:$0xff] }
 0x420   : > { %9821 = vmatprep.subr.bf16.mxu0 %v17648_v21 }
 0x422   : > { %3284 = vmatmul.mubr.f32.gmra.mrb[14].mxu0 %v3015_v27  ;;  %v3106_v27 = vld [vmem:[#allocation3 + $0x410] sm:$0xff] }
 0x423   : > { %3288 = vmatprep.mubr.f32.mxu0 %v3019_v11  ;;  %9823 = vmatpush3.bf16.msra.mxu0 %v9822_v5  ;;  %v3105_v11 = vld [vmem:[#allocation3 + $0x408] sm:$0xff] }
 0x424   : > { %v3117_v5 = vld [vmem:[#allocation3 + $0x468] sm:$0xff] }
 0x426   : > { %3289 = vmatmul.mubr.f32.gmra.mrb[16].mxu0 %v3018_v28  ;;  %v3109_v28 = vld [vmem:[#allocation3 + $0x428] sm:$0xff] }
 0x427   : > { %3293 = vmatprep.mubr.f32.mxu0 %v3022_v18  ;;  %v3108_v18 = vld [vmem:[#allocation3 + $0x420] sm:$0xff] }
 0x42a   : > { %3294 = vmatmul.mubr.f32.gmra.mrb[18].mxu0 %v3021_v32  ;;  %v3112_v32 = vld [vmem:[#allocation3 + $0x440] sm:$0xff] }
 0x42b   : > { %3298 = vmatprep.mubr.f32.mxu0 %v3025_v33  ;;  %v3111_v33 = vld [vmem:[#allocation3 + $0x438] sm:$0xff] }
 0x42e   : > { %3299 = vmatmul.mubr.f32.gmra.mrb[20].mxu0 %v3024_v57  ;;  %v3118_v57 = vld [vmem:[#allocation3 + $0x470] sm:$0xff] }
 0x42f   : > { %3303 = vmatprep.mubr.f32.mxu0 %v3028_v6  ;;  %v3121_v6 = vld [vmem:[#allocation3 + $0x488] sm:$0xff] }
 0x432   : > { %3304 = vmatmul.mubr.f32.gmra.mrb[22].mxu0 %v3027_v51  ;;  %v3120_v51 = vld [vmem:[#allocation3 + $0x480] sm:$0xff] }
 0x433   : > { %3308 = vmatprep.mubr.f32.mxu0 %v3031_v25  ;;  %v3124_v25 = vld [vmem:[#allocation3 + $0x4a0] sm:$0xff] }
 0x436   : > { %3309 = vmatmul.mubr.f32.gmra.mrb[24].mxu0 %v3030_v43  ;;  %v3123_v43 = vld [vmem:[#allocation3 + $0x498] sm:$0xff] }
 0x437   : > { %3313 = vmatprep.mubr.f32.mxu0 %v3034_v52  ;;  %v1381_v52 = vld [vmem:[%s12039_s15 + $0x191] sm:$0xff] }
 0x43a   : > { %3314 = vmatmul.mubr.f32.gmra.mrb[26].mxu0 %v3033_v0  ;;  %v1273_v0 = vld [vmem:[%s12039_s15 + $0x190] sm:$0xff] }
 0x43b   : > { %3318 = vmatprep.mubr.f32.mxu0 %v3037_v46  ;;  %v1382_v46 = vld [vmem:[%s12039_s15 + $0x199] sm:$0xff] }
 0x43e   : > { %3319 = vmatmul.mubr.f32.gmra.mrb[28].mxu0 %v3036_v53  ;;  %v1274_v53 = vld [vmem:[%s12039_s15 + $0x198] sm:$0xff] }
 0x43f   : > { %3323 = vmatprep.mubr.f32.mxu0 %v3040_v20  ;;  %v1383_v20 = vld [vmem:[%s12039_s15 + $0x1a1] sm:$0xff] }
 0x442   : > { %3324 = vmatmul.mubr.f32.gmra.mrb[30].mxu0 %v3039_v29  ;;  %v1275_v29 = vld [vmem:[%s12039_s15 + $0x1a0] sm:$0xff] }
 0x443   : > { %3328 = vmatprep.mubr.f32.mxu0 %v3043_v30  ;;  %v2996_v30 = vld [vmem:[#allocation3 + $0xa0] sm:$0xff] }
 0x446   : > { %3329 = vmatmul.mubr.f32.gmra.mrb[32].mxu0 %v3042_v13  ;;  %v2999_v13 = vld [vmem:[#allocation3 + $0xb8] sm:$0xff] }
 0x447   : > { %3333 = vmatprep.mubr.f32.mxu0 %v3046_v47  ;;  %v3002_v47 = vld [vmem:[#allocation3 + $0xd0] sm:$0xff] }
 0x44a   : > { %3334 = vmatmul.mubr.f32.gmra.mrb[34].mxu0 %v3045_v54  ;;  %v3005_v54 = vld [vmem:[#allocation3 + $0xe8] sm:$0xff] }
 0x44b   : > { %3338 = vmatprep.mubr.f32.mxu0 %v3049_v37  ;;  %v3008_v37 = vld [vmem:[#allocation3 + $0x100] sm:$0xff] }
 0x44e   : > { %3339 = vmatmul.mubr.f32.gmra.mrb[36].mxu0 %v3048_v38  ;;  %v3011_v38 = vld [vmem:[#allocation3 + $0x118] sm:$0xff] }
 0x44f   : > { %3343 = vmatprep.mubr.f32.mxu0 %v3052_v15  ;;  %v3014_v15 = vld [vmem:[#allocation3 + $0x130] sm:$0xff] }
 0x452   : > { %3344 = vmatmul.mubr.f32.gmra.mrb[38].mxu0 %v3051_v8  ;;  %v3017_v8 = vld [vmem:[#allocation3 + $0x148] sm:$0xff] }
 0x453   : > { %3348 = vmatprep.mubr.f32.mxu0 %v3055_v16  ;;  %v3020_v16 = vld [vmem:[#allocation3 + $0x160] sm:$0xff] }
 0x456   : > { %3349 = vmatmul.mubr.f32.gmra.mrb[40].mxu0 %v3054_v17  ;;  %v3023_v17 = vld [vmem:[#allocation3 + $0x178] sm:$0xff] }
 0x457   : > { %3353 = vmatprep.mubr.f32.mxu0 %v3058_v45  ;;  %v3026_v45 = vld [vmem:[#allocation3 + $0x190] sm:$0xff] }
 0x45a   : > { %3354 = vmatmul.mubr.f32.gmra.mrb[42].mxu0 %v3057_v22  ;;  %v3029_v22 = vld [vmem:[#allocation3 + $0x1a8] sm:$0xff] }
 0x45b   : > { %3358 = vmatprep.mubr.f32.mxu0 %v3061_v58  ;;  %v3032_v58 = vld [vmem:[#allocation3 + $0x1c0] sm:$0xff] }
 0x45e   : > { %3359 = vmatmul.mubr.f32.gmra.mrb[44].mxu0 %v3060_v41  ;;  %v3035_v41 = vld [vmem:[#allocation3 + $0x1d8] sm:$0xff] }
 0x45f   : > { %3363 = vmatprep.mubr.f32.mxu0 %v3064_v2  ;;  %v3038_v2 = vld [vmem:[#allocation3 + $0x1f0] sm:$0xff] }
 0x462   : > { %3364 = vmatmul.mubr.f32.gmra.mrb[46].mxu0 %v3063_v9  ;;  %v3041_v9 = vld [vmem:[#allocation3 + $0x208] sm:$0xff] }
 0x463   : > { %3368 = vmatprep.mubr.f32.mxu0 %v3067_v39  ;;  %v3044_v39 = vld [vmem:[#allocation3 + $0x220] sm:$0xff] }
 0x466   : > { %3369 = vmatmul.mubr.f32.gmra.mrb[48].mxu0 %v3066_v23  ;;  %v3047_v23 = vld [vmem:[#allocation3 + $0x238] sm:$0xff] }
 0x467   : > { %3373 = vmatprep.mubr.f32.mxu0 %v3070_v36  ;;  %v3050_v36 = vld [vmem:[#allocation3 + $0x250] sm:$0xff] }
 0x46a   : > { %3374 = vmatmul.mubr.f32.gmra.mrb[50].mxu0 %v3069_v59  ;;  %v3053_v59 = vld [vmem:[#allocation3 + $0x268] sm:$0xff] }
 0x46b   : > { %3378 = vmatprep.mubr.f32.mxu0 %v3073_v3  ;;  %v3056_v3 = vld [vmem:[#allocation3 + $0x280] sm:$0xff] }
 0x46e   : > { %3379 = vmatmul.mubr.f32.gmra.mrb[52].mxu0 %v3072_v12  ;;  %v3059_v12 = vld [vmem:[#allocation3 + $0x298] sm:$0xff] }
 0x46f   : > { %3383 = vmatprep.mubr.f32.mxu0 %v3076_v19  ;;  %v3062_v19 = vld [vmem:[#allocation3 + $0x2b0] sm:$0xff] }
 0x472   : > { %3384 = vmatmul.mubr.f32.gmra.mrb[54].mxu0 %v3075_v40  ;;  %v3065_v40 = vld [vmem:[#allocation3 + $0x2c8] sm:$0xff] }
 0x473   : > { %3388 = vmatprep.mubr.f32.mxu0 %v3079_v48  ;;  %v3068_v48 = vld [vmem:[#allocation3 + $0x2e0] sm:$0xff] }
 0x476   : > { %3389 = vmatmul.mubr.f32.gmra.mrb[56].mxu0 %v3078_v55  ;;  %v3071_v55 = vld [vmem:[#allocation3 + $0x2f8] sm:$0xff] }
 0x477   : > { %3393 = vmatprep.mubr.f32.mxu0 %v3082_v61  ;;  %v3074_v61 = vld [vmem:[#allocation3 + $0x310] sm:$0xff] }
 0x47a   : > { %3394 = vmatmul.mubr.f32.gmra.mrb[58].mxu0 %v3081_v63  ;;  %v3077_v63 = vld [vmem:[#allocation3 + $0x328] sm:$0xff] }
 0x47b   : > { %3398 = vmatprep.mubr.f32.mxu0 %v3085_v50  ;;  %v3080_v50 = vld [vmem:[#allocation3 + $0x340] sm:$0xff] }
 0x47e   : > { %3399 = vmatmul.mubr.f32.gmra.mrb[60].mxu0 %v3084_v56  ;;  %v3083_v56 = vld [vmem:[#allocation3 + $0x358] sm:$0xff] }
 0x47f   : > { %3403 = vmatprep.mubr.f32.mxu0 %v3088_v60  ;;  %v3086_v60 = vld [vmem:[#allocation3 + $0x370] sm:$0xff] }
 0x482   : > { %3404 = vmatmul.mubr.f32.gmra.mrb[62].mxu0 %v3087_v1  ;;  %v3089_v1 = vld [vmem:[#allocation3 + $0x388] sm:$0xff] }
 0x483   : > { %3408 = vmatprep.mubr.f32.mxu0 %v3091_v4  ;;  %v3092_v4 = vld [vmem:[#allocation3 + $0x3a0] sm:$0xff] }
 0x486   : > { %3409 = vmatmul.mubr.f32.gmra.mrb[64].mxu0 %v3090_v7  ;;  %v3095_v7 = vld [vmem:[#allocation3 + $0x3b8] sm:$0xff] }
 0x487   : > { %3413 = vmatprep.mubr.f32.mxu0 %v3094_v14  ;;  %v3098_v14 = vld [vmem:[#allocation3 + $0x3d0] sm:$0xff] }
 0x48a   : > { %3414 = vmatmul.mubr.f32.gmra.mrb[66].mxu0 %v3093_v31  ;;  %v3101_v31 = vld [vmem:[#allocation3 + $0x3e8] sm:$0xff] }
 0x48b   : > { %3418 = vmatprep.mubr.f32.mxu0 %v3097_v44  ;;  %v3104_v44 = vld [vmem:[#allocation3 + $0x400] sm:$0xff] }
 0x48e   : > { %3419 = vmatmul.mubr.f32.gmra.mrb[68].mxu0 %v3096_v49  ;;  %v3107_v49 = vld [vmem:[#allocation3 + $0x418] sm:$0xff] }
 0x48f   : > { %3423 = vmatprep.mubr.f32.mxu0 %v3100_v62  ;;  %v3110_v62 = vld [vmem:[#allocation3 + $0x430] sm:$0xff] }
 0x492   : > { %3424 = vmatmul.mubr.f32.gmra.mrb[70].mxu0 %v3099_v10  ;;  %v3113_v10 = vld [vmem:[#allocation3 + $0x448] sm:$0xff] }
 0x493   : > { %3428 = vmatprep.mubr.f32.mxu0 %v3103_v26  ;;  %v3116_v26 = vld [vmem:[#allocation3 + $0x460] sm:$0xff] }
 0x496   : > { %3429 = vmatmul.mubr.f32.gmra.mrb[72].mxu0 %v3102_v24  ;;  %v3119_v24 = vld [vmem:[#allocation3 + $0x478] sm:$0xff] }
 0x497   : > { %3433 = vmatprep.mubr.f32.mxu0 %v3106_v27  ;;  %v3122_v27 = vld [vmem:[#allocation3 + $0x490] sm:$0xff] }
 0x49a   : > { %3434 = vmatmul.mubr.f32.gmra.mrb[74].mxu0 %v3105_v11  ;;  %v3125_v11 = vld [vmem:[#allocation3 + $0x4a8] sm:$0xff] }
 0x49b   : > { %3438 = vmatprep.mubr.f32.mxu0 %v3109_v28  ;;  %v376_v28 = vlaneseq }
 0x49e   : > { %3439 = vmatmul.mubr.f32.gmra.mrb[76].mxu0 %v3108_v18  ;;  %v1489_v18 = vld [vmem:[%s12039_s15 + $0x192] sm:$0xff] }
 0x49f   : > { %3443 = vmatprep.mubr.f32.mxu0 %v3112_v32  ;;  %v13152_v32 = vshrl.u32 %v376_v28, 7 }
 0x4a2   : > { %3444 = vmatmul.mubr.f32.gmra.mrb[78].mxu0 %v3111_v33  ;;  %v1490_v33 = vld [vmem:[%s12039_s15 + $0x19a] sm:$0xff] }
 0x4a3   : > { %3448 = vmatprep.mubr.f32.mxu0 %v3115_v34 }
 0x4a6   : > { %3449 = vmatmul.mubr.f32.gmra.mrb[80].mxu0 %v3114_v35  ;;  %v13158_v34 = vmul.u32.u64.low 2863311531, %v13152_v32  ;;  %v13159_v35 = vmul.u32.u64.high 2863311531, %v13152_v32, %v13158_v34 }
 0x4a7   : > { %3453 = vmatprep.mubr.f32.mxu0 %v3118_v57  ;;  %v378_v57 = vadd.s32 8, %v13152_v32 }
 0x4aa   : > { %3454 = vmatmul.mubr.f32.gmra.mrb[82].mxu0 %v3117_v5  ;;  %v379_v5 = vadd.s32 16, %v13152_v32 }
 0x4ab   : > { %3458 = vmatprep.mubr.f32.mxu0 %v3121_v6  ;;  %v1491_v6 = vld [vmem:[%s12039_s15 + $0x1a2] sm:$0xff] }
 0x4ae   : > { %3459 = vmatmul.mubr.f32.gmra.mrb[84].mxu0 %v3120_v51 }
 0x4af   : > { %3463 = vmatprep.mubr.f32.mxu0 %v3124_v25  ;;  %v13166_v51 = vmul.u32.u64.low 2863311531, %v378_v57  ;;  %v13167_v25 = vmul.u32.u64.high 2863311531, %v378_v57, %v13166_v51 }
 0x4b2   : > { %3464 = vmatmul.mubr.f32.gmra.mrb[86].mxu0 %v3123_v43 }
 0x4b3   : > { %3468 = vmatprep.mubr.f32.mxu0 %v1381_v52  ;;  %v13169_v43 = vmul.u32.u64.low 2863311531, %v379_v5  ;;  %v13170_v52 = vmul.u32.u64.high 2863311531, %v379_v5, %v13169_v43 }
 0x4b6   : > { %3469 = vmatmul.mubr.f32.gmra.mrb[88].mxu0 %v1273_v0  ;;  %v430_v0 = vshrl.u32 %v13159_v35, 4 }
 0x4b7   : > { %3473 = vmatprep.mubr.f32.mxu0 %v1382_v46  ;;  %v380_v46 = vadd.s32 24, %v13152_v32 }
 0x4ba   : > { %3474 = vmatmul.mubr.f32.gmra.mrb[90].mxu0 %v1274_v53  ;;  %v381_v53 = vadd.s32 32, %v13152_v32 }
 0x4bb   : > { %3478 = vmatprep.mubr.f32.mxu0 %v1383_v20  ;;  %v431_v20 = vmul.u32 24, %v430_v0 }
 0x4be   : > { %3479 = vmatmul.mubr.f32.gmra.mrb[92].mxu0 %v1275_v29 }
 0x4bf   : > { %8948 = vmatprep.mubr.msk.f32.mxu0 %vm17480_vm0, %v17309_v42 }
 0x4c2   : > { %8949 = vmatmul.mubr.f32.vlgmr.msra.gmra.mrb[0].mxu0 %v2996_v30  ;;  %v13175_v29 = vmul.u32.u64.low 2863311531, %v380_v46  ;;  %v13176_v30 = vmul.u32.u64.high 2863311531, %v380_v46, %v13175_v29 }
 0x4c3   : > { %8951 = vmatprep.mubr.msk.f32.mxu0 %vm17480_vm0, %v17309_v42 }
 0x4c6   : > { %8952 = vmatmul.mubr.f32.gmra.mrb[2].mxu0 %v2999_v13  ;;  %v441_v13 = vshrl.u32 %v13167_v25, 4 }
 0x4c7   : > { %8954 = vmatprep.mubr.msk.f32.mxu0 %vm17480_vm0, %v17309_v42 }
 0x4ca   : > { %8955 = vmatmul.mubr.f32.gmra.mrb[4].mxu0 %v3002_v47  ;;  %v382_v47 = vadd.s32 40, %v13152_v32 }
 0x4cb   : > { %8957 = vmatprep.mubr.msk.f32.mxu0 %vm17480_vm0, %v17309_v42 }
 0x4ce   : > { %8958 = vmatmul.mubr.f32.gmra.mrb[6].mxu0 %v3005_v54  ;;  %v452_v54 = vshrl.u32 %v13170_v52, 4 }
 0x4cf   : > { %8960 = vmatprep.mubr.msk.f32.mxu0 %vm17480_vm0, %v17309_v42 }
 0x4d2   : > { %8961 = vmatmul.mubr.f32.gmra.mrb[8].mxu0 %v3008_v37 }
 0x4d3   : > { %8963 = vmatprep.mubr.msk.f32.mxu0 %vm17480_vm0, %v17309_v42 }
 0x4d6   : > { %8964 = vmatmul.mubr.f32.gmra.mrb[10].mxu0 %v3011_v38  ;;  %v13181_v37 = vmul.u32.u64.low 2863311531, %v381_v53  ;;  %v13182_v38 = vmul.u32.u64.high 2863311531, %v381_v53, %v13181_v37 }
 0x4d7   : > { %8966 = vmatprep.mubr.msk.f32.mxu0 %vm17480_vm0, %v17309_v42 }
 0x4da   : > { %8967 = vmatmul.mubr.f32.gmra.mrb[12].mxu0 %v3014_v15  ;;  %v432_v15 = vsub.s32 %v13152_v32, %v431_v20 }
 0x4db   : > { %8969 = vmatprep.mubr.msk.f32.mxu0 %vm17480_vm0, %v17309_v42 }
 0x4dc   : > { %vm941_vm1 = vcmp.ne.s32.totalorder %v432_v15, 0  ;;  %vm988_vm2 = vcmp.lt.s32.totalorder %v432_v15, 0 }
 0x4dd   : > { %vm1035_vm3 = vmand %vm988_vm2, %vm941_vm1 }
 0x4de   : > { %8970 = vmatmul.mubr.f32.gmra.mrb[14].mxu0 %v3017_v8  ;;  %v442_v8 = vmul.u32 24, %v441_v13 }
 0x4df   : > { %8972 = vmatprep.mubr.msk.f32.mxu0 %vm17480_vm0, %v17309_v42 }
 0x4e2   : > { %8973 = vmatmul.mubr.f32.gmra.mrb[16].mxu0 %v3020_v16 }
 0x4e3   : > { %8975 = vmatprep.mubr.msk.f32.mxu0 %vm17480_vm0, %v17309_v42 }
 0x4e6   : > { %8976 = vmatmul.mubr.f32.gmra.mrb[18].mxu0 %v3023_v17  ;;  %v13185_v16 = vmul.u32.u64.low 2863311531, %v382_v47  ;;  %v13186_v17 = vmul.u32.u64.high 2863311531, %v382_v47, %v13185_v16 }
 0x4e7   : > { %8978 = vmatprep.mubr.msk.f32.mxu0 %vm17480_vm0, %v17309_v42 }
 0x4ea   : > { %8979 = vmatmul.mubr.f32.gmra.mrb[20].mxu0 %v3026_v45  ;;  %v383_v45 = vadd.s32 48, %v13152_v32 }
 0x4eb   : > { %8981 = vmatprep.mubr.msk.f32.mxu0 %vm17480_vm0, %v17309_v42 }
 0x4ee   : > { %8982 = vmatmul.mubr.f32.gmra.mrb[22].mxu0 %v3029_v22  ;;  %v453_v22 = vmul.u32 24, %v452_v54 }
 0x4ef   : > { %8984 = vmatprep.mubr.msk.f32.mxu0 %vm17480_vm0, %v17309_v42 }
 0x4f2   : > { %8985 = vmatmul.mubr.f32.gmra.mrb[24].mxu0 %v3032_v58  ;;  %v463_v58 = vshrl.u32 %v13176_v30, 4 }
 0x4f3   : > { %8987 = vmatprep.mubr.msk.f32.mxu0 %vm17480_vm0, %v17309_v42 }
 0x4f6   : > { %8988 = vmatmul.mubr.f32.gmra.mrb[26].mxu0 %v3035_v41  ;;  %v443_v41 = vsub.s32 %v378_v57, %v442_v8 }
 0x4f7   : > { %8990 = vmatprep.mubr.msk.f32.mxu0 %vm17480_vm0, %v17309_v42 }
 0x4f8   : > { %vm942_vm4 = vcmp.ne.s32.totalorder %v443_v41, 0  ;;  %vm989_vm5 = vcmp.lt.s32.totalorder %v443_v41, 0 }
 0x4f9   : > { %vm1036_vm8 = vmand %vm989_vm5, %vm942_vm4 }
 0x4fa   : > { %8991 = vmatmul.mubr.f32.gmra.mrb[28].mxu0 %v3038_v2 }
 0x4fb   : > { %8993 = vmatprep.mubr.msk.f32.mxu0 %vm17480_vm0, %v17309_v42 }
 0x4fe   : > { %8994 = vmatmul.mubr.f32.gmra.mrb[30].mxu0 %v3041_v9  ;;  %v13190_v2 = vmul.u32.u64.low 2863311531, %v383_v45  ;;  %v13191_v9 = vmul.u32.u64.high 2863311531, %v383_v45, %v13190_v2 }
 0x4ff   : > { %8996 = vmatprep.mubr.msk.f32.mxu0 %vm17480_vm0, %v17309_v42 }
 0x502   : > { %8997 = vmatmul.mubr.f32.gmra.mrb[32].mxu0 %v3044_v39  ;;  %v454_v39 = vsub.s32 %v379_v5, %v453_v22  ;;  %v13243_v5 = vadd.s32 88, %v13152_v32 }
 0x503   : > { %8999 = vmatprep.mubr.msk.f32.mxu0 %vm17480_vm0, %v17309_v42 }
 0x504   : > { %vm943_vm6 = vcmp.ne.s32.totalorder %v454_v39, 0  ;;  %vm990_vm7 = vcmp.lt.s32.totalorder %v454_v39, 0 }
 0x505   : > { %vm1037_vm9 = vmand %vm990_vm7, %vm943_vm6 }
 0x506   : > { %9000 = vmatmul.mubr.f32.gmra.mrb[34].mxu0 %v3047_v23  ;;  %v13194_v23 = vadd.s32 56, %v13152_v32 }
 0x507   : > { %9002 = vmatprep.mubr.msk.f32.mxu0 %vm17480_vm0, %v17309_v42 }
 0x50a   : > { %9003 = vmatmul.mubr.f32.gmra.mrb[36].mxu0 %v3050_v36  ;;  %v1082_v36 = vadd.s32 24, %v432_v15 }
 0x50b   : > { %9005 = vmatprep.mubr.msk.f32.mxu0 %vm17480_vm0, %v17309_v42 }
 0x50e   : > { %9006 = vmatmul.mubr.f32.gmra.mrb[38].mxu0 %v3053_v59  ;;  %v474_v59 = vshrl.u32 %v13182_v38, 4  ;;  %v13260_v37 = vmul.u32.u64.low 2863311531, %v13243_v5  ;;  %v13261_v38 = vmul.u32.u64.high 2863311531, %v13243_v5, %v13260_v37 }
 0x50f   : > { %9008 = vmatprep.mubr.msk.f32.mxu0 %vm17480_vm0, %v17309_v42 }
 0x512   : > { %9009 = vmatmul.mubr.f32.gmra.mrb[40].mxu0 %v3056_v3  ;;  %v464_v3 = vmul.u32 24, %v463_v58 }
 0x513   : > { %9011 = vmatprep.mubr.msk.f32.mxu0 %vm17480_vm0, %v17309_v42 }
 0x516   : > { %9012 = vmatmul.mubr.f32.gmra.mrb[42].mxu0 %v3059_v12  ;;  %v13198_v12 = vadd.s32 64, %v13152_v32 }
 0x517   : > { %9014 = vmatprep.mubr.msk.f32.mxu0 %vm17480_vm0, %v17309_v42 }
 0x51a   : > { %9015 = vmatmul.mubr.f32.gmra.mrb[44].mxu0 %v3062_v19  ;;  %v485_v19 = vshrl.u32 %v13186_v17, 4 }
 0x51b   : > { %9017 = vmatprep.mubr.msk.f32.mxu0 %vm17480_vm0, %v17309_v42 }
 0x51e   : > { %9018 = vmatmul.mubr.f32.gmra.mrb[46].mxu0 %v3065_v40 }
 0x51f   : > { %9020 = vmatprep.mubr.msk.f32.mxu0 %vm17480_vm0, %v17309_v42 }
 0x522   : > { %9021 = vmatmul.mubr.f32.gmra.mrb[48].mxu0 %v3068_v48  ;;  %v13202_v40 = vmul.u32.u64.low 2863311531, %v13194_v23  ;;  %v13203_v48 = vmul.u32.u64.high 2863311531, %v13194_v23, %v13202_v40 }
 0x523   : > { %9023 = vmatprep.mubr.msk.f32.mxu0 %vm17480_vm0, %v17309_v42 }
 0x524   : > { %v507_v28 = vshrl.u32 %v13203_v48, 4 }
 0x526   : > { %9024 = vmatmul.mubr.f32.gmra.mrb[50].mxu0 %v3071_v55  ;;  %v13205_v55 = vsel %vm1035_vm3, %v1082_v36, %v432_v15  ;;  %v508_v0 = vmul.u32 24, %v507_v28 }
 0x527   : > { %9026 = vmatprep.mubr.msk.f32.mxu0 %vm17480_vm0, %v17309_v42  ;;  %17665 = vst [vmem:[#allocation22_spill] sm:$0xff] %v13205_v55  ;;  %vm17479_vm10 = vcmp.lt.s32.totalorder %v13205_v55, 16 }
 0x52a   : > { %9027 = vmatmul.mubr.f32.gmra.mrb[52].mxu0 %v3074_v61  ;;  %v1083_v61 = vadd.s32 24, %v443_v41 }
 0x52b   : > { %9029 = vmatprep.mubr.msk.f32.mxu0 %vm17480_vm0, %v17309_v42 }
 0x52e   : > { %9030 = vmatmul.mubr.f32.gmra.mrb[54].mxu0 %v3077_v63  ;;  %v475_v63 = vmul.u32 24, %v474_v59 }
 0x52f   : > { %9032 = vmatprep.mubr.msk.f32.mxu0 %vm17480_vm0, %v17309_v42 }
 0x532   : > { %9033 = vmatmul.mubr.f32.gmra.mrb[56].mxu0 %v3080_v50  ;;  %v1084_v50 = vadd.s32 24, %v454_v39 }
 0x533   : > { %9035 = vmatprep.mubr.msk.f32.mxu0 %vm17480_vm0, %v17309_v42 }
 0x536   : > { %9036 = vmatmul.mubr.f32.gmra.mrb[58].mxu0 %v3083_v56  ;;  %v465_v56 = vsub.s32 %v380_v46, %v464_v3 }
 0x537   : > { %9038 = vmatprep.mubr.msk.f32.mxu0 %vm17480_vm0, %v17309_v42 }
 0x538   : > { %vm944_vm11 = vcmp.ne.s32.totalorder %v465_v56, 0  ;;  %vm991_vm12 = vcmp.lt.s32.totalorder %v465_v56, 0 }
 0x539   : > { %vm13237_vm2 = vmand %vm991_vm12, %vm944_vm11 }
 0x53a   : > { %9039 = vmatmul.mubr.f32.gmra.mrb[60].mxu0 %v3086_v60 }
 0x53b   : > { %9041 = vmatprep.mubr.msk.f32.mxu0 %vm17480_vm0, %v17309_v42 }
 0x53e   : > { %9042 = vmatmul.mubr.f32.gmra.mrb[62].mxu0 %v3089_v1  ;;  %v13208_v60 = vmul.u32.u64.low 2863311531, %v13198_v12  ;;  %v13209_v1 = vmul.u32.u64.high 2863311531, %v13198_v12, %v13208_v60 }
 0x53f   : > { %9044 = vmatprep.mubr.msk.f32.mxu0 %vm17480_vm0, %v17309_v42 }
 0x540   : > { %v518_v57 = vshrl.u32 %v13209_v1, 4 }
 0x542   : > { %9045 = vmatmul.mubr.f32.gmra.mrb[64].mxu0 %v3092_v4  ;;  %v486_v4 = vmul.u32 24, %v485_v19  ;;  %v519_v54 = vmul.u32 24, %v518_v57 }
 0x543   : > { %9047 = vmatprep.mubr.msk.f32.mxu0 %vm17480_vm0, %v17309_v42 }
 0x544   : > { %v520_v3 = vsub.s32 %v13198_v12, %v519_v54 }
 0x546   : > { %9048 = vmatmul.mubr.f32.gmra.mrb[66].mxu0 %v3095_v7  ;;  %v496_v7 = vshrl.u32 %v13191_v9, 4 }
 0x547   : > { %9050 = vmatprep.mubr.msk.f32.mxu0 %vm17480_vm0, %v17309_v42 }
 0x54a   : > { %9051 = vmatmul.mubr.f32.gmra.mrb[68].mxu0 %v3098_v14  ;;  %v13213_v14 = vadd.s32 72, %v13152_v32 }
 0x54b   : > { %9053 = vmatprep.mubr.msk.f32.mxu0 %vm17480_vm0, %v17309_v42 }
 0x54e   : > { %9054 = vmatmul.mubr.f32.gmra.mrb[70].mxu0 %v3101_v31  ;;  %v476_v31 = vsub.s32 %v381_v53, %v475_v63 }
 0x54f   : > { %9056 = vmatprep.mubr.msk.f32.mxu0 %vm17480_vm0, %v17309_v42 }
 0x550   : > { %vm945_vm14 = vcmp.ne.s32.totalorder %v476_v31, 0  ;;  %vm992_vm15 = vcmp.lt.s32.totalorder %v476_v31, 0  ;;  %v1086_v51 = vadd.s32 24, %v476_v31 }
 0x551   : > { %vm1039_vm5 = vmand %vm992_vm15, %vm945_vm14 }
 0x552   : > { %9057 = vmatmul.mubr.f32.gmra.mrb[72].mxu0 %v3104_v44  ;;  %v13216_v44 = vsel %vm1036_vm8, %v1083_v61, %v443_v41  ;;  %v13265_v16 = vsel %vm1039_vm5, %v1086_v51, %v476_v31  ;;  %v509_v41 = vsub.s32 %v13194_v23, %v508_v0  ;;  %v551_v31 = vshrl.u32 %v13261_v38, 4 }
 0x553   : > { %9059 = vmatprep.mubr.msk.f32.mxu0 %vm17480_vm0, %v17309_v42  ;;  %17666 = vst [vmem:[#allocation23_spill] sm:$0xff] %v13216_v44  ;;  %vm17478_vm13 = vcmp.lt.s32.totalorder %v13216_v44, 16  ;;  %17671 = vst [vmem:[#allocation26_spill] sm:$0xff] %v13265_v16  ;;  %vm17300_vm11 = vcmp.lt.s32.totalorder %v13265_v16, 16 }
 0x554   : > { %vm948_vm14 = vcmp.ne.s32.totalorder %v509_v41, 0  ;;  %vm995_vm15 = vcmp.lt.s32.totalorder %v509_v41, 0 }
 0x556   : > { %9060 = vmatmul.mubr.f32.gmra.mrb[74].mxu0 %v3107_v49  ;;  %v13218_v49 = vsel %vm1037_vm9, %v1084_v50, %v454_v39  ;;  %v13279_v39 = vadd.s32 104, %v13152_v32 }
 0x557   : > { %9062 = vmatprep.mubr.msk.f32.mxu0 %vm17480_vm0, %v17309_v42  ;;  %17667 = vst [vmem:[#allocation24_spill] sm:$0xff] %v13218_v49  ;;  %vm17475_vm1 = vcmp.lt.s32.totalorder %v13218_v49, 16 }
 0x55a   : > { %9063 = vmatmul.mubr.f32.gmra.mrb[76].mxu0 %v3110_v62 }
 0x55b   : > { %9065 = vmatprep.mubr.msk.f32.mxu0 %vm17480_vm0, %v17309_v42 }
 0x55e   : > { %9066 = vmatmul.mubr.f32.gmra.mrb[78].mxu0 %v3113_v10  ;;  %v487_v10 = vsub.s32 %v382_v47, %v486_v4  ;;  %v13296_v1 = vmul.u32.u64.low 2863311531, %v13279_v39  ;;  %v13297_v4 = vmul.u32.u64.high 2863311531, %v13279_v39, %v13296_v1 }
 0x55f   : > { %9068 = vmatprep.mubr.msk.f32.mxu0 %vm17480_vm0, %v17309_v42 }
 0x560   : > { %vm946_vm3 = vcmp.ne.s32.totalorder %v487_v10, 0  ;;  %vm993_vm4 = vcmp.lt.s32.totalorder %v487_v10, 0  ;;  %v1087_v47 = vadd.s32 24, %v487_v10  ;;  %v573_v38 = vshrl.u32 %v13297_v4, 4 }
 0x561   : > { %vm1040_vm6 = vmand %vm993_vm4, %vm946_vm3  ;;  %vm996_vm3 = vcmp.lt.s32.totalorder %v520_v3, 0 }
 0x562   : > { %9069 = vmatmul.mubr.f32.gmra.mrb[80].mxu0 %v3116_v26  ;;  %v497_v26 = vmul.u32 24, %v496_v7  ;;  %v13282_v36 = vsel %vm1040_vm6, %v1087_v47, %v487_v10  ;;  %vm1042_vm4 = vmand %vm995_vm15, %vm948_vm14 }
 0x563   : > { %9071 = vmatprep.mubr.msk.f32.mxu0 %vm17480_vm0, %v17309_v42  ;;  %17672 = vst [vmem:[#allocation27_spill] sm:$0xff] %v13282_v36  ;;  %vm17299_vm5 = vcmp.lt.s32.totalorder %v13282_v36, 16 }
 0x564   : > { %v498_v25 = vsub.s32 %v383_v45, %v497_v26  ;;  %v13271_v45 = vadd.s32 96, %v13152_v32 }
 0x566   : > { %9072 = vmatmul.mubr.f32.gmra.mrb[82].mxu0 %v3119_v24  ;;  %vm947_vm8 = vcmp.ne.s32.totalorder %v498_v25, 0  ;;  %vm994_vm9 = vcmp.lt.s32.totalorder %v498_v25, 0  ;;  %v1088_v59 = vadd.s32 24, %v498_v25 }
 0x567   : > { %9074 = vmatprep.mubr.msk.f32.mxu0 %vm17480_vm0, %v17309_v42  ;;  %v13288_v61 = vmul.u32.u64.low 2863311531, %v13271_v45  ;;  %v13289_v23 = vmul.u32.u64.high 2863311531, %v13271_v45, %v13288_v61  ;;  %vm1041_vm12 = vmand %vm994_vm9, %vm947_vm8 }
 0x568   : > { %v13349_v61 = vadd.s32 136, %v13152_v32 }
 0x569   : > { %v562_v0 = vshrl.u32 %v13289_v23, 4 }
 0x56a   : > { %9075 = vmatmul.mubr.f32.gmra.mrb[84].mxu0 %v3122_v27  ;;  %v13223_v24 = vmul.u32.u64.low 2863311531, %v13213_v14  ;;  %v13224_v27 = vmul.u32.u64.high 2863311531, %v13213_v14, %v13223_v24 }
 0x56b   : > { %9077 = vmatprep.mubr.msk.f32.mxu0 %vm17480_vm0, %v17309_v42  ;;  %v13303_v24 = vsel %vm1041_vm12, %v1088_v59, %v498_v25  ;;  %v552_v25 = vmul.u32 24, %v551_v31 }
 0x56c   : > { %v529_v17 = vshrl.u32 %v13224_v27, 4  ;;  %17673 = vst [vmem:[#allocation28_spill] sm:$0xff] %v13303_v24  ;;  %vm17298_vm8 = vcmp.lt.s32.totalorder %v13303_v24, 16 }
 0x56e   : > { %9078 = vmatmul.mubr.f32.gmra.mrb[86].mxu0 %v3125_v11  ;;  %v530_v48 = vmul.u32 24, %v529_v17  ;;  %v553_v17 = vsub.s32 %v13243_v5, %v552_v25 }
 0x56f   : > { %9080 = vmatprep.mubr.msk.f32.mxu0 %vm17480_vm0, %v17309_v42 }
 0x570   : > { %v531_v27 = vsub.s32 %v13213_v14, %v530_v48  ;;  %v574_v48 = vmul.u32 24, %v573_v38  ;;  %v1093_v25 = vadd.s32 24, %v553_v17 }
 0x572   : > { %9081 = vmatmul.mubr.f32.gmra.mrb[88].mxu0 %v1489_v18  ;;  %v13228_v18 = vadd.s32 80, %v13152_v32  ;;  %vm950_vm9 = vcmp.ne.s32.totalorder %v531_v27, 0  ;;  %vm997_vm12 = vcmp.lt.s32.totalorder %v531_v27, 0  ;;  %v1091_v37 = vadd.s32 24, %v531_v27 }
 0x573   : > { %9083 = vmatprep.mubr.msk.f32.mxu0 %vm17480_vm0, %v17309_v42  ;;  %vm1044_vm14 = vmand %vm997_vm12, %vm950_vm9  ;;  %vm999_vm9 = vcmp.lt.s32.totalorder %v553_v17, 0 }
 0x574   : > { %v13252_v46 = vmul.u32.u64.low 2863311531, %v13228_v18  ;;  %v13253_v53 = vmul.u32.u64.high 2863311531, %v13228_v18, %v13252_v46 }
 0x576   : > { %9084 = vmatmul.mubr.f32.gmra.mrb[90].mxu0 %v1490_v33  ;;  %v1085_v33 = vadd.s32 24, %v465_v56  ;;  %v540_v7 = vshrl.u32 %v13253_v53, 4 }
 0x577   : > { %9086 = vmatprep.mubr.msk.f32.mxu0 %vm17480_vm0, %v17309_v42 }
 0x578   : > { %v13257_v13 = vsel %vm13237_vm2, %v1085_v33, %v465_v56  ;;  %v1089_v56 = vadd.s32 24, %v509_v41  ;;  %vm949_vm2 = vcmp.ne.s32.totalorder %v520_v3, 0  ;;  %v1090_v33 = vadd.s32 24, %v520_v3 }
 0x579   : > { %17670 = vst [vmem:[#allocation25_spill] sm:$0xff] %v13257_v13  ;;  %vm17301_vm7 = vcmp.lt.s32.totalorder %v13257_v13, 16  ;;  %vm1043_vm6 = vmand %vm996_vm3, %vm949_vm2  ;;  %v541_v14 = vmul.u32 24, %v540_v7 }
 0x57a   : > { %9087 = vmatmul.mubr.f32.gmra.mrb[92].mxu0 %v1491_v6  ;;  %v13316_v51 = vsel %vm1042_vm4, %v1089_v56, %v509_v41  ;;  %v563_v41 = vmul.u32 24, %v562_v0 }
 0x57b   : > { %17674 = vst [vmem:[#allocation30_spill] sm:$0xff] %v13316_v51  ;;  %vm17297_vm15 = vcmp.lt.s32.totalorder %v13316_v51, 16 }
 0x595   : > { %v13220_v62 = vpop.f32.mrb[0].mxu0 }
 0x596   : > { %v8950_v11 = vpop.f32.mrb[1].mxu0  ;;  %v3925_v34 = vsel %vm17479_vm10, %v13220_v62, 0.0 }
 0x597   : > { %v4025_v20 = vmul.f32 %v3925_v34, %v3925_v34 }
 0x599   : > { %v13245_v6 = vpop.f32.mrb[2].mxu0 }
 0x59a   : > { %v3926_v43 = vsel %vm17478_vm13, %v13245_v6, 0.0  ;;  %v8953_v52 = vpop.f32.mrb[3].mxu0 }
 0x59b   : > { %v3972_v29 = vadd.f32 %v3926_v43, %v3925_v34  ;;  %v4026_v30 = vmul.f32 %v3926_v43, %v3926_v43  ;;  %v13310_v34 = vadd.s32 112, %v13152_v32 }
 0x59d   : > { %v4072_v15 = vadd.f32 %v4026_v30, %v4025_v20  ;;  %v13263_v8 = vpop.f32.mrb[4].mxu0  ;;  %v13324_v20 = vsel %vm1043_vm6, %v1090_v33, %v520_v3  ;;  %vm952_vm6 = vcmp.ne.s32.totalorder %v553_v17, 0 }
 0x59e   : > { %v3927_v22 = vsel %vm17475_vm1, %v13263_v8, 0.0  ;;  %v8956_v58 = vpop.f32.mrb[5].mxu0  ;;  %17675 = vst [vmem:[#allocation32_spill] sm:$0xff] %v13324_v20  ;;  %vm17472_vm2 = vcmp.lt.s32.totalorder %v13324_v20, 16 }
 0x59f   : > { %v3973_v2 = vadd.f32 %v3972_v29, %v3927_v22  ;;  %v4027_v9 = vmul.f32 %v3927_v22, %v3927_v22  ;;  %v13327_v29 = vmul.u32.u64.low 2863311531, %v13310_v34  ;;  %v13328_v30 = vmul.u32.u64.high 2863311531, %v13310_v34, %v13327_v29 }
 0x5a1   : > { %v4073_v19 = vadd.f32 %v4072_v15, %v4027_v9  ;;  %v13285_v40 = vpop.f32.mrb[6].mxu0  ;;  %v542_v15 = vsub.s32 %v13228_v18, %v541_v14  ;;  %v13344_v18 = vadd.s32 128, %v13152_v32  ;;  %v584_v4 = vshrl.u32 %v13328_v30, 4 }
 0x5a2   : > { %v3928_v63 = vsel %vm17301_vm7, %v13285_v40, 0.0  ;;  %v8959_v50 = vpop.f32.mrb[7].mxu0 }
 0x5a3   : > { %v3974_v60 = vadd.f32 %v3973_v2, %v3928_v63  ;;  %v4028_v12 = vmul.f32 %v3928_v63, %v3928_v63  ;;  %v13336_v2 = vadd.s32 120, %v13152_v32  ;;  %vm951_vm3 = vcmp.ne.s32.totalorder %v542_v15, 0 }
 0x5a4   : > { %vm998_vm4 = vcmp.lt.s32.totalorder %v542_v15, 0  ;;  %v564_v50 = vsub.s32 %v13271_v45, %v563_v41  ;;  %v13363_v7 = vmul.u32.u64.low 2863311531, %v13344_v18  ;;  %v13364_v31 = vmul.u32.u64.high 2863311531, %v13344_v18, %v13363_v7 }
 0x5a5   : > { %v4074_v10 = vadd.f32 %v4073_v19, %v4028_v12  ;;  %v13301_v26 = vpop.f32.mrb[8].mxu0  ;;  %v13346_v19 = vsel %vm1044_vm14, %v1091_v37, %v531_v27  ;;  %v575_v45 = vsub.s32 %v13279_v39, %v574_v48  ;;  %vm1045_vm14 = vmand %vm998_vm4, %vm951_vm3  ;;  %v585_v0 = vmul.u32 24, %v584_v4 }
 0x5a6   : > { %v3929_v11 = vsel %vm17300_vm11, %v13301_v26, 0.0  ;;  %v8962_v28 = vpop.f32.mrb[9].mxu0  ;;  %17676 = vst [vmem:[#allocation34_spill] sm:$0xff] %v13346_v19  ;;  %vm17471_vm12 = vcmp.lt.s32.totalorder %v13346_v19, 16  ;;  %v1094_v30 = vadd.s32 24, %v564_v50  ;;  %v13413_v7 = vadd.s32 160, %v13152_v32 }
 0x5a7   : > { %v3975_v35 = vadd.f32 %v3974_v60, %v3929_v11  ;;  %v4029_v57 = vmul.f32 %v3929_v11, %v3929_v11  ;;  %v13355_v56 = vmul.u32.u64.low 2863311531, %v13336_v2  ;;  %v13356_v60 = vmul.u32.u64.high 2863311531, %v13336_v2, %v13355_v56 }
 0x5a8   : > { %v1092_v11 = vadd.s32 24, %v542_v15  ;;  %v13368_v28 = vmul.u32.u64.low 2863311531, %v13349_v61  ;;  %v13369_v33 = vmul.u32.u64.high 2863311531, %v13349_v61, %v13368_v28  ;;  %vm954_vm11 = vcmp.ne.s32.totalorder %v575_v45, 0 }
 0x5a9   : > { %v4075_v43 = vadd.f32 %v4074_v10, %v4029_v57  ;;  %v13318_v52 = vpop.f32.mrb[10].mxu0  ;;  %vm1001_vm7 = vcmp.lt.s32.totalorder %v575_v45, 0  ;;  %v1095_v41 = vadd.s32 24, %v575_v45 }
 0x5aa   : > { %v3930_v46 = vsel %vm17299_vm5, %v13318_v52, 0.0  ;;  %v8965_v53 = vpop.f32.mrb[11].mxu0  ;;  %vm1000_vm5 = vcmp.lt.s32.totalorder %v564_v50, 0  ;;  %v13383_v29 = vsel %vm1045_vm14, %v1092_v11, %v542_v15  ;;  %vm1048_vm4 = vmand %vm1001_vm7, %vm954_vm11  ;;  %v617_v56 = vshrl.u32 %v13369_v33, 4 }
 0x5ab   : > { %v3976_v47 = vadd.f32 %v3975_v35, %v3930_v46  ;;  %v4030_v54 = vmul.f32 %v3930_v46, %v3930_v46  ;;  %v13372_v35 = vadd.s32 144, %v13152_v32  ;;  %17677 = vst [vmem:[#allocation29_spill] sm:$0xff] %v13383_v29  ;;  %v13410_v4 = vsel %vm1048_vm4, %v1095_v41, %v575_v45 }
 0x5ac   : > { %17680 = vst [vmem:[#allocation35_spill] sm:$0xff] %v13410_v4  ;;  %v618_v45 = vmul.u32 24, %v617_v56 }
 0x5ad   : > { %v4076_v22 = vadd.f32 %v4075_v43, %v4030_v54  ;;  %v13333_v58 = vpop.f32.mrb[12].mxu0 }
 0x5ae   : > { %v3931_v9 = vsel %vm17298_vm8, %v13333_v58, 0.0  ;;  %v8968_v59 = vpop.f32.mrb[13].mxu0  ;;  %vm953_vm8 = vcmp.ne.s32.totalorder %v564_v50, 0 }
 0x5af   : > { %v3977_v5 = vadd.f32 %v3976_v47, %v3931_v9  ;;  %v4031_v3 = vmul.f32 %v3931_v9, %v3931_v9  ;;  %v13386_v47 = vmul.u32.u64.low 2863311531, %v13372_v35  ;;  %v13387_v54 = vmul.u32.u64.high 2863311531, %v13372_v35, %v13386_v47  ;;  %vm1047_vm3 = vmand %vm1000_vm5, %vm953_vm8 }
 0x5b0   : > { %v595_v9 = vshrl.u32 %v13356_v60, 4  ;;  %v13406_v60 = vadd.s32 152, %v13152_v32 }
 0x5b1   : > { %v4077_v23 = vadd.f32 %v4076_v22, %v4031_v3  ;;  %v13351_v63 = vpop.f32.mrb[14].mxu0  ;;  %v606_v3 = vshrl.u32 %v13364_v31, 4 }
 0x5b2   : > { %v3932_v12 = vsel %vm17297_vm15, %v13351_v63, 0.0  ;;  %v8971_v1 = vpop.f32.mrb[15].mxu0  ;;  %vm1046_vm15 = vmand %vm999_vm9, %vm952_vm6  ;;  %vm17303_vm9 = vcmp.lt.s32.totalorder %v13410_v4, 16 }
 0x5b3   : > { %v3978_v10 = vadd.f32 %v3977_v5, %v3932_v12  ;;  %v4032_v27 = vmul.f32 %v3932_v12, %v3932_v12  ;;  %v13391_v22 = vsel %vm1046_vm15, %v1093_v25, %v553_v17  ;;  %v586_v5 = vsub.s32 %v13310_v34, %v585_v0 }
 0x5b4   : > { %17678 = vst [vmem:[#allocation31_spill] sm:$0xff] %v13391_v22  ;;  %vm17308_vm15 = vcmp.lt.s32.totalorder %v13383_v29, 16  ;;  %vm17302_vm6 = vcmp.lt.s32.totalorder %v13391_v22, 16  ;;  %v13402_v17 = vsel %vm1047_vm3, %v1094_v30, %v564_v50  ;;  %v596_v34 = vmul.u32 24, %v595_v9 }
 0x5b5   : > { %v4078_v57 = vadd.f32 %v4077_v23, %v4032_v27  ;;  %v13374_v14 = vpop.f32.mrb[16].mxu0  ;;  %17679 = vst [vmem:[#allocation33_spill] sm:$0xff] %v13402_v17  ;;  %vm955_vm7 = vcmp.ne.s32.totalorder %v586_v5, 0  ;;  %v13419_v27 = vadd.s32 168, %v13152_v32  ;;  %vm1002_vm11 = vcmp.lt.s32.totalorder %v586_v5, 0 }
 0x5b6   : > { %v3933_v39 = vsel %vm17472_vm2, %v13374_v14, 0.0  ;;  %v8974_v43 = vpop.f32.mrb[17].mxu0  ;;  %v1096_v33 = vadd.s32 24, %v586_v5  ;;  %vm17304_vm5 = vcmp.lt.s32.totalorder %v13402_v17, 16  ;;  %vm1049_vm8 = vmand %vm1002_vm11, %vm955_vm7 }
 0x5b7   : > { %v3979_v46 = vadd.f32 %v3978_v10, %v3933_v39  ;;  %v4033_v53 = vmul.f32 %v3933_v39, %v3933_v39  ;;  %v607_v10 = vmul.u32 24, %v606_v3  ;;  %v619_v3 = vsub.s32 %v13349_v61, %v618_v45 }
 0x5b8   : > { %v13423_v25 = vmul.u32.u64.low 2863311531, %v13406_v60  ;;  %v13424_v39 = vmul.u32.u64.high 2863311531, %v13406_v60, %v13423_v25  ;;  %v13440_v41 = vmul.u32.u64.low 2863311531, %v13419_v27  ;;  %v13441_v9 = vmul.u32.u64.high 2863311531, %v13419_v27, %v13440_v41 }
 0x5b9   : > { %v4079_v37 = vadd.f32 %v4078_v57, %v4033_v53  ;;  %v13389_v38 = vpop.f32.mrb[18].mxu0  ;;  %v628_v57 = vshrl.u32 %v13387_v54, 4  ;;  %v13430_v53 = vmul.u32.u64.low 2863311531, %v13413_v7  ;;  %v13431_v30 = vmul.u32.u64.high 2863311531, %v13413_v7, %v13430_v53 }
 0x5ba   : > { %v3934_v15 = vsel %vm17471_vm12, %v13389_v38, 0.0  ;;  %v8977_v59 = vpop.f32.mrb[19].mxu0  ;;  %v13437_v54 = vsub.s32 %v13344_v18, %v607_v10 }
 0x5bb   : > { %v3980_v48 = vadd.f32 %v3979_v46, %v3934_v15  ;;  %v4034_v23 = vmul.f32 %v3934_v15, %v3934_v15  ;;  %v597_v46 = vsub.s32 %v13336_v2, %v596_v34  ;;  %v13447_v2 = vadd.s32 176, %v13152_v32 }
 0x5bc   : > { %v13456_v34 = vsel %vm1049_vm8, %v1096_v33, %v586_v5  ;;  %vm957_vm4 = vcmp.ne.s32.totalorder %v13437_v54, 0  ;;  %vm1004_vm11 = vcmp.lt.s32.totalorder %v13437_v54, 0  ;;  %v639_v5 = vshrl.u32 %v13424_v39, 4 }
 0x5bd   : > { %v4080_v12 = vadd.f32 %v4079_v37, %v4034_v23  ;;  %v13408_v1 = vpop.f32.mrb[20].mxu0  ;;  %vm956_vm14 = vcmp.ne.s32.totalorder %v597_v46, 0  ;;  %vm1003_vm3 = vcmp.lt.s32.totalorder %v597_v46, 0  ;;  %17681 = vst [vmem:[#allocation36_spill] sm:$0xff] %v13456_v34  ;;  %v650_v25 = vshrl.u32 %v13431_v30, 4 }
 0x5be   : > { %v3935_v31 = vsel %vm17308_vm15, %v13408_v1, 0.0  ;;  %v8980_v50 = vpop.f32.mrb[21].mxu0  ;;  %vm13463_vm7 = vmand %vm1003_vm3, %vm956_vm14  ;;  %vm1005_vm8 = vcmp.lt.s32.totalorder %v619_v3, 0  ;;  %vm17306_vm14 = vcmp.lt.s32.totalorder %v13456_v34, 16 }
 0x5bf   : > { %v3981_v11 = vadd.f32 %v3980_v48, %v3935_v31  ;;  %v4035_v28 = vmul.f32 %v3935_v31, %v3935_v31  ;;  %v629_v48 = vmul.u32 24, %v628_v57  ;;  %v1097_v31 = vadd.s32 24, %v597_v46  ;;  %vm13489_vm3 = vmand %vm1004_vm11, %vm957_vm4 }
 0x5c1   : > { %v4081_v43 = vadd.f32 %v4080_v12, %v4035_v28  ;;  %v13426_v0 = vpop.f32.mrb[22].mxu0  ;;  %v630_v45 = vsub.s32 %v13372_v35, %v629_v48  ;;  %v13483_v39 = vsel %vm13463_vm7, %v1097_v31, %v597_v46  ;;  %v651_v46 = vmul.u32 24, %v650_v25 }
 0x5c2   : > { %v3936_v47 = vsel %vm17302_vm6, %v13426_v0, 0.0  ;;  %v8983_v37 = vpop.f32.mrb[23].mxu0  ;;  %vm958_vm6 = vcmp.ne.s32.totalorder %v619_v3, 0  ;;  %17684 = vst [vmem:[#allocation37_spill] sm:$0xff] %v13483_v39  ;;  %vm17305_vm4 = vcmp.lt.s32.totalorder %v13483_v39, 16 }
 0x5c3   : > { %v3982_v15 = vadd.f32 %v3981_v11, %v3936_v47  ;;  %v4036_v59 = vmul.f32 %v3936_v47, %v3936_v47  ;;  %v13460_v10 = vmul.u32.u64.low 2863311531, %v13447_v2  ;;  %v13461_v11 = vmul.u32.u64.high 2863311531, %v13447_v2, %v13460_v10  ;;  %vm1052_vm7 = vmand %vm1005_vm8, %vm958_vm6 }
 0x5c4   : > { %v661_v47 = vshrl.u32 %v13441_v9, 4  ;;  %v13478_v37 = vadd.s32 184, %v13152_v32  ;;  %v1098_v9 = vadd.s32 24, %v13437_v54 }
 0x5c5   : > { %v4082_v23 = vadd.f32 %v4081_v43, %v4036_v59  ;;  %v13450_v18 = vpop.f32.mrb[24].mxu0  ;;  %v640_v59 = vmul.u32 24, %v639_v5 }
 0x5c6   : > { %v3937_v56 = vsel %vm17304_vm5, %v13450_v18, 0.0  ;;  %v8986_v12 = vpop.f32.mrb[25].mxu0  ;;  %vm1006_vm5 = vcmp.lt.s32.totalorder %v630_v45, 0  ;;  %v13513_v25 = vsel %vm13489_vm3, %v1098_v9, %v13437_v54 }
 0x5c7   : > { %v3983_v50 = vadd.f32 %v3982_v15, %v3937_v56  ;;  %v4037_v61 = vmul.f32 %v3937_v56, %v3937_v56  ;;  %v1099_v15 = vadd.s32 24, %v619_v3  ;;  %v13499_v56 = vadd.s32 192, %v13152_v32  ;;  %17687 = vst [vmem:[#allocation38_spill] sm:$0xff] %v13513_v25 }
 0x5c8   : > { %vm17307_vm11 = vcmp.lt.s32.totalorder %v13513_v25, 16 }
 0x5c9   : > { %v4083_v33 = vadd.f32 %v4082_v23, %v4037_v61  ;;  %v13470_v57 = vpop.f32.mrb[26].mxu0  ;;  %v13505_v61 = vmul.u32.u64.low 2863311531, %v13478_v37  ;;  %v13506_v10 = vmul.u32.u64.high 2863311531, %v13478_v37, %v13505_v61 }
 0x5ca   : > { %v3938_v43 = vsel %vm17303_vm9, %v13470_v57, 0.0  ;;  %v8989_v53 = vpop.f32.mrb[27].mxu0  ;;  %vm959_vm9 = vcmp.ne.s32.totalorder %v630_v45, 0 }
 0x5cb   : > { %v3984_v41 = vadd.f32 %v3983_v50, %v3938_v43  ;;  %v4038_v35 = vmul.f32 %v3938_v43, %v3938_v43  ;;  %v662_v50 = vmul.u32 24, %v661_v47  ;;  %v13515_v43 = vsel %vm1052_vm7, %v1099_v15, %v619_v3  ;;  %vm1053_vm6 = vmand %vm1006_vm5, %vm959_vm9 }
 0x5cc   : > { %17688 = vst [vmem:[#allocation39_spill] sm:$0xff] %v13515_v43  ;;  %v1100_v53 = vadd.s32 24, %v630_v45  ;;  %v641_v47 = vsub.s32 %v13406_v60, %v640_v59  ;;  %vm17468_vm5 = vcmp.lt.s32.totalorder %v13515_v43, 16 }
 0x5cd   : > { %v4084_v48 = vadd.f32 %v4083_v33, %v4038_v35  ;;  %v13494_v23 = vpop.f32.mrb[28].mxu0  ;;  %v672_v33 = vshrl.u32 %v13461_v11, 4  ;;  %v663_v30 = vsub.s32 %v13419_v27, %v662_v50 }
 0x5ce   : > { %v3939_v12 = vsel %vm17306_vm14, %v13494_v23, 0.0  ;;  %v8992_v31 = vpop.f32.mrb[29].mxu0  ;;  %v13533_v59 = vsel %vm1053_vm6, %v1100_v53, %v630_v45  ;;  %vm960_vm9 = vcmp.ne.s32.totalorder %v641_v47, 0  ;;  %vm1007_vm8 = vcmp.lt.s32.totalorder %v641_v47, 0 }
 0x5cf   : > { %v3985_v28 = vadd.f32 %v3984_v41, %v3939_v12  ;;  %v4039_v5 = vmul.f32 %v3939_v12, %v3939_v12  ;;  %v652_v41 = vsub.s32 %v13413_v7, %v651_v46  ;;  %v673_v15 = vmul.u32 24, %v672_v33  ;;  %17689 = vst [vmem:[#allocation40_spill] sm:$0xff] %v13533_v59  ;;  %vm13546_vm14 = vmand %vm1007_vm8, %vm960_vm9 }
 0x5d0   : > { %v13524_v11 = vmul.u32.u64.low 2863311531, %v13499_v56  ;;  %v13525_v12 = vmul.u32.u64.high 2863311531, %v13499_v56, %v13524_v11  ;;  %v13536_v7 = vadd.s32 200, %v13152_v32  ;;  %v1101_v61 = vadd.s32 24, %v641_v47 }
 0x5d1   : > { %v4085_v35 = vadd.f32 %v4084_v48, %v4039_v5  ;;  %v13518_v31 = vpop.f32.mrb[30].mxu0  ;;  %vm961_vm3 = vcmp.ne.s32.totalorder %v652_v41, 0  ;;  %vm1008_vm7 = vcmp.lt.s32.totalorder %v652_v41, 0  ;;  %v683_v45 = vshrl.u32 %v13506_v10, 4 }
 0x5d2   : > { %v3940_v54 = vsel %vm17305_vm4, %v13518_v31, 0.0  ;;  %v8995_v3 = vpop.f32.mrb[31].mxu0  ;;  %vm962_vm4 = vcmp.ne.s32.totalorder %v663_v30, 0  ;;  %vm1009_vm6 = vcmp.lt.s32.totalorder %v663_v30, 0  ;;  %v674_v33 = vsub.s32 %v13447_v2, %v673_v15 }
 0x5d3   : > { %v3986_v60 = vadd.f32 %v3985_v28, %v3940_v54  ;;  %v4040_v9 = vmul.f32 %v3940_v54, %v3940_v54  ;;  %v13551_v11 = vmul.u32.u64.low 2863311531, %v13536_v7  ;;  %v13552_v54 = vmul.u32.u64.high 2863311531, %v13536_v7, %v13551_v11  ;;  %vm1056_vm8 = vmand %vm1009_vm6, %vm962_vm4 }
 0x5d4   : > { %v13555_v3 = vadd.s32 208, %v13152_v32  ;;  %v694_v2 = vshrl.u32 %v13525_v12, 4  ;;  %vm17349_vm9 = vcmp.lt.s32.totalorder %v13533_v59, 16  ;;  %v13567_v11 = vadd.s32 216, %v13152_v32 }
 0x5d5   : > { %v4086_v48 = vadd.f32 %v4085_v35, %v4040_v9  ;;  %v13538_v46 = vpop.f32.mrb[32].mxu0  ;;  %v1102_v35 = vadd.s32 24, %v652_v41  ;;  %vm963_vm15 = vcmp.ne.s32.totalorder %v674_v33, 0  ;;  %v13571_v12 = vsel %vm13546_vm14, %v1101_v61, %v641_v47 }
 0x5d6   : > { %v3941_v27 = vsel %vm17307_vm11, %v13538_v46, 0.0  ;;  %v8998_v50 = vpop.f32.mrb[33].mxu0  ;;  %vm1055_vm11 = vmand %vm1008_vm7, %vm961_vm3  ;;  %vm1010_vm3 = vcmp.lt.s32.totalorder %v674_v33, 0  ;;  %17692 = vst [vmem:[#allocation41_spill] sm:$0xff] %v13571_v12  ;;  %v1104_v34 = vadd.s32 24, %v674_v33  ;;  %vm17327_vm4 = vcmp.lt.s32.totalorder %v13571_v12, 16 }
 0x5d7   : > { %v3987_v28 = vadd.f32 %v3986_v60, %v3941_v27  ;;  %v4041_v5 = vmul.f32 %v3941_v27, %v3941_v27  ;;  %v1103_v60 = vadd.s32 24, %v663_v30  ;;  %v684_v50 = vmul.u32 24, %v683_v45  ;;  %vm1057_vm14 = vmand %vm1010_vm3, %vm963_vm15 }
 0x5d8   : > { %v13573_v42 = vsel %vm1055_vm11, %v1102_v35, %v652_v41  ;;  %v13588_v41 = vmul.u32.u64.low 2863311531, %v13567_v11  ;;  %v13589_v61 = vmul.u32.u64.high 2863311531, %v13567_v11, %v13588_v41 }
 0x5d9   : > { %v4087_v9 = vadd.f32 %v4086_v48, %v4041_v5  ;;  %v13557_v10 = vpop.f32.mrb[34].mxu0  ;;  %17693 = vst [vmem:[#allocation42_spill] sm:$0xff] %v13573_v42  ;;  %v13581_v45 = vsel %vm1056_vm8, %v1103_v60, %v663_v30  ;;  %v685_v47 = vsub.s32 %v13478_v37, %v684_v50  ;;  %vm17332_vm11 = vcmp.lt.s32.totalorder %v13573_v42, 16 }
 0x5da   : > { %v3942_v15 = vsel %vm17468_vm5, %v13557_v10, 0.0  ;;  %v9001_v27 = vpop.f32.mrb[35].mxu0  ;;  %17694 = vst [vmem:[#allocation43_spill] sm:$0xff] %v13581_v45  ;;  %v705_v30 = vshrl.u32 %v13552_v54, 4  ;;  %v13595_v60 = vadd.s32 224, %v13152_v32  ;;  %vm17337_vm15 = vcmp.lt.s32.totalorder %v13581_v45, 16 }
 0x5db   : > { %v3988_v48 = vadd.f32 %v3987_v28, %v3942_v15  ;;  %v4042_v5 = vmul.f32 %v3942_v15, %v3942_v15  ;;  %v13576_v27 = vmul.u32.u64.low 2863311531, %v13555_v3  ;;  %v13577_v43 = vmul.u32.u64.high 2863311531, %v13555_v3, %v13576_v27 }
 0x5dc   : > { %v695_v28 = vmul.u32 24, %v694_v2  ;;  %v13600_v37 = vsel %vm1057_vm14, %v1104_v34, %v674_v33  ;;  %vm964_vm7 = vcmp.ne.s32.totalorder %v685_v47, 0  ;;  %vm1011_vm6 = vcmp.lt.s32.totalorder %v685_v47, 0 }
 0x5dd   : > { %v4088_v25 = vadd.f32 %v4087_v9, %v4042_v5  ;;  %v13579_v39 = vpop.f32.mrb[36].mxu0  ;;  %17695 = vst [vmem:[#allocation44_spill] sm:$0xff] %v13600_v37  ;;  %v13607_v54 = vadd.s32 232, %v13152_v32  ;;  %v13610_v41 = vadd.s32 240, %v13152_v32  ;;  %v706_v34 = vmul.u32 24, %v705_v30  ;;  %vm1058_vm14 = vmand %vm1011_vm6, %vm964_vm7 }
 0x5de   : > { %v3943_v15 = vsel %vm17349_vm9, %v13579_v39, 0.0  ;;  %v9004_v53 = vpop.f32.mrb[37].mxu0  ;;  %v696_v50 = vsub.s32 %v13499_v56, %v695_v28  ;;  %v716_v33 = vshrl.u32 %v13577_v43, 4  ;;  %v727_v59 = vshrl.u32 %v13589_v61, 4 }
 0x5df   : > { %v3989_v35 = vadd.f32 %v3988_v48, %v3943_v15  ;;  %v4043_v9 = vmul.f32 %v3943_v15, %v3943_v15  ;;  %v1105_v53 = vadd.s32 24, %v685_v47 }
 0x5e0   : > { %v13614_v56 = vmul.u32.u64.low 2863311531, %v13595_v60  ;;  %v13615_v28 = vmul.u32.u64.high 2863311531, %v13595_v60, %v13614_v56  ;;  %vm965_vm8 = vcmp.ne.s32.totalorder %v696_v50, 0  ;;  %vm1012_vm3 = vcmp.lt.s32.totalorder %v696_v50, 0 }
 0x5e1   : > { %v4089_v2 = vadd.f32 %v4088_v25, %v4043_v9  ;;  %v13597_v5 = vpop.f32.mrb[38].mxu0  ;;  %v1106_v12 = vadd.s32 24, %v696_v50  ;;  %v13624_v30 = vmul.u32.u64.low 2863311531, %v13607_v54  ;;  %v13625_v43 = vmul.u32.u64.high 2863311531, %v13607_v54, %v13624_v30 }
 0x5e2   : > { %v3944_v48 = vsel %vm17327_vm4, %v13597_v5, 0.0  ;;  %v9007_v27 = vpop.f32.mrb[39].mxu0  ;;  %vm1059_vm4 = vmand %vm1012_vm3, %vm965_vm8  ;;  %v707_v56 = vsub.s32 %v13536_v7, %v706_v34  ;;  %v717_v42 = vmul.u32 24, %v716_v33  ;;  %v738_v7 = vshrl.u32 %v13615_v28, 4 }
 0x5e3   : > { %v3990_v15 = vadd.f32 %v3989_v35, %v3944_v48  ;;  %v4044_v25 = vmul.f32 %v3944_v48, %v3944_v48  ;;  %v13642_v19 = vsel %vm1059_vm4, %v1106_v12, %v696_v50  ;;  %v13661_v28 = vadd.s32 256, %v13152_v32 }
 0x5e4   : > { %17697 = vst [vmem:[#allocation46_spill] sm:$0xff] %v13642_v19  ;;  %vm966_vm7 = vcmp.ne.s32.totalorder %v707_v56, 0  ;;  %vm1013_vm6 = vcmp.lt.s32.totalorder %v707_v56, 0  ;;  %vm17348_vm4 = vcmp.lt.s32.totalorder %v13642_v19, 16 }
 0x5e5   : > { %v4090_v9 = vadd.f32 %v4089_v2, %v4044_v25  ;;  %v13617_v27 = vpop.f32.mrb[40].mxu0  ;;  %v13630_v2 = vmul.u32.u64.low 2863311531, %v13610_v41  ;;  %v13631_v25 = vmul.u32.u64.high 2863311531, %v13610_v41, %v13630_v2  ;;  %vm1060_vm3 = vmand %vm1013_vm6, %vm966_vm7 }
 0x5e6   : > { %v3945_v35 = vsel %vm17332_vm11, %v13617_v27, 0.0  ;;  %v9010_v48 = vpop.f32.mrb[41].mxu0  ;;  %vm17338_vm11 = vcmp.lt.s32.totalorder %v13600_v37, 16  ;;  %v728_v2 = vmul.u32 24, %v727_v59  ;;  %v1107_v59 = vadd.s32 24, %v707_v56 }
 0x5e7   : > { %v3991_v4 = vadd.f32 %v3990_v15, %v3945_v35  ;;  %v4045_v17 = vmul.f32 %v3945_v35, %v3945_v35  ;;  %v13640_v35 = vsel %vm1058_vm14, %v1105_v53, %v685_v47  ;;  %v760_v50 = vshrl.u32 %v13631_v25, 4 }
 0x5e8   : > { %17696 = vst [vmem:[#allocation45_spill] sm:$0xff] %v13640_v35  ;;  %vm17347_vm8 = vcmp.lt.s32.totalorder %v13640_v35, 16  ;;  %v739_v53 = vmul.u32 24, %v738_v7  ;;  %v13680_v37 = vmul.u32.u64.low 2863311531, %v13661_v28  ;;  %v13681_v45 = vmul.u32.u64.high 2863311531, %v13661_v28, %v13680_v37 }
 0x5e9   : > { %v4091_v48 = vadd.f32 %v4090_v9, %v4045_v17  ;;  %v13634_v22 = vpop.f32.mrb[42].mxu0  ;;  %v718_v17 = vsub.s32 %v13555_v3, %v717_v42  ;;  %v13650_v9 = vadd.s32 248, %v13152_v32  ;;  %v749_v42 = vshrl.u32 %v13625_v43, 4 }
 0x5ea   : > { %v3946_v61 = vsel %vm17337_vm15, %v13634_v22, 0.0  ;;  %v9013_v15 = vpop.f32.mrb[43].mxu0 }
 0x5eb   : > { %v3992_v30 = vadd.f32 %v3991_v4, %v3946_v61  ;;  %v4046_v29 = vmul.f32 %v3946_v61, %v3946_v61  ;;  %vm967_vm14 = vcmp.ne.s32.totalorder %v718_v17, 0  ;;  %vm1014_vm15 = vcmp.lt.s32.totalorder %v718_v17, 0 }
 0x5ec   : > { %v13666_v15 = vmul.u32.u64.low 2863311531, %v13650_v9  ;;  %v13667_v43 = vmul.u32.u64.high 2863311531, %v13650_v9, %v13666_v15  ;;  %v1108_v7 = vadd.s32 24, %v718_v17  ;;  %vm1061_vm7 = vmand %vm1014_vm15, %vm967_vm14 }
 0x5ed   : > { %v4092_v34 = vadd.f32 %v4091_v48, %v4046_v29  ;;  %v13646_v33 = vpop.f32.mrb[44].mxu0  ;;  %v729_v29 = vsub.s32 %v13567_v11, %v728_v2  ;;  %v13675_v2 = vsel %vm1060_vm3, %v1107_v59, %v707_v56  ;;  %v740_v15 = vsub.s32 %v13595_v60, %v739_v53 }
 0x5ee   : > { %v3947_v4 = vsel %vm17338_vm11, %v13646_v33, 0.0  ;;  %v9016_v12 = vpop.f32.mrb[45].mxu0  ;;  %17698 = vst [vmem:[#allocation47_spill] sm:$0xff] %v13675_v2  ;;  %vm17352_vm15 = vcmp.lt.s32.totalorder %v13675_v2, 16 }
 0x5ef   : > { %v3993_v3 = vadd.f32 %v3992_v30, %v3947_v4  ;;  %v4047_v47 = vmul.f32 %v3947_v4, %v3947_v4  ;;  %v13670_v30 = vadd.s32 264, %v13152_v32  ;;  %v750_v4 = vmul.u32 24, %v749_v42 }
 0x5f0   : > { %vm968_vm6 = vcmp.ne.s32.totalorder %v729_v29, 0  ;;  %vm1015_vm11 = vcmp.lt.s32.totalorder %v729_v29, 0  ;;  %vm969_vm14 = vcmp.ne.s32.totalorder %v740_v15, 0 }
 0x5f1   : > { %v4093_v48 = vadd.f32 %v4092_v34, %v4047_v47  ;;  %v13663_v61 = vpop.f32.mrb[46].mxu0  ;;  %v761_v47 = vmul.u32 24, %v760_v50  ;;  %v13686_v56 = vmul.u32.u64.low 2863311531, %v13670_v30  ;;  %v13687_v59 = vmul.u32.u64.high 2863311531, %v13670_v30, %v13686_v56  ;;  %vm1062_vm3 = vmand %vm1015_vm11, %vm968_vm6 }
 0x5f2   : > { %v3948_v11 = vsel %vm17347_vm8, %v13663_v61, 0.0  ;;  %v9019_v25 = vpop.f32.mrb[47].mxu0  ;;  %v13692_v50 = vsel %vm1061_vm7, %v1108_v7, %v718_v17  ;;  %v751_v60 = vsub.s32 %v13607_v54, %v750_v4  ;;  %vm1016_vm8 = vcmp.lt.s32.totalorder %v740_v15, 0 }
 0x5f3   : > { %v3994_v12 = vadd.f32 %v3993_v3, %v3948_v11  ;;  %v4048_v34 = vmul.f32 %v3948_v11, %v3948_v11  ;;  %17699 = vst [vmem:[#allocation48_spill] sm:$0xff] %v13692_v50  ;;  %v1109_v11 = vadd.s32 24, %v729_v29  ;;  %v762_v37 = vsub.s32 %v13610_v41, %v761_v47  ;;  %vm1063_vm6 = vmand %vm1016_vm8, %vm969_vm14 }
 0x5f4   : > { %vm17465_vm7 = vcmp.lt.s32.totalorder %v13692_v50, 16  ;;  %v771_v54 = vshrl.u32 %v13667_v43, 4  ;;  %v1110_v41 = vadd.s32 24, %v740_v15  ;;  %vm970_vm11 = vcmp.ne.s32.totalorder %v751_v60, 0 }
 0x5f5   : > { %v4094_v35 = vadd.f32 %v4093_v48, %v4048_v34  ;;  %v13683_v20 = vpop.f32.mrb[48].mxu0  ;;  %v13700_v48 = vadd.s32 272, %v13152_v32  ;;  %vm971_vm9 = vcmp.ne.s32.totalorder %v762_v37, 0 }
 0x5f6   : > { %v3949_v42 = vsel %vm17348_vm4, %v13683_v20, 0.0  ;;  %v9022_v3 = vpop.f32.mrb[49].mxu0  ;;  %vm1017_vm4 = vcmp.lt.s32.totalorder %v751_v60, 0 }
 0x5f7   : > { %v3995_v53 = vadd.f32 %v3994_v12, %v3949_v42  ;;  %v4049_v25 = vmul.f32 %v3949_v42, %v3949_v42  ;;  %v13709_v12 = vsel %vm1062_vm3, %v1109_v11, %v729_v29  ;;  %v13719_v3 = vadd.s32 280, %v13152_v32  ;;  %vm13732_vm14 = vmand %vm1017_vm4, %vm970_vm11 }
 0x5f8   : > { %17700 = vst [vmem:[#allocation49_spill] sm:$0xff] %v13709_v12  ;;  %v13715_v43 = vmul.u32.u64.low 2863311531, %v13700_v48  ;;  %v13716_v42 = vmul.u32.u64.high 2863311531, %v13700_v48, %v13715_v43  ;;  %vm1018_vm3 = vcmp.lt.s32.totalorder %v762_v37, 0  ;;  %vm17366_vm8 = vcmp.lt.s32.totalorder %v13709_v12, 16 }
 0x5f9   : > { %v4095_v34 = vadd.f32 %v4094_v35, %v4049_v25  ;;  %v13702_v17 = vpop.f32.mrb[50].mxu0  ;;  %v782_v35 = vshrl.u32 %v13681_v45, 4  ;;  %v793_v25 = vshrl.u32 %v13687_v59, 4  ;;  %v13728_v45 = vsel %vm1063_vm6, %v1110_v41, %v740_v15 }
 0x5fa   : > { %v3950_v7 = vsel %vm17352_vm15, %v13702_v17, 0.0  ;;  %v9025_v4 = vpop.f32.mrb[51].mxu0  ;;  %17701 = vst [vmem:[#allocation50_spill] sm:$0xff] %v13728_v45  ;;  %vm1065_vm15 = vmand %vm1018_vm3, %vm971_vm9  ;;  %v13742_v15 = vadd.s32 288, %v13152_v32  ;;  %vm17365_vm9 = vcmp.lt.s32.totalorder %v13728_v45, 16 }
 0x5fb   : > { %v3996_v47 = vadd.f32 %v3995_v53, %v3950_v7  ;;  %v4050_v56 = vmul.f32 %v3950_v7, %v3950_v7  ;;  %v772_v53 = vmul.u32 24, %v771_v54  ;;  %v1111_v54 = vadd.s32 24, %v751_v60 }
 0x5fc   : > { %v783_v59 = vmul.u32 24, %v782_v35  ;;  %v794_v19 = vmul.u32 24, %v793_v25 }
 0x5fd   : > { %v4096_v29 = vadd.f32 %v4095_v34, %v4050_v56  ;;  %v13721_v11 = vpop.f32.mrb[52].mxu0  ;;  %v1112_v56 = vadd.s32 24, %v762_v37 }
 0x5fe   : > { %v3951_v7 = vsel %vm17465_vm7, %v13721_v11, 0.0  ;;  %v9028_v4 = vpop.f32.mrb[53].mxu0 }
 0x5ff   : > { %v3997_v43 = vadd.f32 %v3996_v47, %v3951_v7  ;;  %v4051_v2 = vmul.f32 %v3951_v7, %v3951_v7  ;;  %v13738_v50 = vmul.u32.u64.low 2863311531, %v13719_v3  ;;  %v13739_v4 = vmul.u32.u64.high 2863311531, %v13719_v3, %v13738_v50 }
 0x600   : > { %v773_v7 = vsub.s32 %v13650_v9, %v772_v53  ;;  %v13753_v50 = vsel %vm13732_vm14, %v1111_v54, %v751_v60  ;;  %v13755_v16 = vsel %vm1065_vm15, %v1112_v56, %v762_v37  ;;  %v804_v9 = vshrl.u32 %v13716_v42, 4 }
 0x601   : > { %v4097_v41 = vadd.f32 %v4096_v29, %v4051_v2  ;;  %v13744_v47 = vpop.f32.mrb[54].mxu0  ;;  %17704 = vst [vmem:[#allocation51_spill] sm:$0xff] %v13753_v50  ;;  %17705 = vst [vmem:[#allocation52_spill] sm:$0xff] %v13755_v16  ;;  %v784_v2 = vsub.s32 %v13661_v28, %v783_v59  ;;  %v13760_v29 = vmul.u32.u64.low 2863311531, %v13742_v15  ;;  %v13761_v53 = vmul.u32.u64.high 2863311531, %v13742_v15, %v13760_v29 }
 0x602   : > { %v3952_v51 = vsel %vm17366_vm8, %v13744_v47, 0.0  ;;  %v9031_v24 = vpop.f32.mrb[55].mxu0  ;;  %vm972_vm4 = vcmp.ne.s32.totalorder %v773_v7, 0  ;;  %vm1019_vm11 = vcmp.lt.s32.totalorder %v773_v7, 0  ;;  %v13770_v28 = vadd.s32 296, %v13152_v32 }
 0x603   : > { %v3998_v35 = vadd.f32 %v3997_v43, %v3952_v51  ;;  %v4052_v36 = vmul.f32 %v3952_v51, %v3952_v51  ;;  %v795_v51 = vsub.s32 %v13670_v30, %v794_v19  ;;  %vm17375_vm15 = vcmp.lt.s32.totalorder %v13753_v50, 16  ;;  %vm13774_vm3 = vmand %vm1019_vm11, %vm972_vm4 }
 0x604   : > { %v1113_v34 = vadd.s32 24, %v773_v7  ;;  %vm17434_vm6 = vcmp.lt.s32.totalorder %v13755_v16, 16  ;;  %vm973_vm14 = vcmp.ne.s32.totalorder %v784_v2, 0  ;;  %v805_v19 = vmul.u32 24, %v804_v9 }
 0x605   : > { %v4098_v25 = vadd.f32 %v4097_v41, %v4052_v36  ;;  %v13763_v24 = vpop.f32.mrb[56].mxu0  ;;  %v815_v30 = vshrl.u32 %v13739_v4, 4  ;;  %vm974_vm8 = vcmp.ne.s32.totalorder %v795_v51, 0  ;;  %v13782_v59 = vadd.s32 304, %v13152_v32 }
 0x606   : > { %v3953_v60 = vsel %vm17365_vm9, %v13763_v24, 0.0  ;;  %v9034_v37 = vpop.f32.mrb[57].mxu0  ;;  %vm1020_vm9 = vcmp.lt.s32.totalorder %v784_v2, 0  ;;  %vm1021_vm4 = vcmp.lt.s32.totalorder %v795_v51, 0  ;;  %v1115_v50 = vadd.s32 24, %v795_v51 }
 0x607   : > { %v3999_v42 = vadd.f32 %v3998_v35, %v3953_v60  ;;  %v4053_v43 = vmul.f32 %v3953_v60, %v3953_v60  ;;  %v13788_v29 = vmul.u32.u64.low 2863311531, %v13770_v28  ;;  %v13789_v60 = vmul.u32.u64.high 2863311531, %v13770_v28, %v13788_v29  ;;  %vm13796_vm11 = vmand %vm1020_vm9, %vm973_vm14 }
 0x608   : > { %v1114_v37 = vadd.s32 24, %v784_v2  ;;  %v816_v45 = vmul.u32 24, %v815_v30  ;;  %v826_v12 = vshrl.u32 %v13761_v53, 4 }
 0x609   : > { %v4099_v54 = vadd.f32 %v4098_v25, %v4053_v43  ;;  %v13779_v56 = vpop.f32.mrb[58].mxu0  ;;  %v13793_v25 = vsel %vm13774_vm3, %v1113_v34, %v773_v7  ;;  %v13810_v34 = vadd.s32 312, %v13152_v32 }
 0x60a   : > { %v3954_v41 = vsel %vm17375_vm15, %v13779_v56, 0.0  ;;  %v9037_v35 = vpop.f32.mrb[59].mxu0  ;;  %17708 = vst [vmem:[#allocation53_spill] sm:$0xff] %v13793_v25  ;;  %vm1068_vm15 = vmand %vm1021_vm4, %vm974_vm8  ;;  %vm17378_vm9 = vcmp.lt.s32.totalorder %v13793_v25, 16  ;;  %v13818_v53 = vsel %vm13796_vm11, %v1114_v37, %v784_v2  ;;  %v817_v16 = vsub.s32 %v13719_v3, %v816_v45 }
 0x60b   : > { %v4000_v9 = vadd.f32 %v3999_v42, %v3954_v41  ;;  %v4054_v4 = vmul.f32 %v3954_v41, %v3954_v41  ;;  %v806_v35 = vsub.s32 %v13700_v48, %v805_v19  ;;  %17711 = vst [vmem:[#allocation54_spill] sm:$0xff] %v13818_v53  ;;  %v827_v41 = vmul.u32 24, %v826_v12 }
 0x60c   : > { %v13806_v7 = vmul.u32.u64.low 2863311531, %v13782_v59  ;;  %v13807_v42 = vmul.u32.u64.high 2863311531, %v13782_v59, %v13806_v7  ;;  %v13842_v45 = vadd.s32 328, %v13152_v32  ;;  %vm976_vm11 = vcmp.ne.s32.totalorder %v817_v16, 0 }
 0x60d   : > { %v4100_v13 = vadd.f32 %v4099_v54, %v4054_v4  ;;  %v13802_v29 = vpop.f32.mrb[60].mxu0  ;;  %v13820_v54 = vsel %vm1068_vm15, %v1115_v50, %v795_v51  ;;  %vm975_vm8 = vcmp.ne.s32.totalorder %v806_v35, 0  ;;  %vm1022_vm3 = vcmp.lt.s32.totalorder %v806_v35, 0 }
 0x60e   : > { %v3955_v36 = vsel %vm17434_vm6, %v13802_v29, 0.0  ;;  %v9040_v48 = vpop.f32.mrb[61].mxu0  ;;  %17712 = vst [vmem:[#allocation55_spill] sm:$0xff] %v13820_v54  ;;  %v837_v50 = vshrl.u32 %v13789_v60, 4  ;;  %v13834_v51 = vadd.s32 320, %v13152_v32  ;;  %vm17387_vm15 = vcmp.lt.s32.totalorder %v13818_v53, 16  ;;  %vm1069_vm4 = vmand %vm1022_vm3, %vm975_vm8 }
 0x60f   : > { %v4001_v19 = vadd.f32 %v4000_v9, %v3955_v36  ;;  %v4055_v30 = vmul.f32 %v3955_v36, %v3955_v36  ;;  %v13826_v48 = vmul.u32.u64.low 2863311531, %v13810_v34  ;;  %v13827_v9 = vmul.u32.u64.high 2863311531, %v13810_v34, %v13826_v48 }
 0x610   : > { %v1116_v37 = vadd.s32 24, %v806_v35  ;;  %vm17395_vm14 = vcmp.lt.s32.totalorder %v13820_v54, 16  ;;  %v828_v3 = vsub.s32 %v13742_v15, %v827_v41 }
 0x611   : > { %v4101_v4 = vadd.f32 %v4100_v13, %v4055_v30  ;;  %v13822_v7 = vpop.f32.mrb[62].mxu0 }
 0x612   : > { %17713 = vst [vmem:[#allocation56_spill] sm:$0xff] %v13822_v7  ;;  %v3956_v43 = vsel %vm17378_vm9, %v13822_v7, 0.0  ;;  %v9043_v2 = vpop.f32.mrb[63].mxu0  ;;  %vm1023_vm9 = vcmp.lt.s32.totalorder %v817_v16, 0  ;;  %v13854_v49 = vsel %vm1069_vm4, %v1116_v37, %v806_v35  ;;  %vm977_vm8 = vcmp.ne.s32.totalorder %v828_v3, 0 }
 0x613   : > { %v4002_v12 = vadd.f32 %v4001_v19, %v3956_v43  ;;  %v4056_v13 = vmul.f32 %v3956_v43, %v3956_v43  ;;  %v848_v19 = vshrl.u32 %v13807_v42, 4  ;;  %v838_v43 = vmul.u32 24, %v837_v50  ;;  %17715 = vst [vmem:[#allocation58_spill] sm:$0xff] %v13854_v49  ;;  %vm1070_vm3 = vmand %vm1023_vm9, %vm976_vm11 }
 0x614   : > { %v13851_v2 = vmul.u32.u64.low 2863311531, %v13834_v51  ;;  %v13852_v25 = vmul.u32.u64.high 2863311531, %v13834_v51, %v13851_v2  ;;  %v13861_v42 = vadd.s32 336, %v13152_v32  ;;  %v859_v35 = vshrl.u32 %v13827_v9, 4 }
 0x615   : > { %v4102_v36 = vadd.f32 %v4101_v4, %v4056_v13  ;;  %v13844_v60 = vpop.f32.mrb[64].mxu0  ;;  %v1117_v4 = vadd.s32 24, %v817_v16  ;;  %v13857_v13 = vmul.u32.u64.low 2863311531, %v13842_v45  ;;  %v13858_v44 = vmul.u32.u64.high 2863311531, %v13842_v45, %v13857_v13 }
 0x616   : > { %17714 = vst [vmem:[#allocation57_spill] sm:$0xff] %v13844_v60  ;;  %v3957_v30 = vsel %vm17387_vm15, %v13844_v60, 0.0  ;;  %v9046_v48 = vpop.f32.mrb[65].mxu0  ;;  %vm1024_vm15 = vcmp.lt.s32.totalorder %v828_v3, 0  ;;  %v849_v50 = vmul.u32 24, %v848_v19  ;;  %vm17394_vm4 = vcmp.lt.s32.totalorder %v13854_v49, 16 }
 0x617   : > { %v4003_v15 = vadd.f32 %v4002_v12, %v3957_v30  ;;  %v4057_v41 = vmul.f32 %v3957_v30, %v3957_v30  ;;  %v839_v30 = vsub.s32 %v13770_v28, %v838_v43  ;;  %vm13876_vm9 = vmand %vm1024_vm15, %vm977_vm8  ;;  %v870_v54 = vshrl.u32 %v13852_v25, 4 }
 0x618   : > { %v13881_v9 = vmul.u32.u64.low 2863311531, %v13861_v42  ;;  %v13882_v19 = vmul.u32.u64.high 2863311531, %v13861_v42, %v13881_v9 }
 0x619   : > { %v4103_v53 = vadd.f32 %v4102_v36, %v4057_v41  ;;  %v13863_v48 = vpop.f32.mrb[66].mxu0  ;;  %v1118_v36 = vadd.s32 24, %v828_v3  ;;  %v13873_v41 = vsel %vm1070_vm3, %v1117_v4, %v817_v16  ;;  %vm978_vm15 = vcmp.ne.s32.totalorder %v839_v30, 0 }
 0x61a   : > { %17716 = vst [vmem:[#allocation59_spill] sm:$0xff] %v13863_v48  ;;  %v3958_v12 = vsel %vm17395_vm14, %v13863_v48, 0.0  ;;  %v9049_v37 = vpop.f32.mrb[67].mxu0  ;;  %17717 = vst [vmem:[#allocation60_spill] sm:$0xff] %v13873_v41  ;;  %vm1025_vm11 = vcmp.lt.s32.totalorder %v839_v30, 0  ;;  %vm17398_vm8 = vcmp.lt.s32.totalorder %v13873_v41, 16 }
 0x61b   : > { %v4004_v2 = vadd.f32 %v4003_v15, %v3958_v12  ;;  %v4058_v13 = vmul.f32 %v3958_v12, %v3958_v12  ;;  %v13885_v37 = vadd.s32 344, %v13152_v32  ;;  %v850_v15 = vsub.s32 %v13782_v59, %v849_v50  ;;  %vm1072_vm3 = vmand %vm1025_vm11, %vm978_vm15 }
 0x61c   : > { %v860_v12 = vmul.u32 24, %v859_v35  ;;  %v881_v59 = vshrl.u32 %v13858_v44, 4  ;;  %v13911_v44 = vadd.s32 352, %v13152_v32 }
 0x61d   : > { %v4104_v28 = vadd.f32 %v4103_v53, %v4058_v13  ;;  %v13887_v43 = vpop.f32.mrb[68].mxu0  ;;  %v13897_v53 = vsel %vm13876_vm9, %v1118_v36, %v828_v3  ;;  %v1119_v13 = vadd.s32 24, %v839_v30  ;;  %vm1026_vm14 = vcmp.lt.s32.totalorder %v850_v15, 0 }
 0x61e   : > { %17720 = vst [vmem:[#allocation61_spill] sm:$0xff] %v13887_v43  ;;  %v3959_v16 = vsel %vm17394_vm4, %v13887_v43, 0.0  ;;  %v9052_v4 = vpop.f32.mrb[69].mxu0  ;;  %17721 = vst [vmem:[#allocation62_spill] sm:$0xff] %v13897_v53  ;;  %v13901_v50 = vmul.u32.u64.low 2863311531, %v13885_v37  ;;  %v13902_v35 = vmul.u32.u64.high 2863311531, %v13885_v37, %v13901_v50  ;;  %v861_v25 = vsub.s32 %v13810_v34, %v860_v12 }
 0x61f   : > { %v4005_v48 = vadd.f32 %v4004_v2, %v3959_v16  ;;  %v4059_v9 = vmul.f32 %v3959_v16, %v3959_v16  ;;  %vm979_vm4 = vcmp.ne.s32.totalorder %v850_v15, 0  ;;  %v871_v2 = vmul.u32 24, %v870_v54 }
 0x620   : > { %vm17405_vm9 = vcmp.lt.s32.totalorder %v13897_v53, 16  ;;  %vm13916_vm15 = vmand %vm1026_vm14, %vm979_vm4  ;;  %v882_v34 = vmul.u32 24, %v881_v59  ;;  %v892_v12 = vshrl.u32 %v13882_v19, 4  ;;  %vm980_vm11 = vcmp.ne.s32.totalorder %v861_v25, 0 }
 0x621   : > { %v4105_v4 = vadd.f32 %v4104_v28, %v4059_v9  ;;  %v13904_v49 = vpop.f32.mrb[70].mxu0  ;;  %v1120_v28 = vadd.s32 24, %v850_v15  ;;  %v13914_v9 = vsel %vm1072_vm3, %v1119_v13, %v839_v30  ;;  %v13924_v54 = vadd.s32 360, %v13152_v32 }
 0x622   : > { %17722 = vst [vmem:[#allocation63_spill] sm:$0xff] %v13904_v49  ;;  %v3960_v3 = vsel %vm17398_vm8, %v13904_v49, 0.0  ;;  %v9055_v60 = vpop.f32.mrb[71].mxu0  ;;  %17723 = vst [vmem:[#allocation64_spill] sm:$0xff] %v13914_v9  ;;  %vm1027_vm8 = vcmp.lt.s32.totalorder %v861_v25, 0  ;;  %v872_v13 = vsub.s32 %v13834_v51, %v871_v2  ;;  %vm17406_vm14 = vcmp.lt.s32.totalorder %v13914_v9, 16 }
 0x623   : > { %v4006_v36 = vadd.f32 %v4005_v48, %v3960_v3  ;;  %v4060_v16 = vmul.f32 %v3960_v3, %v3960_v3  ;;  %v13931_v3 = vmul.u32.u64.low 2863311531, %v13911_v44  ;;  %v13932_v59 = vmul.u32.u64.high 2863311531, %v13911_v44, %v13931_v3  ;;  %v5439_v51 = vld [vmem:[#allocation9 + $0x180] sm:$0xff]  ;;  %v5440_v2 = vld [vmem:[#allocation9 + $0x188] sm:$0xff]  ;;  %vm1074_vm4 = vmand %vm1027_vm8, %vm980_vm11 }
 0x624   : > { %v1121_v49 = vadd.s32 24, %v861_v25  ;;  %v13940_v43 = vsub.s32 %v13842_v45, %v882_v34  ;;  %v893_v53 = vmul.u32 24, %v892_v12  ;;  %vm981_vm3 = vcmp.ne.s32.totalorder %v872_v13, 0  ;;  %v5441_v3 = vld [vmem:[#allocation9 + $0x190] sm:$0xff] }
 0x625   : > { %v4106_v41 = vadd.f32 %v4105_v4, %v4060_v16  ;;  %v13921_v60 = vpop.f32.mrb[72].mxu0  ;;  %v13937_v16 = vsel %vm13916_vm15, %v1120_v28, %v850_v15  ;;  %v9825_v15 = vpack.c.bf16 %v5440_v2, %v5439_v51  ;;  %vm1028_vm15 = vcmp.lt.s32.totalorder %v872_v13, 0 }
 0x626   : > { %17726 = vst [vmem:[#allocation65_spill] sm:$0xff] %v13921_v60  ;;  %v3961_v48 = vsel %vm17405_vm9, %v13921_v60, 0.0  ;;  %v9058_v30 = vpop.f32.mrb[73].mxu0  ;;  %17727 = vst [vmem:[#allocation66_spill] sm:$0xff] %v13937_v16  ;;  %vm17410_vm9 = vcmp.lt.s32.totalorder %v13937_v16, 16  ;;  %v13958_v12 = vsel %vm1074_vm4, %v1121_v49, %v861_v25  ;;  %vm982_vm8 = vcmp.ne.s32.totalorder %v13940_v43, 0 }
 0x627   : > { %v4007_v19 = vadd.f32 %v4006_v36, %v3961_v48  ;;  %v4061_v4 = vmul.f32 %v3961_v48, %v3961_v48  ;;  %v903_v30 = vshrl.u32 %v13902_v35, 4  ;;  %v13955_v35 = vadd.s32 368, %v13152_v32  ;;  %9826 = vmatpush1.bf16.msra.mxu1 %v9825_v15  ;;  %17729 = vst [vmem:[#allocation68_spill] sm:$0xff] %v13958_v12  ;;  %v5464_v16 = vld [vmem:[#allocation9 + $0x248] sm:$0xff] }
 0x628   : > { %v13948_v36 = vmul.u32.u64.low 2863311531, %v13924_v54  ;;  %v13949_v50 = vmul.u32.u64.high 2863311531, %v13924_v54, %v13948_v36  ;;  %v1122_v48 = vadd.s32 24, %v872_v13  ;;  %vm1029_vm11 = vcmp.lt.s32.totalorder %v13940_v43, 0  ;;  %9827 = vmatprep.subr.bf16.mxu1 %v17648_v21 }
 0x629   : > { %v4107_v60 = vadd.f32 %v4106_v41, %v4061_v4  ;;  %v13943_v7 = vpop.f32.mrb[74].mxu0  ;;  %v5442_v4 = vld [vmem:[#allocation9 + $0x198] sm:$0xff]  ;;  %v904_v36 = vmul.u32 24, %v903_v30  ;;  %vm17411_vm4 = vcmp.lt.s32.totalorder %v13958_v12, 16  ;;  %v5444_v30 = vld [vmem:[#allocation9 + $0x1a8] sm:$0xff] }
 0x62a   : > { %17728 = vst [vmem:[#allocation67_spill] sm:$0xff] %v13943_v7  ;;  %v3962_v45 = vsel %vm17406_vm14, %v13943_v7, 0.0  ;;  %v9061_v28 = vpop.f32.mrb[75].mxu0  ;;  %vm1075_vm14 = vmand %vm1028_vm15, %vm981_vm3  ;;  %v9828_v49 = vpack.c.bf16 %v5442_v4, %v5441_v3 }
 0x62b   : > { %v4008_v41 = vadd.f32 %v4007_v19, %v3962_v45  ;;  %v4062_v34 = vmul.f32 %v3962_v45, %v3962_v45  ;;  %v894_v19 = vsub.s32 %v13861_v42, %v893_v53  ;;  %v914_v45 = vshrl.u32 %v13932_v59, 4  ;;  %v5443_v53 = vld [vmem:[#allocation9 + $0x1a0] sm:$0xff]  ;;  %vm1076_vm3 = vmand %vm1029_vm11, %vm982_vm8 }
 0x62c   : > { %v13973_v28 = vmul.u32.u64.low 2863311531, %v13955_v35  ;;  %v13974_v9 = vmul.u32.u64.high 2863311531, %v13955_v35, %v13973_v28  ;;  %9829 = vmatpush1.bf16.msra.mxu1 %v9828_v49  ;;  %v13977_v7 = vsel %vm1075_vm14, %v1122_v48, %v872_v13  ;;  %v1123_v42 = vadd.s32 24, %v13940_v43 }
 0x62d   : > { %v4108_v51 = vadd.f32 %v4107_v60, %v4062_v34  ;;  %v13963_v2 = vpop.f32.mrb[76].mxu0  ;;  %17730 = vst [vmem:[#allocation69_spill] sm:$0xff] %v13977_v7  ;;  %9830 = vmatprep.subr.bf16.mxu1 %v17648_v21  ;;  %v905_v59 = vsub.s32 %v13885_v37, %v904_v36  ;;  %v9831_v13 = vpack.c.bf16 %v5444_v30, %v5443_v53  ;;  %vm983_vm14 = vcmp.ne.s32.totalorder %v894_v19, 0  ;;  %v5446_v36 = vld [vmem:[#allocation9 + $0x1b8] sm:$0xff] }
 0x62e   : > { %v3963_v25 = vsel %vm17410_vm9, %v13963_v2, 0.0  ;;  %v9064_v15 = vpop.f32.mrb[77].mxu0  ;;  %vm1030_vm15 = vcmp.lt.s32.totalorder %v894_v19, 0  ;;  %vm17414_vm9 = vcmp.lt.s32.totalorder %v13977_v7, 16  ;;  %v13994_v28 = vsel %vm1076_vm3, %v1123_v42, %v13940_v43 }
 0x62f   : > { %v4009_v60 = vadd.f32 %v4008_v41, %v3963_v25  ;;  %v4063_v34 = vmul.f32 %v3963_v25, %v3963_v25  ;;  %v925_v41 = vshrl.u32 %v13949_v50, 4  ;;  %17731 = vst [vmem:[#allocation70_spill] sm:$0xff] %v13994_v28  ;;  %v1124_v37 = vadd.s32 24, %v894_v19  ;;  %v5445_v50 = vld [vmem:[#allocation9 + $0x1b0] sm:$0xff]  ;;  %vm1077_vm8 = vmand %vm1030_vm15, %vm983_vm14 }
 0x630   : > { %9832 = vmatpush1.bf16.msra.mxu1 %v9831_v13  ;;  %vm984_vm11 = vcmp.ne.s32.totalorder %v905_v59, 0  ;;  %vm1031_vm3 = vcmp.lt.s32.totalorder %v905_v59, 0  ;;  %v936_v42 = vshrl.u32 %v13974_v9, 4 }
 0x631   : > { %v4109_v3 = vadd.f32 %v4108_v51, %v4063_v34  ;;  %v13981_v4 = vpop.f32.mrb[78].mxu0  ;;  %v915_v51 = vmul.u32 24, %v914_v45  ;;  %9833 = vmatprep.subr.bf16.mxu1 %v17648_v21  ;;  %v926_v45 = vmul.u32 24, %v925_v41  ;;  %v5447_v41 = vld [vmem:[#allocation9 + $0x1c0] sm:$0xff]  ;;  %vm1078_vm14 = vmand %vm1031_vm3, %vm984_vm11 }
 0x632   : > { %v3964_v48 = vsel %vm17411_vm4, %v13981_v4, 0.0  ;;  %v9067_v49 = vpop.f32.mrb[79].mxu0  ;;  %vm17415_vm4 = vcmp.lt.s32.totalorder %v13994_v28, 16 }
 0x633   : > { %v4010_v25 = vadd.f32 %v4009_v60, %v3964_v48  ;;  %v4064_v15 = vmul.f32 %v3964_v48, %v3964_v48  ;;  %v9834_v60 = vpack.c.bf16 %v5446_v36, %v5445_v50  ;;  %v916_v43 = vsub.s32 %v13911_v44, %v915_v51  ;;  %v5448_v50 = vld [vmem:[#allocation9 + $0x1c8] sm:$0xff] }
 0x634   : > { %v927_v44 = vsub.s32 %v13924_v54, %v926_v45  ;;  %v9837_v9 = vpack.c.bf16 %v5448_v50, %v5447_v41  ;;  %v5449_v54 = vld [vmem:[#allocation9 + $0x1d0] sm:$0xff]  ;;  %v5450_v45 = vld [vmem:[#allocation9 + $0x1d8] sm:$0xff] }
 0x635   : > { %v4110_v34 = vadd.f32 %v4109_v3, %v4064_v15  ;;  %v13997_v53 = vpop.f32.mrb[80].mxu0  ;;  %9835 = vmatpush1.bf16.msra.mxu1 %v9834_v60  ;;  %v14006_v3 = vsel %vm1077_vm8, %v1124_v37, %v894_v19  ;;  %v1125_v15 = vadd.s32 24, %v905_v59  ;;  %vm985_vm15 = vcmp.ne.s32.totalorder %v916_v43, 0 }
 0x636   : > { %v3965_v30 = vsel %vm17414_vm9, %v13997_v53, 0.0  ;;  %v9070_v13 = vpop.f32.mrb[81].mxu0  ;;  %17732 = vst [vmem:[#allocation71_spill] sm:$0xff] %v14006_v3  ;;  %9836 = vmatprep.subr.bf16.mxu1 %v17648_v21  ;;  %vm1032_vm8 = vcmp.lt.s32.totalorder %v916_v43, 0  ;;  %v937_v19 = vmul.u32 24, %v936_v42  ;;  %vm17416_vm9 = vcmp.lt.s32.totalorder %v14006_v3, 16 }
 0x637   : > { %v4011_v48 = vadd.f32 %v4010_v25, %v3965_v30  ;;  %v4065_v49 = vmul.f32 %v3965_v30, %v3965_v30  ;;  %v1126_v30 = vadd.s32 24, %v916_v43  ;;  %vm1079_vm11 = vmand %vm1032_vm8, %vm985_vm15  ;;  %v9840_v41 = vpack.c.bf16 %v5450_v45, %v5449_v54 }
 0x638   : > { %vm986_vm3 = vcmp.ne.s32.totalorder %v927_v44, 0 }
 0x639   : > { %v4111_v36 = vadd.f32 %v4110_v34, %v4065_v49  ;;  %v14009_v7 = vpop.f32.mrb[82].mxu0  ;;  %9838 = vmatpush1.bf16.msra.mxu1 %v9837_v9  ;;  %v14017_v34 = vsel %vm1078_vm14, %v1125_v15, %v905_v59  ;;  %v938_v59 = vsub.s32 %v13955_v35, %v937_v19  ;;  %v14027_v9 = vsel %vm1079_vm11, %v1126_v30, %v916_v43 }
 0x63a   : > { %v3966_v51 = vsel %vm17415_vm4, %v14009_v7, 0.0  ;;  %v9073_v25 = vpop.f32.mrb[83].mxu0  ;;  %17733 = vst [vmem:[#allocation72_spill] sm:$0xff] %v14017_v34  ;;  %9839 = vmatprep.subr.bf16.mxu1 %v17648_v21  ;;  %vm1033_vm4 = vcmp.lt.s32.totalorder %v927_v44, 0  ;;  %vm17433_vm14 = vcmp.lt.s32.totalorder %v14017_v34, 16  ;;  %17734 = vst [vmem:[#allocation73_spill] sm:$0xff] %v14027_v9 }
 0x63b   : > { %v4012_v37 = vadd.f32 %v4011_v48, %v3966_v51  ;;  %v4066_v60 = vmul.f32 %v3966_v51, %v3966_v51  ;;  %v5451_v51 = vld [vmem:[#allocation9 + $0x1e0] sm:$0xff]  ;;  %v5452_v25 = vld [vmem:[#allocation9 + $0x1e8] sm:$0xff]  ;;  %vm1080_vm15 = vmand %vm1033_vm4, %vm986_vm3  ;;  %vm987_vm8 = vcmp.ne.s32.totalorder %v938_v59, 0  ;;  %vm17432_vm11 = vcmp.lt.s32.totalorder %v14027_v9, 16 }
 0x63c   : > { %v9843_v45 = vpack.c.bf16 %v5452_v25, %v5451_v51 }
 0x63d   : > { %v4112_v13 = vadd.f32 %v4111_v36, %v4066_v60  ;;  %v14020_v49 = vpop.f32.mrb[84].mxu0  ;;  %9841 = vmatpush1.bf16.msra.mxu1 %v9840_v41  ;;  %v1127_v36 = vadd.s32 24, %v927_v44  ;;  %v1128_v41 = vadd.s32 24, %v938_v59 }
 0x63e   : > { %v3967_v42 = vsel %vm17416_vm9, %v14020_v49, 0.0  ;;  %v9076_v48 = vpop.f32.mrb[85].mxu0  ;;  %9842 = vmatprep.subr.bf16.mxu1 %v17648_v21  ;;  %vm1034_vm9 = vcmp.lt.s32.totalorder %v938_v59, 0 }
 0x63f   : > { %v4013_v15 = vadd.f32 %v4012_v37, %v3967_v42  ;;  %v4067_v50 = vmul.f32 %v3967_v42, %v3967_v42  ;;  %v14036_v30 = vsel %vm1080_vm15, %v1127_v36, %v927_v44  ;;  %v5454_v42 = vld [vmem:[#allocation9 + $0x1f8] sm:$0xff]  ;;  %vm1081_vm4 = vmand %vm1034_vm9, %vm987_vm8  ;;  %v5455_v36 = vld [vmem:[#allocation9 + $0x200] sm:$0xff]  ;;  %vm4382_vm15 = vcmp.lt.s32.totalorder %v13152_v32, 2 }
 0x640   : > { %17736 = vst [vmem:[#allocation75_spill] sm:$0xff] %v14036_v30  ;;  %vm17431_vm3 = vcmp.lt.s32.totalorder %v14036_v30, 16  ;;  %v14045_v44 = vsel %vm1081_vm4, %v1128_v41, %v938_v59  ;;  %v5457_v59 = vld [vmem:[#allocation9 + $0x210] sm:$0xff]  ;;  %v5458_v41 = vld [vmem:[#allocation9 + $0x218] sm:$0xff]  ;;  %vm17484_vm8 = vcmp.lt.s32.totalorder %v13152_v32, 6  ;;  %vm4333_vm4 = vcmp.eq.s32.totalorder %v14036_v30, 16 }
 0x641   : > { %v4113_v60 = vadd.f32 %v4112_v13, %v4067_v50  ;;  %v14030_v54 = vpop.f32.mrb[86].mxu0  ;;  %9844 = vmatpush1.bf16.msra.mxu1 %v9843_v45  ;;  %v5453_v13 = vld [vmem:[#allocation9 + $0x1f0] sm:$0xff]  ;;  %17737 = vst [vmem:[#allocation76_spill] sm:$0xff] %v14045_v44  ;;  %vm17430_vm9 = vcmp.lt.s32.totalorder %v14045_v44, 16  ;;  %vm4617_vm6 = vcmp.eq.s32.totalorder %v14045_v44, 23 }
 0x642   : > { %17735 = vst [vmem:[#allocation74_spill] sm:$0xff] %v14030_v54  ;;  %v3968_v35 = vsel %vm17433_vm14, %v14030_v54, 0.0  ;;  %v9079_v19 = vpop.f32.mrb[87].mxu0  ;;  %9845 = vmatprep.subr.bf16.mxu1 %v17648_v21  ;;  %v9846_v51 = vpack.c.bf16 %v5454_v42, %v5453_v13  ;;  %vm4616_vm14 = vcmp.eq.s32.totalorder %v14036_v30, 23 }
 0x643   : > { %v4014_v37 = vadd.f32 %v4013_v15, %v3968_v35  ;;  %v4068_v43 = vmul.f32 %v3968_v35, %v3968_v35 }
 0x645   : > { %v4114_v48 = vadd.f32 %v4113_v60, %v4068_v43  ;;  %v14039_v50 = vpop.f32.mrb[88].mxu0  ;;  %9847 = vmatpush1.bf16.msra.mxu1 %v9846_v51  ;;  %v5456_v60 = vld [vmem:[#allocation9 + $0x208] sm:$0xff] }
 0x646   : > { %v3969_v15 = vsel %vm17432_vm11, %v14039_v50, 0.0  ;;  %v9082_v25 = vpop.f32.mrb[89].mxu0  ;;  %9848 = vmatprep.subr.bf16.mxu1 %v17648_v21  ;;  %v9849_v13 = vpack.c.bf16 %v5456_v60, %v5455_v36  ;;  %vm4571_vm11 = vcmp.eq.s32.totalorder %v13205_v55, 23 }
 0x647   : > { %v4015_v35 = vadd.f32 %v4014_v37, %v3969_v15  ;;  %v4069_v19 = vmul.f32 %v3969_v15, %v3969_v15 }
 0x649   : > { %v4115_v45 = vadd.f32 %v4114_v48, %v4069_v19  ;;  %v14048_v43 = vpop.f32.mrb[90].mxu0  ;;  %9850 = vmatpush1.bf16.msra.mxu1 %v9849_v13  ;;  %v9852_v48 = vpack.c.bf16 %v5458_v41, %v5457_v59  ;;  %v5460_v13 = vld [vmem:[#allocation9 + $0x228] sm:$0xff]  ;;  %v5462_v59 = vld [vmem:[#allocation9 + $0x238] sm:$0xff] }
 0x64a   : > { %v3970_v42 = vsel %vm17431_vm3, %v14048_v43, 0.0  ;;  %v9085_v25 = vpop.f32.mrb[91].mxu0  ;;  %9851 = vmatprep.subr.bf16.mxu1 %v17648_v21  ;;  %vm4334_vm3 = vcmp.eq.s32.totalorder %v14045_v44, 16 }
 0x64b   : > { %v4016_v37 = vadd.f32 %v4015_v35, %v3970_v42  ;;  %v4070_v15 = vmul.f32 %v3970_v42, %v3970_v42  ;;  %v5459_v35 = vld [vmem:[#allocation9 + $0x220] sm:$0xff] }
 0x64c   : > { %v9855_v3 = vpack.c.bf16 %v5460_v13, %v5459_v35  ;;  %v5466_v13 = vld [vmem:[#allocation9 + $0x258] sm:$0xff] }
 0x64d   : > { %v4116_v51 = vadd.f32 %v4115_v45, %v4070_v15  ;;  %v14055_v9 = vpop.f32.mrb[92].mxu0  ;;  %9853 = vmatpush1.bf16.msra.mxu1 %v9852_v48  ;;  %v5461_v15 = vld [vmem:[#allocation9 + $0x230] sm:$0xff]  ;;  %v5463_v48 = vld [vmem:[#allocation9 + $0x240] sm:$0xff] }
 0x64e   : > { %v3971_v19 = vsel %vm17430_vm9, %v14055_v9, 0.0  ;;  %v9088_v36 = vpop.f32.mrb[93].mxu0  ;;  %9854 = vmatprep.subr.bf16.mxu1 %v17648_v21  ;;  %vm4288_vm9 = vcmp.eq.s32.totalorder %v13205_v55, 16 }
 0x64f   : > { %v4017_v60 = vadd.f32 %v4016_v37, %v3971_v19  ;;  %v4071_v25 = vmul.f32 %v3971_v19, %v3971_v19  ;;  %v9858_v36 = vpack.c.bf16 %v5462_v59, %v5461_v15  ;;  %v5467_v59 = vld [vmem:[#allocation9 + $0x260] sm:$0xff] }
 0x651   : > { %v4018_v42 = vrot.slane %v4017_v60, 4  ;;  %v4117_v34 = vadd.f32 %v4116_v51, %v4071_v25  ;;  %9856 = vmatpush1.bf16.msra.mxu1 %v9855_v3  ;;  %v9861_v25 = vpack.c.bf16 %v5464_v16, %v5463_v48  ;;  %v5465_v3 = vld [vmem:[#allocation9 + $0x250] sm:$0xff] }
 0x652   : > { %9857 = vmatprep.subr.bf16.mxu1 %v17648_v21 }
 0x653   : > { %v4019_v28 = vadd.f32 %v4018_v42, %v4017_v60  ;;  %v4118_v45 = vrot.slane %v4117_v34, 4 }
 0x655   : > { %v4020_v41 = vrot.slane %v4019_v28, 2  ;;  %v4119_v12 = vadd.f32 %v4118_v45, %v4117_v34  ;;  %9859 = vmatpush1.bf16.msra.mxu1 %v9858_v36  ;;  %v9864_v45 = vpack.c.bf16 %v5466_v13, %v5465_v3  ;;  %v14070_v3 = vld [vmem:[#allocation9 + $0x280] sm:$0xff]  ;;  %v14072_v13 = vld [vmem:[#allocation9 + $0x288] sm:$0xff] }
 0x656   : > { %9860 = vmatprep.subr.bf16.mxu1 %v17648_v21 }
 0x657   : > { %v4021_v37 = vadd.f32 %v4020_v41, %v4019_v28  ;;  %v4120_v19 = vrot.slane %v4119_v12, 2  ;;  %v5468_v41 = vld [vmem:[#allocation9 + $0x268] sm:$0xff] }
 0x659   : > { %v4022_v54 = vrot.slane %v4021_v37, 1  ;;  %v4121_v51 = vadd.f32 %v4120_v19, %v4119_v12  ;;  %9862 = vmatpush1.bf16.msra.mxu1 %v9861_v25  ;;  %v9867_v12 = vpack.c.bf16 %v5468_v41, %v5467_v59  ;;  %v14068_v25 = vsub.s32 0, %v13152_v32  ;;  %v14079_v59 = vld [vmem:[#allocation9 + $0x298] sm:$0xff] }
 0x65a   : > { %9863 = vmatprep.subr.bf16.mxu1 %v17648_v21 }
 0x65b   : > { %v4023_v60 = vadd.f32 %v4022_v54, %v4021_v37  ;;  %v4122_v35 = vrot.slane %v4121_v51, 1  ;;  %v5469_v54 = vld [vmem:[#allocation9 + $0x270] sm:$0xff]  ;;  %v5470_v37 = vld [vmem:[#allocation9 + $0x278] sm:$0xff]  ;;  %17738 = vst [vmem:[#allocation77_spill] sm:$0xff] %v14068_v25 }
 0x65c   : > { %v9870_v48 = vpack.c.bf16 %v5470_v37, %v5469_v54 }
 0x65d   : > { %v4024_v42 = vmul.f32 0.00390625, %v4023_v60  ;;  %v4123_v34 = vadd.f32 %v4122_v35, %v4121_v51  ;;  %9865 = vmatpush1.bf16.msra.mxu1 %v9864_v45  ;;  %v4128_v51 = vld [vmem:[#allocation10] sm:$0x1] }
 0x65e   : > { %9866 = vmatprep.subr.bf16.mxu1 %v17648_v21 }
 0x65f   : > { %v4124_v28 = vmul.f32 0.00390625, %v4123_v34  ;;  %v4125_v15 = vmul.f32 %v4024_v42, %v4024_v42  ;;  %v4132_v34 = vld [vmem:[#allocation12] sm:$0x1] }
 0x661   : > { %v4126_v36 = vsub.f32 %v4124_v28, %v4125_v15  ;;  %9868 = vmatpush1.bf16.msra.mxu1 %v9867_v12  ;;  %v14077_v15 = vld [vmem:[#allocation9 + $0x290] sm:$0xff] }
 0x662   : > { %9869 = vmatprep.subr.bf16.mxu1 %v17648_v21 }
 0x663   : > { %v4127_v16 = vmax.f32 %v4126_v36, 0.0 }
 0x665   : > { %v4129_v19 = vadd.f32 1e-05, %v4127_v16  ;;  %9871 = vmatpush1.bf16.msra.mxu1 %v9870_v48 }
 0x666   : > { %9872 = vmatprep.subr.bf16.mxu1 %v17648_v21 }
 0x667   : > { %11193 = vrsqrt.f32 %v4129_v19 }
 0x671   : > { %v11194_v60 = vpop.eup %11193 }
 0x672   : > { %v4131_v35 = vmul.f32 %v11194_v60, %v4128_v51 }
 0x674   : > { %v4133_v45 = vmul.f32 %v4131_v35, %v4024_v42  ;;  %v14075_v28 = vrot.slane %v4131_v35, %v14068_v25 }
 0x676   : > { %v4134_v42 = vsub.f32 %v4132_v34, %v4133_v45  ;;  %v4141_v12 = vmul.f32 %v14075_v28, %v13220_v62  ;;  %v4142_v16 = vmul.f32 %v14075_v28, %v13245_v6  ;;  %v4185_v54 = vmul.f32 %v14075_v28, %v14039_v50 }
 0x677   : > { %v4186_v37 = vmul.f32 %v14075_v28, %v14048_v43  ;;  %v4187_v19 = vmul.f32 %v14075_v28, %v14055_v9  ;;  %v14102_v48 = vmul.f32 %v14075_v28, %v13263_v8  ;;  %v14106_v62 = vmul.f32 %v14075_v28, %v13285_v40 }
 0x678   : > { %v14111_v6 = vrot.slane %v4134_v42, %v14068_v25  ;;  %v14116_v9 = vmul.f32 %v14075_v28, %v13301_v26  ;;  %v14120_v8 = vmul.f32 %v14075_v28, %v13318_v52  ;;  %v14124_v40 = vmul.f32 %v14075_v28, %v13333_v58 }
 0x679   : > { %v14128_v50 = vmul.f32 %v14075_v28, %v13351_v63  ;;  %v14132_v43 = vmul.f32 %v14075_v28, %v13374_v14  ;;  %v14136_v26 = vmul.f32 %v14075_v28, %v13389_v38  ;;  %v14140_v52 = vmul.f32 %v14075_v28, %v13408_v1 }
 0x67a   : > { %v4194_v51 = vadd.f32 %v14111_v6, %v4141_v12  ;;  %v4195_v58 = vadd.f32 %v14111_v6, %v4142_v16  ;;  %v4238_v60 = vadd.f32 %v14111_v6, %v4185_v54  ;;  %v4239_v63 = vadd.f32 %v14111_v6, %v4186_v37 }
 0x67b   : > { %v4240_v35 = vadd.f32 %v14111_v6, %v4187_v19  ;;  %v14149_v14 = vmul.f32 %v14075_v28, %v13426_v0  ;;  %v14153_v38 = vmul.f32 %v14075_v28, %v13450_v18  ;;  %v14157_v1 = vmul.f32 %v14075_v28, %v13470_v57 }
 0x67c   : > { %v14159_v34 = vmax.f32 %v4194_v51, 0.0  ;;  %v14161_v45 = vmax.f32 %v4195_v58, 0.0  ;;  %v14163_v42 = vmax.f32 %v4238_v60, 0.0  ;;  %v14165_v12 = vmax.f32 %v4239_v63, 0.0 }
 0x67d   : > { %v4287_v16 = vmax.f32 %v4240_v35, 0.0  ;;  %v14169_v0 = vmul.f32 %v14075_v28, %v13494_v23  ;;  %v14173_v18 = vmul.f32 %v14075_v28, %v13518_v31  ;;  %v14177_v57 = vmul.f32 %v14075_v28, %v13538_v46 }
 0x67e   : > { %17739 = vst [vmem:[#allocation78_spill] sm:$0xff] %v14161_v45  ;;  %17740 = vst [vmem:[#allocation79_spill] sm:$0xff] %v14163_v42  ;;  %v17436_v54 = vrot.slane %v14159_v34, 6  ;;  %v17435_v37 = vrot.slane %v14163_v42, 6  ;;  %v4380_v19 = vrot.slane %v14165_v12, 6  ;;  %v4618_v51 = vrot.slane %v14159_v34, 2 }
 0x67f   : > { %v4381_v58 = vrot.slane %v4287_v16, 6  ;;  %v17438_v23 = vrot.slane %v14161_v45, 2  ;;  %v17437_v60 = vrot.slane %v14165_v12, 2  ;;  %v4664_v63 = vrot.slane %v4287_v16, 2 }
 0x680   : > { %v4384_v31 = vsel %vm4382_vm15, %v17435_v37, %v4380_v19  ;;  %v14191_v46 = vmul.f32 %v14075_v28, %v13557_v10  ;;  %v14195_v35 = vmul.f32 %v14075_v28, %v13579_v39  ;;  %v14199_v36 = vmul.f32 %v14075_v28, %v13597_v5 }
 0x681   : > { %v4383_v41 = vsel %vm4382_vm15, %v4380_v19, %v4381_v58  ;;  %v4429_v37 = vsel %vm4382_vm15, %v4381_v58, %v17436_v54  ;;  %v4569_v10 = vsel %vm4333_vm4, %v4384_v31, %v14165_v12  ;;  %v4666_v39 = vsel %vm17484_vm8, %v17437_v60, %v4664_v63 }
 0x682   : > { %v4524_v5 = vsel %vm4288_vm9, %v4429_v37, %v14159_v34  ;;  %v4570_v19 = vsel %vm4334_vm3, %v4383_v41, %v4287_v16  ;;  %v4711_v58 = vsel %vm17484_vm8, %v4618_v51, %v17438_v23  ;;  %v4712_v31 = vsel %vm17484_vm8, %v4664_v63, %v4618_v51  ;;  %v17747_v23 = vld [vmem:[#allocation67_spill] sm:$0xff] }
 0x683   : > { %v4807_v54 = vsel %vm4571_vm11, %v4711_v58, %v4524_v5  ;;  %v4852_v60 = vsel %vm4616_vm14, %v4666_v39, %v4569_v10  ;;  %v4853_v37 = vsel %vm4617_vm6, %v4712_v31, %v4570_v19  ;;  %v4161_v41 = vmul.f32 %v14075_v28, %v13617_v27  ;;  %v17741_v39 = vld [vmem:[#allocation56_spill] sm:$0xff]  ;;  %v17742_v5 = vld [vmem:[#allocation57_spill] sm:$0xff]  ;;  %v17743_v19 = vld [vmem:[#allocation59_spill] sm:$0xff] }
 0x684   : > { %4854 = vst [vmem:[#allocation2 + $0x19] sm:$0xff] %v4807_v54  ;;  %4899 = vst [vmem:[#allocation2 + $0x181] sm:$0xff] %v4852_v60  ;;  %v4162_v16 = vmul.f32 %v14075_v28, %v13634_v22  ;;  %v4163_v51 = vmul.f32 %v14075_v28, %v13646_v33  ;;  %v4164_v63 = vmul.f32 %v14075_v28, %v13663_v61  ;;  %v17744_v58 = vld [vmem:[#allocation61_spill] sm:$0xff]  ;;  %v17745_v31 = vld [vmem:[#allocation63_spill] sm:$0xff] }
 0x685   : > { %4900 = vst [vmem:[#allocation2 + $0x189] sm:$0xff] %v4853_v37  ;;  %4901 = vst [vmem:[#allocation2 + $0x17] sm:$0x2] %v4807_v54  ;;  %v4165_v10 = vmul.f32 %v14075_v28, %v13683_v20  ;;  %v4166_v27 = vmul.f32 %v14075_v28, %v13702_v17  ;;  %v4167_v60 = vmul.f32 %v14075_v28, %v13721_v11 }
 0x686   : > { %4902 = vst [vmem:[#allocation2 + $0x18b] sm:$0x40] %v4853_v37  ;;  %v4168_v54 = vmul.f32 %v14075_v28, %v13744_v47  ;;  %v4169_v22 = vmul.f32 %v14075_v28, %v13763_v24  ;;  %v4170_v33 = vmul.f32 %v14075_v28, %v13779_v56  ;;  %v4171_v61 = vmul.f32 %v14075_v28, %v13802_v29  ;;  %v17746_v37 = vld [vmem:[#allocation65_spill] sm:$0xff] }
 0x687   : > { %v4172_v20 = vmul.f32 %v14075_v28, %v17741_v39  ;;  %v4173_v17 = vmul.f32 %v14075_v28, %v17742_v5  ;;  %v4174_v11 = vmul.f32 %v14075_v28, %v17743_v19  ;;  %v4175_v47 = vmul.f32 %v14075_v28, %v17744_v58 }
 0x688   : > { %v4176_v24 = vmul.f32 %v14075_v28, %v17745_v31  ;;  %v4177_v56 = vmul.f32 %v14075_v28, %v17746_v37  ;;  %v14267_v29 = vmul.f32 %v14075_v28, %v17747_v23  ;;  %v14271_v39 = vmul.f32 %v14075_v28, %v13963_v2  ;;  %v17748_v31 = vld [vmem:[#allocation74_spill] sm:$0xff] }
 0x689   : > { %v14275_v5 = vmul.f32 %v14075_v28, %v13981_v4  ;;  %v14279_v19 = vmul.f32 %v14075_v28, %v13997_v53  ;;  %v14283_v58 = vmul.f32 %v14075_v28, %v14009_v7  ;;  %v14287_v23 = vmul.f32 %v14075_v28, %v14020_v49 }
 0x68a   : > { %v14291_v2 = vmul.f32 %v14075_v28, %v17748_v31  ;;  %v14297_v53 = vadd.f32 %v14111_v6, %v14102_v48  ;;  %v14301_v7 = vadd.f32 %v14111_v6, %v14106_v62  ;;  %v14305_v49 = vadd.f32 %v14111_v6, %v14116_v9 }
 0x68b   : > { %v14309_v28 = vadd.f32 %v14111_v6, %v14120_v8  ;;  %v14313_v31 = vadd.f32 %v14111_v6, %v14124_v40  ;;  %v14317_v48 = vadd.f32 %v14111_v6, %v14128_v50  ;;  %v14321_v62 = vadd.f32 %v14111_v6, %v14132_v43  ;;  %v5027_v4 = vld [vmem:[#allocation2 + $0x19] sm:$0xff]  ;;  %v5072_v50 = vld [vmem:[#allocation2 + $0x181] sm:$0xff] }
 0x68c   : > { %v4919_v37 = vld [vmem:[#allocation2 + $0x18] sm:$0xff]  ;;  %v4203_v9 = vadd.f32 %v14111_v6, %v14136_v26  ;;  %v4204_v8 = vadd.f32 %v14111_v6, %v14140_v52  ;;  %v4205_v40 = vadd.f32 %v14111_v6, %v14149_v14  ;;  %v4206_v25 = vadd.f32 %v14111_v6, %v14153_v38  ;;  %5081 = vst [vmem:[#allocation3 + $0x50] sm:$0xff] %v5027_v4  ;;  %v5073_v43 = vld [vmem:[#allocation2 + $0x189] sm:$0xff] }
 0x68d   : > { %5551 = vmatprep.mubr.f32.mxu1 %v5027_v4  ;;  %4973 = vst [vmem:[#allocation3 + $0x48] sm:$0xff] %v4919_v37  ;;  %v4207_v44 = vadd.f32 %v14111_v6, %v14157_v1  ;;  %v4208_v26 = vadd.f32 %v14111_v6, %v14169_v0  ;;  %v4209_v52 = vadd.f32 %v14111_v6, %v14173_v18  ;;  %5126 = vst [vmem:[#allocation3 + $0x488] sm:$0xff] %v5072_v50  ;;  %v4965_v38 = vld [vmem:[#allocation2 + $0x188] sm:$0xff] }
 0x68e   : > { %v4210_v14 = vadd.f32 %v14111_v6, %v14177_v57  ;;  %5552 = vmatmul.mubr.f32.vlgmr.msra.gmra.mrb[0].mxu1 %v4919_v37  ;;  %5127 = vst [vmem:[#allocation3 + $0x4a0] sm:$0xff] %v5073_v43  ;;  %v5180_v4 = vld [vmem:[#allocation2 + $0x182] sm:$0xff]  ;;  %v5181_v30 = vld [vmem:[#allocation2 + $0x18a] sm:$0xff]  ;;  %v4211_v55 = vadd.f32 %v14111_v6, %v14191_v46  ;;  %v4212_v1 = vadd.f32 %v14111_v6, %v14195_v35  ;;  %5019 = vst [vmem:[#allocation3 + $0x498] sm:$0xff] %v4965_v38 }
 0x68f   : > { %v4213_v0 = vadd.f32 %v14111_v6, %v14199_v36  ;;  %v4214_v18 = vadd.f32 %v14111_v6, %v4161_v41  ;;  %v17749_v57 = vpack.c.bf16 %v14072_v13, %v14070_v3  ;;  %5234 = vst [vmem:[#allocation3 + $0x490] sm:$0xff] %v5180_v4  ;;  %5235 = vst [vmem:[#allocation3 + $0x4a8] sm:$0xff] %v5181_v30  ;;  %v14429_v38 = vmax.f32 %v4207_v44, 0.0 }
 0x690   : > { %v4215_v37 = vadd.f32 %v14111_v6, %v4162_v16  ;;  %v4216_v50 = vadd.f32 %v14111_v6, %v4163_v51  ;;  %v4217_v46 = vadd.f32 %v14111_v6, %v4164_v63  ;;  %v4218_v35 = vadd.f32 %v14111_v6, %v4165_v10 }
 0x691   : > { %9874 = vmatpush3.bf16.msra.mxu1 %v17749_v57  ;;  %v4219_v36 = vadd.f32 %v14111_v6, %v4166_v27  ;;  %v4220_v41 = vadd.f32 %v14111_v6, %v4167_v60  ;;  %v4221_v3 = vadd.f32 %v14111_v6, %v4168_v54  ;;  %v4222_v13 = vadd.f32 %v14111_v6, %v4169_v22 }
 0x692   : > { %9875 = vmatprep.subr.bf16.mxu1 %v17648_v21  ;;  %v4223_v30 = vadd.f32 %v14111_v6, %v4170_v33  ;;  %v4224_v16 = vadd.f32 %v14111_v6, %v4171_v61  ;;  %v4225_v51 = vadd.f32 %v14111_v6, %v4172_v20  ;;  %v4226_v63 = vadd.f32 %v14111_v6, %v4173_v17 }
 0x693   : > { %v4227_v10 = vadd.f32 %v14111_v6, %v4174_v11  ;;  %v4228_v43 = vadd.f32 %v14111_v6, %v4175_v47  ;;  %v4229_v27 = vadd.f32 %v14111_v6, %v4176_v24  ;;  %v4230_v60 = vadd.f32 %v14111_v6, %v4177_v56 }
 0x694   : > { %v17750_v54 = vpack.c.bf16 %v14079_v59, %v14077_v15  ;;  %v4231_v22 = vadd.f32 %v14111_v6, %v14267_v29  ;;  %v4232_v33 = vadd.f32 %v14111_v6, %v14271_v39  ;;  %v4233_v61 = vadd.f32 %v14111_v6, %v14275_v5 }
 0x695   : > { %v4234_v20 = vadd.f32 %v14111_v6, %v14279_v19  ;;  %v4235_v17 = vadd.f32 %v14111_v6, %v14283_v58  ;;  %v4236_v15 = vadd.f32 %v14111_v6, %v14287_v23  ;;  %v4237_v59 = vadd.f32 %v14111_v6, %v14291_v2 }
 0x696   : > { %9877 = vmatpush3.bf16.msra.mxu1 %v17750_v54  ;;  %v17751_v11 = vrot.slane %v14161_v45, 6  ;;  %v17752_v47 = vrot.slane %v14159_v34, 6  ;;  %v17753_v56 = vrot.slane %v14165_v12, 2  ;;  %v17754_v29 = vrot.slane %v14163_v42, 2 }
 0x697   : > { %9878 = vmatprep.subr.bf16.mxu1 %v17648_v21  ;;  %v14401_v5 = vmax.f32 %v14297_v53, 0.0  ;;  %v14404_v6 = vmax.f32 %v14301_v7, 0.0  ;;  %v14407_v34 = vmax.f32 %v14305_v49, 0.0  ;;  %v14410_v19 = vmax.f32 %v14309_v28, 0.0 }
 0x698   : > { %v14390_v24 = vsel %vm4382_vm15, %v17752_v47, %v17751_v11  ;;  %v14398_v39 = vsel %vm17484_vm8, %v17754_v29, %v17753_v56  ;;  %v14413_v12 = vmax.f32 %v14313_v31, 0.0  ;;  %v14416_v58 = vmax.f32 %v14317_v48, 0.0 }
 0x699   : > { %17755 = vst [vmem:[#allocation56_spill] sm:$0xff] %v14398_v39  ;;  %v14419_v23 = vmax.f32 %v14321_v62, 0.0  ;;  %v14421_v2 = vmax.f32 %v4203_v9, 0.0  ;;  %v14423_v53 = vmax.f32 %v4204_v8, 0.0  ;;  %v14425_v7 = vmax.f32 %v4205_v40, 0.0  ;;  %v17781_v39 = vld [vmem:[#allocation23_spill] sm:$0xff] }
 0x69a   : > { %v14427_v49 = vmax.f32 %v4206_v25, 0.0  ;;  %v14431_v28 = vmax.f32 %v4208_v26, 0.0  ;;  %v14433_v31 = vmax.f32 %v4209_v52, 0.0  ;;  %v14435_v4 = vmax.f32 %v4210_v14, 0.0 }
 0x69b   : > { %v14437_v48 = vmax.f32 %v4211_v55, 0.0  ;;  %v14439_v62 = vmax.f32 %v4212_v1, 0.0  ;;  %v14441_v9 = vmax.f32 %v4213_v0, 0.0  ;;  %v14443_v8 = vmax.f32 %v4214_v18, 0.0 }
 0x69c   : > { %v14445_v40 = vmax.f32 %v4215_v37, 0.0  ;;  %v14447_v25 = vmax.f32 %v4216_v50, 0.0  ;;  %v14449_v44 = vmax.f32 %v4217_v46, 0.0  ;;  %v14451_v26 = vmax.f32 %v4218_v35, 0.0  ;;  %v4966_v50 = vld [vmem:[#allocation2 + $0x190] sm:$0xff] }
 0x69d   : > { %17756 = vst [vmem:[#allocation57_spill] sm:$0xff] %v14441_v9  ;;  %17757 = vst [vmem:[#allocation59_spill] sm:$0xff] %v14443_v8  ;;  %v14453_v52 = vmax.f32 %v4219_v36, 0.0  ;;  %v14455_v14 = vmax.f32 %v4220_v41, 0.0  ;;  %v14457_v55 = vmax.f32 %v4221_v3, 0.0  ;;  %v14459_v1 = vmax.f32 %v4222_v13, 0.0 }
 0x69e   : > { %17758 = vst [vmem:[#allocation61_spill] sm:$0xff] %v14445_v40  ;;  %17759 = vst [vmem:[#allocation63_spill] sm:$0xff] %v14447_v25  ;;  %v14461_v0 = vmax.f32 %v4223_v30, 0.0  ;;  %v14463_v18 = vmax.f32 %v4224_v16, 0.0  ;;  %v14465_v57 = vmax.f32 %v4225_v51, 0.0  ;;  %v14467_v37 = vmax.f32 %v4226_v63, 0.0 }
 0x69f   : > { %17760 = vst [vmem:[#allocation65_spill] sm:$0xff] %v14449_v44  ;;  %17761 = vst [vmem:[#allocation67_spill] sm:$0xff] %v14451_v26  ;;  %v14469_v46 = vmax.f32 %v4227_v10, 0.0  ;;  %v14471_v35 = vmax.f32 %v4228_v43, 0.0  ;;  %v14473_v36 = vmax.f32 %v4229_v27, 0.0  ;;  %v14475_v41 = vmax.f32 %v4230_v60, 0.0 }
 0x6a0   : > { %17762 = vst [vmem:[#allocation74_spill] sm:$0xff] %v14453_v52  ;;  %17763 = vst [vmem:[#allocation80_spill] sm:$0xff] %v14455_v14  ;;  %v14477_v3 = vmax.f32 %v4231_v22, 0.0  ;;  %v14479_v13 = vmax.f32 %v4232_v33, 0.0  ;;  %v14481_v30 = vmax.f32 %v4233_v61, 0.0  ;;  %v14483_v16 = vmax.f32 %v4234_v20, 0.0 }
 0x6a1   : > { %17764 = vst [vmem:[#allocation81_spill] sm:$0xff] %v14457_v55  ;;  %17765 = vst [vmem:[#allocation82_spill] sm:$0xff] %v14459_v1  ;;  %v14485_v51 = vmax.f32 %v4235_v17, 0.0  ;;  %v14487_v63 = vmax.f32 %v4236_v15, 0.0  ;;  %v14489_v10 = vmax.f32 %v4237_v59, 0.0  ;;  %v4361_v17 = vrot.slane %v14455_v14, 6 }
 0x6a2   : > { %17766 = vst [vmem:[#allocation83_spill] sm:$0xff] %v14461_v0  ;;  %17767 = vst [vmem:[#allocation84_spill] sm:$0xff] %v14463_v18  ;;  %v4362_v15 = vrot.slane %v14457_v55, 6  ;;  %v4363_v59 = vrot.slane %v14459_v1, 6  ;;  %v4364_v11 = vrot.slane %v14461_v0, 6  ;;  %v4365_v47 = vrot.slane %v14463_v18, 6 }
 0x6a3   : > { %17768 = vst [vmem:[#allocation85_spill] sm:$0xff] %v14465_v57  ;;  %17769 = vst [vmem:[#allocation86_spill] sm:$0xff] %v14467_v37  ;;  %v4366_v56 = vrot.slane %v14465_v57, 6  ;;  %v4367_v29 = vrot.slane %v14467_v37, 6  ;;  %v4369_v43 = vrot.slane %v14471_v35, 6  ;;  %v4370_v27 = vrot.slane %v14473_v36, 6 }
 0x6a4   : > { %17770 = vst [vmem:[#allocation87_spill] sm:$0xff] %v14469_v46  ;;  %17771 = vst [vmem:[#allocation88_spill] sm:$0xff] %v14471_v35  ;;  %v4371_v60 = vrot.slane %v14475_v41, 6  ;;  %v4372_v54 = vrot.slane %v14477_v3, 6  ;;  %v4373_v22 = vrot.slane %v14479_v13, 6  ;;  %v4374_v33 = vrot.slane %v14481_v30, 6 }
 0x6a5   : > { %17772 = vst [vmem:[#allocation89_spill] sm:$0xff] %v14473_v36  ;;  %17773 = vst [vmem:[#allocation90_spill] sm:$0xff] %v14475_v41  ;;  %v4375_v61 = vrot.slane %v14483_v16, 6  ;;  %v4376_v20 = vrot.slane %v14485_v51, 6  ;;  %v4377_v21 = vrot.slane %v14487_v63, 6  ;;  %vm4289_vm6 = vcmp.eq.s32.totalorder %v17781_v39, 16 }
 0x6a6   : > { %5020 = vst [vmem:[#allocation3 + $0x4b0] sm:$0xff] %v4966_v50  ;;  %17774 = vst [vmem:[#allocation91_spill] sm:$0xff] %v14477_v3  ;;  %v4368_v50 = vrot.slane %v14469_v46, 6  ;;  %v17782_v46 = vld [vmem:[#allocation24_spill] sm:$0xff]  ;;  %v17783_v35 = vld [vmem:[#allocation25_spill] sm:$0xff]  ;;  %v4378_v3 = vrot.slane %v14489_v10, 6 }
 0x6a7   : > { %17775 = vst [vmem:[#allocation92_spill] sm:$0xff] %v14479_v13  ;;  %17776 = vst [vmem:[#allocation93_spill] sm:$0xff] %v14481_v30  ;;  %vm4290_vm14 = vcmp.eq.s32.totalorder %v17782_v46, 16  ;;  %vm4291_vm11 = vcmp.eq.s32.totalorder %v17783_v35, 16  ;;  %v17784_v36 = vld [vmem:[#allocation26_spill] sm:$0xff]  ;;  %v14539_v13 = vsel %vm4382_vm15, %v4372_v54, %v4373_v22  ;;  %v17789_v30 = vld [vmem:[#allocation28_spill] sm:$0xff] }
 0x6a8   : > { %17777 = vst [vmem:[#allocation94_spill] sm:$0xff] %v14483_v16  ;;  %17778 = vst [vmem:[#allocation95_spill] sm:$0xff] %v14485_v51  ;;  %vm4292_vm3 = vcmp.eq.s32.totalorder %v17784_v36, 16  ;;  %v14543_v16 = vsel %vm4382_vm15, %v4371_v60, %v4372_v54  ;;  %v17788_v51 = vld [vmem:[#allocation27_spill] sm:$0xff]  ;;  %vm4294_vm4 = vcmp.eq.s32.totalorder %v17789_v30, 16  ;;  %v17790_v41 = vld [vmem:[#allocation30_spill] sm:$0xff]  ;;  %v14559_v54 = vsel %vm4382_vm15, %v4375_v61, %v4376_v20 }
 0x6a9   : > { %17779 = vst [vmem:[#allocation96_spill] sm:$0xff] %v14487_v63  ;;  %17780 = vst [vmem:[#allocation97_spill] sm:$0xff] %v14489_v10  ;;  %v14547_v63 = vsel %vm4382_vm15, %v4370_v27, %v4371_v60  ;;  %vm4293_vm9 = vcmp.eq.s32.totalorder %v17788_v51, 16  ;;  %vm4295_vm7 = vcmp.eq.s32.totalorder %v17790_v41, 16  ;;  %v17791_v37 = vld [vmem:[#allocation32_spill] sm:$0xff]  ;;  %v14555_v10 = vsel %vm4382_vm15, %v4376_v20, %v4377_v21  ;;  %v17798_v57 = vld [vmem:[#allocation31_spill] sm:$0xff] }
 0x6aa   : > { %17785 = vst [vmem:[#allocation98_spill] sm:$0xff] %v14539_v13  ;;  %17786 = vst [vmem:[#allocation99_spill] sm:$0xff] %v14543_v16  ;;  %vm4296_vm5 = vcmp.eq.s32.totalorder %v17791_v37, 16  ;;  %v14563_v60 = vsel %vm4382_vm15, %v4374_v33, %v4375_v61  ;;  %v14567_v13 = vsel %vm4382_vm15, %v4373_v22, %v4374_v33  ;;  %v17796_v16 = vld [vmem:[#allocation34_spill] sm:$0xff]  ;;  %vm4299_vm1 = vcmp.eq.s32.totalorder %v17798_v57, 16  ;;  %v17799_v18 = vld [vmem:[#allocation33_spill] sm:$0xff] }
 0x6ab   : > { %17787 = vst [vmem:[#allocation100_spill] sm:$0xff] %v14547_v63  ;;  %17792 = vst [vmem:[#allocation101_spill] sm:$0xff] %v14555_v10  ;;  %vm4297_vm12 = vcmp.eq.s32.totalorder %v17796_v16, 16  ;;  %v17797_v63 = vld [vmem:[#allocation29_spill] sm:$0xff]  ;;  %v17800_v10 = vrot.slane %v14163_v42, 6  ;;  %v14581_v61 = vsel %vm4382_vm15, %v4377_v21, %v4378_v3  ;;  %v14585_v22 = vsel %vm4382_vm15, %v4369_v43, %v4370_v27 }
 0x6ac   : > { %17793 = vst [vmem:[#allocation102_spill] sm:$0xff] %v14559_v54  ;;  %17794 = vst [vmem:[#allocation103_spill] sm:$0xff] %v14563_v60  ;;  %vm4298_vm2 = vcmp.eq.s32.totalorder %v17797_v63, 16  ;;  %v14589_v33 = vsel %vm4382_vm15, %v4368_v50, %v4369_v43  ;;  %v17805_v54 = vld [vmem:[#allocation35_spill] sm:$0xff]  ;;  %v17806_v60 = vld [vmem:[#allocation36_spill] sm:$0xff]  ;;  %v14597_v21 = vsel %vm4382_vm15, %v4367_v29, %v4368_v50  ;;  %v14605_v43 = vsel %vm4382_vm15, %v4365_v47, %v4366_v56 }
 0x6ad   : > { %17795 = vst [vmem:[#allocation104_spill] sm:$0xff] %v14567_v13  ;;  %v14577_v20 = vsel %vm4382_vm15, %v4378_v3, %v17800_v10  ;;  %17802 = vst [vmem:[#allocation106_spill] sm:$0xff] %v14581_v61  ;;  %v17807_v42 = vld [vmem:[#allocation37_spill] sm:$0xff]  ;;  %v17808_v10 = vld [vmem:[#allocation38_spill] sm:$0xff]  ;;  %v14601_v3 = vsel %vm4382_vm15, %v4366_v56, %v4367_v29  ;;  %v14609_v27 = vsel %vm4382_vm15, %v4364_v11, %v4365_v47  ;;  %v17881_v50 = vrot.slane %v14416_v58, 6 }
 0x6ae   : > { %17801 = vst [vmem:[#allocation105_spill] sm:$0xff] %v14577_v20  ;;  %17803 = vst [vmem:[#allocation107_spill] sm:$0xff] %v14585_v22  ;;  %v17813_v20 = vld [vmem:[#allocation39_spill] sm:$0xff]  ;;  %v14617_v29 = vsel %vm4382_vm15, %v4363_v59, %v4364_v11  ;;  %v14621_v56 = vsel %vm4382_vm15, %v4362_v15, %v4363_v59  ;;  %v14625_v47 = vsel %vm4382_vm15, %v4361_v17, %v4362_v15  ;;  %v17820_v22 = vrot.slane %v14453_v52, 6  ;;  %v17888_v13 = vld [vmem:[#allocation72_spill] sm:$0xff] }
 0x6af   : > { %17804 = vst [vmem:[#allocation108_spill] sm:$0xff] %v14589_v33  ;;  %17809 = vst [vmem:[#allocation109_spill] sm:$0xff] %v14597_v21  ;;  %v17849_v52 = vrot.slane %v14437_v48, 6  ;;  %v17857_v11 = vrot.slane %v14433_v31, 6  ;;  %v17883_v21 = vrot.slane %v14413_v12, 6  ;;  %vm4331_vm0 = vcmp.eq.s32.totalorder %v17888_v13, 16 }
 0x6b0   : > { %17810 = vst [vmem:[#allocation110_spill] sm:$0xff] %v14601_v3  ;;  %17811 = vst [vmem:[#allocation111_spill] sm:$0xff] %v14605_v43  ;;  %v14631_v33 = vsel %vm4382_vm15, %v17820_v22, %v4361_v17  ;;  %v17826_v59 = vmov %v17820_v22  ;;  %v17830_v17 = vrot.slane %v14449_v44, 6  ;;  %v17867_v3 = vrot.slane %v14427_v49, 6 }
 0x6b1   : > { %17812 = vst [vmem:[#allocation112_spill] sm:$0xff] %v14609_v27  ;;  %17817 = vst [vmem:[#allocation113_spill] sm:$0xff] %v14617_v29  ;;  %v17827_v27 = vrot.slane %v14451_v26, 6  ;;  %v17855_v26 = vrot.slane %v14435_v4, 6  ;;  %v17871_v44 = vrot.slane %v14423_v53, 6  ;;  %v17893_v61 = vrot.slane %v14404_v6, 6 }
 0x6b2   : > { %17818 = vst [vmem:[#allocation114_spill] sm:$0xff] %v14621_v56  ;;  %17819 = vst [vmem:[#allocation115_spill] sm:$0xff] %v14625_v47  ;;  %v17832_v0 = vmov %v17830_v17  ;;  %v17833_v56 = vrot.slane %v14447_v25, 6  ;;  %v17884_v25 = vmov %v17883_v21  ;;  %v17895_v13 = vrot.slane %v14401_v5, 6 }
 0x6b3   : > { %17821 = vst [vmem:[#allocation116_spill] sm:$0xff] %v14631_v33  ;;  %v14643_v15 = vsel %vm4382_vm15, %v17827_v27, %v17826_v59  ;;  %v17829_v29 = vmov %v17827_v27  ;;  %v17836_v27 = vrot.slane %v14445_v40, 6  ;;  %v17879_v40 = vrot.slane %v14419_v23, 6 }
 0x6b4   : > { %17828 = vst [vmem:[#allocation117_spill] sm:$0xff] %v14643_v15  ;;  %v14651_v22 = vsel %vm4382_vm15, %v17830_v17, %v17829_v29  ;;  %v14659_v1 = vsel %vm4382_vm15, %v17833_v56, %v17832_v0  ;;  %v17835_v47 = vmov %v17833_v56  ;;  %v17843_v0 = vrot.slane %v14443_v8, 6  ;;  %v17887_v8 = vld [vmem:[#allocation71_spill] sm:$0xff] }
 0x6b5   : > { %17831 = vst [vmem:[#allocation118_spill] sm:$0xff] %v14651_v22  ;;  %17834 = vst [vmem:[#allocation119_spill] sm:$0xff] %v14659_v1  ;;  %v14667_v59 = vsel %vm4382_vm15, %v17836_v27, %v17835_v47  ;;  %v17842_v14 = vmov %v17836_v27  ;;  %v17845_v47 = vrot.slane %v14441_v9, 6  ;;  %v17847_v17 = vrot.slane %v14439_v62, 6 }
 0x6b6   : > { %17837 = vst [vmem:[#allocation120_spill] sm:$0xff] %v14667_v59  ;;  %v4408_v56 = vsel %vm4382_vm15, %v17843_v0, %v17842_v14  ;;  %v17844_v15 = vmov %v17843_v0  ;;  %v17859_v22 = vrot.slane %v14431_v28, 6  ;;  %v17861_v0 = vrot.slane %v14429_v38, 6 }
 0x6b7   : > { %v4409_v27 = vsel %vm4382_vm15, %v17845_v47, %v17844_v15  ;;  %v17846_v29 = vmov %v17845_v47  ;;  %v17848_v55 = vmov %v17847_v17  ;;  %v17854_v47 = vmov %v17849_v52 }
 0x6b8   : > { %v4410_v33 = vsel %vm4382_vm15, %v17847_v17, %v17846_v29  ;;  %v4411_v14 = vsel %vm4382_vm15, %v17849_v52, %v17848_v55  ;;  %v4412_v29 = vsel %vm4382_vm15, %v17855_v26, %v17854_v47  ;;  %v17856_v17 = vmov %v17855_v26 }
 0x6b9   : > { %v4413_v52 = vsel %vm4382_vm15, %v17857_v11, %v17856_v17  ;;  %v17858_v55 = vmov %v17857_v11  ;;  %v17860_v43 = vmov %v17859_v22  ;;  %v17866_v17 = vmov %v17861_v0 }
 0x6ba   : > { %v4414_v15 = vsel %vm4382_vm15, %v17859_v22, %v17858_v55  ;;  %v4415_v26 = vsel %vm4382_vm15, %v17861_v0, %v17860_v43  ;;  %v4416_v22 = vsel %vm4382_vm15, %v17867_v3, %v17866_v17  ;;  %v17868_v55 = vmov %v17867_v3 }
 0x6bb   : > { %v17869_v59 = vrot.slane %v14425_v7, 6  ;;  %v17872_v1 = vmov %v17871_v44  ;;  %v17873_v47 = vrot.slane %v14421_v2, 6  ;;  %v17885_v17 = vrot.slane %v14410_v19, 6 }
 0x6bc   : > { %vm4330_vm13 = vcmp.eq.s32.totalorder %v17887_v8, 16  ;;  %v17891_v9 = vrot.slane %v14407_v34, 6  ;;  %v17896_v8 = vmov %v17895_v13 }
 0x6bd   : > { %v4417_v43 = vsel %vm4382_vm15, %v17869_v59, %v17868_v55  ;;  %v17870_v0 = vmov %v17869_v59  ;;  %v4419_v3 = vsel %vm4382_vm15, %v17873_v47, %v17872_v1  ;;  %v17878_v55 = vmov %v17873_v47 }
 0x6be   : > { %v4418_v11 = vsel %vm4382_vm15, %v17871_v44, %v17870_v0  ;;  %v4420_v44 = vsel %vm4382_vm15, %v17879_v40, %v17878_v55  ;;  %v17880_v0 = vmov %v17879_v40  ;;  %v17882_v47 = vmov %v17881_v50  ;;  %v17886_v55 = vld [vmem:[#allocation70_spill] sm:$0xff] }
 0x6bf   : > { %v4421_v1 = vsel %vm4382_vm15, %v17881_v50, %v17880_v0  ;;  %v4422_v59 = vsel %vm4382_vm15, %v17883_v21, %v17882_v47  ;;  %v4423_v40 = vsel %vm4382_vm15, %v17885_v17, %v17884_v25  ;;  %vm4329_vm8 = vcmp.eq.s32.totalorder %v17886_v55, 16  ;;  %v17889_v50 = vld [vmem:[#allocation73_spill] sm:$0xff] }
 0x6c0   : > { %vm4332_vm10 = vcmp.eq.s32.totalorder %v17889_v50, 16  ;;  %v17890_v0 = vmov %v17885_v17  ;;  %v17892_v47 = vmov %v17891_v9  ;;  %v17894_v17 = vmov %v17893_v61 }
 0x6c1   : > { %v4424_v21 = vsel %vm4382_vm15, %v17891_v9, %v17890_v0  ;;  %v4425_v25 = vsel %vm4382_vm15, %v17893_v61, %v17892_v47  ;;  %v4426_v50 = vsel %vm4382_vm15, %v17895_v13, %v17894_v17  ;;  %v17897_v55 = vrot.slane %v14161_v45, 6  ;;  %v17924_v17 = vld [vmem:[#allocation57_spill] sm:$0xff] }
 0x6c2   : > { %v14813_v0 = vsel %vm4289_vm6, %v14390_v24, %v14161_v45  ;;  %v14823_v13 = vsel %vm4291_vm11, %v4426_v50, %v14404_v6  ;;  %v14833_v24 = vsel %vm4293_vm9, %v4424_v21, %v14410_v19  ;;  %v14843_v50 = vsel %vm4295_vm7, %v4422_v59, %v14416_v58 }
 0x6c3   : > { %v4427_v9 = vsel %vm4382_vm15, %v17897_v55, %v17896_v8  ;;  %17898 = vst [vmem:[#allocation121_spill] sm:$0xff] %v14813_v0  ;;  %17900 = vst [vmem:[#allocation123_spill] sm:$0xff] %v14823_v13  ;;  %v14828_v8 = vsel %vm4292_vm3, %v4425_v25, %v14407_v34  ;;  %v14838_v55 = vsel %vm4294_vm4, %v4423_v40, %v14413_v12  ;;  %vm17909_vm7 = vcmp.eq.s32.totalorder %v17799_v18, 16  ;;  %v17921_v25 = vld [vmem:[#allocation40_spill] sm:$0xff] }
 0x6c4   : > { %v14818_v61 = vsel %vm4290_vm14, %v4427_v9, %v14401_v5  ;;  %17901 = vst [vmem:[#allocation124_spill] sm:$0xff] %v14828_v8  ;;  %17902 = vst [vmem:[#allocation125_spill] sm:$0xff] %v14833_v24  ;;  %v14848_v47 = vsel %vm4296_vm5, %v4421_v1, %v14419_v23  ;;  %v14853_v21 = vsel %vm4297_vm12, %v4420_v44, %v14421_v2  ;;  %vm17911_vm5 = vcmp.eq.s32.totalorder %v17805_v54, 16  ;;  %v17925_v9 = vld [vmem:[#allocation41_spill] sm:$0xff]  ;;  %v17958_v24 = vld [vmem:[#allocation48_spill] sm:$0xff] }
 0x6c5   : > { %17899 = vst [vmem:[#allocation122_spill] sm:$0xff] %v14818_v61  ;;  %17903 = vst [vmem:[#allocation126_spill] sm:$0xff] %v14838_v55  ;;  %v14858_v40 = vsel %vm4298_vm2, %v4419_v3, %v14423_v53  ;;  %v14863_v59 = vsel %vm4299_vm1, %v4418_v11, %v14425_v7  ;;  %v14868_v1 = vsel %vm17909_vm7, %v4417_v43, %v14427_v49  ;;  %vm17913_vm12 = vcmp.eq.s32.totalorder %v17806_v60, 16  ;;  %v17963_v8 = vld [vmem:[#allocation49_spill] sm:$0xff]  ;;  %v17968_v61 = vld [vmem:[#allocation50_spill] sm:$0xff] }
 0x6c6   : > { %17904 = vst [vmem:[#allocation127_spill] sm:$0xff] %v14843_v50  ;;  %17905 = vst [vmem:[#allocation128_spill] sm:$0xff] %v14848_v47  ;;  %v14873_v44 = vsel %vm17911_vm5, %v4416_v22, %v14429_v38  ;;  %v14878_v3 = vsel %vm17913_vm12, %v4415_v26, %v14431_v28  ;;  %vm17915_vm2 = vcmp.eq.s32.totalorder %v17807_v42, 16  ;;  %vm17917_vm1 = vcmp.eq.s32.totalorder %v17808_v10, 16  ;;  %v17953_v50 = vld [vmem:[#allocation47_spill] sm:$0xff] }
 0x6c7   : > { %17906 = vst [vmem:[#allocation129_spill] sm:$0xff] %v14853_v21  ;;  %17907 = vst [vmem:[#allocation130_spill] sm:$0xff] %v14858_v40  ;;  %v14883_v11 = vsel %vm17915_vm2, %v4414_v15, %v14433_v31  ;;  %v14888_v43 = vsel %vm17917_vm1, %v4413_v52, %v14435_v4  ;;  %vm17919_vm15 = vcmp.eq.s32.totalorder %v17813_v20, 16  ;;  %vm17922_vm6 = vcmp.eq.s32.totalorder %v17921_v25, 16  ;;  %v17942_v40 = vld [vmem:[#allocation119_spill] sm:$0xff] }
 0x6c8   : > { %17908 = vst [vmem:[#allocation131_spill] sm:$0xff] %v14863_v59  ;;  %17910 = vst [vmem:[#allocation132_spill] sm:$0xff] %v14868_v1  ;;  %v14893_v22 = vsel %vm17919_vm15, %v4412_v29, %v14437_v48  ;;  %v14898_v26 = vsel %vm17922_vm6, %v4411_v14, %v14439_v62  ;;  %vm17926_vm14 = vcmp.eq.s32.totalorder %v17925_v9, 16  ;;  %v17937_v1 = vld [vmem:[#allocation120_spill] sm:$0xff]  ;;  %v17946_v21 = vld [vmem:[#allocation67_spill] sm:$0xff]  ;;  %vm17954_vm5 = vcmp.eq.s32.totalorder %v17953_v50, 16 }
 0x6c9   : > { %17912 = vst [vmem:[#allocation133_spill] sm:$0xff] %v14873_v44  ;;  %17914 = vst [vmem:[#allocation134_spill] sm:$0xff] %v14878_v3  ;;  %v14903_v15 = vsel %vm17926_vm14, %v4410_v33, %v17924_v17  ;;  %v17929_v3 = vld [vmem:[#allocation42_spill] sm:$0xff]  ;;  %v17933_v44 = vld [vmem:[#allocation43_spill] sm:$0xff]  ;;  %vm17959_vm12 = vcmp.eq.s32.totalorder %v17958_v24, 16  ;;  %vm17964_vm2 = vcmp.eq.s32.totalorder %v17963_v8, 16 }
 0x6ca   : > { %17916 = vst [vmem:[#allocation135_spill] sm:$0xff] %v14883_v11  ;;  %17918 = vst [vmem:[#allocation136_spill] sm:$0xff] %v14888_v43  ;;  %v17928_v11 = vld [vmem:[#allocation59_spill] sm:$0xff]  ;;  %vm17930_vm11 = vcmp.eq.s32.totalorder %v17929_v3, 16  ;;  %v17932_v43 = vld [vmem:[#allocation61_spill] sm:$0xff]  ;;  %vm17934_vm3 = vcmp.eq.s32.totalorder %v17933_v44, 16 }
 0x6cb   : > { %17920 = vst [vmem:[#allocation137_spill] sm:$0xff] %v14893_v22  ;;  %17923 = vst [vmem:[#allocation138_spill] sm:$0xff] %v14898_v26  ;;  %v14908_v52 = vsel %vm17930_vm11, %v4409_v27, %v17928_v11  ;;  %v14913_v29 = vsel %vm17934_vm3, %v4408_v56, %v17932_v43  ;;  %v17936_v22 = vld [vmem:[#allocation63_spill] sm:$0xff]  ;;  %v17938_v59 = vld [vmem:[#allocation44_spill] sm:$0xff]  ;;  %vm17969_vm1 = vcmp.eq.s32.totalorder %v17968_v61, 16 }
 0x6cc   : > { %17927 = vst [vmem:[#allocation57_spill] sm:$0xff] %v14903_v15  ;;  %17931 = vst [vmem:[#allocation59_spill] sm:$0xff] %v14908_v52  ;;  %vm17939_vm9 = vcmp.eq.s32.totalorder %v17938_v59, 16  ;;  %v17941_v26 = vld [vmem:[#allocation65_spill] sm:$0xff]  ;;  %v17947_v27 = vld [vmem:[#allocation118_spill] sm:$0xff] }
 0x6cd   : > { %17935 = vst [vmem:[#allocation61_spill] sm:$0xff] %v14913_v29  ;;  %v14919_v14 = vsel %vm17939_vm9, %v17937_v1, %v17936_v22  ;;  %v17943_v33 = vld [vmem:[#allocation45_spill] sm:$0xff]  ;;  %v17948_v52 = vld [vmem:[#allocation46_spill] sm:$0xff]  ;;  %v17956_v1 = vld [vmem:[#allocation80_spill] sm:$0xff] }
 0x6ce   : > { %17940 = vst [vmem:[#allocation63_spill] sm:$0xff] %v14919_v14  ;;  %vm17944_vm4 = vcmp.eq.s32.totalorder %v17943_v33, 16  ;;  %vm17949_vm7 = vcmp.eq.s32.totalorder %v17948_v52, 16  ;;  %v17951_v56 = vld [vmem:[#allocation74_spill] sm:$0xff]  ;;  %v17952_v29 = vld [vmem:[#allocation117_spill] sm:$0xff]  ;;  %v17957_v14 = vld [vmem:[#allocation116_spill] sm:$0xff] }
 0x6cf   : > { %v14925_v15 = vsel %vm17944_vm4, %v17942_v40, %v17941_v26  ;;  %v14931_v47 = vsel %vm17949_vm7, %v17947_v27, %v17946_v21  ;;  %v14937_v55 = vsel %vm17954_vm5, %v17952_v29, %v17951_v56  ;;  %v14943_v0 = vsel %vm17959_vm12, %v17957_v14, %v17956_v1  ;;  %v17961_v40 = vld [vmem:[#allocation81_spill] sm:$0xff]  ;;  %v17966_v27 = vld [vmem:[#allocation82_spill] sm:$0xff]  ;;  %v17971_v29 = vld [vmem:[#allocation83_spill] sm:$0xff] }
 0x6d0   : > { %17945 = vst [vmem:[#allocation120_spill] sm:$0xff] %v14925_v15  ;;  %17950 = vst [vmem:[#allocation65_spill] sm:$0xff] %v14931_v47  ;;  %v17962_v15 = vld [vmem:[#allocation115_spill] sm:$0xff]  ;;  %v17967_v47 = vld [vmem:[#allocation114_spill] sm:$0xff] }
 0x6d1   : > { %17955 = vst [vmem:[#allocation119_spill] sm:$0xff] %v14937_v55  ;;  %17960 = vst [vmem:[#allocation67_spill] sm:$0xff] %v14943_v0  ;;  %v14949_v13 = vsel %vm17964_vm2, %v17962_v15, %v17961_v40  ;;  %v14955_v45 = vsel %vm17969_vm1, %v17967_v47, %v17966_v27  ;;  %v17972_v55 = vld [vmem:[#allocation113_spill] sm:$0xff]  ;;  %v17973_v50 = vld [vmem:[#allocation51_spill] sm:$0xff] }
 0x6d2   : > { %17965 = vst [vmem:[#allocation118_spill] sm:$0xff] %v14949_v13  ;;  %17970 = vst [vmem:[#allocation74_spill] sm:$0xff] %v14955_v45  ;;  %vm17974_vm15 = vcmp.eq.s32.totalorder %v17973_v50, 16  ;;  %v17976_v14 = vld [vmem:[#allocation84_spill] sm:$0xff]  ;;  %v17981_v15 = vld [vmem:[#allocation85_spill] sm:$0xff] }
 0x6d3   : > { %v14961_v52 = vsel %vm17974_vm15, %v17972_v55, %v17971_v29  ;;  %v17977_v0 = vld [vmem:[#allocation112_spill] sm:$0xff]  ;;  %v17982_v13 = vld [vmem:[#allocation111_spill] sm:$0xff]  ;;  %v17983_v8 = vld [vmem:[#allocation53_spill] sm:$0xff] }
 0x6d4   : > { %17975 = vst [vmem:[#allocation117_spill] sm:$0xff] %v14961_v52  ;;  %v17978_v24 = vld [vmem:[#allocation52_spill] sm:$0xff]  ;;  %vm17984_vm14 = vcmp.eq.s32.totalorder %v17983_v8, 16  ;;  %v17986_v47 = vld [vmem:[#allocation86_spill] sm:$0xff]  ;;  %v17991_v55 = vld [vmem:[#allocation87_spill] sm:$0xff] }
 0x6d5   : > { %vm17979_vm6 = vcmp.eq.s32.totalorder %v17978_v24, 16  ;;  %v14973_v59 = vsel %vm17984_vm14, %v17982_v13, %v17981_v15  ;;  %v17987_v45 = vld [vmem:[#allocation110_spill] sm:$0xff]  ;;  %v17992_v52 = vld [vmem:[#allocation109_spill] sm:$0xff]  ;;  %v17993_v50 = vld [vmem:[#allocation55_spill] sm:$0xff]  ;;  %vm4576_vm14 = vcmp.eq.s32.totalorder %v17788_v51, 23 }
 0x6d6   : > { %v14967_v33 = vsel %vm17979_vm6, %v17977_v0, %v17976_v14  ;;  %17985 = vst [vmem:[#allocation116_spill] sm:$0xff] %v14973_v59  ;;  %v17988_v61 = vld [vmem:[#allocation54_spill] sm:$0xff]  ;;  %vm17994_vm3 = vcmp.eq.s32.totalorder %v17993_v50, 16  ;;  %v17996_v0 = vld [vmem:[#allocation88_spill] sm:$0xff]  ;;  %v18001_v13 = vld [vmem:[#allocation89_spill] sm:$0xff]  ;;  %vm4572_vm6 = vcmp.eq.s32.totalorder %v17781_v39, 23 }
 0x6d7   : > { %17980 = vst [vmem:[#allocation80_spill] sm:$0xff] %v14967_v33  ;;  %vm17989_vm11 = vcmp.eq.s32.totalorder %v17988_v61, 16  ;;  %v14985_v3 = vsel %vm17994_vm3, %v17992_v52, %v17991_v55  ;;  %v17997_v33 = vld [vmem:[#allocation108_spill] sm:$0xff]  ;;  %v17998_v24 = vld [vmem:[#allocation58_spill] sm:$0xff]  ;;  %v18002_v59 = vld [vmem:[#allocation107_spill] sm:$0xff]  ;;  %vm4578_vm3 = vcmp.eq.s32.totalorder %v17790_v41, 23 }
 0x6d8   : > { %v14979_v44 = vsel %vm17989_vm11, %v17987_v45, %v17986_v47  ;;  %17995 = vst [vmem:[#allocation115_spill] sm:$0xff] %v14985_v3  ;;  %vm17999_vm9 = vcmp.eq.s32.totalorder %v17998_v24, 16  ;;  %v18003_v8 = vld [vmem:[#allocation60_spill] sm:$0xff]  ;;  %v18006_v45 = vld [vmem:[#allocation90_spill] sm:$0xff]  ;;  %v18011_v52 = vld [vmem:[#allocation91_spill] sm:$0xff]  ;;  %vm4577_vm11 = vcmp.eq.s32.totalorder %v17789_v30, 23 }
 0x6d9   : > { %17990 = vst [vmem:[#allocation81_spill] sm:$0xff] %v14979_v44  ;;  %v14991_v9 = vsel %vm17999_vm9, %v17997_v33, %v17996_v0  ;;  %vm18004_vm4 = vcmp.eq.s32.totalorder %v18003_v8, 16  ;;  %v18007_v44 = vld [vmem:[#allocation100_spill] sm:$0xff]  ;;  %v18008_v61 = vld [vmem:[#allocation62_spill] sm:$0xff]  ;;  %v18012_v3 = vld [vmem:[#allocation99_spill] sm:$0xff] }
 0x6da   : > { %18000 = vst [vmem:[#allocation82_spill] sm:$0xff] %v14991_v9  ;;  %v14997_v25 = vsel %vm18004_vm4, %v18002_v59, %v18001_v13  ;;  %vm18009_vm7 = vcmp.eq.s32.totalorder %v18008_v61, 16  ;;  %v18013_v50 = vld [vmem:[#allocation64_spill] sm:$0xff]  ;;  %v18017_v9 = vld [vmem:[#allocation98_spill] sm:$0xff]  ;;  %v18021_v59 = vld [vmem:[#allocation93_spill] sm:$0xff] }
 0x6db   : > { %18005 = vst [vmem:[#allocation114_spill] sm:$0xff] %v14997_v25  ;;  %v15003_v20 = vsel %vm18009_vm7, %v18007_v44, %v18006_v45  ;;  %vm18014_vm5 = vcmp.eq.s32.totalorder %v18013_v50, 16  ;;  %v18016_v33 = vld [vmem:[#allocation92_spill] sm:$0xff]  ;;  %v18018_v24 = vld [vmem:[#allocation66_spill] sm:$0xff]  ;;  %v18028_v61 = vld [vmem:[#allocation69_spill] sm:$0xff] }
 0x6dc   : > { %18010 = vst [vmem:[#allocation83_spill] sm:$0xff] %v15003_v20  ;;  %v15009_v10 = vsel %vm18014_vm5, %v18012_v3, %v18011_v52  ;;  %vm18019_vm12 = vcmp.eq.s32.totalorder %v18018_v24, 16  ;;  %v18022_v25 = vld [vmem:[#allocation104_spill] sm:$0xff]  ;;  %v18026_v44 = vld [vmem:[#allocation94_spill] sm:$0xff]  ;;  %v18027_v20 = vld [vmem:[#allocation103_spill] sm:$0xff]  ;;  %vm18029_vm1 = vcmp.eq.s32.totalorder %v18028_v61, 16 }
 0x6dd   : > { %18015 = vst [vmem:[#allocation113_spill] sm:$0xff] %v15009_v10  ;;  %v15015_v42 = vsel %vm18019_vm12, %v18017_v9, %v18016_v33  ;;  %v18023_v8 = vld [vmem:[#allocation68_spill] sm:$0xff]  ;;  %v15027_v54 = vsel %vm18029_vm1, %v18027_v20, %v18026_v44  ;;  %v18031_v3 = vld [vmem:[#allocation95_spill] sm:$0xff]  ;;  %v18032_v10 = vld [vmem:[#allocation102_spill] sm:$0xff]  ;;  %v4648_v61 = vrot.slane %v17976_v14, 2  ;;  %v4652_v24 = vrot.slane %v17996_v0, 2 }
 0x6de   : > { %18020 = vst [vmem:[#allocation84_spill] sm:$0xff] %v15015_v42  ;;  %vm18024_vm2 = vcmp.eq.s32.totalorder %v18023_v8, 16  ;;  %18030 = vst [vmem:[#allocation85_spill] sm:$0xff] %v15027_v54  ;;  %v18033_v50 = vld [vmem:[#allocation70_spill] sm:$0xff]  ;;  %v15033_v18 = vsel %vm4329_vm8, %v18032_v10, %v18031_v3  ;;  %v18035_v9 = vld [vmem:[#allocation96_spill] sm:$0xff]  ;;  %v4645_v8 = vrot.slane %v17961_v40, 2 }
 0x6df   : > { %v15021_v60 = vsel %vm18024_vm2, %v18022_v25, %v18021_v59  ;;  %18034 = vst [vmem:[#allocation111_spill] sm:$0xff] %v15033_v18  ;;  %v18036_v42 = vld [vmem:[#allocation101_spill] sm:$0xff]  ;;  %v18043_v20 = vld [vmem:[#allocation79_spill] sm:$0xff]  ;;  %v4650_v10 = vrot.slane %v17986_v47, 2  ;;  %v4651_v18 = vrot.slane %v17991_v55, 2  ;;  %v4655_v40 = vrot.slane %v18011_v52, 2 }
 0x6e0   : > { %18025 = vst [vmem:[#allocation112_spill] sm:$0xff] %v15021_v60  ;;  %v15039_v57 = vsel %vm4330_vm13, %v18036_v42, %v18035_v9  ;;  %v18039_v25 = vld [vmem:[#allocation97_spill] sm:$0xff]  ;;  %v18040_v60 = vld [vmem:[#allocation106_spill] sm:$0xff]  ;;  %v4643_v42 = vrot.slane %v17951_v56, 2  ;;  %v4653_v56 = vrot.slane %v18001_v13, 2  ;;  %v4658_v14 = vrot.slane %v18026_v44, 2 }
 0x6e1   : > { %18038 = vst [vmem:[#allocation86_spill] sm:$0xff] %v15039_v57  ;;  %v15045_v63 = vsel %vm4331_vm0, %v18040_v60, %v18039_v25  ;;  %v18044_v54 = vld [vmem:[#allocation105_spill] sm:$0xff]  ;;  %v4644_v57 = vrot.slane %v17956_v1, 2  ;;  %v4646_v60 = vrot.slane %v17966_v27, 2  ;;  %v4654_v1 = vrot.slane %v18006_v45, 2  ;;  %v18059_v44 = vld [vmem:[#allocation34_spill] sm:$0xff] }
 0x6e2   : > { %18042 = vst [vmem:[#allocation110_spill] sm:$0xff] %v15045_v63  ;;  %v15051_v16 = vsel %vm4332_vm10, %v18044_v54, %v18043_v20  ;;  %v4647_v63 = vrot.slane %v17971_v29, 2  ;;  %v4649_v54 = vrot.slane %v17981_v15, 2  ;;  %v4656_v27 = vrot.slane %v18016_v33, 2  ;;  %v18302_v51 = vld [vmem:[#allocation71_spill] sm:$0xff]  ;;  %v18307_v39 = vld [vmem:[#allocation72_spill] sm:$0xff] }
 0x6e3   : > { %18046 = vst [vmem:[#allocation87_spill] sm:$0xff] %v15051_v16  ;;  %v4657_v29 = vrot.slane %v18021_v59, 2  ;;  %v4659_v15 = vrot.slane %v18031_v3, 2  ;;  %vm4573_vm0 = vcmp.eq.s32.totalorder %v17782_v46, 23  ;;  %vm4574_vm10 = vcmp.eq.s32.totalorder %v17783_v35, 23  ;;  %v18060_v3 = vld [vmem:[#allocation29_spill] sm:$0xff] }
 0x6e4   : > { %vm4575_vm13 = vcmp.eq.s32.totalorder %v17784_v36, 23  ;;  %v4660_v47 = vrot.slane %v18035_v9, 2  ;;  %v4661_v55 = vrot.slane %v18039_v25, 2  ;;  %vm18047_vm8 = vcmp.lt.s32.totalorder %v13152_v32, 6  ;;  %v18061_v9 = vld [vmem:[#allocation31_spill] sm:$0xff] }
 0x6e5   : > { %v15100_v0 = vsel %vm18047_vm8, %v4654_v1, %v4655_v40  ;;  %vm18049_vm15 = vmmov %vm18047_vm8  ;;  %vm4579_vm12 = vcmp.eq.s32.totalorder %v17791_v37, 23  ;;  %v18062_v25 = vrot.slane %v18043_v20, 2  ;;  %v18071_v16 = vld [vmem:[#allocation35_spill] sm:$0xff]  ;;  %v18072_v20 = vld [vmem:[#allocation36_spill] sm:$0xff] }
 0x6e6   : > { %18048 = vst [vmem:[#allocation109_spill] sm:$0xff] %v15100_v0  ;;  %v15104_v13 = vsel %vm18049_vm15, %v4653_v56, %v4654_v1  ;;  %vm18051_vm9 = vmmov %vm18047_vm8  ;;  %v18098_v0 = vrot.slane %v17946_v21, 2  ;;  %v18289_v37 = vld [vmem:[#allocation68_spill] sm:$0xff] }
 0x6e7   : > { %18050 = vst [vmem:[#allocation88_spill] sm:$0xff] %v15104_v13  ;;  %v15112_v45 = vsel %vm18051_vm9, %v4658_v14, %v4659_v15  ;;  %vm18053_vm4 = vmmov %vm18047_vm8  ;;  %v18101_v13 = vrot.slane %v17941_v26, 2 }
 0x6e8   : > { %18052 = vst [vmem:[#allocation108_spill] sm:$0xff] %v15112_v45  ;;  %v15116_v52 = vsel %vm18053_vm4, %v4657_v29, %v4658_v14  ;;  %vm18055_vm7 = vmmov %vm18053_vm4  ;;  %v18070_v14 = vld [vmem:[#allocation33_spill] sm:$0xff] }
 0x6e9   : > { %18054 = vst [vmem:[#allocation89_spill] sm:$0xff] %v15116_v52  ;;  %v15120_v33 = vsel %vm18055_vm7, %v4656_v27, %v4657_v29  ;;  %vm18057_vm5 = vmmov %vm18053_vm4  ;;  %v18093_v52 = vld [vmem:[#allocation42_spill] sm:$0xff] }
 0x6ea   : > { %18056 = vst [vmem:[#allocation107_spill] sm:$0xff] %v15120_v33  ;;  %v15124_v59 = vsel %vm18057_vm5, %v4655_v40, %v4656_v27  ;;  %vm18063_vm15 = vmmov %vm18053_vm4  ;;  %v15142_v40 = vsel %vm18053_vm4, %v4659_v15, %v4660_v47  ;;  %vm4591_vm8 = vcmp.eq.s32.totalorder %v18093_v52, 23  ;;  %v18094_v33 = vld [vmem:[#allocation43_spill] sm:$0xff]  ;;  %v18264_v52 = vld [vmem:[#allocation58_spill] sm:$0xff] }
 0x6eb   : > { %18058 = vst [vmem:[#allocation90_spill] sm:$0xff] %v15124_v59  ;;  %v15134_v1 = vsel %vm18063_vm15, %v4661_v55, %v18062_v25  ;;  %vm18065_vm9 = vmmov %vm18053_vm4  ;;  %v18073_v25 = vld [vmem:[#allocation37_spill] sm:$0xff]  ;;  %v18095_v59 = vld [vmem:[#allocation44_spill] sm:$0xff] }
 0x6ec   : > { %18064 = vst [vmem:[#allocation100_spill] sm:$0xff] %v15134_v1  ;;  %v15138_v29 = vsel %vm18065_vm9, %v4660_v47, %v4661_v55  ;;  %18067 = vst [vmem:[#allocation99_spill] sm:$0xff] %v15142_v40  ;;  %v18082_v1 = vld [vmem:[#allocation38_spill] sm:$0xff]  ;;  %v18084_v40 = vld [vmem:[#allocation40_spill] sm:$0xff] }
 0x6ed   : > { %18066 = vst [vmem:[#allocation91_spill] sm:$0xff] %v15138_v29  ;;  %vm18068_vm7 = vmmov %vm18053_vm4  ;;  %v18083_v29 = vld [vmem:[#allocation39_spill] sm:$0xff]  ;;  %v18305_v35 = vld [vmem:[#allocation110_spill] sm:$0xff] }
 0x6ee   : > { %v15146_v27 = vsel %vm18068_vm7, %v4652_v24, %v4653_v56  ;;  %vm18074_vm2 = vmmov %vm18053_vm4 }
 0x6ef   : > { %18069 = vst [vmem:[#allocation92_spill] sm:$0xff] %v15146_v27  ;;  %v15154_v55 = vsel %vm18074_vm2, %v4651_v18, %v4652_v24  ;;  %vm18076_vm9 = vmmov %vm18074_vm2  ;;  %v18085_v24 = vld [vmem:[#allocation41_spill] sm:$0xff] }
 0x6f0   : > { %18075 = vst [vmem:[#allocation98_spill] sm:$0xff] %v15154_v55  ;;  %v15158_v15 = vsel %vm18076_vm9, %v4650_v10, %v4651_v18  ;;  %vm18078_vm4 = vmmov %vm18074_vm2  ;;  %v18103_v55 = vmov %v18101_v13 }
 0x6f1   : > { %18077 = vst [vmem:[#allocation93_spill] sm:$0xff] %v15158_v15  ;;  %v15162_v56 = vsel %vm18078_vm4, %v4649_v54, %v4650_v10  ;;  %vm18080_vm7 = vmmov %vm18074_vm2  ;;  %v18104_v15 = vrot.slane %v17936_v22, 2 }
 0x6f2   : > { %18079 = vst [vmem:[#allocation104_spill] sm:$0xff] %v15162_v56  ;;  %v15166_v47 = vsel %vm18080_vm7, %v4648_v61, %v4649_v54  ;;  %vm18086_vm5 = vmmov %vm18074_vm2  ;;  %v18105_v56 = vld [vmem:[#allocation46_spill] sm:$0xff] }
 0x6f3   : > { %18081 = vst [vmem:[#allocation94_spill] sm:$0xff] %v15166_v47  ;;  %v15174_v18 = vsel %vm18086_vm5, %v4647_v63, %v4648_v61  ;;  %vm18088_vm9 = vmmov %vm18074_vm2  ;;  %v18096_v61 = vld [vmem:[#allocation45_spill] sm:$0xff]  ;;  %v18109_v47 = vmov %v18104_v15  ;;  %v18306_v46 = vld [vmem:[#allocation100_spill] sm:$0xff] }
 0x6f4   : > { %18087 = vst [vmem:[#allocation103_spill] sm:$0xff] %v15174_v18  ;;  %v15178_v10 = vsel %vm18088_vm9, %v4646_v60, %v4647_v63  ;;  %vm18090_vm4 = vmmov %vm18074_vm2  ;;  %v18301_v30 = vld [vmem:[#allocation91_spill] sm:$0xff] }
 0x6f5   : > { %18089 = vst [vmem:[#allocation95_spill] sm:$0xff] %v15178_v10  ;;  %v15182_v54 = vsel %vm18090_vm4, %v4645_v8, %v4646_v60  ;;  %vm18092_vm7 = vmmov %vm18074_vm2  ;;  %vm4592_vm2 = vcmp.eq.s32.totalorder %v18094_v33, 23  ;;  %v18115_v10 = vrot.slane %v17924_v17, 2 }
 0x6f6   : > { %18091 = vst [vmem:[#allocation102_spill] sm:$0xff] %v15182_v54  ;;  %v15186_v45 = vsel %vm18092_vm7, %v4644_v57, %v4645_v8  ;;  %vm18097_vm1 = vmmov %vm18090_vm4  ;;  %v18100_v8 = vmov %v18098_v0 }
 0x6f7   : > { %v15194_v63 = vsel %vm18097_vm1, %v4643_v42, %v4644_v57  ;;  %vm18099_vm9 = vmmov %vm18097_vm1  ;;  %v15216_v57 = vsel %vm18097_vm1, %v18104_v15, %v18103_v55  ;;  %v18113_v55 = vrot.slane %v17928_v11, 2  ;;  %v18117_v21 = vmov %v18115_v10 }
 0x6f8   : > { %v15200_v60 = vsel %vm18099_vm9, %v18098_v0, %v4643_v42  ;;  %vm18102_vm4 = vmmov %vm18097_vm1  ;;  %v18106_v42 = vld [vmem:[#allocation47_spill] sm:$0xff]  ;;  %v18131_v11 = vrot.slane %v14433_v31, 2  ;;  %v18141_v0 = vrot.slane %v14429_v38, 2  ;;  %v18152_v38 = vld [vmem:[#allocation62_spill] sm:$0xff] }
 0x6f9   : > { %v15208_v27 = vsel %vm18102_vm4, %v18101_v13, %v18100_v8  ;;  %v18110_v13 = vrot.slane %v17932_v43, 2  ;;  %vm18111_vm4 = vmmov %vm18097_vm1  ;;  %v18114_v18 = vmov %v18113_v55 }
 0x6fa   : > { %vm18116_vm15 = vmmov %vm18097_vm1 }
 0x6fb   : > { %v15228_v26 = vsel %vm18111_vm4, %v18110_v13, %v18109_v47  ;;  %v18112_v8 = vmov %v18110_v13  ;;  %v15244_v22 = vsel %vm18116_vm15, %v18115_v10, %v18114_v18  ;;  %v18118_v47 = vrot.slane %v14439_v62, 2  ;;  %vm18119_vm4 = vmmov %vm18097_vm1 }
 0x6fc   : > { %v15236_v15 = vsel %vm18097_vm1, %v18113_v55, %v18112_v8  ;;  %v18125_v18 = vrot.slane %v14437_v48, 2  ;;  %vm18126_vm15 = vmmov %vm18097_vm1  ;;  %v18133_v8 = vmov %v18131_v11  ;;  %v18150_v13 = vrot.slane %v14423_v53, 2 }
 0x6fd   : > { %v15252_v43 = vsel %vm18119_vm4, %v18118_v47, %v18117_v21  ;;  %v18124_v54 = vmov %v18118_v47  ;;  %v18128_v21 = vrot.slane %v14435_v4, 2  ;;  %vm18129_vm4 = vmmov %vm18097_vm1 }
 0x6fe   : > { %v15264_v17 = vsel %vm18126_vm15, %v18125_v18, %v18124_v54  ;;  %v18127_v10 = vmov %v18125_v18  ;;  %vm18132_vm7 = vmmov %vm18097_vm1  ;;  %v18134_v54 = vrot.slane %v14431_v28, 2  ;;  %v18163_v18 = vrot.slane %v14416_v58, 2 }
 0x6ff   : > { %v15272_v47 = vsel %vm18129_vm4, %v18128_v21, %v18127_v10  ;;  %v18130_v55 = vmov %v18128_v21  ;;  %vm18135_vm15 = vmmov %vm18097_vm1  ;;  %v18147_v10 = vrot.slane %v14425_v7, 2 }
 0x700   : > { %v4696_v62 = vsel %vm18132_vm7, %v18131_v11, %v18130_v55  ;;  %v4697_v48 = vsel %vm18135_vm15, %v18134_v54, %v18133_v8  ;;  %v18140_v4 = vmov %v18134_v54  ;;  %vm18142_vm7 = vmmov %vm18097_vm1  ;;  %v18143_v55 = vmov %v18141_v0 }
 0x701   : > { %v4698_v31 = vsel %vm18142_vm7, %v18141_v0, %v18140_v4  ;;  %v18144_v11 = vrot.slane %v14427_v49, 2  ;;  %vm18145_vm15 = vmmov %vm18097_vm1  ;;  %v18149_v28 = vmov %v18147_v10  ;;  %v18156_v49 = vmov %v18150_v13 }
 0x702   : > { %vm18148_vm5 = vmmov %vm18097_vm1  ;;  %v18165_v53 = vmov %v18163_v18  ;;  %v18166_v4 = vrot.slane %v14413_v12, 2 }
 0x703   : > { %v4699_v8 = vsel %vm18145_vm15, %v18144_v11, %v18143_v55  ;;  %v18146_v54 = vmov %v18144_v11  ;;  %vm18151_vm7 = vmmov %vm18097_vm1  ;;  %v18157_v11 = vrot.slane %v14421_v2, 2  ;;  %v18168_v2 = vld [vmem:[#allocation69_spill] sm:$0xff] }
 0x704   : > { %v4700_v21 = vsel %vm18148_vm5, %v18147_v10, %v18146_v54  ;;  %v4701_v0 = vsel %vm18151_vm7, %v18150_v13, %v18149_v28  ;;  %vm18158_vm5 = vmmov %vm18097_vm1  ;;  %v18160_v54 = vrot.slane %v14419_v23, 2  ;;  %vm4611_vm15 = vcmp.eq.s32.totalorder %v18168_v2, 23  ;;  %v18184_v2 = vld [vmem:[#allocation78_spill] sm:$0xff] }
 0x705   : > { %v4702_v7 = vsel %vm18158_vm5, %v18157_v11, %v18156_v49  ;;  %v18159_v10 = vmov %v18157_v11  ;;  %vm18161_vm7 = vmmov %vm18097_vm1  ;;  %v18171_v23 = vmov %v18166_v4  ;;  %v18178_v11 = vrot.slane %v14404_v6, 2  ;;  %v18188_v6 = vld [vmem:[#allocation123_spill] sm:$0xff] }
 0x706   : > { %v4703_v13 = vsel %vm18161_vm7, %v18160_v54, %v18159_v10  ;;  %v18162_v28 = vmov %v18160_v54  ;;  %vm18164_vm9 = vmmov %vm18097_vm1  ;;  %v18172_v54 = vrot.slane %v14410_v19, 2  ;;  %v18182_v19 = vld [vmem:[#allocation73_spill] sm:$0xff] }
 0x707   : > { %v4704_v55 = vsel %vm18164_vm9, %v18163_v18, %v18162_v28  ;;  %vm18167_vm5 = vmmov %vm18097_vm1  ;;  %vm4612_vm1 = vcmp.eq.s32.totalorder %v18033_v50, 23  ;;  %v18175_v28 = vrot.slane %v14407_v34, 2  ;;  %v18179_v12 = vmov %v18178_v11 }
 0x708   : > { %v4705_v49 = vsel %vm18167_vm5, %v18166_v4, %v18165_v53  ;;  %vm18173_vm9 = vmmov %vm18129_vm4  ;;  %v18174_v18 = vmov %v18172_v54  ;;  %v18180_v50 = vrot.slane %v14401_v5, 2  ;;  %vm4615_vm7 = vcmp.eq.s32.totalorder %v18182_v19, 23  ;;  %v18190_v5 = vld [vmem:[#allocation121_spill] sm:$0xff]  ;;  %v15763_v19 = vld [vmem:[#allocation9 + $0x2c8] sm:$0xff] }
 0x709   : > { %v4706_v58 = vsel %vm18173_vm9, %v18172_v54, %v18171_v23  ;;  %vm18176_vm5 = vmmov %vm18129_vm4  ;;  %v18177_v53 = vmov %v18175_v28 }
 0x70a   : > { %v4707_v4 = vsel %vm18176_vm5, %v18175_v28, %v18174_v18  ;;  %v4708_v10 = vsel %vm18129_vm4, %v18178_v11, %v18177_v53  ;;  %vm18181_vm9 = vmmov %vm18129_vm4  ;;  %v18183_v54 = vmov %v18180_v50  ;;  %v18185_v18 = vrot.slane %v18184_v2, 2  ;;  %v18187_v28 = vld [vmem:[#allocation122_spill] sm:$0xff]  ;;  %v18191_v2 = vld [vmem:[#allocation125_spill] sm:$0xff] }
 0x70b   : > { %v4709_v23 = vsel %vm18181_vm9, %v18180_v50, %v18179_v12  ;;  %vm18186_vm5 = vmmov %vm18129_vm4  ;;  %v15385_v53 = vsel %vm4574_vm10, %v4708_v10, %v18188_v6  ;;  %v18189_v50 = vld [vmem:[#allocation124_spill] sm:$0xff]  ;;  %v18193_v10 = vld [vmem:[#allocation127_spill] sm:$0xff]  ;;  %vm18198_vm10 = vcmp.eq.s32.totalorder %v18060_v3, 23  ;;  %vm18212_vm4 = vcmp.eq.s32.totalorder %v18083_v29, 23 }
 0x70c   : > { %v4710_v34 = vsel %vm18186_vm5, %v18185_v18, %v18183_v54  ;;  %v15380_v11 = vsel %vm4573_vm0, %v4709_v23, %v18187_v28  ;;  %v15390_v12 = vsel %vm4575_vm13, %v4707_v4, %v18189_v50  ;;  %v15398_v54 = vsel %vm4576_vm14, %v4706_v58, %v18191_v2  ;;  %v18192_v23 = vld [vmem:[#allocation126_spill] sm:$0xff]  ;;  %4857 = vst [vmem:[#allocation2 + $0x31] sm:$0xff] %v15385_v53  ;;  %v18194_v58 = vld [vmem:[#allocation128_spill] sm:$0xff]  ;;  %v18195_v4 = vld [vmem:[#allocation129_spill] sm:$0xff] }
 0x70d   : > { %v4808_v32 = vsel %vm4572_vm6, %v4710_v34, %v18190_v5  ;;  %v15403_v18 = vsel %vm4577_vm11, %v4705_v49, %v18192_v23  ;;  %v15408_v28 = vsel %vm4578_vm3, %v4704_v55, %v18193_v10  ;;  %4856 = vst [vmem:[#allocation2 + $0x29] sm:$0xff] %v15380_v11  ;;  %4858 = vst [vmem:[#allocation2 + $0x39] sm:$0xff] %v15390_v12  ;;  %vm18196_vm0 = vcmp.eq.s32.totalorder %v18059_v44, 23  ;;  %v18197_v34 = vld [vmem:[#allocation130_spill] sm:$0xff]  ;;  %v18199_v50 = vld [vmem:[#allocation131_spill] sm:$0xff] }
 0x70e   : > { %5084 = vst [vmem:[#allocation3 + $0x98] sm:$0xff] %v15385_v53  ;;  %5085 = vst [vmem:[#allocation3 + $0xb0] sm:$0xff] %v15390_v12  ;;  %v15418_v49 = vsel %vm4579_vm12, %v4703_v13, %v18194_v58  ;;  %v15423_v55 = vsel %vm18196_vm0, %v4702_v7, %v18195_v4  ;;  %v15428_v6 = vsel %vm18198_vm10, %v4701_v0, %v18197_v34  ;;  %vm18200_vm13 = vcmp.eq.s32.totalorder %v18061_v9, 23  ;;  %v18201_v0 = vld [vmem:[#allocation132_spill] sm:$0xff]  ;;  %v18205_v2 = vld [vmem:[#allocation134_spill] sm:$0xff] }
 0x70f   : > { %v15433_v5 = vsel %vm18200_vm13, %v4700_v21, %v18199_v50  ;;  %4855 = vst [vmem:[#allocation2 + $0x21] sm:$0xff] %v4808_v32  ;;  %4859 = vst [vmem:[#allocation2 + $0x41] sm:$0xff] %v15398_v54  ;;  %5556 = vmatprep.mubr.f32.mxu1 %v4808_v32  ;;  %vm18202_vm6 = vcmp.eq.s32.totalorder %v18070_v14, 23  ;;  %v18203_v21 = vld [vmem:[#allocation133_spill] sm:$0xff]  ;;  %vm18204_vm14 = vcmp.eq.s32.totalorder %v18071_v16, 23  ;;  %vm18206_vm11 = vcmp.eq.s32.totalorder %v18072_v20, 23 }
 0x710   : > { %4860 = vst [vmem:[#allocation2 + $0x49] sm:$0xff] %v15403_v18  ;;  %4861 = vst [vmem:[#allocation2 + $0x51] sm:$0xff] %v15408_v28  ;;  %v15444_v7 = vsel %vm18202_vm6, %v4699_v8, %v18201_v0  ;;  %v15449_v13 = vsel %vm18204_vm14, %v4698_v31, %v18203_v21  ;;  %v15454_v32 = vsel %vm18206_vm11, %v4697_v48, %v18205_v2  ;;  %v18207_v23 = vld [vmem:[#allocation135_spill] sm:$0xff]  ;;  %vm18208_vm3 = vcmp.eq.s32.totalorder %v18073_v25, 23  ;;  %v18209_v48 = vld [vmem:[#allocation136_spill] sm:$0xff] }
 0x711   : > { %5086 = vst [vmem:[#allocation3 + $0xc8] sm:$0xff] %v15398_v54  ;;  %5087 = vst [vmem:[#allocation3 + $0xe0] sm:$0xff] %v15403_v18  ;;  %v15459_v10 = vsel %vm18208_vm3, %v4696_v62, %v18207_v23  ;;  %vm18210_vm12 = vcmp.eq.s32.totalorder %v18082_v1, 23  ;;  %v18211_v31 = vld [vmem:[#allocation137_spill] sm:$0xff]  ;;  %v18213_v58 = vld [vmem:[#allocation138_spill] sm:$0xff]  ;;  %vm18214_vm9 = vcmp.eq.s32.totalorder %v18084_v40, 23 }
 0x712   : > { %5088 = vst [vmem:[#allocation3 + $0xf8] sm:$0xff] %v15408_v28  ;;  %4862 = vst [vmem:[#allocation2 + $0x59] sm:$0xff] %v15418_v49  ;;  %v15473_v62 = vsel %vm18210_vm12, %v15272_v47, %v18209_v48  ;;  %v15479_v8 = vsel %vm18212_vm4, %v15264_v17, %v18211_v31  ;;  %v15485_v4 = vsel %vm18214_vm9, %v15252_v43, %v18213_v58  ;;  %v18215_v34 = vld [vmem:[#allocation57_spill] sm:$0xff]  ;;  %vm18216_vm5 = vcmp.eq.s32.totalorder %v18085_v24, 23  ;;  %v18217_v43 = vld [vmem:[#allocation59_spill] sm:$0xff] }
 0x713   : > { %4863 = vst [vmem:[#allocation2 + $0x61] sm:$0xff] %v15423_v55  ;;  %4864 = vst [vmem:[#allocation2 + $0x69] sm:$0xff] %v15428_v6  ;;  %v15491_v50 = vsel %vm18216_vm5, %v15244_v22, %v18215_v34  ;;  %v15505_v22 = vsel %vm4591_vm8, %v15236_v15, %v18217_v43  ;;  %v18218_v17 = vld [vmem:[#allocation61_spill] sm:$0xff]  ;;  %v18219_v0 = vld [vmem:[#allocation63_spill] sm:$0xff]  ;;  %vm18220_vm0 = vcmp.eq.s32.totalorder %v18095_v59, 23  ;;  %vm18222_vm10 = vcmp.eq.s32.totalorder %v18096_v61, 23 }
 0x714   : > { %4865 = vst [vmem:[#allocation2 + $0x71] sm:$0xff] %v15433_v5  ;;  %5089 = vst [vmem:[#allocation3 + $0x110] sm:$0xff] %v15418_v49  ;;  %v15511_v47 = vsel %vm4592_vm2, %v15228_v26, %v18218_v17  ;;  %v15517_v21 = vsel %vm18220_vm0, %v15216_v57, %v18219_v0  ;;  %v18221_v2 = vld [vmem:[#allocation120_spill] sm:$0xff]  ;;  %v18223_v57 = vld [vmem:[#allocation65_spill] sm:$0xff]  ;;  %vm18224_vm8 = vcmp.eq.s32.totalorder %v18105_v56, 23  ;;  %vm18226_vm2 = vcmp.eq.s32.totalorder %v18106_v42, 23 }
 0x715   : > { %5090 = vst [vmem:[#allocation3 + $0x128] sm:$0xff] %v15423_v55  ;;  %5091 = vst [vmem:[#allocation3 + $0x140] sm:$0xff] %v15428_v6  ;;  %v15523_v23 = vsel %vm18222_vm10, %v15208_v27, %v18221_v2  ;;  %v15537_v27 = vsel %vm18224_vm8, %v15200_v60, %v18223_v57  ;;  %v18225_v26 = vld [vmem:[#allocation119_spill] sm:$0xff]  ;;  %v18228_v31 = vld [vmem:[#allocation48_spill] sm:$0xff]  ;;  %vm18265_vm5 = vcmp.eq.s32.totalorder %v18264_v52, 23  ;;  %vm18275_vm10 = vcmp.eq.s32.totalorder %v18152_v38, 23 }
 0x716   : > { %5092 = vst [vmem:[#allocation3 + $0x158] sm:$0xff] %v15433_v5  ;;  %4866 = vst [vmem:[#allocation2 + $0x79] sm:$0xff] %v15444_v7  ;;  %v15543_v15 = vsel %vm18226_vm2, %v15194_v63, %v18225_v26  ;;  %v18227_v48 = vld [vmem:[#allocation67_spill] sm:$0xff]  ;;  %vm18229_vm13 = vcmp.eq.s32.totalorder %v18228_v31, 23  ;;  %v18230_v34 = vld [vmem:[#allocation118_spill] sm:$0xff] }
 0x717   : > { %4867 = vst [vmem:[#allocation2 + $0x81] sm:$0xff] %v15449_v13  ;;  %4868 = vst [vmem:[#allocation2 + $0x89] sm:$0xff] %v15454_v32  ;;  %v15549_v58 = vsel %vm18229_vm13, %v15186_v45, %v18227_v48  ;;  %v18231_v43 = vld [vmem:[#allocation102_spill] sm:$0xff]  ;;  %v18232_v17 = vld [vmem:[#allocation49_spill] sm:$0xff]  ;;  %vm18290_vm13 = vcmp.eq.s32.totalorder %v18289_v37, 23 }
 0x718   : > { %4869 = vst [vmem:[#allocation2 + $0x91] sm:$0xff] %v15459_v10  ;;  %5093 = vst [vmem:[#allocation3 + $0x170] sm:$0xff] %v15444_v7  ;;  %vm18233_vm6 = vcmp.eq.s32.totalorder %v18232_v17, 23  ;;  %v18234_v45 = vld [vmem:[#allocation74_spill] sm:$0xff]  ;;  %v18235_v63 = vld [vmem:[#allocation95_spill] sm:$0xff] }
 0x719   : > { %5094 = vst [vmem:[#allocation3 + $0x188] sm:$0xff] %v15449_v13  ;;  %5095 = vst [vmem:[#allocation3 + $0x1a0] sm:$0xff] %v15454_v32  ;;  %v15555_v0 = vsel %vm18233_vm6, %v18231_v43, %v18230_v34  ;;  %v18236_v60 = vld [vmem:[#allocation50_spill] sm:$0xff]  ;;  %v18238_v57 = vld [vmem:[#allocation117_spill] sm:$0xff]  ;;  %vm18303_vm6 = vcmp.eq.s32.totalorder %v18302_v51, 23 }
 0x71a   : > { %5096 = vst [vmem:[#allocation3 + $0x1b8] sm:$0xff] %v15459_v10  ;;  %4870 = vst [vmem:[#allocation2 + $0x99] sm:$0xff] %v15473_v62  ;;  %vm18237_vm14 = vcmp.eq.s32.totalorder %v18236_v60, 23  ;;  %v18239_v26 = vld [vmem:[#allocation103_spill] sm:$0xff]  ;;  %v18242_v43 = vld [vmem:[#allocation80_spill] sm:$0xff] }
 0x71b   : > { %4871 = vst [vmem:[#allocation2 + $0xa1] sm:$0xff] %v15479_v8  ;;  %4872 = vst [vmem:[#allocation2 + $0xa9] sm:$0xff] %v15485_v4  ;;  %v15569_v2 = vsel %vm18237_vm14, %v18235_v63, %v18234_v45  ;;  %v18240_v48 = vld [vmem:[#allocation51_spill] sm:$0xff]  ;;  %v18243_v17 = vld [vmem:[#allocation94_spill] sm:$0xff]  ;;  %vm18308_vm14 = vcmp.eq.s32.totalorder %v18307_v39, 23 }
 0x71c   : > { %4873 = vst [vmem:[#allocation2 + $0xb1] sm:$0xff] %v15491_v50  ;;  %5097 = vst [vmem:[#allocation3 + $0x1d0] sm:$0xff] %v15473_v62  ;;  %vm18241_vm11 = vcmp.eq.s32.totalorder %v18240_v48, 23  ;;  %v18244_v31 = vld [vmem:[#allocation52_spill] sm:$0xff]  ;;  %v18249_v59 = vld [vmem:[#allocation53_spill] sm:$0xff] }
 0x71d   : > { %5098 = vst [vmem:[#allocation3 + $0x1e8] sm:$0xff] %v15479_v8  ;;  %5099 = vst [vmem:[#allocation3 + $0x200] sm:$0xff] %v15485_v4  ;;  %v15575_v34 = vsel %vm18241_vm11, %v18239_v26, %v18238_v57  ;;  %vm18245_vm3 = vcmp.eq.s32.totalorder %v18244_v31, 23  ;;  %v18247_v56 = vld [vmem:[#allocation116_spill] sm:$0xff]  ;;  %vm18250_vm12 = vcmp.eq.s32.totalorder %v18249_v59, 23  ;;  %v15593_v45 = vld [vmem:[#allocation9 + $0x2a0] sm:$0xff] }
 0x71e   : > { %5100 = vst [vmem:[#allocation3 + $0x218] sm:$0xff] %v15491_v50  ;;  %4874 = vst [vmem:[#allocation2 + $0xb9] sm:$0xff] %v15505_v22  ;;  %v15581_v42 = vsel %vm18245_vm3, %v18243_v17, %v18242_v43  ;;  %v18248_v61 = vld [vmem:[#allocation104_spill] sm:$0xff]  ;;  %v18254_v17 = vld [vmem:[#allocation54_spill] sm:$0xff] }
 0x71f   : > { %4875 = vst [vmem:[#allocation2 + $0xc1] sm:$0xff] %v15511_v47  ;;  %4876 = vst [vmem:[#allocation2 + $0xc9] sm:$0xff] %v15517_v21  ;;  %v15587_v33 = vsel %vm18250_vm12, %v18248_v61, %v18247_v56  ;;  %v15595_v63 = vld [vmem:[#allocation9 + $0x2a8] sm:$0xff]  ;;  %v18252_v56 = vld [vmem:[#allocation81_spill] sm:$0xff]  ;;  %vm18255_vm4 = vcmp.eq.s32.totalorder %v18254_v17, 23 }
 0x720   : > { %4877 = vst [vmem:[#allocation2 + $0xd1] sm:$0xff] %v15523_v23  ;;  %5101 = vst [vmem:[#allocation3 + $0x230] sm:$0xff] %v15505_v22  ;;  %v18253_v61 = vld [vmem:[#allocation93_spill] sm:$0xff]  ;;  %v18257_v26 = vld [vmem:[#allocation115_spill] sm:$0xff] }
 0x721   : > { %5102 = vst [vmem:[#allocation3 + $0x248] sm:$0xff] %v15511_v47  ;;  %5103 = vst [vmem:[#allocation3 + $0x260] sm:$0xff] %v15517_v21  ;;  %v15605_v57 = vsel %vm18255_vm4, %v18253_v61, %v18252_v56  ;;  %v18258_v43 = vld [vmem:[#allocation98_spill] sm:$0xff]  ;;  %v18259_v59 = vld [vmem:[#allocation55_spill] sm:$0xff] }
 0x722   : > { %5104 = vst [vmem:[#allocation3 + $0x278] sm:$0xff] %v15523_v23  ;;  %18246 = vst [vmem:[#allocation96_spill] sm:$0xff] %v15581_v42  ;;  %vm18260_vm9 = vcmp.eq.s32.totalorder %v18259_v59, 23  ;;  %v18262_v48 = vld [vmem:[#allocation82_spill] sm:$0xff]  ;;  %v18263_v60 = vld [vmem:[#allocation92_spill] sm:$0xff] }
 0x723   : > { %18251 = vst [vmem:[#allocation101_spill] sm:$0xff] %v15587_v33  ;;  %4878 = vst [vmem:[#allocation2 + $0xd9] sm:$0xff] %v15537_v27  ;;  %v15611_v31 = vsel %vm18260_vm9, %v18258_v43, %v18257_v26  ;;  %v15617_v24 = vsel %vm18265_vm5, %v18263_v60, %v18262_v48  ;;  %v18267_v40 = vld [vmem:[#allocation114_spill] sm:$0xff]  ;;  %v18268_v29 = vld [vmem:[#allocation88_spill] sm:$0xff] }
 0x724   : > { %4879 = vst [vmem:[#allocation2 + $0xe1] sm:$0xff] %v15543_v15  ;;  %4880 = vst [vmem:[#allocation2 + $0xe9] sm:$0xff] %v15549_v58  ;;  %v18269_v1 = vld [vmem:[#allocation60_spill] sm:$0xff]  ;;  %v15629_v56 = vld [vmem:[#allocation2 + $0x30] sm:$0xff] }
 0x725   : > { %4881 = vst [vmem:[#allocation2 + $0xf1] sm:$0xff] %v15555_v0  ;;  %5105 = vst [vmem:[#allocation3 + $0x290] sm:$0xff] %v15537_v27  ;;  %vm18270_vm0 = vcmp.eq.s32.totalorder %v18269_v1, 23  ;;  %v15631_v61 = vld [vmem:[#allocation2 + $0x38] sm:$0xff]  ;;  %v15633_v60 = vld [vmem:[#allocation9 + $0x2b0] sm:$0xff] }
 0x726   : > { %5106 = vst [vmem:[#allocation3 + $0x2a8] sm:$0xff] %v15543_v15  ;;  %5107 = vst [vmem:[#allocation3 + $0x2c0] sm:$0xff] %v15549_v58  ;;  %v15623_v25 = vsel %vm18270_vm0, %v18268_v29, %v18267_v40  ;;  %v15635_v48 = vld [vmem:[#allocation9 + $0x2b8] sm:$0xff]  ;;  %v15641_v29 = vld [vmem:[#allocation2 + $0x2a] sm:$0xff] }
 0x727   : > { %5108 = vst [vmem:[#allocation3 + $0x2d8] sm:$0xff] %v15555_v0  ;;  %18256 = vst [vmem:[#allocation97_spill] sm:$0xff] %v15605_v57  ;;  %v18273_v40 = vld [vmem:[#allocation83_spill] sm:$0xff]  ;;  %v18274_v26 = vld [vmem:[#allocation109_spill] sm:$0xff] }
 0x728   : > { %18261 = vst [vmem:[#allocation106_spill] sm:$0xff] %v15611_v31  ;;  %18266 = vst [vmem:[#allocation79_spill] sm:$0xff] %v15617_v24  ;;  %v15647_v43 = vsel %vm18275_vm10, %v18274_v26, %v18273_v40  ;;  %v18277_v1 = vld [vmem:[#allocation113_spill] sm:$0xff]  ;;  %v18278_v52 = vld [vmem:[#allocation90_spill] sm:$0xff] }
 0x729   : > { %18271 = vst [vmem:[#allocation105_spill] sm:$0xff] %v15623_v25  ;;  %4882 = vst [vmem:[#allocation2 + $0xf9] sm:$0xff] %v15569_v2  ;;  %v18279_v59 = vld [vmem:[#allocation64_spill] sm:$0xff]  ;;  %v18283_v16 = vld [vmem:[#allocation107_spill] sm:$0xff] }
 0x72a   : > { %4883 = vst [vmem:[#allocation2 + $0x101] sm:$0xff] %v15575_v34  ;;  %4884 = vst [vmem:[#allocation2 + $0x109] sm:$0xff] %v15581_v42  ;;  %vm18280_vm8 = vcmp.eq.s32.totalorder %v18279_v59, 23  ;;  %v18282_v20 = vld [vmem:[#allocation84_spill] sm:$0xff]  ;;  %v18284_v14 = vld [vmem:[#allocation66_spill] sm:$0xff] }
 0x72b   : > { %4885 = vst [vmem:[#allocation2 + $0x111] sm:$0xff] %v15587_v33  ;;  %5109 = vst [vmem:[#allocation3 + $0x2f0] sm:$0xff] %v15569_v2  ;;  %v15653_v17 = vsel %vm18280_vm8, %v18278_v52, %v18277_v1  ;;  %vm18285_vm2 = vcmp.eq.s32.totalorder %v18284_v14, 23  ;;  %v18287_v3 = vld [vmem:[#allocation112_spill] sm:$0xff]  ;;  %v18288_v44 = vld [vmem:[#allocation89_spill] sm:$0xff] }
 0x72c   : > { %5110 = vst [vmem:[#allocation3 + $0x308] sm:$0xff] %v15575_v34  ;;  %5111 = vst [vmem:[#allocation3 + $0x320] sm:$0xff] %v15581_v42  ;;  %v15659_v9 = vsel %vm18285_vm2, %v18283_v16, %v18282_v20  ;;  %v15665_v41 = vsel %vm18290_vm13, %v18288_v44, %v18287_v3  ;;  %v15671_v52 = vld [vmem:[#allocation2 + $0x40] sm:$0xff]  ;;  %v15675_v1 = vld [vmem:[#allocation2 + $0x28] sm:$0xff]  ;;  %v9882_v20 = vpack.c.bf16 %v15635_v48, %v15633_v60 }
 0x72d   : > { %5112 = vst [vmem:[#allocation3 + $0x338] sm:$0xff] %v15587_v33  ;;  %18272 = vst [vmem:[#allocation78_spill] sm:$0xff] %v15641_v29  ;;  %v4920_v16 = vld [vmem:[#allocation2 + $0x20] sm:$0xff]  ;;  %v18292_v44 = vld [vmem:[#allocation85_spill] sm:$0xff] }
 0x72e   : > { %18276 = vst [vmem:[#allocation122_spill] sm:$0xff] %v15647_v43  ;;  %18281 = vst [vmem:[#allocation123_spill] sm:$0xff] %v15653_v17  ;;  %v18293_v3 = vld [vmem:[#allocation108_spill] sm:$0xff]  ;;  %v18296_v26 = vld [vmem:[#allocation111_spill] sm:$0xff]  ;;  %5557 = vmatmul.mubr.f32.gmra.mrb[2].mxu1 %v4920_v16 }
 0x72f   : > { %18286 = vst [vmem:[#allocation124_spill] sm:$0xff] %v15659_v9  ;;  %18291 = vst [vmem:[#allocation121_spill] sm:$0xff] %v15665_v41  ;;  %v15688_v40 = vsel %vm4611_vm15, %v18293_v3, %v18292_v44  ;;  %v18297_v37 = vld [vmem:[#allocation99_spill] sm:$0xff]  ;;  %v18300_v38 = vld [vmem:[#allocation86_spill] sm:$0xff]  ;;  %5561 = vmatprep.mubr.f32.mxu1 %v15380_v11 }
 0x730   : > { %4886 = vst [vmem:[#allocation2 + $0x119] sm:$0xff] %v15605_v57  ;;  %4887 = vst [vmem:[#allocation2 + $0x121] sm:$0xff] %v15611_v31  ;;  %v15694_v59 = vsel %vm4612_vm1, %v18297_v37, %v18296_v26  ;;  %v15700_v36 = vsel %vm18303_vm6, %v18301_v30, %v18300_v38  ;;  %v15715_v37 = vld [vmem:[#allocation2 + $0x48] sm:$0xff]  ;;  %v18310_v30 = vld [vmem:[#allocation87_spill] sm:$0xff]  ;;  %vm18392_vm1 = vmmov 0  }
 0x731   : > { %4888 = vst [vmem:[#allocation2 + $0x129] sm:$0xff] %v15617_v24  ;;  %4889 = vst [vmem:[#allocation2 + $0x131] sm:$0xff] %v15623_v25  ;;  %v18311_v38 = vld [vmem:[#allocation56_spill] sm:$0xff]  ;;  %v15739_v44 = vld [vmem:[#allocation2 + $0x60] sm:$0xff] }
 0x732   : > { %4907 = vst [vmem:[#allocation2] sm:$0xff] %v15629_v56  ;;  %4908 = vst [vmem:[#allocation2 + $0x8] sm:$0xff] %v15631_v61  ;;  %v15741_v3 = vld [vmem:[#allocation2 + $0x68] sm:$0xff]  ;;  %v15743_v26 = vld [vmem:[#allocation2 + $0x70] sm:$0xff]  ;;  %5562 = vmatmul.mubr.f32.gmra.mrb[4].mxu1 %v15675_v1 }
 0x733   : > { %4976 = vst [vmem:[#allocation3 + $0x90] sm:$0xff] %v15629_v56  ;;  %4977 = vst [vmem:[#allocation3 + $0xa8] sm:$0xff] %v15631_v61  ;;  %v15755_v11 = vld [vmem:[#allocation2 + $0x78] sm:$0xff]  ;;  %v15769_v39 = vld [vmem:[#allocation2 + $0x90] sm:$0xff]  ;;  %5566 = vmatprep.mubr.f32.mxu1 %v15385_v53 }
 0x734   : > { %5113 = vst [vmem:[#allocation3 + $0x350] sm:$0xff] %v15605_v57  ;;  %5114 = vst [vmem:[#allocation3 + $0x368] sm:$0xff] %v15611_v31  ;;  %v15771_v51 = vld [vmem:[#allocation2 + $0x98] sm:$0xff]  ;;  %v15773_v14 = vld [vmem:[#allocation2 + $0xa0] sm:$0xff] }
 0x735   : > { %5115 = vst [vmem:[#allocation3 + $0x380] sm:$0xff] %v15617_v24  ;;  %5116 = vst [vmem:[#allocation3 + $0x398] sm:$0xff] %v15623_v25  ;;  %v15792_v60 = vld [vmem:[#allocation2 + $0xc0] sm:$0xff]  ;;  %v15794_v48 = vld [vmem:[#allocation2 + $0xc8] sm:$0xff] }
 0x736   : > { %5191 = vst [vmem:[#allocation3 + $0x88] sm:$0xff] %v15641_v29  ;;  %18295 = vst [vmem:[#allocation125_spill] sm:$0xff] %v15688_v40  ;;  %v15706_v29 = vsel %vm18308_vm14, %v18306_v46, %v18305_v35  ;;  %v15717_v46 = vld [vmem:[#allocation2 + $0x50] sm:$0xff]  ;;  %v15719_v35 = vld [vmem:[#allocation2 + $0x58] sm:$0xff]  ;;  %5567 = vmatmul.mubr.f32.gmra.mrb[6].mxu1 %v15629_v56 }
 0x737   : > { %18299 = vst [vmem:[#allocation126_spill] sm:$0xff] %v15694_v59  ;;  %18304 = vst [vmem:[#allocation127_spill] sm:$0xff] %v15700_v36  ;;  %v15803_v53 = vld [vmem:[#allocation2 + $0xe0] sm:$0xff]  ;;  %v15814_v25 = vld [vmem:[#allocation2 + $0xf8] sm:$0xff]  ;;  %5571 = vmatprep.mubr.f32.mxu1 %v15390_v12 }
 0x738   : > { %18309 = vst [vmem:[#allocation128_spill] sm:$0xff] %v15706_v29  ;;  %4890 = vst [vmem:[#allocation2 + $0x139] sm:$0xff] %v15647_v43  ;;  %v15816_v24 = vld [vmem:[#allocation2 + $0x100] sm:$0xff]  ;;  %v15835_v56 = vld [vmem:[#allocation2 + $0x110] sm:$0xff] }
 0x739   : > { %4891 = vst [vmem:[#allocation2 + $0x141] sm:$0xff] %v15653_v17  ;;  %4892 = vst [vmem:[#allocation2 + $0x149] sm:$0xff] %v15659_v9  ;;  %v15844_v33 = vld [vmem:[#allocation2 + $0x120] sm:$0xff]  ;;  %v15846_v42 = vld [vmem:[#allocation2 + $0x128] sm:$0xff] }
 0x73a   : > { %4893 = vst [vmem:[#allocation2 + $0x151] sm:$0xff] %v15665_v41  ;;  %4909 = vst [vmem:[#allocation2 + $0x10] sm:$0xff] %v15671_v52  ;;  %v15848_v12 = vld [vmem:[#allocation2 + $0x130] sm:$0xff]  ;;  %5572 = vmatmul.mubr.f32.gmra.mrb[8].mxu1 %v15631_v61 }
 0x73b   : > { %4974 = vst [vmem:[#allocation3 + $0x60] sm:$0xff] %v4920_v16  ;;  %4975 = vst [vmem:[#allocation3 + $0x78] sm:$0xff] %v15675_v1  ;;  %v15729_v16 = vsel %vm4615_vm7, %v18311_v38, %v18310_v30  ;;  %v9879_v30 = vpack.c.bf16 %v15595_v63, %v15593_v45  ;;  %v15757_v38 = vld [vmem:[#allocation2 + $0x80] sm:$0xff]  ;;  %v15759_v45 = vld [vmem:[#allocation2 + $0x88] sm:$0xff]  ;;  %5576 = vmatprep.mubr.f32.mxu1 %v15398_v54 }
 0x73c   : > { %4978 = vst [vmem:[#allocation3 + $0xc0] sm:$0xff] %v15671_v52  ;;  %5117 = vst [vmem:[#allocation3 + $0x3b0] sm:$0xff] %v15647_v43  ;;  %v15761_v63 = vld [vmem:[#allocation9 + $0x2c0] sm:$0xff]  ;;  %v15796_v1 = vld [vmem:[#allocation2 + $0xd0] sm:$0xff] }
 0x73d   : > { %5118 = vst [vmem:[#allocation3 + $0x3c8] sm:$0xff] %v15653_v17  ;;  %5119 = vst [vmem:[#allocation3 + $0x3e0] sm:$0xff] %v15659_v9  ;;  %9880 = vmatpush3.bf16.msra.mxu1 %v9879_v30  ;;  %v18313_v30 = vmov 0.0|0.0   ;;  %v5482_v9 = vld [vmem:[#allocation9 + $0x2d8] sm:$0xff]  ;;  %v9885_v17 = vpack.c.bf16 %v15763_v19, %v15761_v63  ;;  %v15812_v43 = vld [vmem:[#allocation2 + $0xf0] sm:$0xff] }
 0x73e   : > { %5120 = vst [vmem:[#allocation3 + $0x3f8] sm:$0xff] %v15665_v41  ;;  %18312 = vst [vmem:[#allocation129_spill] sm:$0xff] %v15729_v16  ;;  %9881 = vmatprep.subr.bf16.mxu1 %v18313_v30  ;;  %v5481_v41 = vld [vmem:[#allocation9 + $0x2d0] sm:$0xff]  ;;  %v15827_v19 = vld [vmem:[#allocation2 + $0x108] sm:$0xff]  ;;  %5577 = vmatmul.mubr.f32.gmra.mrb[10].mxu1 %v15671_v52 }
 0x73f   : > { %4894 = vst [vmem:[#allocation2 + $0x159] sm:$0xff] %v15688_v40  ;;  %4895 = vst [vmem:[#allocation2 + $0x161] sm:$0xff] %v15694_v59  ;;  %v15837_v63 = vld [vmem:[#allocation2 + $0x118] sm:$0xff]  ;;  %v15880_v54 = vld [vmem:[#allocation2 + $0x22] sm:$0xff]  ;;  %5581 = vmatprep.mubr.f32.mxu1 %v15403_v18 }
 0x740   : > { %4896 = vst [vmem:[#allocation2 + $0x169] sm:$0xff] %v15700_v36  ;;  %4897 = vst [vmem:[#allocation2 + $0x171] sm:$0xff] %v15706_v29  ;;  %v15908_v52 = vld [vmem:[#allocation2 + $0x6a] sm:$0xff] }
 0x741   : > { %4979 = vst [vmem:[#allocation3 + $0xd8] sm:$0xff] %v15715_v37  ;;  %4980 = vst [vmem:[#allocation3 + $0xf0] sm:$0xff] %v15717_v46  ;;  %9883 = vmatpush3.bf16.msra.mxu1 %v9882_v20  ;;  %v15920_v18 = vld [vmem:[#allocation2 + $0x8a] sm:$0xff] }
 0x742   : > { %4981 = vst [vmem:[#allocation3 + $0x108] sm:$0xff] %v15719_v35  ;;  %5121 = vst [vmem:[#allocation3 + $0x410] sm:$0xff] %v15688_v40  ;;  %v15805_v40 = vld [vmem:[#allocation2 + $0xe8] sm:$0xff]  ;;  %9884 = vmatprep.subr.bf16.mxu1 %v18313_v30  ;;  %5582 = vmatmul.mubr.f32.gmra.mrb[12].mxu1 %v15715_v37  ;;  %v15941_v37 = vld [vmem:[#allocation2 + $0xba] sm:$0xff] }
 0x743   : > { %5122 = vst [vmem:[#allocation3 + $0x428] sm:$0xff] %v15694_v59  ;;  %5123 = vst [vmem:[#allocation3 + $0x440] sm:$0xff] %v15700_v36  ;;  %v15786_v36 = vld [vmem:[#allocation2 + $0xb8] sm:$0xff]  ;;  %5586 = vmatprep.mubr.f32.mxu1 %v15408_v28 }
 0x744   : > { %5124 = vst [vmem:[#allocation3 + $0x458] sm:$0xff] %v15706_v29  ;;  %4898 = vst [vmem:[#allocation2 + $0x179] sm:$0xff] %v15729_v16  ;;  %v15784_v29 = vld [vmem:[#allocation2 + $0xb0] sm:$0xff]  ;;  %v15801_v59 = vld [vmem:[#allocation2 + $0xd8] sm:$0xff] }
 0x745   : > { %4982 = vst [vmem:[#allocation3 + $0x120] sm:$0xff] %v15739_v44  ;;  %4983 = vst [vmem:[#allocation3 + $0x138] sm:$0xff] %v15741_v3  ;;  %9886 = vmatpush3.bf16.msra.mxu1 %v9885_v17  ;;  %v15861_v17 = vld [vmem:[#allocation2 + $0x148] sm:$0xff]  ;;  %v15952_v28 = vld [vmem:[#allocation2 + $0xda] sm:$0xff] }
 0x746   : > { %4984 = vst [vmem:[#allocation3 + $0x150] sm:$0xff] %v15743_v26  ;;  %5125 = vst [vmem:[#allocation3 + $0x470] sm:$0xff] %v15729_v16  ;;  %v15782_v16 = vld [vmem:[#allocation2 + $0xa8] sm:$0xff]  ;;  %9887 = vmatprep.subr.bf16.mxu1 %v18313_v30  ;;  %v15871_v61 = vld [vmem:[#allocation2 + $0x160] sm:$0xff]  ;;  %5587 = vmatmul.mubr.f32.gmra.mrb[14].mxu1 %v15717_v46 }
 0x747   : > { %4985 = vst [vmem:[#allocation3 + $0x168] sm:$0xff] %v15755_v11  ;;  %4986 = vst [vmem:[#allocation3 + $0x180] sm:$0xff] %v15757_v38  ;;  %v15818_v31 = vld [vmem:[#allocation2 + $0x168] sm:$0xff]  ;;  %v15820_v57 = vld [vmem:[#allocation2 + $0x170] sm:$0xff]  ;;  %5591 = vmatprep.mubr.f32.mxu1 %v15418_v49 }
 0x748   : > { %4987 = vst [vmem:[#allocation3 + $0x198] sm:$0xff] %v15759_v45  ;;  %4988 = vst [vmem:[#allocation3 + $0x1b0] sm:$0xff] %v15769_v39  ;;  %v15979_v46 = vld [vmem:[#allocation2 + $0x11a] sm:$0xff] }
 0x749   : > { %4989 = vst [vmem:[#allocation3 + $0x1c8] sm:$0xff] %v15771_v51  ;;  %4990 = vst [vmem:[#allocation3 + $0x1e0] sm:$0xff] %v15773_v14  ;;  %v15990_v49 = vld [vmem:[#allocation2 + $0x13a] sm:$0xff] }
 0x74a   : > { %4991 = vst [vmem:[#allocation3 + $0x1f8] sm:$0xff] %v15782_v16  ;;  %4992 = vst [vmem:[#allocation3 + $0x210] sm:$0xff] %v15784_v29  ;;  %5592 = vmatmul.mubr.f32.gmra.mrb[16].mxu1 %v15719_v35 }
 0x74b   : > { %4993 = vst [vmem:[#allocation3 + $0x228] sm:$0xff] %v15786_v36  ;;  %4994 = vst [vmem:[#allocation3 + $0x240] sm:$0xff] %v15792_v60  ;;  %v15829_v20 = vld [vmem:[#allocation2 + $0x178] sm:$0xff]  ;;  %5596 = vmatprep.mubr.f32.mxu1 %v15423_v55  ;;  %v16030_v55 = vld [vmem:[#allocation2 + $0x10] sm:$0xff] }
 0x74c   : > { %4995 = vst [vmem:[#allocation3 + $0x258] sm:$0xff] %v15794_v48  ;;  %4996 = vst [vmem:[#allocation3 + $0x270] sm:$0xff] %v15796_v1  ;;  %v16017_v35 = vld [vmem:[#allocation2 + $0x17a] sm:$0xff] }
 0x74d   : > { %4997 = vst [vmem:[#allocation3 + $0x288] sm:$0xff] %v15801_v59  ;;  %4998 = vst [vmem:[#allocation3 + $0x2a0] sm:$0xff] %v15803_v53 }
 0x74e   : > { %4999 = vst [vmem:[#allocation3 + $0x2b8] sm:$0xff] %v15805_v40  ;;  %18314 = vst [vmem:[#allocation130_spill] sm:$0xff] %v15818_v31  ;;  %5597 = vmatmul.mubr.f32.gmra.mrb[18].mxu1 %v15739_v44  ;;  %v18389_v44 = vld [vmem:[#allocation129_spill] sm:$0xff] }
 0x74f   : > { %18315 = vst [vmem:[#allocation131_spill] sm:$0xff] %v15820_v57  ;;  %5000 = vst [vmem:[#allocation3 + $0x2d0] sm:$0xff] %v15812_v43  ;;  %5601 = vmatprep.mubr.f32.mxu1 %v15428_v6 }
 0x750   : > { %5001 = vst [vmem:[#allocation3 + $0x2e8] sm:$0xff] %v15814_v25  ;;  %5002 = vst [vmem:[#allocation3 + $0x300] sm:$0xff] %v15816_v24 }
 0x751   : > { %18316 = vst [vmem:[#allocation132_spill] sm:$0xff] %v15827_v19  ;;  %18317 = vst [vmem:[#allocation133_spill] sm:$0xff] %v15829_v20 }
 0x752   : > { %4913 = vst [vmem:[#allocation2 + $0x198] sm:$0xff] %v15818_v31  ;;  %4914 = vst [vmem:[#allocation2 + $0x1a0] sm:$0xff] %v15820_v57  ;;  %5602 = vmatmul.mubr.f32.gmra.mrb[20].mxu1 %v15741_v3 }
 0x753   : > { %5003 = vst [vmem:[#allocation3 + $0x318] sm:$0xff] %v15827_v19  ;;  %18318 = vst [vmem:[#allocation134_spill] sm:$0xff] %v15835_v56  ;;  %v9888_v19 = vpack.c.bf16 %v5482_v9, %v5481_v41  ;;  %v15863_v41 = vld [vmem:[#allocation2 + $0x150] sm:$0xff]  ;;  %v15869_v9 = vld [vmem:[#allocation2 + $0x158] sm:$0xff]  ;;  %5606 = vmatprep.mubr.f32.mxu1 %v15433_v5 }
 0x754   : > { %18319 = vst [vmem:[#allocation135_spill] sm:$0xff] %v15837_v63  ;;  %5015 = vst [vmem:[#allocation3 + $0x438] sm:$0xff] %v15818_v31  ;;  %v5484_v31 = vld [vmem:[#allocation9 + $0x2e8] sm:$0xff] }
 0x755   : > { %5016 = vst [vmem:[#allocation3 + $0x450] sm:$0xff] %v15820_v57  ;;  %4915 = vst [vmem:[#allocation2 + $0x1a8] sm:$0xff] %v15829_v20  ;;  %v5483_v57 = vld [vmem:[#allocation9 + $0x2e0] sm:$0xff]  ;;  %9889 = vmatpush3.bf16.msra.mxu1 %v9888_v19 }
 0x756   : > { %5004 = vst [vmem:[#allocation3 + $0x330] sm:$0xff] %v15835_v56  ;;  %5005 = vst [vmem:[#allocation3 + $0x348] sm:$0xff] %v15837_v63  ;;  %v15854_v56 = vld [vmem:[#allocation2 + $0x138] sm:$0xff]  ;;  %v15859_v63 = vld [vmem:[#allocation2 + $0x140] sm:$0xff]  ;;  %9890 = vmatprep.subr.bf16.mxu1 %v18313_v30  ;;  %5607 = vmatmul.mubr.f32.gmra.mrb[22].mxu1 %v15743_v26 }
 0x757   : > { %5017 = vst [vmem:[#allocation3 + $0x468] sm:$0xff] %v15829_v20  ;;  %5006 = vst [vmem:[#allocation3 + $0x360] sm:$0xff] %v15844_v33  ;;  %v15873_v20 = vld [vmem:[#allocation2 + $0x180] sm:$0xff]  ;;  %5611 = vmatprep.mubr.f32.mxu1 %v15444_v7  ;;  %v11296_v26 = vld [vmem:[#allocation3 + $0x488] sm:$0xff] }
 0x758   : > { %5007 = vst [vmem:[#allocation3 + $0x378] sm:$0xff] %v15846_v42  ;;  %5008 = vst [vmem:[#allocation3 + $0x390] sm:$0xff] %v15848_v12  ;;  %v15902_v19 = vld [vmem:[#allocation2 + $0x62] sm:$0xff]  ;;  %v18390_v3 = vld [vmem:[#allocation133_spill] sm:$0xff] }
 0x759   : > { %18320 = vst [vmem:[#allocation136_spill] sm:$0xff] %v15854_v56  ;;  %5009 = vst [vmem:[#allocation3 + $0x3a8] sm:$0xff] %v15854_v56  ;;  %v15878_v56 = vld [vmem:[#allocation2 + $0x1a] sm:$0xff]  ;;  %v5074_v6 = vld [vmem:[#allocation2 + $0x191] sm:$0xff] }
 0x75a   : > { %18321 = vst [vmem:[#allocation137_spill] sm:$0xff] %v15859_v63  ;;  %18322 = vst [vmem:[#allocation138_spill] sm:$0xff] %v15861_v17  ;;  %5612 = vmatmul.mubr.f32.gmra.mrb[24].mxu1 %v15755_v11  ;;  %v5075_v5 = vld [vmem:[#allocation2 + $0x199] sm:$0xff]  ;;  %v11297_v11 = vld [vmem:[#allocation3 + $0x4a0] sm:$0xff] }
 0x75b   : > { %18323 = vst [vmem:[#allocation57_spill] sm:$0xff] %v15863_v41  ;;  %5010 = vst [vmem:[#allocation3 + $0x3c0] sm:$0xff] %v15859_v63  ;;  %v15882_v63 = vld [vmem:[#allocation2 + $0x32] sm:$0xff]  ;;  %5616 = vmatprep.mubr.f32.mxu1 %v15449_v13 }
 0x75c   : > { %5011 = vst [vmem:[#allocation3 + $0x3d8] sm:$0xff] %v15861_v17  ;;  %5012 = vst [vmem:[#allocation3 + $0x3f0] sm:$0xff] %v15863_v41  ;;  %v9891_v41 = vpack.c.bf16 %v5484_v31, %v5483_v57  ;;  %v15887_v17 = vld [vmem:[#allocation2 + $0x3a] sm:$0xff]  ;;  %v15898_v31 = vld [vmem:[#allocation2 + $0x52] sm:$0xff] }
 0x75d   : > { %18324 = vst [vmem:[#allocation59_spill] sm:$0xff] %v15869_v9  ;;  %18325 = vst [vmem:[#allocation61_spill] sm:$0xff] %v15871_v61  ;;  %v15900_v57 = vld [vmem:[#allocation2 + $0x5a] sm:$0xff] }
 0x75e   : > { %5013 = vst [vmem:[#allocation3 + $0x408] sm:$0xff] %v15869_v9  ;;  %5014 = vst [vmem:[#allocation3 + $0x420] sm:$0xff] %v15871_v61  ;;  %v15889_v9 = vld [vmem:[#allocation2 + $0x42] sm:$0xff]  ;;  %v15891_v61 = vld [vmem:[#allocation2 + $0x4a] sm:$0xff]  ;;  %9892 = vmatpush3.bf16.msra.mxu1 %v9891_v41 }
 0x75f   : > { %5018 = vst [vmem:[#allocation3 + $0x480] sm:$0xff] %v15873_v20  ;;  %5189 = vst [vmem:[#allocation3 + $0x58] sm:$0xff] %v15878_v56  ;;  %9893 = vmatprep.subr.bf16.mxu1 %v18313_v30  ;;  %v15931_v41 = vld [vmem:[#allocation2 + $0xa2] sm:$0xff]  ;;  %5617 = vmatmul.mubr.f32.gmra.mrb[26].mxu1 %v15757_v38  ;;  %v4967_v7 = vld [vmem:[#allocation2 + $0x198] sm:$0xff] }
 0x760   : > { %5190 = vst [vmem:[#allocation3 + $0x70] sm:$0xff] %v15880_v54  ;;  %5192 = vst [vmem:[#allocation3 + $0xa0] sm:$0xff] %v15882_v63  ;;  %5621 = vmatprep.mubr.f32.mxu1 %v15454_v32  ;;  %v5076_v13 = vld [vmem:[#allocation2 + $0x1a1] sm:$0xff] }
 0x761   : > { %18326 = vst [vmem:[#allocation63_spill] sm:$0xff] %v15887_v17  ;;  %18327 = vst [vmem:[#allocation120_spill] sm:$0xff] %v15889_v9  ;;  %v4968_v32 = vld [vmem:[#allocation2 + $0x1a0] sm:$0xff] }
 0x762   : > { %18328 = vst [vmem:[#allocation65_spill] sm:$0xff] %v15891_v61  ;;  %5193 = vst [vmem:[#allocation3 + $0xb8] sm:$0xff] %v15887_v17  ;;  %v15915_v17 = vld [vmem:[#allocation2 + $0x82] sm:$0xff] }
 0x763   : > { %5194 = vst [vmem:[#allocation3 + $0xd0] sm:$0xff] %v15889_v9  ;;  %5195 = vst [vmem:[#allocation3 + $0xe8] sm:$0xff] %v15891_v61  ;;  %v15911_v9 = vld [vmem:[#allocation2 + $0x72] sm:$0xff]  ;;  %v15913_v61 = vld [vmem:[#allocation2 + $0x7a] sm:$0xff]  ;;  %5622 = vmatmul.mubr.f32.gmra.mrb[28].mxu1 %v15759_v45 }
 0x764   : > { %18329 = vst [vmem:[#allocation119_spill] sm:$0xff] %v15900_v57  ;;  %18330 = vst [vmem:[#allocation67_spill] sm:$0xff] %v15902_v19  ;;  %5626 = vmatprep.mubr.f32.mxu1 %v15459_v10  ;;  %v18366_v10 = vld [vmem:[#allocation101_spill] sm:$0xff]  ;;  %v5381_v38 = vld [vmem:[#allocation9] sm:$0xff] }
 0x765   : > { %5196 = vst [vmem:[#allocation3 + $0x100] sm:$0xff] %v15898_v31  ;;  %5197 = vst [vmem:[#allocation3 + $0x118] sm:$0xff] %v15900_v57  ;;  %v15924_v57 = vld [vmem:[#allocation2 + $0x9a] sm:$0xff]  ;;  %v5382_v45 = vld [vmem:[#allocation9 + $0x8] sm:$0xff] }
 0x766   : > { %5198 = vst [vmem:[#allocation3 + $0x130] sm:$0xff] %v15902_v19  ;;  %5199 = vst [vmem:[#allocation3 + $0x148] sm:$0xff] %v15908_v52  ;;  %v15922_v19 = vld [vmem:[#allocation2 + $0x92] sm:$0xff] }
 0x767   : > { %18331 = vst [vmem:[#allocation118_spill] sm:$0xff] %v15913_v61  ;;  %18332 = vst [vmem:[#allocation102_spill] sm:$0xff] %v15915_v17  ;;  %5627 = vmatmul.mubr.f32.gmra.mrb[30].mxu1 %v15769_v39  ;;  %v5182_v39 = vld [vmem:[#allocation2 + $0x192] sm:$0xff] }
 0x768   : > { %5200 = vst [vmem:[#allocation3 + $0x160] sm:$0xff] %v15911_v9  ;;  %5201 = vst [vmem:[#allocation3 + $0x178] sm:$0xff] %v15913_v61  ;;  %v15933_v61 = vld [vmem:[#allocation2 + $0xaa] sm:$0xff]  ;;  %5631 = vmatprep.mubr.f32.mxu1 %v15473_v62  ;;  %v18367_v62 = vld [vmem:[#allocation134_spill] sm:$0xff] }
 0x769   : > { %5202 = vst [vmem:[#allocation3 + $0x190] sm:$0xff] %v15915_v17  ;;  %18333 = vst [vmem:[#allocation74_spill] sm:$0xff] %v15920_v18  ;;  %v15935_v17 = vld [vmem:[#allocation2 + $0xb2] sm:$0xff] }
 0x76a   : > { %18334 = vst [vmem:[#allocation95_spill] sm:$0xff] %v15922_v19  ;;  %18335 = vst [vmem:[#allocation117_spill] sm:$0xff] %v15924_v57 }
 0x76b   : > { %5203 = vst [vmem:[#allocation3 + $0x1a8] sm:$0xff] %v15920_v18  ;;  %5204 = vst [vmem:[#allocation3 + $0x1c0] sm:$0xff] %v15922_v19  ;;  %v15943_v18 = vld [vmem:[#allocation2 + $0xc2] sm:$0xff]  ;;  %v15945_v19 = vld [vmem:[#allocation2 + $0xca] sm:$0xff]  ;;  %5632 = vmatmul.mubr.f32.gmra.mrb[32].mxu1 %v15771_v51 }
 0x76c   : > { %5205 = vst [vmem:[#allocation3 + $0x1d8] sm:$0xff] %v15924_v57  ;;  %18336 = vst [vmem:[#allocation103_spill] sm:$0xff] %v15931_v41  ;;  %v15950_v57 = vld [vmem:[#allocation2 + $0xd2] sm:$0xff]  ;;  %5636 = vmatprep.mubr.f32.mxu1 %v15479_v8  ;;  %v5183_v51 = vld [vmem:[#allocation2 + $0x19a] sm:$0xff] }
 0x76d   : > { %18337 = vst [vmem:[#allocation80_spill] sm:$0xff] %v15933_v61  ;;  %18338 = vst [vmem:[#allocation94_spill] sm:$0xff] %v15935_v17  ;;  %v18368_v8 = vld [vmem:[#allocation97_spill] sm:$0xff] }
 0x76e   : > { %5206 = vst [vmem:[#allocation3 + $0x1f0] sm:$0xff] %v15931_v41  ;;  %5207 = vst [vmem:[#allocation3 + $0x208] sm:$0xff] %v15933_v61  ;;  %v15954_v41 = vld [vmem:[#allocation2 + $0xe2] sm:$0xff]  ;;  %v15961_v61 = vld [vmem:[#allocation2 + $0xf2] sm:$0xff] }
 0x76f   : > { %5208 = vst [vmem:[#allocation3 + $0x220] sm:$0xff] %v15935_v17  ;;  %18339 = vst [vmem:[#allocation116_spill] sm:$0xff] %v15941_v37  ;;  %v15959_v17 = vld [vmem:[#allocation2 + $0xea] sm:$0xff]  ;;  %5637 = vmatmul.mubr.f32.gmra.mrb[34].mxu1 %v15773_v14  ;;  %v5184_v14 = vld [vmem:[#allocation2 + $0x1a2] sm:$0xff] }
 0x770   : > { %18340 = vst [vmem:[#allocation104_spill] sm:$0xff] %v15945_v19  ;;  %5209 = vst [vmem:[#allocation3 + $0x238] sm:$0xff] %v15941_v37  ;;  %v15963_v37 = vld [vmem:[#allocation2 + $0xfa] sm:$0xff]  ;;  %5641 = vmatprep.mubr.f32.mxu1 %v15485_v4 }
 0x771   : > { %5210 = vst [vmem:[#allocation3 + $0x250] sm:$0xff] %v15943_v18  ;;  %5211 = vst [vmem:[#allocation3 + $0x268] sm:$0xff] %v15945_v19  ;;  %v15969_v19 = vld [vmem:[#allocation2 + $0x102] sm:$0xff] }
 0x772   : > { %18341 = vst [vmem:[#allocation81_spill] sm:$0xff] %v15950_v57  ;;  %18342 = vst [vmem:[#allocation93_spill] sm:$0xff] %v15952_v28  ;;  %v18369_v4 = vld [vmem:[#allocation135_spill] sm:$0xff] }
 0x773   : > { %5212 = vst [vmem:[#allocation3 + $0x280] sm:$0xff] %v15950_v57  ;;  %5213 = vst [vmem:[#allocation3 + $0x298] sm:$0xff] %v15952_v28  ;;  %v15971_v57 = vld [vmem:[#allocation2 + $0x10a] sm:$0xff]  ;;  %v15973_v28 = vld [vmem:[#allocation2 + $0x112] sm:$0xff]  ;;  %5642 = vmatmul.mubr.f32.gmra.mrb[36].mxu1 %v15782_v16 }
 0x774   : > { %5214 = vst [vmem:[#allocation3 + $0x2b0] sm:$0xff] %v15954_v41  ;;  %18343 = vst [vmem:[#allocation115_spill] sm:$0xff] %v15959_v17  ;;  %5646 = vmatprep.mubr.f32.mxu1 %v15491_v50  ;;  %v18370_v50 = vld [vmem:[#allocation106_spill] sm:$0xff]  ;;  %v18388_v16 = vld [vmem:[#allocation131_spill] sm:$0xff] }
 0x775   : > { %18344 = vst [vmem:[#allocation98_spill] sm:$0xff] %v15961_v61  ;;  %18345 = vst [vmem:[#allocation82_spill] sm:$0xff] %v15963_v37 }
 0x776   : > { %5215 = vst [vmem:[#allocation3 + $0x2c8] sm:$0xff] %v15959_v17  ;;  %5216 = vst [vmem:[#allocation3 + $0x2e0] sm:$0xff] %v15961_v61  ;;  %v15981_v17 = vld [vmem:[#allocation2 + $0x122] sm:$0xff]  ;;  %v15983_v61 = vld [vmem:[#allocation2 + $0x12a] sm:$0xff] }
 0x777   : > { %5217 = vst [vmem:[#allocation3 + $0x2f8] sm:$0xff] %v15963_v37  ;;  %18346 = vst [vmem:[#allocation92_spill] sm:$0xff] %v15969_v19  ;;  %v15988_v37 = vld [vmem:[#allocation2 + $0x132] sm:$0xff]  ;;  %5647 = vmatmul.mubr.f32.gmra.mrb[38].mxu1 %v15784_v29  ;;  %v18385_v29 = vld [vmem:[#allocation127_spill] sm:$0xff] }
 0x778   : > { %18347 = vst [vmem:[#allocation114_spill] sm:$0xff] %v15971_v57  ;;  %18348 = vst [vmem:[#allocation88_spill] sm:$0xff] %v15973_v28  ;;  %5651 = vmatprep.mubr.f32.mxu1 %v15505_v22  ;;  %v18373_v22 = vld [vmem:[#allocation122_spill] sm:$0xff] }
 0x779   : > { %5218 = vst [vmem:[#allocation3 + $0x310] sm:$0xff] %v15969_v19  ;;  %5219 = vst [vmem:[#allocation3 + $0x328] sm:$0xff] %v15971_v57  ;;  %v15992_v19 = vld [vmem:[#allocation2 + $0x142] sm:$0xff]  ;;  %v15999_v57 = vld [vmem:[#allocation2 + $0x152] sm:$0xff] }
 0x77a   : > { %5220 = vst [vmem:[#allocation3 + $0x340] sm:$0xff] %v15973_v28  ;;  %18349 = vst [vmem:[#allocation83_spill] sm:$0xff] %v15979_v46  ;;  %v15997_v28 = vld [vmem:[#allocation2 + $0x14a] sm:$0xff] }
 0x77b   : > { %18350 = vst [vmem:[#allocation109_spill] sm:$0xff] %v15981_v17  ;;  %18351 = vst [vmem:[#allocation113_spill] sm:$0xff] %v15983_v61  ;;  %5652 = vmatmul.mubr.f32.gmra.mrb[40].mxu1 %v15786_v36  ;;  %v18364_v36 = vld [vmem:[#allocation96_spill] sm:$0xff] }
 0x77c   : > { %5221 = vst [vmem:[#allocation3 + $0x358] sm:$0xff] %v15979_v46  ;;  %5222 = vst [vmem:[#allocation3 + $0x370] sm:$0xff] %v15981_v17  ;;  %v16001_v46 = vld [vmem:[#allocation2 + $0x15a] sm:$0xff]  ;;  %v16028_v17 = vld [vmem:[#allocation2 + $0x11] sm:$0xff]  ;;  %5656 = vmatprep.mubr.f32.mxu1 %v15511_v47 }
 0x77d   : > { %5223 = vst [vmem:[#allocation3 + $0x388] sm:$0xff] %v15983_v61  ;;  %18352 = vst [vmem:[#allocation90_spill] sm:$0xff] %v15988_v37  ;;  %v16007_v61 = vld [vmem:[#allocation2 + $0x162] sm:$0xff] }
 0x77e   : > { %18353 = vst [vmem:[#allocation84_spill] sm:$0xff] %v15990_v49  ;;  %18354 = vst [vmem:[#allocation107_spill] sm:$0xff] %v15992_v19  ;;  %v18374_v47 = vld [vmem:[#allocation136_spill] sm:$0xff] }
 0x77f   : > { %5224 = vst [vmem:[#allocation3 + $0x3a0] sm:$0xff] %v15988_v37  ;;  %5225 = vst [vmem:[#allocation3 + $0x3b8] sm:$0xff] %v15990_v49  ;;  %v16009_v37 = vld [vmem:[#allocation2 + $0x16a] sm:$0xff]  ;;  %v16011_v49 = vld [vmem:[#allocation2 + $0x172] sm:$0xff]  ;;  %5657 = vmatmul.mubr.f32.gmra.mrb[42].mxu1 %v15792_v60 }
 0x780   : > { %5226 = vst [vmem:[#allocation3 + $0x3d0] sm:$0xff] %v15992_v19  ;;  %18355 = vst [vmem:[#allocation112_spill] sm:$0xff] %v15997_v28  ;;  %v16026_v19 = vld [vmem:[#allocation2 + $0x8] sm:$0xff]  ;;  %5661 = vmatprep.mubr.f32.mxu1 %v15517_v21  ;;  %v18375_v21 = vld [vmem:[#allocation123_spill] sm:$0xff] }
 0x781   : > { %18356 = vst [vmem:[#allocation89_spill] sm:$0xff] %v15999_v57  ;;  %18357 = vst [vmem:[#allocation85_spill] sm:$0xff] %v16001_v46  ;;  %v11298_v60 = vld [vmem:[#allocation3 + $0x498] sm:$0xff] }
 0x782   : > { %5227 = vst [vmem:[#allocation3 + $0x3e8] sm:$0xff] %v15997_v28  ;;  %5228 = vst [vmem:[#allocation3 + $0x400] sm:$0xff] %v15999_v57  ;;  %v16019_v28 = vld [vmem:[#allocation2 + $0x1] sm:$0xff] }
 0x783   : > { %5229 = vst [vmem:[#allocation3 + $0x418] sm:$0xff] %v16001_v46  ;;  %18358 = vst [vmem:[#allocation108_spill] sm:$0xff] %v16007_v61  ;;  %v16021_v57 = vld [vmem:[#allocation2] sm:$0xff]  ;;  %v16024_v46 = vld [vmem:[#allocation2 + $0x9] sm:$0xff]  ;;  %5662 = vmatmul.mubr.f32.gmra.mrb[44].mxu1 %v15794_v48  ;;  %v18391_v48 = vmov 0.0  }
 0x784   : > { %18359 = vst [vmem:[#allocation111_spill] sm:$0xff] %v16009_v37  ;;  %18360 = vst [vmem:[#allocation99_spill] sm:$0xff] %v16011_v49  ;;  %5666 = vmatprep.mubr.f32.mxu1 %v15523_v23  ;;  %v18376_v23 = vld [vmem:[#allocation137_spill] sm:$0xff] }
 0x785   : > { %5230 = vst [vmem:[#allocation3 + $0x430] sm:$0xff] %v16007_v61  ;;  %5231 = vst [vmem:[#allocation3 + $0x448] sm:$0xff] %v16009_v37  ;;  %v16032_v61 = vld [vmem:[#allocation2 + $0x2] sm:$0xff]  ;;  %v16034_v37 = vld [vmem:[#allocation2 + $0xa] sm:$0xff] }
 0x786   : > { %5232 = vst [vmem:[#allocation3 + $0x460] sm:$0xff] %v16011_v49  ;;  %18361 = vst [vmem:[#allocation86_spill] sm:$0xff] %v16017_v35  ;;  %v16037_v49 = vld [vmem:[#allocation2 + $0x12] sm:$0xff] }
 0x787   : > { %18362 = vst [vmem:[#allocation91_spill] sm:$0xff] %v16019_v28  ;;  %18363 = vst [vmem:[#allocation110_spill] sm:$0xff] %v16021_v57  ;;  %v5485_v57 = vld [vmem:[#allocation9 + $0x2f0] sm:$0xff]  ;;  %v5486_v28 = vld [vmem:[#allocation9 + $0x2f8] sm:$0xff]  ;;  %5667 = vmatmul.mubr.f32.gmra.mrb[46].mxu1 %v15796_v1  ;;  %v9897_v1 = vpack.c.bf16 %v5382_v45, %v5381_v38 }
 0x788   : > { %5233 = vst [vmem:[#allocation3 + $0x478] sm:$0xff] %v16017_v35  ;;  %v9894_v35 = vpack.c.bf16 %v5486_v28, %v5485_v57  ;;  %5128 = vst [vmem:[#allocation3 + $0x4b8] sm:$0xff] %v5074_v6  ;;  %5671 = vmatprep.mubr.f32.mxu1 %v15537_v27  ;;  %v18377_v27 = vld [vmem:[#allocation124_spill] sm:$0xff]  ;;  %v5387_v6 = vld [vmem:[#allocation9 + $0x30] sm:$0xff] }
 0x789   : > { %5129 = vst [vmem:[#allocation3 + $0x4d0] sm:$0xff] %v5075_v5  ;;  %5021 = vst [vmem:[#allocation3 + $0x4c8] sm:$0xff] %v4967_v7  ;;  %v5386_v28 = vld [vmem:[#allocation9 + $0x28] sm:$0xff]  ;;  %v18393_v5 = vld [vmem:[#allocation78_spill] sm:$0xff] }
 0x78a   : > { %9895 = vmatpush3.bf16.msra.mxu1 %v9894_v35  ;;  %5130 = vst [vmem:[#allocation3 + $0x4e8] sm:$0xff] %v5076_v13  ;;  %5022 = vst [vmem:[#allocation3 + $0x4e0] sm:$0xff] %v4968_v32  ;;  %v5389_v13 = vld [vmem:[#allocation9 + $0x40] sm:$0xff]  ;;  %v5411_v45 = vld [vmem:[#allocation9 + $0xf0] sm:$0xff] }
 0x78b   : > { %9896 = vmatprep.subr.bf16.mxu1 %v18313_v30  ;;  %5236 = vst [vmem:[#allocation3 + $0x4c0] sm:$0xff] %v5182_v39  ;;  %5237 = vst [vmem:[#allocation3 + $0x4d8] sm:$0xff] %v5183_v51  ;;  %5672 = vmatmul.mubr.f32.gmra.mrb[48].mxu1 %v15801_v59  ;;  %v18365_v59 = vld [vmem:[#allocation132_spill] sm:$0xff]  ;;  %v5391_v39 = vld [vmem:[#allocation9 + $0x50] sm:$0xff] }
 0x78c   : > { %5238 = vst [vmem:[#allocation3 + $0x4f0] sm:$0xff] %v5184_v14  ;;  %5676 = vmatprep.mubr.f32.mxu1 %v15543_v15  ;;  %v18378_v15 = vld [vmem:[#allocation138_spill] sm:$0xff]  ;;  %v18394_v14 = vld [vmem:[#allocation63_spill] sm:$0xff] }
 0x78d   : > { %v5392_v51 = vld [vmem:[#allocation9 + $0x58] sm:$0xff] }
 0x78f   : > { %5677 = vmatmul.mubr.f32.gmra.mrb[50].mxu1 %v15803_v53  ;;  %v5383_v53 = vld [vmem:[#allocation9 + $0x10] sm:$0xff] }
 0x790   : > { %5681 = vmatprep.mubr.f32.mxu1 %v15549_v58  ;;  %v18380_v58 = vld [vmem:[#allocation57_spill] sm:$0xff] }
 0x793   : > { %5682 = vmatmul.mubr.f32.gmra.mrb[52].mxu1 %v15805_v40  ;;  %v18387_v40 = vld [vmem:[#allocation128_spill] sm:$0xff] }
 0x794   : > { %5686 = vmatprep.mubr.f32.mxu1 %v15555_v0  ;;  %v18382_v0 = vld [vmem:[#allocation59_spill] sm:$0xff] }
 0x797   : > { %5687 = vmatmul.mubr.f32.gmra.mrb[54].mxu1 %v15812_v43  ;;  %v18386_v43 = vld [vmem:[#allocation130_spill] sm:$0xff] }
 0x798   : > { %5691 = vmatprep.mubr.f32.mxu1 %v15569_v2  ;;  %v18383_v2 = vld [vmem:[#allocation126_spill] sm:$0xff] }
 0x79b   : > { %5692 = vmatmul.mubr.f32.gmra.mrb[56].mxu1 %v15814_v25  ;;  %v18371_v25 = vld [vmem:[#allocation79_spill] sm:$0xff] }
 0x79c   : > { %5696 = vmatprep.mubr.f32.mxu1 %v15575_v34  ;;  %v18384_v34 = vld [vmem:[#allocation61_spill] sm:$0xff] }
 0x79f   : > { %5697 = vmatmul.mubr.f32.gmra.mrb[58].mxu1 %v15816_v24  ;;  %v18372_v24 = vld [vmem:[#allocation105_spill] sm:$0xff] }
 0x7a0   : > { %5701 = vmatprep.mubr.f32.mxu1 %v18364_v36  ;;  %v9912_v36 = vpack.c.bf16 %v5392_v51, %v5391_v39  ;;  %v18416_v39 = vld [vmem:[#allocation88_spill] sm:$0xff]  ;;  %v18417_v51 = vld [vmem:[#allocation83_spill] sm:$0xff] }
 0x7a3   : > { %5702 = vmatmul.mubr.f32.gmra.mrb[60].mxu1 %v18365_v59  ;;  %v5393_v59 = vld [vmem:[#allocation9 + $0x60] sm:$0xff] }
 0x7a4   : > { %5706 = vmatprep.mubr.f32.mxu1 %v18366_v10  ;;  %v18395_v10 = vld [vmem:[#allocation120_spill] sm:$0xff] }
 0x7a7   : > { %5707 = vmatmul.mubr.f32.gmra.mrb[62].mxu1 %v18367_v62 }
 0x7a8   : > { %5711 = vmatprep.mubr.f32.mxu1 %v18368_v8  ;;  %v5395_v8 = vld [vmem:[#allocation9 + $0x70] sm:$0xff] }
 0x7ab   : > { %5712 = vmatmul.mubr.f32.gmra.mrb[64].mxu1 %v18369_v4  ;;  %v5396_v4 = vld [vmem:[#allocation9 + $0x78] sm:$0xff] }
 0x7ac   : > { %5716 = vmatprep.mubr.f32.mxu1 %v18370_v50  ;;  %v18396_v50 = vld [vmem:[#allocation65_spill] sm:$0xff] }
 0x7af   : > { %5717 = vmatmul.mubr.f32.gmra.mrb[66].mxu1 %v15844_v33  ;;  %v18379_v33 = vld [vmem:[#allocation121_spill] sm:$0xff] }
 0x7b0   : > { %5721 = vmatprep.mubr.f32.mxu1 %v18371_v25  ;;  %v9918_v25 = vpack.c.bf16 %v5396_v4, %v5395_v8  ;;  %v18424_v8 = vld [vmem:[#allocation89_spill] sm:$0xff] }
 0x7b1   : > { %v18425_v4 = vld [vmem:[#allocation85_spill] sm:$0xff] }
 0x7b3   : > { %5722 = vmatmul.mubr.f32.gmra.mrb[68].mxu1 %v15846_v42  ;;  %v18381_v42 = vld [vmem:[#allocation125_spill] sm:$0xff] }
 0x7b4   : > { %5726 = vmatprep.mubr.f32.mxu1 %v18372_v24  ;;  %v5397_v24 = vld [vmem:[#allocation9 + $0x80] sm:$0xff] }
 0x7b7   : > { %5727 = vmatmul.mubr.f32.gmra.mrb[70].mxu1 %v15848_v12  ;;  %v5384_v12 = vld [vmem:[#allocation9 + $0x18] sm:$0xff] }
 0x7b8   : > { %5731 = vmatprep.mubr.f32.mxu1 %v18373_v22  ;;  %v9900_v57 = vpack.c.bf16 %v5384_v12, %v5383_v53  ;;  %v5398_v22 = vld [vmem:[#allocation9 + $0x88] sm:$0xff]  ;;  %v18402_v12 = vld [vmem:[#allocation95_spill] sm:$0xff] }
 0x7bb   : > { %5732 = vmatmul.mubr.f32.gmra.mrb[72].mxu1 %v18374_v47  ;;  %v9921_v47 = vpack.c.bf16 %v5398_v22, %v5397_v24  ;;  %v18428_v24 = vld [vmem:[#allocation99_spill] sm:$0xff]  ;;  %v18429_v22 = vld [vmem:[#allocation86_spill] sm:$0xff] }
 0x7bc   : > { %5736 = vmatprep.mubr.f32.mxu1 %v18375_v21  ;;  %v5399_v21 = vld [vmem:[#allocation9 + $0x90] sm:$0xff] }
 0x7bf   : > { %5737 = vmatmul.mubr.f32.gmra.mrb[74].mxu1 %v18376_v23  ;;  %v5400_v23 = vld [vmem:[#allocation9 + $0x98] sm:$0xff] }
 0x7c0   : > { %5741 = vmatprep.mubr.f32.mxu1 %v18377_v27  ;;  %v18397_v27 = vld [vmem:[#allocation119_spill] sm:$0xff] }
 0x7c3   : > { %5742 = vmatmul.mubr.f32.gmra.mrb[76].mxu1 %v18378_v15  ;;  %v9924_v15 = vpack.c.bf16 %v5400_v23, %v5399_v21  ;;  %v5413_v21 = vld [vmem:[#allocation9 + $0x100] sm:$0xff]  ;;  %v5414_v23 = vld [vmem:[#allocation9 + $0x108] sm:$0xff] }
 0x7c4   : > { %5746 = vmatprep.mubr.f32.mxu1 %v18379_v33  ;;  %v5401_v33 = vld [vmem:[#allocation9 + $0xa0] sm:$0xff] }
 0x7c7   : > { %5747 = vmatmul.mubr.f32.gmra.mrb[78].mxu1 %v18380_v58  ;;  %v18398_v58 = vld [vmem:[#allocation67_spill] sm:$0xff] }
 0x7c8   : > { %5751 = vmatprep.mubr.f32.mxu1 %v18381_v42 }
 0x7cb   : > { %5752 = vmatmul.mubr.f32.gmra.mrb[80].mxu1 %v18382_v0  ;;  %v5403_v0 = vld [vmem:[#allocation9 + $0xb0] sm:$0xff] }
 0x7cc   : > { %5756 = vmatprep.mubr.f32.mxu1 %v18383_v2  ;;  %v5404_v2 = vld [vmem:[#allocation9 + $0xb8] sm:$0xff] }
 0x7cf   : > { %5757 = vmatmul.mubr.f32.gmra.mrb[82].mxu1 %v18384_v34  ;;  %v9930_v34 = vpack.c.bf16 %v5404_v2, %v5403_v0  ;;  %v5417_v2 = vld [vmem:[#allocation9 + $0x120] sm:$0xff] }
 0x7d0   : > { %5761 = vmatprep.mubr.f32.mxu1 %v18385_v29  ;;  %v5405_v29 = vld [vmem:[#allocation9 + $0xc0] sm:$0xff] }
 0x7d3   : > { %5762 = vmatmul.mubr.f32.gmra.mrb[84].mxu1 %v18386_v43  ;;  %v5406_v43 = vld [vmem:[#allocation9 + $0xc8] sm:$0xff] }
 0x7d4   : > { %5766 = vmatprep.mubr.f32.mxu1 %v18387_v40  ;;  %v9933_v40 = vpack.c.bf16 %v5406_v43, %v5405_v29  ;;  %v5419_v43 = vld [vmem:[#allocation9 + $0x130] sm:$0xff] }
 0x7d7   : > { %5767 = vmatmul.mubr.f32.gmra.mrb[86].mxu1 %v18388_v16  ;;  %v5407_v16 = vld [vmem:[#allocation9 + $0xd0] sm:$0xff] }
 0x7d8   : > { %5771 = vmatprep.mubr.f32.mxu1 %v18389_v44  ;;  %v18399_v44 = vld [vmem:[#allocation118_spill] sm:$0xff] }
 0x7db   : > { %5772 = vmatmul.mubr.f32.gmra.mrb[88].mxu1 %v18390_v3 }
 0x7dc   : > { %5776 = vmatprep.mubr.f32.mxu1 %v11296_v26  ;;  %v5409_v26 = vld [vmem:[#allocation9 + $0xe0] sm:$0xff] }
 0x7df   : > { %5777 = vmatmul.mubr.f32.gmra.mrb[90].mxu1 %v15873_v20  ;;  %v5385_v20 = vld [vmem:[#allocation9 + $0x20] sm:$0xff] }
 0x7e0   : > { %5781 = vmatprep.mubr.f32.mxu1 %v11297_v11  ;;  %v9903_v35 = vpack.c.bf16 %v5386_v28, %v5385_v20  ;;  %v18400_v11 = vld [vmem:[#allocation102_spill] sm:$0xff]  ;;  %v18404_v20 = vld [vmem:[#allocation103_spill] sm:$0xff]  ;;  %v18405_v28 = vld [vmem:[#allocation80_spill] sm:$0xff] }
 0x7e3   : > { %5782 = vmatmul.mubr.f32.gmra.mrb[92].mxu1 %v11298_v60  ;;  %v5412_v60 = vld [vmem:[#allocation9 + $0xf8] sm:$0xff] }
 0x7e4   : > { %9121 = vmatprep.mubr.msk.f32.mxu1 %vm18392_vm1, %v18391_v48  ;;  %v9942_v53 = vpack.c.bf16 %v5412_v60, %v5411_v45  ;;  %v5425_v45 = vld [vmem:[#allocation9 + $0x160] sm:$0xff]  ;;  %v5426_v60 = vld [vmem:[#allocation9 + $0x168] sm:$0xff] }
 0x7e7   : > { %9122 = vmatmul.mubr.f32.vlgmr.msra.gmra.mrb[0].mxu1 %v15878_v56  ;;  %v5388_v56 = vld [vmem:[#allocation9 + $0x38] sm:$0xff] }
 0x7e8   : > { %9898 = vmatpush1.bf16.msra.mxu1 %v9897_v1  ;;  %9124 = vmatprep.mubr.msk.f32.mxu1 %vm18392_vm1, %v18391_v48  ;;  %v9906_v7 = vpack.c.bf16 %v5388_v56, %v5387_v6  ;;  %v18401_v1 = vld [vmem:[#allocation74_spill] sm:$0xff]  ;;  %v18407_v6 = vld [vmem:[#allocation116_spill] sm:$0xff] }
 0x7e9   : > { %9899 = vmatprep.subr.bf16.mxu1 %v18313_v30  ;;  %v18408_v56 = vld [vmem:[#allocation104_spill] sm:$0xff] }
 0x7eb   : > { %9125 = vmatmul.mubr.f32.gmra.mrb[2].mxu1 %v15880_v54  ;;  %v5390_v54 = vld [vmem:[#allocation9 + $0x48] sm:$0xff] }
 0x7ec   : > { %9127 = vmatprep.mubr.msk.f32.mxu1 %vm18392_vm1, %v18391_v48  ;;  %9901 = vmatpush1.bf16.msra.mxu1 %v9900_v57  ;;  %v9909_v32 = vpack.c.bf16 %v5390_v54, %v5389_v13  ;;  %v18403_v57 = vld [vmem:[#allocation117_spill] sm:$0xff]  ;;  %v18412_v13 = vld [vmem:[#allocation98_spill] sm:$0xff] }
 0x7ed   : > { %9902 = vmatprep.subr.bf16.mxu1 %v18313_v30  ;;  %v18413_v54 = vld [vmem:[#allocation82_spill] sm:$0xff] }
 0x7ef   : > { %9128 = vmatmul.mubr.f32.gmra.mrb[4].mxu1 %v18393_v5  ;;  %v18409_v5 = vld [vmem:[#allocation81_spill] sm:$0xff] }
 0x7f0   : > { %9130 = vmatprep.mubr.msk.f32.mxu1 %vm18392_vm1, %v18391_v48  ;;  %9904 = vmatpush1.bf16.msra.mxu1 %v9903_v35  ;;  %v18406_v35 = vld [vmem:[#allocation94_spill] sm:$0xff] }
 0x7f1   : > { %9905 = vmatprep.subr.bf16.mxu1 %v18313_v30 }
 0x7f3   : > { %9131 = vmatmul.mubr.f32.gmra.mrb[6].mxu1 %v15882_v63  ;;  %v5394_v63 = vld [vmem:[#allocation9 + $0x68] sm:$0xff] }
 0x7f4   : > { %9133 = vmatprep.mubr.msk.f32.mxu1 %vm18392_vm1, %v18391_v48  ;;  %9907 = vmatpush1.bf16.msra.mxu1 %v9906_v7  ;;  %v9915_v62 = vpack.c.bf16 %v5394_v63, %v5393_v59  ;;  %v18410_v7 = vld [vmem:[#allocation93_spill] sm:$0xff]  ;;  %v18420_v59 = vld [vmem:[#allocation90_spill] sm:$0xff]  ;;  %v18421_v63 = vld [vmem:[#allocation84_spill] sm:$0xff] }
 0x7f5   : > { %9908 = vmatprep.subr.bf16.mxu1 %v18313_v30 }
 0x7f7   : > { %9134 = vmatmul.mubr.f32.gmra.mrb[8].mxu1 %v18394_v14  ;;  %v18418_v14 = vld [vmem:[#allocation109_spill] sm:$0xff] }
 0x7f8   : > { %9136 = vmatprep.mubr.msk.f32.mxu1 %vm18392_vm1, %v18391_v48  ;;  %9910 = vmatpush1.bf16.msra.mxu1 %v9909_v32  ;;  %v18414_v32 = vld [vmem:[#allocation92_spill] sm:$0xff] }
 0x7f9   : > { %9911 = vmatprep.subr.bf16.mxu1 %v18313_v30 }
 0x7fb   : > { %9137 = vmatmul.mubr.f32.gmra.mrb[10].mxu1 %v18395_v10  ;;  %v18422_v10 = vld [vmem:[#allocation107_spill] sm:$0xff] }
 0x7fc   : > { %9139 = vmatprep.mubr.msk.f32.mxu1 %vm18392_vm1, %v18391_v48  ;;  %9913 = vmatpush1.bf16.msra.mxu1 %v9912_v36  ;;  %v18419_v36 = vld [vmem:[#allocation113_spill] sm:$0xff] }
 0x7fd   : > { %9914 = vmatprep.subr.bf16.mxu1 %v18313_v30 }
 0x7ff   : > { %9140 = vmatmul.mubr.f32.gmra.mrb[12].mxu1 %v18396_v50  ;;  %v18426_v50 = vld [vmem:[#allocation108_spill] sm:$0xff] }
 0x800   : > { %9142 = vmatprep.mubr.msk.f32.mxu1 %vm18392_vm1, %v18391_v48  ;;  %9916 = vmatpush1.bf16.msra.mxu1 %v9915_v62  ;;  %v18423_v62 = vld [vmem:[#allocation112_spill] sm:$0xff] }
 0x801   : > { %9917 = vmatprep.subr.bf16.mxu1 %v18313_v30 }
 0x803   : > { %9143 = vmatmul.mubr.f32.gmra.mrb[14].mxu1 %v15898_v31  ;;  %v5402_v31 = vld [vmem:[#allocation9 + $0xa8] sm:$0xff] }
 0x804   : > { %9145 = vmatprep.mubr.msk.f32.mxu1 %vm18392_vm1, %v18391_v48  ;;  %9919 = vmatpush1.bf16.msra.mxu1 %v9918_v25  ;;  %v9927_v42 = vpack.c.bf16 %v5402_v31, %v5401_v33  ;;  %v18427_v25 = vld [vmem:[#allocation111_spill] sm:$0xff]  ;;  %v9945_v33 = vpack.c.bf16 %v5414_v23, %v5413_v21  ;;  %v5415_v31 = vld [vmem:[#allocation9 + $0x110] sm:$0xff]  ;;  %v11334_v23 = vld [vmem:[#allocation3 + $0x1c8] sm:$0xff] }
 0x805   : > { %9920 = vmatprep.subr.bf16.mxu1 %v18313_v30  ;;  %v11333_v21 = vld [vmem:[#allocation2 + $0x99] sm:$0xff] }
 0x807   : > { %9146 = vmatmul.mubr.f32.gmra.mrb[16].mxu1 %v18397_v27  ;;  %v11300_v27 = vld [vmem:[#allocation3 + $0x4a8] sm:$0xff] }
 0x808   : > { %9148 = vmatprep.mubr.msk.f32.mxu1 %vm18392_vm1, %v18391_v48  ;;  %9922 = vmatpush1.bf16.msra.mxu1 %v9921_v47  ;;  %v11299_v47 = vld [vmem:[#allocation3 + $0x490] sm:$0xff] }
 0x809   : > { %9923 = vmatprep.subr.bf16.mxu1 %v18313_v30 }
 0x80b   : > { %9149 = vmatmul.mubr.f32.gmra.mrb[18].mxu1 %v18398_v58  ;;  %v5416_v58 = vld [vmem:[#allocation9 + $0x118] sm:$0xff] }
 0x80c   : > { %9151 = vmatprep.mubr.msk.f32.mxu1 %vm18392_vm1, %v18391_v48  ;;  %9925 = vmatpush1.bf16.msra.mxu1 %v9924_v15  ;;  %v18430_v15 = vld [vmem:[#allocation91_spill] sm:$0xff]  ;;  %v9948_v0 = vpack.c.bf16 %v5416_v58, %v5415_v31  ;;  %v11338_v31 = vld [vmem:[#allocation3 + $0x1f8] sm:$0xff]  ;;  %v11339_v58 = vld [vmem:[#allocation2 + $0xb1] sm:$0xff] }
 0x80d   : > { %9926 = vmatprep.subr.bf16.mxu1 %v18313_v30 }
 0x80f   : > { %9152 = vmatmul.mubr.f32.gmra.mrb[20].mxu1 %v15908_v52  ;;  %v5408_v52 = vld [vmem:[#allocation9 + $0xd8] sm:$0xff] }
 0x810   : > { %9154 = vmatprep.mubr.msk.f32.mxu1 %vm18392_vm1, %v18391_v48  ;;  %9928 = vmatpush1.bf16.msra.mxu1 %v9927_v42  ;;  %v9936_v3 = vpack.c.bf16 %v5408_v52, %v5407_v16  ;;  %v18431_v42 = vld [vmem:[#allocation110_spill] sm:$0xff]  ;;  %v11301_v16 = vld [vmem:[#allocation3 + $0x50] sm:$0xff] }
 0x811   : > { %9929 = vmatprep.subr.bf16.mxu1 %v18313_v30  ;;  %v5421_v52 = vld [vmem:[#allocation9 + $0x140] sm:$0xff] }
 0x813   : > { %9155 = vmatmul.mubr.f32.gmra.mrb[22].mxu1 %v15911_v9  ;;  %v5410_v9 = vld [vmem:[#allocation9 + $0xe8] sm:$0xff] }
 0x814   : > { %9157 = vmatprep.mubr.msk.f32.mxu1 %vm18392_vm1, %v18391_v48  ;;  %9931 = vmatpush1.bf16.msra.mxu1 %v9930_v34  ;;  %v9939_v38 = vpack.c.bf16 %v5410_v9, %v5409_v26  ;;  %v5418_v34 = vld [vmem:[#allocation9 + $0x128] sm:$0xff]  ;;  %v5423_v26 = vld [vmem:[#allocation9 + $0x150] sm:$0xff]  ;;  %v5424_v9 = vld [vmem:[#allocation9 + $0x158] sm:$0xff] }
 0x815   : > { %9932 = vmatprep.subr.bf16.mxu1 %v18313_v30  ;;  %v9951_v29 = vpack.c.bf16 %v5418_v34, %v5417_v2  ;;  %v11342_v2 = vld [vmem:[#allocation3 + $0x228] sm:$0xff]  ;;  %v11343_v34 = vld [vmem:[#allocation2 + $0xc1] sm:$0xff] }
 0x817   : > { %9158 = vmatmul.mubr.f32.gmra.mrb[24].mxu1 %v18399_v44  ;;  %v5422_v44 = vld [vmem:[#allocation9 + $0x148] sm:$0xff] }
 0x818   : > { %9160 = vmatprep.mubr.msk.f32.mxu1 %vm18392_vm1, %v18391_v48  ;;  %9934 = vmatpush1.bf16.msra.mxu1 %v9933_v40  ;;  %v5420_v40 = vld [vmem:[#allocation9 + $0x138] sm:$0xff] }
 0x819   : > { %9935 = vmatprep.subr.bf16.mxu1 %v18313_v30 }
 0x81b   : > { %9161 = vmatmul.mubr.f32.gmra.mrb[26].mxu1 %v18400_v11  ;;  %v11304_v11 = vld [vmem:[#allocation3 + $0x60] sm:$0xff] }
 0x81c   : > { %9163 = vmatprep.mubr.msk.f32.mxu1 %vm18392_vm1, %v18391_v48  ;;  %9937 = vmatpush1.bf16.msra.mxu1 %v9936_v3  ;;  %v11302_v3 = vld [vmem:[#allocation3 + $0x48] sm:$0xff] }
 0x81d   : > { %9938 = vmatprep.subr.bf16.mxu1 %v18313_v30 }
 0x81f   : > { %9164 = vmatmul.mubr.f32.gmra.mrb[28].mxu1 %v18401_v1  ;;  %v11306_v1 = vld [vmem:[#allocation3 + $0x78] sm:$0xff] }
 0x820   : > { %9166 = vmatprep.mubr.msk.f32.mxu1 %vm18392_vm1, %v18391_v48  ;;  %9940 = vmatpush1.bf16.msra.mxu1 %v9939_v38  ;;  %v9960_v38 = vpack.c.bf16 %v5424_v9, %v5423_v26  ;;  %v11354_v26 = vld [vmem:[#allocation3 + $0x2b8] sm:$0xff]  ;;  %v11355_v9 = vld [vmem:[#allocation2 + $0xf1] sm:$0xff] }
 0x821   : > { %9941 = vmatprep.subr.bf16.mxu1 %v18313_v30 }
 0x823   : > { %9167 = vmatmul.mubr.f32.gmra.mrb[30].mxu1 %v18402_v12  ;;  %v9963_v12 = vpack.c.bf16 %v5426_v60, %v5425_v45  ;;  %v11359_v45 = vld [vmem:[#allocation2 + $0x101] sm:$0xff]  ;;  %v11360_v60 = vld [vmem:[#allocation3 + $0x300] sm:$0xff] }
 0x824   : > { %9169 = vmatprep.mubr.msk.f32.mxu1 %vm18392_vm1, %v18391_v48  ;;  %9943 = vmatpush1.bf16.msra.mxu1 %v9942_v53  ;;  %v11307_v53 = vld [vmem:[#allocation2 + $0x31] sm:$0xff] }
 0x825   : > { %9944 = vmatprep.subr.bf16.mxu1 %v18313_v30 }
 0x827   : > { %9170 = vmatmul.mubr.f32.gmra.mrb[32].mxu1 %v18403_v57  ;;  %v11308_v57 = vld [vmem:[#allocation2] sm:$0xff] }
 0x828   : > { %9172 = vmatprep.mubr.msk.f32.mxu1 %vm18392_vm1, %v18391_v48 }
 0x82b   : > { %9173 = vmatmul.mubr.f32.gmra.mrb[34].mxu1 %v18404_v20  ;;  %v11309_v20 = vld [vmem:[#allocation2 + $0x39] sm:$0xff] }
 0x82c   : > { %9175 = vmatprep.mubr.msk.f32.mxu1 %vm18392_vm1, %v18391_v48 }
 0x82f   : > { %9176 = vmatmul.mubr.f32.gmra.mrb[36].mxu1 %v18405_v28  ;;  %v11310_v28 = vld [vmem:[#allocation2 + $0x8] sm:$0xff] }
 0x830   : > { %9178 = vmatprep.mubr.msk.f32.mxu1 %vm18392_vm1, %v18391_v48 }
 0x833   : > { %9179 = vmatmul.mubr.f32.gmra.mrb[38].mxu1 %v18406_v35  ;;  %v11311_v35 = vld [vmem:[#allocation2 + $0x41] sm:$0xff] }
 0x834   : > { %9181 = vmatprep.mubr.msk.f32.mxu1 %vm18392_vm1, %v18391_v48 }
 0x837   : > { %9182 = vmatmul.mubr.f32.gmra.mrb[40].mxu1 %v18407_v6  ;;  %v11312_v6 = vld [vmem:[#allocation2 + $0x10] sm:$0xff] }
 0x838   : > { %9184 = vmatprep.mubr.msk.f32.mxu1 %vm18392_vm1, %v18391_v48 }
 0x83b   : > { %9185 = vmatmul.mubr.f32.gmra.mrb[42].mxu1 %v15943_v18  ;;  %v18411_v18 = vld [vmem:[#allocation115_spill] sm:$0xff] }
 0x83c   : > { %9187 = vmatprep.mubr.msk.f32.mxu1 %vm18392_vm1, %v18391_v48 }
 0x83f   : > { %9188 = vmatmul.mubr.f32.gmra.mrb[44].mxu1 %v18408_v56  ;;  %v11313_v56 = vld [vmem:[#allocation2 + $0x49] sm:$0xff] }
 0x840   : > { %9190 = vmatprep.mubr.msk.f32.mxu1 %vm18392_vm1, %v18391_v48 }
 0x843   : > { %9191 = vmatmul.mubr.f32.gmra.mrb[46].mxu1 %v18409_v5  ;;  %v11314_v5 = vld [vmem:[#allocation3 + $0xd8] sm:$0xff] }
 0x844   : > { %9193 = vmatprep.mubr.msk.f32.mxu1 %vm18392_vm1, %v18391_v48 }
 0x847   : > { %9194 = vmatmul.mubr.f32.gmra.mrb[48].mxu1 %v18410_v7  ;;  %v11315_v7 = vld [vmem:[#allocation2 + $0x51] sm:$0xff] }
 0x848   : > { %9196 = vmatprep.mubr.msk.f32.mxu1 %vm18392_vm1, %v18391_v48 }
 0x84b   : > { %9197 = vmatmul.mubr.f32.gmra.mrb[50].mxu1 %v15954_v41  ;;  %v18415_v41 = vld [vmem:[#allocation114_spill] sm:$0xff] }
 0x84c   : > { %9199 = vmatprep.mubr.msk.f32.mxu1 %vm18392_vm1, %v18391_v48 }
 0x84f   : > { %9200 = vmatmul.mubr.f32.gmra.mrb[52].mxu1 %v18411_v18  ;;  %v5427_v18 = vld [vmem:[#allocation9 + $0x170] sm:$0xff] }
 0x850   : > { %9202 = vmatprep.mubr.msk.f32.mxu1 %vm18392_vm1, %v18391_v48 }
 0x853   : > { %9203 = vmatmul.mubr.f32.gmra.mrb[54].mxu1 %v18412_v13  ;;  %v5428_v13 = vld [vmem:[#allocation9 + $0x178] sm:$0xff] }
 0x854   : > { %9205 = vmatprep.mubr.msk.f32.mxu1 %vm18392_vm1, %v18391_v48 }
 0x857   : > { %9206 = vmatmul.mubr.f32.gmra.mrb[56].mxu1 %v18413_v54  ;;  %v9966_v54 = vpack.c.bf16 %v5428_v13, %v5427_v18  ;;  %v11372_v18 = vld [vmem:[#allocation3 + $0x390] sm:$0xff] }
 0x858   : > { %9208 = vmatprep.mubr.msk.f32.mxu1 %vm18392_vm1, %v18391_v48  ;;  %v11373_v13 = vld [vmem:[#allocation2 + $0x139] sm:$0xff] }
 0x85b   : > { %9209 = vmatmul.mubr.f32.gmra.mrb[58].mxu1 %v18414_v32  ;;  %v11316_v32 = vld [vmem:[#allocation3 + $0xf0] sm:$0xff] }
 0x85c   : > { %9211 = vmatprep.mubr.msk.f32.mxu1 %vm18392_vm1, %v18391_v48 }
 0x85f   : > { %9212 = vmatmul.mubr.f32.gmra.mrb[60].mxu1 %v18415_v41  ;;  %v11317_v41 = vld [vmem:[#allocation2 + $0x59] sm:$0xff] }
 0x860   : > { %9214 = vmatprep.mubr.msk.f32.mxu1 %vm18392_vm1, %v18391_v48 }
 0x863   : > { %9215 = vmatmul.mubr.f32.gmra.mrb[62].mxu1 %v18416_v39  ;;  %v11318_v39 = vld [vmem:[#allocation3 + $0x108] sm:$0xff] }
 0x864   : > { %9217 = vmatprep.mubr.msk.f32.mxu1 %vm18392_vm1, %v18391_v48 }
 0x867   : > { %9218 = vmatmul.mubr.f32.gmra.mrb[64].mxu1 %v18417_v51  ;;  %v11319_v51 = vld [vmem:[#allocation2 + $0x61] sm:$0xff] }
 0x868   : > { %9220 = vmatprep.mubr.msk.f32.mxu1 %vm18392_vm1, %v18391_v48 }
 0x86b   : > { %9221 = vmatmul.mubr.f32.gmra.mrb[66].mxu1 %v18418_v14  ;;  %v11320_v14 = vld [vmem:[#allocation3 + $0x120] sm:$0xff] }
 0x86c   : > { %9223 = vmatprep.mubr.msk.f32.mxu1 %vm18392_vm1, %v18391_v48 }
 0x86f   : > { %9224 = vmatmul.mubr.f32.gmra.mrb[68].mxu1 %v18419_v36  ;;  %v11321_v36 = vld [vmem:[#allocation2 + $0x69] sm:$0xff] }
 0x870   : > { %9226 = vmatprep.mubr.msk.f32.mxu1 %vm18392_vm1, %v18391_v48 }
 0x873   : > { %9227 = vmatmul.mubr.f32.gmra.mrb[70].mxu1 %v18420_v59  ;;  %v11322_v59 = vld [vmem:[#allocation3 + $0x138] sm:$0xff] }
 0x874   : > { %9229 = vmatprep.mubr.msk.f32.mxu1 %vm18392_vm1, %v18391_v48 }
 0x877   : > { %9230 = vmatmul.mubr.f32.gmra.mrb[72].mxu1 %v18421_v63  ;;  %v11323_v63 = vld [vmem:[#allocation2 + $0x71] sm:$0xff] }
 0x878   : > { %9232 = vmatprep.mubr.msk.f32.mxu1 %vm18392_vm1, %v18391_v48 }
 0x87b   : > { %9233 = vmatmul.mubr.f32.gmra.mrb[74].mxu1 %v18422_v10  ;;  %v11324_v10 = vld [vmem:[#allocation3 + $0x150] sm:$0xff] }
 0x87c   : > { %9235 = vmatprep.mubr.msk.f32.mxu1 %vm18392_vm1, %v18391_v48 }
 0x87f   : > { %9236 = vmatmul.mubr.f32.gmra.mrb[76].mxu1 %v18423_v62  ;;  %v11325_v62 = vld [vmem:[#allocation2 + $0x79] sm:$0xff] }
 0x880   : > { %9238 = vmatprep.mubr.msk.f32.mxu1 %vm18392_vm1, %v18391_v48 }
 0x883   : > { %9239 = vmatmul.mubr.f32.gmra.mrb[78].mxu1 %v18424_v8  ;;  %v11326_v8 = vld [vmem:[#allocation3 + $0x168] sm:$0xff] }
 0x884   : > { %9241 = vmatprep.mubr.msk.f32.mxu1 %vm18392_vm1, %v18391_v48 }
 0x887   : > { %9242 = vmatmul.mubr.f32.gmra.mrb[80].mxu1 %v18425_v4  ;;  %v11327_v4 = vld [vmem:[#allocation2 + $0x81] sm:$0xff] }
 0x888   : > { %9244 = vmatprep.mubr.msk.f32.mxu1 %vm18392_vm1, %v18391_v48 }
 0x88b   : > { %9245 = vmatmul.mubr.f32.gmra.mrb[82].mxu1 %v18426_v50  ;;  %v11328_v50 = vld [vmem:[#allocation3 + $0x180] sm:$0xff] }
 0x88c   : > { %9247 = vmatprep.mubr.msk.f32.mxu1 %vm18392_vm1, %v18391_v48 }
 0x88f   : > { %9248 = vmatmul.mubr.f32.gmra.mrb[84].mxu1 %v18427_v25  ;;  %v11329_v25 = vld [vmem:[#allocation2 + $0x89] sm:$0xff] }
 0x890   : > { %9250 = vmatprep.mubr.msk.f32.mxu1 %vm18392_vm1, %v18391_v48 }
 0x893   : > { %9251 = vmatmul.mubr.f32.gmra.mrb[86].mxu1 %v18428_v24  ;;  %v11330_v24 = vld [vmem:[#allocation3 + $0x198] sm:$0xff] }
 0x894   : > { %9253 = vmatprep.mubr.msk.f32.mxu1 %vm18392_vm1, %v18391_v48 }
 0x897   : > { %9254 = vmatmul.mubr.f32.gmra.mrb[88].mxu1 %v18429_v22  ;;  %v11331_v22 = vld [vmem:[#allocation2 + $0x91] sm:$0xff] }
 0x898   : > { %9256 = vmatprep.mubr.msk.f32.mxu1 %vm18392_vm1, %v18391_v48 }
 0x89b   : > { %9257 = vmatmul.mubr.f32.gmra.mrb[90].mxu1 %v11299_v47  ;;  %v11332_v47 = vld [vmem:[#allocation3 + $0x1b0] sm:$0xff] }
 0x89c   : > { %9259 = vmatprep.mubr.msk.f32.mxu1 %vm18392_vm1, %v18391_v48 }
 0x89f   : > { %9260 = vmatmul.mubr.f32.gmra.mrb[92].mxu1 %v11300_v27  ;;  %v11335_v27 = vld [vmem:[#allocation2 + $0xa1] sm:$0xff] }
 0x8a0   : > { %6151 = vmatprep.mubr.f32.mxu1 %v18430_v15  ;;  %v11336_v15 = vld [vmem:[#allocation3 + $0x1e0] sm:$0xff] }
 0x8a3   : > { %6152 = vmatmul.mubr.f32.vlgmr.msra.gmra.mrb[0].mxu1 %v18431_v42  ;;  %v11340_v42 = vld [vmem:[#allocation3 + $0x210] sm:$0xff] }
 0x8a4   : > { %6156 = vmatprep.mubr.f32.mxu1 %v16024_v46  ;;  %9946 = vmatpush3.bf16.msra.mxu1 %v9945_v33  ;;  %v9954_v46 = vpack.c.bf16 %v5420_v40, %v5419_v43  ;;  %v11337_v33 = vld [vmem:[#allocation2 + $0xa9] sm:$0xff] }
 0x8a5   : > { %9947 = vmatprep.subr.bf16.mxu1 %v18313_v30  ;;  %v11345_v43 = vld [vmem:[#allocation2 + $0xc9] sm:$0xff] }
 0x8a6   : > { %v11346_v40 = vld [vmem:[#allocation3 + $0x258] sm:$0xff] }
 0x8a7   : > { %6157 = vmatmul.mubr.f32.gmra.mrb[2].mxu1 %v16026_v19  ;;  %v11303_v19 = vld [vmem:[#allocation2 + $0x21] sm:$0xff] }
 0x8a8   : > { %6161 = vmatprep.mubr.f32.mxu1 %v16028_v17  ;;  %9949 = vmatpush3.bf16.msra.mxu1 %v9948_v0  ;;  %v9957_v17 = vpack.c.bf16 %v5422_v44, %v5421_v52  ;;  %v11341_v0 = vld [vmem:[#allocation2 + $0xb9] sm:$0xff] }
 0x8a9   : > { %9950 = vmatprep.subr.bf16.mxu1 %v18313_v30  ;;  %v11349_v52 = vld [vmem:[#allocation2 + $0xd9] sm:$0xff] }
 0x8aa   : > { %v11350_v44 = vld [vmem:[#allocation3 + $0x288] sm:$0xff] }
 0x8ab   : > { %6162 = vmatmul.mubr.f32.gmra.mrb[4].mxu1 %v16030_v55  ;;  %v11305_v55 = vld [vmem:[#allocation2 + $0x29] sm:$0xff] }
 0x8ac   : > { %6166 = vmatprep.mubr.f32.mxu1 %v11301_v16  ;;  %9952 = vmatpush3.bf16.msra.mxu1 %v9951_v29  ;;  %v11344_v29 = vld [vmem:[#allocation3 + $0x240] sm:$0xff] }
 0x8ad   : > { %9953 = vmatprep.subr.bf16.mxu1 %v18313_v30  ;;  %v11347_v16 = vld [vmem:[#allocation2 + $0xd1] sm:$0xff] }
 0x8af   : > { %6167 = vmatmul.mubr.f32.gmra.mrb[6].mxu1 %v11302_v3  ;;  %v11351_v3 = vld [vmem:[#allocation2 + $0xe1] sm:$0xff] }
 0x8b0   : > { %6171 = vmatprep.mubr.f32.mxu1 %v11303_v19  ;;  %9955 = vmatpush3.bf16.msra.mxu1 %v9954_v46  ;;  %v11348_v46 = vld [vmem:[#allocation3 + $0x270] sm:$0xff]  ;;  %v11352_v19 = vld [vmem:[#allocation3 + $0x2a0] sm:$0xff] }
 0x8b1   : > { %9956 = vmatprep.subr.bf16.mxu1 %v18313_v30 }
 0x8b3   : > { %6172 = vmatmul.mubr.f32.gmra.mrb[8].mxu1 %v11304_v11  ;;  %v11356_v11 = vld [vmem:[#allocation3 + $0x2d0] sm:$0xff] }
 0x8b4   : > { %6176 = vmatprep.mubr.f32.mxu1 %v11305_v55  ;;  %9958 = vmatpush3.bf16.msra.mxu1 %v9957_v17  ;;  %v11353_v17 = vld [vmem:[#allocation2 + $0xe9] sm:$0xff]  ;;  %v11357_v55 = vld [vmem:[#allocation2 + $0xf9] sm:$0xff] }
 0x8b5   : > { %9959 = vmatprep.subr.bf16.mxu1 %v18313_v30 }
 0x8b7   : > { %6177 = vmatmul.mubr.f32.gmra.mrb[10].mxu1 %v11306_v1  ;;  %v11361_v1 = vld [vmem:[#allocation2 + $0x109] sm:$0xff] }
 0x8b8   : > { %6181 = vmatprep.mubr.f32.mxu1 %v11307_v53  ;;  %9961 = vmatpush3.bf16.msra.mxu1 %v9960_v38  ;;  %v11358_v38 = vld [vmem:[#allocation3 + $0x2e8] sm:$0xff]  ;;  %v11362_v53 = vld [vmem:[#allocation3 + $0x318] sm:$0xff] }
 0x8b9   : > { %9962 = vmatprep.subr.bf16.mxu1 %v18313_v30 }
 0x8bb   : > { %6182 = vmatmul.mubr.f32.gmra.mrb[12].mxu1 %v11308_v57  ;;  %v11364_v57 = vld [vmem:[#allocation3 + $0x330] sm:$0xff] }
 0x8bc   : > { %6186 = vmatprep.mubr.f32.mxu1 %v11309_v20  ;;  %9964 = vmatpush3.bf16.msra.mxu1 %v9963_v12  ;;  %v11363_v12 = vld [vmem:[#allocation2 + $0x111] sm:$0xff]  ;;  %v11365_v20 = vld [vmem:[#allocation2 + $0x119] sm:$0xff] }
 0x8bd   : > { %9965 = vmatprep.subr.bf16.mxu1 %v18313_v30 }
 0x8bf   : > { %6187 = vmatmul.mubr.f32.gmra.mrb[14].mxu1 %v11310_v28  ;;  %v11366_v28 = vld [vmem:[#allocation3 + $0x348] sm:$0xff] }
 0x8c0   : > { %6191 = vmatprep.mubr.f32.mxu1 %v11311_v35  ;;  %9967 = vmatpush3.bf16.msra.mxu1 %v9966_v54  ;;  %v11367_v35 = vld [vmem:[#allocation2 + $0x121] sm:$0xff]  ;;  %v11374_v54 = vld [vmem:[#allocation3 + $0x3a8] sm:$0xff] }
 0x8c1   : > { %9968 = vmatprep.subr.bf16.mxu1 %v18313_v30 }
 0x8c3   : > { %6192 = vmatmul.mubr.f32.gmra.mrb[16].mxu1 %v11312_v6  ;;  %v11368_v6 = vld [vmem:[#allocation3 + $0x360] sm:$0xff] }
 0x8c4   : > { %6196 = vmatprep.mubr.f32.mxu1 %v11313_v56  ;;  %v11369_v56 = vld [vmem:[#allocation2 + $0x129] sm:$0xff] }
 0x8c7   : > { %6197 = vmatmul.mubr.f32.gmra.mrb[18].mxu1 %v11314_v5  ;;  %v11370_v5 = vld [vmem:[#allocation3 + $0x378] sm:$0xff] }
 0x8c8   : > { %6201 = vmatprep.mubr.f32.mxu1 %v11315_v7  ;;  %v11371_v7 = vld [vmem:[#allocation2 + $0x131] sm:$0xff] }
 0x8cb   : > { %6202 = vmatmul.mubr.f32.gmra.mrb[20].mxu1 %v11316_v32  ;;  %v11375_v32 = vld [vmem:[#allocation2 + $0x141] sm:$0xff] }
 0x8cc   : > { %6206 = vmatprep.mubr.f32.mxu1 %v11317_v41  ;;  %v11376_v41 = vld [vmem:[#allocation3 + $0x3c0] sm:$0xff] }
 0x8cf   : > { %6207 = vmatmul.mubr.f32.gmra.mrb[22].mxu1 %v11318_v39  ;;  %v11377_v39 = vld [vmem:[#allocation2 + $0x149] sm:$0xff] }
 0x8d0   : > { %6211 = vmatprep.mubr.f32.mxu1 %v11319_v51  ;;  %v11378_v51 = vld [vmem:[#allocation3 + $0x3d8] sm:$0xff] }
 0x8d3   : > { %6212 = vmatmul.mubr.f32.gmra.mrb[24].mxu1 %v11320_v14  ;;  %v11379_v14 = vld [vmem:[#allocation2 + $0x151] sm:$0xff] }
 0x8d4   : > { %6216 = vmatprep.mubr.f32.mxu1 %v11321_v36  ;;  %v11380_v36 = vld [vmem:[#allocation3 + $0x3f0] sm:$0xff] }
 0x8d7   : > { %6217 = vmatmul.mubr.f32.gmra.mrb[26].mxu1 %v11322_v59  ;;  %v11381_v59 = vld [vmem:[#allocation2 + $0x159] sm:$0xff] }
 0x8d8   : > { %6221 = vmatprep.mubr.f32.mxu1 %v11323_v63  ;;  %v11382_v63 = vld [vmem:[#allocation3 + $0x408] sm:$0xff] }
 0x8db   : > { %6222 = vmatmul.mubr.f32.gmra.mrb[28].mxu1 %v11324_v10  ;;  %v11383_v10 = vld [vmem:[#allocation2 + $0x161] sm:$0xff] }
 0x8dc   : > { %6226 = vmatprep.mubr.f32.mxu1 %v11325_v62  ;;  %v11384_v62 = vld [vmem:[#allocation3 + $0x420] sm:$0xff] }
 0x8df   : > { %6227 = vmatmul.mubr.f32.gmra.mrb[30].mxu1 %v11326_v8  ;;  %v11385_v8 = vld [vmem:[#allocation2 + $0x169] sm:$0xff] }
 0x8e0   : > { %6231 = vmatprep.mubr.f32.mxu1 %v11327_v4  ;;  %v11386_v4 = vld [vmem:[#allocation2 + $0x198] sm:$0xff] }
 0x8e3   : > { %6232 = vmatmul.mubr.f32.gmra.mrb[32].mxu1 %v11328_v50  ;;  %v11387_v50 = vld [vmem:[#allocation2 + $0x171] sm:$0xff] }
 0x8e4   : > { %6236 = vmatprep.mubr.f32.mxu1 %v11329_v25  ;;  %v6829_v25 = vld [vmem:[#allocation9 + $0x300] sm:$0xff] }
 0x8e7   : > { %6237 = vmatmul.mubr.f32.gmra.mrb[34].mxu1 %v11330_v24  ;;  %v6830_v24 = vld [vmem:[#allocation9 + $0x308] sm:$0xff] }
 0x8e8   : > { %6241 = vmatprep.mubr.f32.mxu1 %v11331_v22  ;;  %v11388_v22 = vld [vmem:[#allocation2 + $0x1a0] sm:$0xff] }
 0x8eb   : > { %6242 = vmatmul.mubr.f32.gmra.mrb[36].mxu1 %v11332_v47  ;;  %v9969_v47 = vpack.c.bf16 %v6830_v24, %v6829_v25  ;;  %v11402_v25 = vld [vmem:[#allocation3 + $0x190] sm:$0xff]  ;;  %v11403_v24 = vld [vmem:[#allocation3 + $0x1a8] sm:$0xff] }
 0x8ec   : > { %6246 = vmatprep.mubr.f32.mxu1 %v11333_v21  ;;  %v6831_v21 = vld [vmem:[#allocation9 + $0x310] sm:$0xff] }
 0x8ef   : > { %6247 = vmatmul.mubr.f32.gmra.mrb[38].mxu1 %v11334_v23  ;;  %v6832_v23 = vld [vmem:[#allocation9 + $0x318] sm:$0xff] }
 0x8f0   : > { %6251 = vmatprep.mubr.f32.mxu1 %v11335_v27  ;;  %v9972_v27 = vpack.c.bf16 %v6832_v23, %v6831_v21  ;;  %v11406_v21 = vld [vmem:[#allocation3 + $0x1f0] sm:$0xff]  ;;  %v11407_v23 = vld [vmem:[#allocation3 + $0x208] sm:$0xff] }
 0x8f3   : > { %6252 = vmatmul.mubr.f32.gmra.mrb[40].mxu1 %v11336_v15  ;;  %v6833_v15 = vld [vmem:[#allocation9 + $0x320] sm:$0xff] }
 0x8f4   : > { %6256 = vmatprep.mubr.f32.mxu1 %v11337_v33  ;;  %v6834_v33 = vld [vmem:[#allocation9 + $0x328] sm:$0xff] }
 0x8f7   : > { %6257 = vmatmul.mubr.f32.gmra.mrb[42].mxu1 %v11338_v31  ;;  %v9975_v31 = vpack.c.bf16 %v6834_v33, %v6833_v15  ;;  %v11409_v15 = vld [vmem:[#allocation3 + $0x238] sm:$0xff]  ;;  %v11410_v33 = vld [vmem:[#allocation3 + $0x250] sm:$0xff] }
 0x8f8   : > { %6261 = vmatprep.mubr.f32.mxu1 %v11339_v58  ;;  %v6835_v58 = vld [vmem:[#allocation9 + $0x330] sm:$0xff] }
 0x8fb   : > { %6262 = vmatmul.mubr.f32.gmra.mrb[44].mxu1 %v11340_v42 }
 0x8fc   : > { %6266 = vmatprep.mubr.f32.mxu1 %v11341_v0  ;;  %v6837_v0 = vld [vmem:[#allocation9 + $0x340] sm:$0xff] }
 0x8ff   : > { %6267 = vmatmul.mubr.f32.gmra.mrb[46].mxu1 %v11342_v2  ;;  %v11389_v2 = vld [vmem:[#allocation3 + $0x58] sm:$0xff] }
 0x900   : > { %6271 = vmatprep.mubr.f32.mxu1 %v11343_v34 }
 0x903   : > { %6272 = vmatmul.mubr.f32.gmra.mrb[48].mxu1 %v11344_v29  ;;  %v6839_v29 = vld [vmem:[#allocation9 + $0x350] sm:$0xff] }
 0x904   : > { %6276 = vmatprep.mubr.f32.mxu1 %v11345_v43  ;;  %v11390_v43 = vld [vmem:[#allocation3 + $0x70] sm:$0xff] }
 0x907   : > { %6277 = vmatmul.mubr.f32.gmra.mrb[50].mxu1 %v11346_v40 }
 0x908   : > { %6281 = vmatprep.mubr.f32.mxu1 %v11347_v16  ;;  %v6841_v16 = vld [vmem:[#allocation9 + $0x360] sm:$0xff] }
 0x90b   : > { %6282 = vmatmul.mubr.f32.gmra.mrb[52].mxu1 %v11348_v46  ;;  %v6842_v46 = vld [vmem:[#allocation9 + $0x368] sm:$0xff] }
 0x90c   : > { %6286 = vmatprep.mubr.f32.mxu1 %v11349_v52  ;;  %v11391_v52 = vld [vmem:[#allocation3 + $0x88] sm:$0xff] }
 0x90f   : > { %6287 = vmatmul.mubr.f32.gmra.mrb[54].mxu1 %v11350_v44  ;;  %v9987_v44 = vpack.c.bf16 %v6842_v46, %v6841_v16  ;;  %v11423_v16 = vld [vmem:[#allocation3 + $0x388] sm:$0xff]  ;;  %v11424_v46 = vld [vmem:[#allocation3 + $0x3a0] sm:$0xff] }
 0x910   : > { %6291 = vmatprep.mubr.f32.mxu1 %v11351_v3  ;;  %v6843_v3 = vld [vmem:[#allocation9 + $0x370] sm:$0xff] }
 0x913   : > { %6292 = vmatmul.mubr.f32.gmra.mrb[56].mxu1 %v11352_v19  ;;  %v6844_v19 = vld [vmem:[#allocation9 + $0x378] sm:$0xff] }
 0x914   : > { %6296 = vmatprep.mubr.f32.mxu1 %v11353_v17  ;;  %v11392_v17 = vld [vmem:[#allocation3 + $0xa0] sm:$0xff] }
 0x917   : > { %6297 = vmatmul.mubr.f32.gmra.mrb[58].mxu1 %v11354_v26  ;;  %v9990_v26 = vpack.c.bf16 %v6844_v19, %v6843_v3  ;;  %v11427_v3 = vld [vmem:[#allocation3 + $0x3e8] sm:$0xff]  ;;  %v11428_v19 = vld [vmem:[#allocation3 + $0x400] sm:$0xff] }
 0x918   : > { %6301 = vmatprep.mubr.f32.mxu1 %v11355_v9  ;;  %v6845_v9 = vld [vmem:[#allocation9 + $0x380] sm:$0xff] }
 0x91b   : > { %6302 = vmatmul.mubr.f32.gmra.mrb[60].mxu1 %v11356_v11  ;;  %v6846_v11 = vld [vmem:[#allocation9 + $0x388] sm:$0xff] }
 0x91c   : > { %6306 = vmatprep.mubr.f32.mxu1 %v11357_v55  ;;  %v11393_v55 = vld [vmem:[#allocation3 + $0xb8] sm:$0xff] }
 0x91f   : > { %6307 = vmatmul.mubr.f32.gmra.mrb[62].mxu1 %v11358_v38  ;;  %v9993_v38 = vpack.c.bf16 %v6846_v11, %v6845_v9  ;;  %v11431_v9 = vld [vmem:[#allocation3 + $0x448] sm:$0xff]  ;;  %v6861_v11 = vld [vmem:[#allocation9 + $0x400] sm:$0xff] }
 0x920   : > { %6311 = vmatprep.mubr.f32.mxu1 %v11359_v45  ;;  %v6847_v45 = vld [vmem:[#allocation9 + $0x390] sm:$0xff] }
 0x923   : > { %6312 = vmatmul.mubr.f32.gmra.mrb[64].mxu1 %v11360_v60  ;;  %v6848_v60 = vld [vmem:[#allocation9 + $0x398] sm:$0xff] }
 0x924   : > { %6316 = vmatprep.mubr.f32.mxu1 %v11361_v1  ;;  %v11394_v1 = vld [vmem:[#allocation3 + $0xd0] sm:$0xff] }
 0x927   : > { %6317 = vmatmul.mubr.f32.gmra.mrb[66].mxu1 %v11362_v53  ;;  %v9996_v53 = vpack.c.bf16 %v6848_v60, %v6847_v45  ;;  %v6688_v45 = vld [vmem:[#allocation3 + $0x98] sm:$0xff] }
 0x928   : > { %6321 = vmatprep.mubr.f32.mxu1 %v11363_v12  ;;  %v6849_v12 = vld [vmem:[#allocation9 + $0x3a0] sm:$0xff] }
 0x92b   : > { %6322 = vmatmul.mubr.f32.gmra.mrb[68].mxu1 %v11364_v57  ;;  %v6850_v57 = vld [vmem:[#allocation9 + $0x3a8] sm:$0xff] }
 0x92c   : > { %6326 = vmatprep.mubr.f32.mxu1 %v11365_v20  ;;  %v11395_v20 = vld [vmem:[#allocation3 + $0xe8] sm:$0xff] }
 0x92f   : > { %6327 = vmatmul.mubr.f32.gmra.mrb[70].mxu1 %v11366_v28  ;;  %v9999_v28 = vpack.c.bf16 %v6850_v57, %v6849_v12  ;;  %v6687_v12 = vld [vmem:[#allocation3 + $0x90] sm:$0xff] }
 0x930   : > { %6331 = vmatprep.mubr.f32.mxu1 %v11367_v35  ;;  %v6851_v35 = vld [vmem:[#allocation9 + $0x3b0] sm:$0xff]  ;;  %v6691_v57 = vld [vmem:[#allocation3 + $0xb0] sm:$0xff] }
 0x933   : > { %6332 = vmatmul.mubr.f32.gmra.mrb[72].mxu1 %v11368_v6  ;;  %v6852_v6 = vld [vmem:[#allocation9 + $0x3b8] sm:$0xff] }
 0x934   : > { %6336 = vmatprep.mubr.f32.mxu1 %v11369_v56  ;;  %v11396_v56 = vld [vmem:[#allocation3 + $0x100] sm:$0xff] }
 0x937   : > { %6337 = vmatmul.mubr.f32.gmra.mrb[74].mxu1 %v11370_v5  ;;  %v10002_v5 = vpack.c.bf16 %v6852_v6, %v6851_v35  ;;  %v6866_v35 = vld [vmem:[#allocation9 + $0x428] sm:$0xff]  ;;  %v6690_v6 = vld [vmem:[#allocation3 + $0xa8] sm:$0xff] }
 0x938   : > { %6341 = vmatprep.mubr.f32.mxu1 %v11371_v7  ;;  %v6853_v7 = vld [vmem:[#allocation9 + $0x3c0] sm:$0xff] }
 0x93b   : > { %6342 = vmatmul.mubr.f32.gmra.mrb[76].mxu1 %v11372_v18  ;;  %v6854_v18 = vld [vmem:[#allocation9 + $0x3c8] sm:$0xff] }
 0x93c   : > { %6346 = vmatprep.mubr.f32.mxu1 %v11373_v13  ;;  %v11397_v13 = vld [vmem:[#allocation3 + $0x118] sm:$0xff] }
 0x93f   : > { %6347 = vmatmul.mubr.f32.gmra.mrb[78].mxu1 %v11374_v54  ;;  %v10005_v54 = vpack.c.bf16 %v6854_v18, %v6853_v7  ;;  %v6867_v7 = vld [vmem:[#allocation9 + $0x430] sm:$0xff]  ;;  %v6868_v18 = vld [vmem:[#allocation9 + $0x438] sm:$0xff] }
 0x940   : > { %6351 = vmatprep.mubr.f32.mxu1 %v11375_v32  ;;  %v6855_v32 = vld [vmem:[#allocation9 + $0x3d0] sm:$0xff] }
 0x943   : > { %6352 = vmatmul.mubr.f32.gmra.mrb[80].mxu1 %v11376_v41  ;;  %v6856_v41 = vld [vmem:[#allocation9 + $0x3d8] sm:$0xff] }
 0x944   : > { %6356 = vmatprep.mubr.f32.mxu1 %v11377_v39  ;;  %v11398_v39 = vld [vmem:[#allocation3 + $0x130] sm:$0xff] }
 0x947   : > { %6357 = vmatmul.mubr.f32.gmra.mrb[82].mxu1 %v11378_v51  ;;  %v10008_v51 = vpack.c.bf16 %v6856_v41, %v6855_v32  ;;  %v10026_v32 = vpack.c.bf16 %v6868_v18, %v6867_v7  ;;  %v6869_v41 = vld [vmem:[#allocation9 + $0x440] sm:$0xff]  ;;  %v6765_v7 = vld [vmem:[#allocation3 + $0x300] sm:$0xff] }
 0x948   : > { %6361 = vmatprep.mubr.f32.mxu1 %v11379_v14  ;;  %v6857_v14 = vld [vmem:[#allocation9 + $0x3e0] sm:$0xff]  ;;  %v6769_v18 = vld [vmem:[#allocation3 + $0x320] sm:$0xff] }
 0x94b   : > { %6362 = vmatmul.mubr.f32.gmra.mrb[84].mxu1 %v11380_v36  ;;  %v6858_v36 = vld [vmem:[#allocation9 + $0x3e8] sm:$0xff] }
 0x94c   : > { %6366 = vmatprep.mubr.f32.mxu1 %v11381_v59  ;;  %v11399_v59 = vld [vmem:[#allocation3 + $0x148] sm:$0xff] }
 0x94f   : > { %6367 = vmatmul.mubr.f32.gmra.mrb[86].mxu1 %v11382_v63  ;;  %v10011_v63 = vpack.c.bf16 %v6858_v36, %v6857_v14  ;;  %v6700_v14 = vld [vmem:[#allocation3 + $0xf8] sm:$0xff] }
 0x950   : > { %6371 = vmatprep.mubr.f32.mxu1 %v11383_v10  ;;  %v6859_v10 = vld [vmem:[#allocation9 + $0x3f0] sm:$0xff] }
 0x953   : > { %6372 = vmatmul.mubr.f32.gmra.mrb[88].mxu1 %v11384_v62  ;;  %v6860_v62 = vld [vmem:[#allocation9 + $0x3f8] sm:$0xff] }
 0x954   : > { %6376 = vmatprep.mubr.f32.mxu1 %v11385_v8  ;;  %v11400_v8 = vld [vmem:[#allocation3 + $0x160] sm:$0xff] }
 0x957   : > { %6377 = vmatmul.mubr.f32.gmra.mrb[90].mxu1 %v11386_v4  ;;  %v10014_v4 = vpack.c.bf16 %v6860_v62, %v6859_v10  ;;  %v6699_v10 = vld [vmem:[#allocation3 + $0xf0] sm:$0xff] }
 0x958   : > { %6381 = vmatprep.mubr.f32.mxu1 %v11387_v50  ;;  %v11401_v50 = vld [vmem:[#allocation3 + $0x178] sm:$0xff]  ;;  %v6703_v62 = vld [vmem:[#allocation3 + $0x110] sm:$0xff] }
 0x95b   : > { %6382 = vmatmul.mubr.f32.gmra.mrb[92].mxu1 %v11388_v22  ;;  %v11404_v22 = vld [vmem:[#allocation3 + $0x1c0] sm:$0xff] }
 0x95c   : > { %9294 = vmatprep.mubr.msk.f32.mxu1 %vm18392_vm1, %v18391_v48 }
 0x95f   : > { %9295 = vmatmul.mubr.f32.vlgmr.msra.gmra.mrb[0].mxu1 %v16032_v61  ;;  %v6836_v61 = vld [vmem:[#allocation9 + $0x338] sm:$0xff] }
 0x960   : > { %9970 = vmatpush1.bf16.msra.mxu1 %v9969_v47  ;;  %9297 = vmatprep.mubr.msk.f32.mxu1 %vm18392_vm1, %v18391_v48  ;;  %v9978_v42 = vpack.c.bf16 %v6836_v61, %v6835_v58  ;;  %v11405_v47 = vld [vmem:[#allocation3 + $0x1d8] sm:$0xff]  ;;  %v11412_v58 = vld [vmem:[#allocation3 + $0x280] sm:$0xff] }
 0x961   : > { %9971 = vmatprep.subr.bf16.mxu1 %v18313_v30  ;;  %v11413_v61 = vld [vmem:[#allocation3 + $0x298] sm:$0xff] }
 0x963   : > { %9298 = vmatmul.mubr.f32.gmra.mrb[2].mxu1 %v16034_v37  ;;  %v6838_v37 = vld [vmem:[#allocation9 + $0x348] sm:$0xff] }
 0x964   : > { %9300 = vmatprep.mubr.msk.f32.mxu1 %vm18392_vm1, %v18391_v48  ;;  %9973 = vmatpush1.bf16.msra.mxu1 %v9972_v27  ;;  %v9981_v34 = vpack.c.bf16 %v6838_v37, %v6837_v0  ;;  %v11408_v27 = vld [vmem:[#allocation3 + $0x220] sm:$0xff]  ;;  %v11415_v0 = vld [vmem:[#allocation3 + $0x2c8] sm:$0xff] }
 0x965   : > { %9974 = vmatprep.subr.bf16.mxu1 %v18313_v30  ;;  %v11416_v37 = vld [vmem:[#allocation3 + $0x2e0] sm:$0xff] }
 0x967   : > { %9301 = vmatmul.mubr.f32.gmra.mrb[4].mxu1 %v16037_v49  ;;  %v6840_v49 = vld [vmem:[#allocation9 + $0x358] sm:$0xff] }
 0x968   : > { %9303 = vmatprep.mubr.msk.f32.mxu1 %vm18392_vm1, %v18391_v48  ;;  %9976 = vmatpush1.bf16.msra.mxu1 %v9975_v31  ;;  %v9984_v40 = vpack.c.bf16 %v6840_v49, %v6839_v29  ;;  %v11411_v31 = vld [vmem:[#allocation3 + $0x268] sm:$0xff]  ;;  %v11420_v49 = vld [vmem:[#allocation3 + $0x340] sm:$0xff] }
 0x969   : > { %9977 = vmatprep.subr.bf16.mxu1 %v18313_v30  ;;  %v11419_v29 = vld [vmem:[#allocation3 + $0x328] sm:$0xff] }
 0x96b   : > { %9304 = vmatmul.mubr.f32.gmra.mrb[6].mxu1 %v11389_v2  ;;  %v11417_v2 = vld [vmem:[#allocation3 + $0x2f8] sm:$0xff] }
 0x96c   : > { %9306 = vmatprep.mubr.msk.f32.mxu1 %vm18392_vm1, %v18391_v48  ;;  %9979 = vmatpush1.bf16.msra.mxu1 %v9978_v42  ;;  %v11414_v42 = vld [vmem:[#allocation3 + $0x2b0] sm:$0xff] }
 0x96d   : > { %9980 = vmatprep.subr.bf16.mxu1 %v18313_v30 }
 0x96f   : > { %9307 = vmatmul.mubr.f32.gmra.mrb[8].mxu1 %v11390_v43  ;;  %v11421_v43 = vld [vmem:[#allocation3 + $0x358] sm:$0xff] }
 0x970   : > { %9309 = vmatprep.mubr.msk.f32.mxu1 %vm18392_vm1, %v18391_v48  ;;  %9982 = vmatpush1.bf16.msra.mxu1 %v9981_v34  ;;  %v11418_v34 = vld [vmem:[#allocation3 + $0x310] sm:$0xff] }
 0x971   : > { %9983 = vmatprep.subr.bf16.mxu1 %v18313_v30 }
 0x973   : > { %9310 = vmatmul.mubr.f32.gmra.mrb[10].mxu1 %v11391_v52  ;;  %v11425_v52 = vld [vmem:[#allocation3 + $0x3b8] sm:$0xff] }
 0x974   : > { %9312 = vmatprep.mubr.msk.f32.mxu1 %vm18392_vm1, %v18391_v48  ;;  %9985 = vmatpush1.bf16.msra.mxu1 %v9984_v40  ;;  %v11422_v40 = vld [vmem:[#allocation3 + $0x370] sm:$0xff] }
 0x975   : > { %9986 = vmatprep.subr.bf16.mxu1 %v18313_v30 }
 0x977   : > { %9313 = vmatmul.mubr.f32.gmra.mrb[12].mxu1 %v11392_v17  ;;  %v11429_v17 = vld [vmem:[#allocation3 + $0x418] sm:$0xff] }
 0x978   : > { %9315 = vmatprep.mubr.msk.f32.mxu1 %vm18392_vm1, %v18391_v48  ;;  %9988 = vmatpush1.bf16.msra.mxu1 %v9987_v44  ;;  %v11426_v44 = vld [vmem:[#allocation3 + $0x3d0] sm:$0xff] }
 0x979   : > { %9989 = vmatprep.subr.bf16.mxu1 %v18313_v30 }
 0x97b   : > { %9316 = vmatmul.mubr.f32.gmra.mrb[14].mxu1 %v11393_v55  ;;  %v6862_v55 = vld [vmem:[#allocation9 + $0x408] sm:$0xff] }
 0x97c   : > { %9318 = vmatprep.mubr.msk.f32.mxu1 %vm18392_vm1, %v18391_v48  ;;  %9991 = vmatpush1.bf16.msra.mxu1 %v9990_v26  ;;  %v11430_v26 = vld [vmem:[#allocation3 + $0x430] sm:$0xff]  ;;  %v10017_v60 = vpack.c.bf16 %v6862_v55, %v6861_v11  ;;  %v6745_v11 = vld [vmem:[#allocation3 + $0x260] sm:$0xff]  ;;  %v6744_v55 = vld [vmem:[#allocation3 + $0x258] sm:$0xff] }
 0x97d   : > { %9992 = vmatprep.subr.bf16.mxu1 %v18313_v30 }
 0x97f   : > { %9319 = vmatmul.mubr.f32.gmra.mrb[16].mxu1 %v11394_v1  ;;  %v6863_v1 = vld [vmem:[#allocation9 + $0x410] sm:$0xff] }
 0x980   : > { %9321 = vmatprep.mubr.msk.f32.mxu1 %vm18392_vm1, %v18391_v48  ;;  %9994 = vmatpush1.bf16.msra.mxu1 %v9993_v38  ;;  %v11432_v38 = vld [vmem:[#allocation3 + $0x460] sm:$0xff] }
 0x981   : > { %9995 = vmatprep.subr.bf16.mxu1 %v18313_v30 }
 0x983   : > { %9322 = vmatmul.mubr.f32.gmra.mrb[18].mxu1 %v11395_v20 }
 0x984   : > { %9324 = vmatprep.mubr.msk.f32.mxu1 %vm18392_vm1, %v18391_v48  ;;  %9997 = vmatpush1.bf16.msra.mxu1 %v9996_v53  ;;  %v6864_v53 = vld [vmem:[#allocation9 + $0x418] sm:$0xff] }
 0x985   : > { %9998 = vmatprep.subr.bf16.mxu1 %v18313_v30  ;;  %v10020_v20 = vpack.c.bf16 %v6864_v53, %v6863_v1  ;;  %v6750_v1 = vld [vmem:[#allocation3 + $0x288] sm:$0xff] }
 0x986   : > { %v6754_v53 = vld [vmem:[#allocation3 + $0x2a8] sm:$0xff] }
 0x987   : > { %9325 = vmatmul.mubr.f32.gmra.mrb[20].mxu1 %v11396_v56  ;;  %v6694_v56 = vld [vmem:[#allocation3 + $0xc8] sm:$0xff] }
 0x988   : > { %9327 = vmatprep.mubr.msk.f32.mxu1 %vm18392_vm1, %v18391_v48  ;;  %10000 = vmatpush1.bf16.msra.mxu1 %v9999_v28  ;;  %v6865_v28 = vld [vmem:[#allocation9 + $0x420] sm:$0xff] }
 0x989   : > { %10001 = vmatprep.subr.bf16.mxu1 %v18313_v30 }
 0x98b   : > { %9328 = vmatmul.mubr.f32.gmra.mrb[22].mxu1 %v11397_v13  ;;  %v6693_v13 = vld [vmem:[#allocation3 + $0xc0] sm:$0xff] }
 0x98c   : > { %9330 = vmatprep.mubr.msk.f32.mxu1 %vm18392_vm1, %v18391_v48  ;;  %10003 = vmatpush1.bf16.msra.mxu1 %v10002_v5  ;;  %v10023_v5 = vpack.c.bf16 %v6866_v35, %v6865_v28  ;;  %v6760_v28 = vld [vmem:[#allocation3 + $0x2d8] sm:$0xff]  ;;  %v6759_v35 = vld [vmem:[#allocation3 + $0x2d0] sm:$0xff] }
 0x98d   : > { %10004 = vmatprep.subr.bf16.mxu1 %v18313_v30 }
 0x98f   : > { %9331 = vmatmul.mubr.f32.gmra.mrb[24].mxu1 %v11398_v39  ;;  %v6870_v39 = vld [vmem:[#allocation9 + $0x448] sm:$0xff] }
 0x990   : > { %9333 = vmatprep.mubr.msk.f32.mxu1 %vm18392_vm1, %v18391_v48  ;;  %10006 = vmatpush1.bf16.msra.mxu1 %v10005_v54  ;;  %v6697_v54 = vld [vmem:[#allocation3 + $0xe0] sm:$0xff]  ;;  %v10029_v36 = vpack.c.bf16 %v6870_v39, %v6869_v41  ;;  %v6775_v41 = vld [vmem:[#allocation3 + $0x350] sm:$0xff]  ;;  %v6774_v39 = vld [vmem:[#allocation3 + $0x348] sm:$0xff] }
 0x991   : > { %10007 = vmatprep.subr.bf16.mxu1 %v18313_v30 }
 0x993   : > { %9334 = vmatmul.mubr.f32.gmra.mrb[26].mxu1 %v11399_v59  ;;  %v6871_v59 = vld [vmem:[#allocation9 + $0x450] sm:$0xff] }
 0x994   : > { %9336 = vmatprep.mubr.msk.f32.mxu1 %vm18392_vm1, %v18391_v48  ;;  %10009 = vmatpush1.bf16.msra.mxu1 %v10008_v51  ;;  %v6696_v51 = vld [vmem:[#allocation3 + $0xd8] sm:$0xff] }
 0x995   : > { %10010 = vmatprep.subr.bf16.mxu1 %v18313_v30 }
 0x997   : > { %9337 = vmatmul.mubr.f32.gmra.mrb[28].mxu1 %v11400_v8 }
 0x998   : > { %9339 = vmatprep.mubr.msk.f32.mxu1 %vm18392_vm1, %v18391_v48  ;;  %10012 = vmatpush1.bf16.msra.mxu1 %v10011_v63  ;;  %v6872_v63 = vld [vmem:[#allocation9 + $0x458] sm:$0xff] }
 0x999   : > { %10013 = vmatprep.subr.bf16.mxu1 %v18313_v30  ;;  %v10032_v8 = vpack.c.bf16 %v6872_v63, %v6871_v59  ;;  %v6780_v59 = vld [vmem:[#allocation3 + $0x378] sm:$0xff] }
 0x99a   : > { %v6784_v63 = vld [vmem:[#allocation3 + $0x398] sm:$0xff] }
 0x99b   : > { %9340 = vmatmul.mubr.f32.gmra.mrb[30].mxu1 %v11401_v50  ;;  %v6874_v50 = vld [vmem:[#allocation9 + $0x468] sm:$0xff] }
 0x99c   : > { %9342 = vmatprep.mubr.msk.f32.mxu1 %vm18392_vm1, %v18391_v48  ;;  %10015 = vmatpush1.bf16.msra.mxu1 %v10014_v4  ;;  %v6873_v4 = vld [vmem:[#allocation9 + $0x460] sm:$0xff] }
 0x99d   : > { %10016 = vmatprep.subr.bf16.mxu1 %v18313_v30 }
 0x99f   : > { %9343 = vmatmul.mubr.f32.gmra.mrb[32].mxu1 %v11402_v25  ;;  %v6702_v25 = vld [vmem:[#allocation3 + $0x108] sm:$0xff] }
 0x9a0   : > { %9345 = vmatprep.mubr.msk.f32.mxu1 %vm18392_vm1, %v18391_v48 }
 0x9a3   : > { %9346 = vmatmul.mubr.f32.gmra.mrb[34].mxu1 %v11403_v24  ;;  %v6706_v24 = vld [vmem:[#allocation3 + $0x128] sm:$0xff] }
 0x9a4   : > { %9348 = vmatprep.mubr.msk.f32.mxu1 %vm18392_vm1, %v18391_v48 }
 0x9a7   : > { %9349 = vmatmul.mubr.f32.gmra.mrb[36].mxu1 %v11404_v22  ;;  %v10035_v22 = vpack.c.bf16 %v6874_v50, %v6873_v4  ;;  %v6790_v4 = vld [vmem:[#allocation3 + $0x3c8] sm:$0xff]  ;;  %v6789_v50 = vld [vmem:[#allocation3 + $0x3c0] sm:$0xff] }
 0x9a8   : > { %9351 = vmatprep.mubr.msk.f32.mxu1 %vm18392_vm1, %v18391_v48 }
 0x9ab   : > { %9352 = vmatmul.mubr.f32.gmra.mrb[38].mxu1 %v11405_v47  ;;  %v6705_v47 = vld [vmem:[#allocation3 + $0x120] sm:$0xff] }
 0x9ac   : > { %9354 = vmatprep.mubr.msk.f32.mxu1 %vm18392_vm1, %v18391_v48 }
 0x9af   : > { %9355 = vmatmul.mubr.f32.gmra.mrb[40].mxu1 %v11406_v21  ;;  %v6709_v21 = vld [vmem:[#allocation3 + $0x140] sm:$0xff] }
 0x9b0   : > { %9357 = vmatprep.mubr.msk.f32.mxu1 %vm18392_vm1, %v18391_v48 }
 0x9b3   : > { %9358 = vmatmul.mubr.f32.gmra.mrb[42].mxu1 %v11407_v23  ;;  %v6708_v23 = vld [vmem:[#allocation3 + $0x138] sm:$0xff] }
 0x9b4   : > { %9360 = vmatprep.mubr.msk.f32.mxu1 %vm18392_vm1, %v18391_v48 }
 0x9b7   : > { %9361 = vmatmul.mubr.f32.gmra.mrb[44].mxu1 %v11408_v27  ;;  %v6712_v27 = vld [vmem:[#allocation3 + $0x158] sm:$0xff] }
 0x9b8   : > { %9363 = vmatprep.mubr.msk.f32.mxu1 %vm18392_vm1, %v18391_v48 }
 0x9bb   : > { %9364 = vmatmul.mubr.f32.gmra.mrb[46].mxu1 %v11409_v15  ;;  %v6711_v15 = vld [vmem:[#allocation3 + $0x150] sm:$0xff] }
 0x9bc   : > { %9366 = vmatprep.mubr.msk.f32.mxu1 %vm18392_vm1, %v18391_v48 }
 0x9bf   : > { %9367 = vmatmul.mubr.f32.gmra.mrb[48].mxu1 %v11410_v33  ;;  %v6715_v33 = vld [vmem:[#allocation3 + $0x170] sm:$0xff] }
 0x9c0   : > { %9369 = vmatprep.mubr.msk.f32.mxu1 %vm18392_vm1, %v18391_v48 }
 0x9c3   : > { %9370 = vmatmul.mubr.f32.gmra.mrb[50].mxu1 %v11411_v31  ;;  %v6714_v31 = vld [vmem:[#allocation3 + $0x168] sm:$0xff] }
 0x9c4   : > { %9372 = vmatprep.mubr.msk.f32.mxu1 %vm18392_vm1, %v18391_v48 }
 0x9c7   : > { %9373 = vmatmul.mubr.f32.gmra.mrb[52].mxu1 %v11412_v58  ;;  %v6718_v58 = vld [vmem:[#allocation3 + $0x188] sm:$0xff] }
 0x9c8   : > { %9375 = vmatprep.mubr.msk.f32.mxu1 %vm18392_vm1, %v18391_v48 }
 0x9cb   : > { %9376 = vmatmul.mubr.f32.gmra.mrb[54].mxu1 %v11413_v61  ;;  %v6875_v61 = vld [vmem:[#allocation9 + $0x470] sm:$0xff] }
 0x9cc   : > { %9378 = vmatprep.mubr.msk.f32.mxu1 %vm18392_vm1, %v18391_v48 }
 0x9cf   : > { %9379 = vmatmul.mubr.f32.gmra.mrb[56].mxu1 %v11414_v42  ;;  %v6876_v42 = vld [vmem:[#allocation9 + $0x478] sm:$0xff] }
 0x9d0   : > { %9381 = vmatprep.mubr.msk.f32.mxu1 %vm18392_vm1, %v18391_v48 }
 0x9d3   : > { %9382 = vmatmul.mubr.f32.gmra.mrb[58].mxu1 %v11415_v0  ;;  %v10038_v0 = vpack.c.bf16 %v6876_v42, %v6875_v61  ;;  %v6807_v61 = vld [vmem:[#allocation3 + $0x450] sm:$0xff] }
 0x9d4   : > { %9384 = vmatprep.mubr.msk.f32.mxu1 %vm18392_vm1, %v18391_v48  ;;  %v6811_v42 = vld [vmem:[#allocation3 + $0x470] sm:$0xff] }
 0x9d7   : > { %9385 = vmatmul.mubr.f32.gmra.mrb[60].mxu1 %v11416_v37  ;;  %v6717_v37 = vld [vmem:[#allocation3 + $0x180] sm:$0xff] }
 0x9d8   : > { %9387 = vmatprep.mubr.msk.f32.mxu1 %vm18392_vm1, %v18391_v48 }
 0x9db   : > { %9388 = vmatmul.mubr.f32.gmra.mrb[62].mxu1 %v11417_v2  ;;  %v6721_v2 = vld [vmem:[#allocation3 + $0x1a0] sm:$0xff] }
 0x9dc   : > { %9390 = vmatprep.mubr.msk.f32.mxu1 %vm18392_vm1, %v18391_v48 }
 0x9df   : > { %9391 = vmatmul.mubr.f32.gmra.mrb[64].mxu1 %v11418_v34  ;;  %v6724_v34 = vld [vmem:[#allocation3 + $0x1b8] sm:$0xff] }
 0x9e0   : > { %9393 = vmatprep.mubr.msk.f32.mxu1 %vm18392_vm1, %v18391_v48 }
 0x9e3   : > { %9394 = vmatmul.mubr.f32.gmra.mrb[66].mxu1 %v11419_v29  ;;  %v6723_v29 = vld [vmem:[#allocation3 + $0x1b0] sm:$0xff] }
 0x9e4   : > { %9396 = vmatprep.mubr.msk.f32.mxu1 %vm18392_vm1, %v18391_v48 }
 0x9e7   : > { %9397 = vmatmul.mubr.f32.gmra.mrb[68].mxu1 %v11420_v49  ;;  %v6727_v49 = vld [vmem:[#allocation3 + $0x1d0] sm:$0xff] }
 0x9e8   : > { %9399 = vmatprep.mubr.msk.f32.mxu1 %vm18392_vm1, %v18391_v48 }
 0x9eb   : > { %9400 = vmatmul.mubr.f32.gmra.mrb[70].mxu1 %v11421_v43  ;;  %v6726_v43 = vld [vmem:[#allocation3 + $0x1c8] sm:$0xff] }
 0x9ec   : > { %9402 = vmatprep.mubr.msk.f32.mxu1 %vm18392_vm1, %v18391_v48 }
 0x9ef   : > { %9403 = vmatmul.mubr.f32.gmra.mrb[72].mxu1 %v11422_v40  ;;  %v6730_v40 = vld [vmem:[#allocation3 + $0x1e8] sm:$0xff] }
 0x9f0   : > { %9405 = vmatprep.mubr.msk.f32.mxu1 %vm18392_vm1, %v18391_v48 }
 0x9f3   : > { %9406 = vmatmul.mubr.f32.gmra.mrb[74].mxu1 %v11423_v16  ;;  %v6729_v16 = vld [vmem:[#allocation3 + $0x1e0] sm:$0xff] }
 0x9f4   : > { %9408 = vmatprep.mubr.msk.f32.mxu1 %vm18392_vm1, %v18391_v48 }
 0x9f7   : > { %9409 = vmatmul.mubr.f32.gmra.mrb[76].mxu1 %v11424_v46  ;;  %v6733_v46 = vld [vmem:[#allocation3 + $0x200] sm:$0xff] }
 0x9f8   : > { %9411 = vmatprep.mubr.msk.f32.mxu1 %vm18392_vm1, %v18391_v48 }
 0x9fb   : > { %9412 = vmatmul.mubr.f32.gmra.mrb[78].mxu1 %v11425_v52  ;;  %v6732_v52 = vld [vmem:[#allocation3 + $0x1f8] sm:$0xff] }
 0x9fc   : > { %9414 = vmatprep.mubr.msk.f32.mxu1 %vm18392_vm1, %v18391_v48 }
 0x9ff   : > { %9415 = vmatmul.mubr.f32.gmra.mrb[80].mxu1 %v11426_v44  ;;  %v6736_v44 = vld [vmem:[#allocation3 + $0x218] sm:$0xff] }
 0xa00   : > { %9417 = vmatprep.mubr.msk.f32.mxu1 %vm18392_vm1, %v18391_v48 }
 0xa03   : > { %9418 = vmatmul.mubr.f32.gmra.mrb[82].mxu1 %v11427_v3  ;;  %v6735_v3 = vld [vmem:[#allocation3 + $0x210] sm:$0xff] }
 0xa04   : > { %9420 = vmatprep.mubr.msk.f32.mxu1 %vm18392_vm1, %v18391_v48 }
 0xa07   : > { %9421 = vmatmul.mubr.f32.gmra.mrb[84].mxu1 %v11428_v19  ;;  %v6739_v19 = vld [vmem:[#allocation3 + $0x230] sm:$0xff] }
 0xa08   : > { %9423 = vmatprep.mubr.msk.f32.mxu1 %vm18392_vm1, %v18391_v48 }
 0xa0b   : > { %9424 = vmatmul.mubr.f32.gmra.mrb[86].mxu1 %v11429_v17  ;;  %v6738_v17 = vld [vmem:[#allocation3 + $0x228] sm:$0xff] }
 0xa0c   : > { %9426 = vmatprep.mubr.msk.f32.mxu1 %vm18392_vm1, %v18391_v48 }
 0xa0f   : > { %9427 = vmatmul.mubr.f32.gmra.mrb[88].mxu1 %v11430_v26  ;;  %v6742_v26 = vld [vmem:[#allocation3 + $0x248] sm:$0xff] }
 0xa10   : > { %9429 = vmatprep.mubr.msk.f32.mxu1 %vm18392_vm1, %v18391_v48 }
 0xa13   : > { %9430 = vmatmul.mubr.f32.gmra.mrb[90].mxu1 %v11431_v9  ;;  %v6741_v9 = vld [vmem:[#allocation3 + $0x240] sm:$0xff] }
 0xa14   : > { %9432 = vmatprep.mubr.msk.f32.mxu1 %vm18392_vm1, %v18391_v48 }
 0xa17   : > { %9433 = vmatmul.mubr.f32.gmra.mrb[92].mxu1 %v11432_v38  ;;  %v6748_v38 = vld [vmem:[#allocation3 + $0x278] sm:$0xff] }
 0xa18   : > { %6941 = vmatprep.mubr.f32.mxu1 %v6688_v45  ;;  %v6747_v45 = vld [vmem:[#allocation3 + $0x270] sm:$0xff] }
 0xa1b   : > { %6942 = vmatmul.mubr.f32.vlgmr.msra.gmra.mrb[0].mxu1 %v6687_v12  ;;  %v6753_v12 = vld [vmem:[#allocation3 + $0x2a0] sm:$0xff] }
 0xa1c   : > { %6946 = vmatprep.mubr.f32.mxu1 %v6691_v57  ;;  %10018 = vmatpush3.bf16.msra.mxu1 %v10017_v60  ;;  %v6751_v60 = vld [vmem:[#allocation3 + $0x290] sm:$0xff]  ;;  %v6757_v57 = vld [vmem:[#allocation3 + $0x2c0] sm:$0xff] }
 0xa1d   : > { %10019 = vmatprep.subr.bf16.mxu1 %v18313_v30 }
 0xa1f   : > { %6947 = vmatmul.mubr.f32.gmra.mrb[2].mxu1 %v6690_v6  ;;  %v6763_v6 = vld [vmem:[#allocation3 + $0x2f0] sm:$0xff] }
 0xa20   : > { %6951 = vmatprep.mubr.f32.mxu1 %v6694_v56  ;;  %10021 = vmatpush3.bf16.msra.mxu1 %v10020_v20  ;;  %v6756_v20 = vld [vmem:[#allocation3 + $0x2b8] sm:$0xff]  ;;  %v6762_v56 = vld [vmem:[#allocation3 + $0x2e8] sm:$0xff] }
 0xa21   : > { %10022 = vmatprep.subr.bf16.mxu1 %v18313_v30 }
 0xa23   : > { %6952 = vmatmul.mubr.f32.gmra.mrb[4].mxu1 %v6693_v13  ;;  %v6768_v13 = vld [vmem:[#allocation3 + $0x318] sm:$0xff] }
 0xa24   : > { %6956 = vmatprep.mubr.f32.mxu1 %v6697_v54  ;;  %10024 = vmatpush3.bf16.msra.mxu1 %v10023_v5  ;;  %v6766_v5 = vld [vmem:[#allocation3 + $0x308] sm:$0xff]  ;;  %v6772_v54 = vld [vmem:[#allocation3 + $0x338] sm:$0xff] }
 0xa25   : > { %10025 = vmatprep.subr.bf16.mxu1 %v18313_v30 }
 0xa27   : > { %6957 = vmatmul.mubr.f32.gmra.mrb[6].mxu1 %v6696_v51  ;;  %v6778_v51 = vld [vmem:[#allocation3 + $0x368] sm:$0xff] }
 0xa28   : > { %6961 = vmatprep.mubr.f32.mxu1 %v6700_v14  ;;  %10027 = vmatpush3.bf16.msra.mxu1 %v10026_v32  ;;  %v6771_v32 = vld [vmem:[#allocation3 + $0x330] sm:$0xff]  ;;  %v6777_v14 = vld [vmem:[#allocation3 + $0x360] sm:$0xff] }
 0xa29   : > { %10028 = vmatprep.subr.bf16.mxu1 %v18313_v30 }
 0xa2b   : > { %6962 = vmatmul.mubr.f32.gmra.mrb[8].mxu1 %v6699_v10  ;;  %v6783_v10 = vld [vmem:[#allocation3 + $0x390] sm:$0xff] }
 0xa2c   : > { %6966 = vmatprep.mubr.f32.mxu1 %v6703_v62  ;;  %10030 = vmatpush3.bf16.msra.mxu1 %v10029_v36  ;;  %v6781_v36 = vld [vmem:[#allocation3 + $0x380] sm:$0xff]  ;;  %v6787_v62 = vld [vmem:[#allocation3 + $0x3b0] sm:$0xff] }
 0xa2d   : > { %10031 = vmatprep.subr.bf16.mxu1 %v18313_v30 }
 0xa2f   : > { %6967 = vmatmul.mubr.f32.gmra.mrb[10].mxu1 %v6702_v25  ;;  %v6793_v25 = vld [vmem:[#allocation3 + $0x3e0] sm:$0xff] }
 0xa30   : > { %6971 = vmatprep.mubr.f32.mxu1 %v6706_v24  ;;  %10033 = vmatpush3.bf16.msra.mxu1 %v10032_v8  ;;  %v6786_v8 = vld [vmem:[#allocation3 + $0x3a8] sm:$0xff]  ;;  %v6792_v24 = vld [vmem:[#allocation3 + $0x3d8] sm:$0xff] }
 0xa31   : > { %10034 = vmatprep.subr.bf16.mxu1 %v18313_v30 }
 0xa33   : > { %6972 = vmatmul.mubr.f32.gmra.mrb[12].mxu1 %v6705_v47  ;;  %v6795_v47 = vld [vmem:[#allocation3 + $0x3f0] sm:$0xff] }
 0xa34   : > { %6976 = vmatprep.mubr.f32.mxu1 %v6709_v21  ;;  %10036 = vmatpush3.bf16.msra.mxu1 %v10035_v22  ;;  %v6796_v22 = vld [vmem:[#allocation3 + $0x3f8] sm:$0xff]  ;;  %v6799_v21 = vld [vmem:[#allocation3 + $0x410] sm:$0xff] }
 0xa35   : > { %10037 = vmatprep.subr.bf16.mxu1 %v18313_v30  ;;  %v6720_v30 = vld [vmem:[#allocation3 + $0x198] sm:$0xff] }
 0xa37   : > { %6977 = vmatmul.mubr.f32.gmra.mrb[14].mxu1 %v6708_v23  ;;  %v6798_v23 = vld [vmem:[#allocation3 + $0x408] sm:$0xff] }
 0xa38   : > { %6981 = vmatprep.mubr.f32.mxu1 %v6712_v27  ;;  %10039 = vmatpush3.bf16.msra.mxu1 %v10038_v0  ;;  %v6802_v27 = vld [vmem:[#allocation3 + $0x428] sm:$0xff] }
 0xa39   : > { %v6810_v0 = vld [vmem:[#allocation3 + $0x468] sm:$0xff] }
 0xa3b   : > { %6982 = vmatmul.mubr.f32.gmra.mrb[16].mxu1 %v6711_v15  ;;  %v6801_v15 = vld [vmem:[#allocation3 + $0x420] sm:$0xff] }
 0xa3c   : > { %6986 = vmatprep.mubr.f32.mxu1 %v6715_v33  ;;  %v6805_v33 = vld [vmem:[#allocation3 + $0x440] sm:$0xff] }
 0xa3f   : > { %6987 = vmatmul.mubr.f32.gmra.mrb[18].mxu1 %v6714_v31  ;;  %v6804_v31 = vld [vmem:[#allocation3 + $0x438] sm:$0xff] }
 0xa40   : > { %6991 = vmatprep.mubr.f32.mxu1 %v6718_v58  ;;  %v6808_v58 = vld [vmem:[#allocation3 + $0x458] sm:$0xff] }
 0xa43   : > { %6992 = vmatmul.mubr.f32.gmra.mrb[20].mxu1 %v6717_v37  ;;  %v6814_v37 = vld [vmem:[#allocation3 + $0x488] sm:$0xff] }
 0xa44   : > { %6996 = vmatprep.mubr.f32.mxu1 %v6721_v2  ;;  %v6813_v2 = vld [vmem:[#allocation3 + $0x480] sm:$0xff] }
 0xa47   : > { %6997 = vmatmul.mubr.f32.gmra.mrb[22].mxu1 %v6720_v30  ;;  %v6817_v30 = vld [vmem:[#allocation3 + $0x4a0] sm:$0xff] }
 0xa48   : > { %7001 = vmatprep.mubr.f32.mxu1 %v6724_v34  ;;  %v6816_v34 = vld [vmem:[#allocation3 + $0x498] sm:$0xff] }
 0xa4b   : > { %7002 = vmatmul.mubr.f32.gmra.mrb[24].mxu1 %v6723_v29  ;;  %v11433_v29 = vld [vmem:[#allocation3 + $0x4b8] sm:$0xff] }
 0xa4c   : > { %7006 = vmatprep.mubr.f32.mxu1 %v6727_v49  ;;  %v11434_v49 = vld [vmem:[#allocation3 + $0x4b0] sm:$0xff] }
 0xa4f   : > { %7007 = vmatmul.mubr.f32.gmra.mrb[26].mxu1 %v6726_v43  ;;  %v11435_v43 = vld [vmem:[#allocation3 + $0x4d0] sm:$0xff] }
 0xa50   : > { %7011 = vmatprep.mubr.f32.mxu1 %v6730_v40  ;;  %v11436_v40 = vld [vmem:[#allocation3 + $0x4c8] sm:$0xff] }
 0xa53   : > { %7012 = vmatmul.mubr.f32.gmra.mrb[28].mxu1 %v6729_v16  ;;  %v11437_v16 = vld [vmem:[#allocation3 + $0x4e8] sm:$0xff] }
 0xa54   : > { %7016 = vmatprep.mubr.f32.mxu1 %v6733_v46  ;;  %v11438_v46 = vld [vmem:[#allocation3 + $0x4e0] sm:$0xff] }
 0xa57   : > { %7017 = vmatmul.mubr.f32.gmra.mrb[30].mxu1 %v6732_v52  ;;  %v6689_v52 = vld [vmem:[#allocation3 + $0xa0] sm:$0xff] }
 0xa58   : > { %7021 = vmatprep.mubr.f32.mxu1 %v6736_v44  ;;  %v6692_v44 = vld [vmem:[#allocation3 + $0xb8] sm:$0xff] }
 0xa5b   : > { %7022 = vmatmul.mubr.f32.gmra.mrb[32].mxu1 %v6735_v3  ;;  %v6695_v3 = vld [vmem:[#allocation3 + $0xd0] sm:$0xff] }
 0xa5c   : > { %7026 = vmatprep.mubr.f32.mxu1 %v6739_v19  ;;  %v6698_v19 = vld [vmem:[#allocation3 + $0xe8] sm:$0xff] }
 0xa5f   : > { %7027 = vmatmul.mubr.f32.gmra.mrb[34].mxu1 %v6738_v17  ;;  %v6701_v17 = vld [vmem:[#allocation3 + $0x100] sm:$0xff] }
 0xa60   : > { %7031 = vmatprep.mubr.f32.mxu1 %v6742_v26  ;;  %v6704_v26 = vld [vmem:[#allocation3 + $0x118] sm:$0xff] }
 0xa63   : > { %7032 = vmatmul.mubr.f32.gmra.mrb[36].mxu1 %v6741_v9  ;;  %v6707_v9 = vld [vmem:[#allocation3 + $0x130] sm:$0xff] }
 0xa64   : > { %7036 = vmatprep.mubr.f32.mxu1 %v6745_v11  ;;  %v6710_v11 = vld [vmem:[#allocation3 + $0x148] sm:$0xff] }
 0xa67   : > { %7037 = vmatmul.mubr.f32.gmra.mrb[38].mxu1 %v6744_v55  ;;  %v6713_v55 = vld [vmem:[#allocation3 + $0x160] sm:$0xff] }
 0xa68   : > { %7041 = vmatprep.mubr.f32.mxu1 %v6748_v38  ;;  %v6716_v38 = vld [vmem:[#allocation3 + $0x178] sm:$0xff] }
 0xa6b   : > { %7042 = vmatmul.mubr.f32.gmra.mrb[40].mxu1 %v6747_v45  ;;  %v6719_v45 = vld [vmem:[#allocation3 + $0x190] sm:$0xff] }
 0xa6c   : > { %7046 = vmatprep.mubr.f32.mxu1 %v6751_v60  ;;  %v6722_v60 = vld [vmem:[#allocation3 + $0x1a8] sm:$0xff] }
 0xa6f   : > { %7047 = vmatmul.mubr.f32.gmra.mrb[42].mxu1 %v6750_v1  ;;  %v6725_v1 = vld [vmem:[#allocation3 + $0x1c0] sm:$0xff] }
 0xa70   : > { %7051 = vmatprep.mubr.f32.mxu1 %v6754_v53  ;;  %v6728_v53 = vld [vmem:[#allocation3 + $0x1d8] sm:$0xff] }
 0xa73   : > { %7052 = vmatmul.mubr.f32.gmra.mrb[44].mxu1 %v6753_v12  ;;  %v6731_v12 = vld [vmem:[#allocation3 + $0x1f0] sm:$0xff] }
 0xa74   : > { %7056 = vmatprep.mubr.f32.mxu1 %v6757_v57  ;;  %v6734_v57 = vld [vmem:[#allocation3 + $0x208] sm:$0xff] }
 0xa77   : > { %7057 = vmatmul.mubr.f32.gmra.mrb[46].mxu1 %v6756_v20  ;;  %v6737_v20 = vld [vmem:[#allocation3 + $0x220] sm:$0xff] }
 0xa78   : > { %7061 = vmatprep.mubr.f32.mxu1 %v6760_v28  ;;  %v6740_v28 = vld [vmem:[#allocation3 + $0x238] sm:$0xff] }
 0xa7b   : > { %7062 = vmatmul.mubr.f32.gmra.mrb[48].mxu1 %v6759_v35  ;;  %v6743_v35 = vld [vmem:[#allocation3 + $0x250] sm:$0xff] }
 0xa7c   : > { %7066 = vmatprep.mubr.f32.mxu1 %v6763_v6  ;;  %v6746_v6 = vld [vmem:[#allocation3 + $0x268] sm:$0xff] }
 0xa7f   : > { %7067 = vmatmul.mubr.f32.gmra.mrb[50].mxu1 %v6762_v56  ;;  %v6749_v56 = vld [vmem:[#allocation3 + $0x280] sm:$0xff] }
 0xa80   : > { %7071 = vmatprep.mubr.f32.mxu1 %v6766_v5  ;;  %v6752_v5 = vld [vmem:[#allocation3 + $0x298] sm:$0xff] }
 0xa83   : > { %7072 = vmatmul.mubr.f32.gmra.mrb[52].mxu1 %v6765_v7  ;;  %v6755_v7 = vld [vmem:[#allocation3 + $0x2b0] sm:$0xff] }
 0xa84   : > { %7076 = vmatprep.mubr.f32.mxu1 %v6769_v18  ;;  %v6758_v18 = vld [vmem:[#allocation3 + $0x2c8] sm:$0xff] }
 0xa87   : > { %7077 = vmatmul.mubr.f32.gmra.mrb[54].mxu1 %v6768_v13  ;;  %v6761_v13 = vld [vmem:[#allocation3 + $0x2e0] sm:$0xff] }
 0xa88   : > { %7081 = vmatprep.mubr.f32.mxu1 %v6772_v54  ;;  %v6764_v54 = vld [vmem:[#allocation3 + $0x2f8] sm:$0xff] }
 0xa8b   : > { %7082 = vmatmul.mubr.f32.gmra.mrb[56].mxu1 %v6771_v32  ;;  %v6767_v32 = vld [vmem:[#allocation3 + $0x310] sm:$0xff] }
 0xa8c   : > { %7086 = vmatprep.mubr.f32.mxu1 %v6775_v41  ;;  %v6770_v41 = vld [vmem:[#allocation3 + $0x328] sm:$0xff] }
 0xa8f   : > { %7087 = vmatmul.mubr.f32.gmra.mrb[58].mxu1 %v6774_v39  ;;  %v6773_v39 = vld [vmem:[#allocation3 + $0x340] sm:$0xff] }
 0xa90   : > { %7091 = vmatprep.mubr.f32.mxu1 %v6778_v51  ;;  %v6776_v51 = vld [vmem:[#allocation3 + $0x358] sm:$0xff] }
 0xa93   : > { %7092 = vmatmul.mubr.f32.gmra.mrb[60].mxu1 %v6777_v14  ;;  %v6779_v14 = vld [vmem:[#allocation3 + $0x370] sm:$0xff] }
 0xa94   : > { %7096 = vmatprep.mubr.f32.mxu1 %v6781_v36  ;;  %v6782_v36 = vld [vmem:[#allocation3 + $0x388] sm:$0xff] }
 0xa97   : > { %7097 = vmatmul.mubr.f32.gmra.mrb[62].mxu1 %v6780_v59  ;;  %v6785_v59 = vld [vmem:[#allocation3 + $0x3a0] sm:$0xff] }
 0xa98   : > { %7101 = vmatprep.mubr.f32.mxu1 %v6784_v63  ;;  %v6788_v63 = vld [vmem:[#allocation3 + $0x3b8] sm:$0xff] }
 0xa9b   : > { %7102 = vmatmul.mubr.f32.gmra.mrb[64].mxu1 %v6783_v10  ;;  %v6791_v10 = vld [vmem:[#allocation3 + $0x3d0] sm:$0xff] }
 0xa9c   : > { %7106 = vmatprep.mubr.f32.mxu1 %v6787_v62  ;;  %v6794_v62 = vld [vmem:[#allocation3 + $0x3e8] sm:$0xff] }
 0xa9f   : > { %7107 = vmatmul.mubr.f32.gmra.mrb[66].mxu1 %v6786_v8  ;;  %v6797_v8 = vld [vmem:[#allocation3 + $0x400] sm:$0xff] }
 0xaa0   : > { %7111 = vmatprep.mubr.f32.mxu1 %v6790_v4  ;;  %v6800_v4 = vld [vmem:[#allocation3 + $0x418] sm:$0xff] }
 0xaa3   : > { %7112 = vmatmul.mubr.f32.gmra.mrb[68].mxu1 %v6789_v50  ;;  %v6803_v50 = vld [vmem:[#allocation3 + $0x430] sm:$0xff] }
 0xaa4   : > { %7116 = vmatprep.mubr.f32.mxu1 %v6793_v25  ;;  %v6806_v25 = vld [vmem:[#allocation3 + $0x448] sm:$0xff] }
 0xaa7   : > { %7117 = vmatmul.mubr.f32.gmra.mrb[70].mxu1 %v6792_v24  ;;  %v6809_v24 = vld [vmem:[#allocation3 + $0x460] sm:$0xff] }
 0xaa8   : > { %7121 = vmatprep.mubr.f32.mxu1 %v6796_v22  ;;  %v6812_v22 = vld [vmem:[#allocation3 + $0x478] sm:$0xff] }
 0xaab   : > { %7122 = vmatmul.mubr.f32.gmra.mrb[72].mxu1 %v6795_v47  ;;  %v6815_v47 = vld [vmem:[#allocation3 + $0x490] sm:$0xff] }
 0xaac   : > { %7126 = vmatprep.mubr.f32.mxu1 %v6799_v21  ;;  %v6818_v21 = vld [vmem:[#allocation3 + $0x4a8] sm:$0xff] }
 0xaaf   : > { %7127 = vmatmul.mubr.f32.gmra.mrb[74].mxu1 %v6798_v23  ;;  %v11439_v23 = vld [vmem:[#allocation3 + $0x4c0] sm:$0xff] }
 0xab0   : > { %7131 = vmatprep.mubr.f32.mxu1 %v6802_v27  ;;  %v11440_v27 = vld [vmem:[#allocation3 + $0x4d8] sm:$0xff] }
 0xab3   : > { %7132 = vmatmul.mubr.f32.gmra.mrb[76].mxu1 %v6801_v15  ;;  %v11441_v15 = vld [vmem:[#allocation3 + $0x4f0] sm:$0xff] }
 0xab4   : > { %7136 = vmatprep.mubr.f32.mxu1 %v6805_v33 }
 0xab7   : > { %7137 = vmatmul.mubr.f32.gmra.mrb[78].mxu1 %v6804_v31 }
 0xab8   : > { %7141 = vmatprep.mubr.f32.mxu1 %v6808_v58  ;;  %v18432_v58 = vld [vmem:[#allocation22_spill] sm:$0xff] }
 0xab9   : > { %vm18433_vm15 = vcmp.lt.s32.totalorder %v18432_v58, 16 }
 0xabb   : > { %7142 = vmatmul.mubr.f32.gmra.mrb[80].mxu1 %v6807_v61 }
 0xabc   : > { %7146 = vmatprep.mubr.f32.mxu1 %v6811_v42 }
 0xabf   : > { %7147 = vmatmul.mubr.f32.gmra.mrb[82].mxu1 %v6810_v0  ;;  %v18434_v0 = vld [vmem:[#allocation23_spill] sm:$0xff] }
 0xac0   : > { %7151 = vmatprep.mubr.f32.mxu1 %v6814_v37  ;;  %vm18435_vm7 = vcmp.lt.s32.totalorder %v18434_v0, 16 }
 0xac3   : > { %7152 = vmatmul.mubr.f32.gmra.mrb[84].mxu1 %v6813_v2 }
 0xac4   : > { %7156 = vmatprep.mubr.f32.mxu1 %v6817_v30 }
 0xac7   : > { %7157 = vmatmul.mubr.f32.gmra.mrb[86].mxu1 %v6816_v34 }
 0xac8   : > { %7161 = vmatprep.mubr.f32.mxu1 %v11433_v29 }
 0xacb   : > { %7162 = vmatmul.mubr.f32.gmra.mrb[88].mxu1 %v11434_v49 }
 0xacc   : > { %7166 = vmatprep.mubr.f32.mxu1 %v11435_v43  ;;  %v18436_v43 = vld [vmem:[#allocation24_spill] sm:$0xff] }
 0xacd   : > { %vm18437_vm11 = vcmp.lt.s32.totalorder %v18436_v43, 16 }
 0xacf   : > { %7167 = vmatmul.mubr.f32.gmra.mrb[90].mxu1 %v11436_v40 }
 0xad0   : > { %7171 = vmatprep.mubr.f32.mxu1 %v11437_v16 }
 0xad3   : > { %7172 = vmatmul.mubr.f32.gmra.mrb[92].mxu1 %v11438_v46 }
 0xad4   : > { %9467 = vmatprep.mubr.msk.f32.mxu1 %vm18392_vm1, %v18391_v48 }
 0xad7   : > { %9468 = vmatmul.mubr.f32.vlgmr.msra.gmra.mrb[0].mxu1 %v6689_v52 }
 0xad8   : > { %9470 = vmatprep.mubr.msk.f32.mxu1 %vm18392_vm1, %v18391_v48 }
 0xadb   : > { %9471 = vmatmul.mubr.f32.gmra.mrb[2].mxu1 %v6692_v44 }
 0xadc   : > { %9473 = vmatprep.mubr.msk.f32.mxu1 %vm18392_vm1, %v18391_v48 }
 0xadf   : > { %9474 = vmatmul.mubr.f32.gmra.mrb[4].mxu1 %v6695_v3 }
 0xae0   : > { %9476 = vmatprep.mubr.msk.f32.mxu1 %vm18392_vm1, %v18391_v48 }
 0xae3   : > { %9477 = vmatmul.mubr.f32.gmra.mrb[6].mxu1 %v6698_v19  ;;  %v18438_v19 = vld [vmem:[#allocation25_spill] sm:$0xff] }
 0xae4   : > { %9479 = vmatprep.mubr.msk.f32.mxu1 %vm18392_vm1, %v18391_v48  ;;  %vm18439_vm3 = vcmp.lt.s32.totalorder %v18438_v19, 16 }
 0xae7   : > { %9480 = vmatmul.mubr.f32.gmra.mrb[8].mxu1 %v6701_v17 }
 0xae8   : > { %9482 = vmatprep.mubr.msk.f32.mxu1 %vm18392_vm1, %v18391_v48 }
 0xaeb   : > { %9483 = vmatmul.mubr.f32.gmra.mrb[10].mxu1 %v6704_v26 }
 0xaec   : > { %9485 = vmatprep.mubr.msk.f32.mxu1 %vm18392_vm1, %v18391_v48 }
 0xaef   : > { %9486 = vmatmul.mubr.f32.gmra.mrb[12].mxu1 %v6707_v9 }
 0xaf0   : > { %9488 = vmatprep.mubr.msk.f32.mxu1 %vm18392_vm1, %v18391_v48 }
 0xaf3   : > { %9489 = vmatmul.mubr.f32.gmra.mrb[14].mxu1 %v6710_v11 }
 0xaf4   : > { %9491 = vmatprep.mubr.msk.f32.mxu1 %vm18392_vm1, %v18391_v48 }
 0xaf7   : > { %9492 = vmatmul.mubr.f32.gmra.mrb[16].mxu1 %v6713_v55 }
 0xaf8   : > { %9494 = vmatprep.mubr.msk.f32.mxu1 %vm18392_vm1, %v18391_v48 }
 0xafb   : > { %9495 = vmatmul.mubr.f32.gmra.mrb[18].mxu1 %v6716_v38 }
 0xafc   : > { %9497 = vmatprep.mubr.msk.f32.mxu1 %vm18392_vm1, %v18391_v48 }
 0xaff   : > { %9498 = vmatmul.mubr.f32.gmra.mrb[20].mxu1 %v6719_v45  ;;  %v18440_v45 = vld [vmem:[#allocation26_spill] sm:$0xff] }
 0xb00   : > { %9500 = vmatprep.mubr.msk.f32.mxu1 %vm18392_vm1, %v18391_v48  ;;  %vm18441_vm12 = vcmp.lt.s32.totalorder %v18440_v45, 16 }
 0xb03   : > { %9501 = vmatmul.mubr.f32.gmra.mrb[22].mxu1 %v6722_v60 }
 0xb04   : > { %9503 = vmatprep.mubr.msk.f32.mxu1 %vm18392_vm1, %v18391_v48 }
 0xb07   : > { %9504 = vmatmul.mubr.f32.gmra.mrb[24].mxu1 %v6725_v1 }
 0xb08   : > { %9506 = vmatprep.mubr.msk.f32.mxu1 %vm18392_vm1, %v18391_v48 }
 0xb0b   : > { %9507 = vmatmul.mubr.f32.gmra.mrb[26].mxu1 %v6728_v53 }
 0xb0c   : > { %9509 = vmatprep.mubr.msk.f32.mxu1 %vm18392_vm1, %v18391_v48 }
 0xb0f   : > { %9510 = vmatmul.mubr.f32.gmra.mrb[28].mxu1 %v6731_v12 }
 0xb10   : > { %9512 = vmatprep.mubr.msk.f32.mxu1 %vm18392_vm1, %v18391_v48 }
 0xb13   : > { %9513 = vmatmul.mubr.f32.gmra.mrb[30].mxu1 %v6734_v57 }
 0xb14   : > { %9515 = vmatprep.mubr.msk.f32.mxu1 %vm18392_vm1, %v18391_v48 }
 0xb17   : > { %9516 = vmatmul.mubr.f32.gmra.mrb[32].mxu1 %v6737_v20 }
 0xb18   : > { %9518 = vmatprep.mubr.msk.f32.mxu1 %vm18392_vm1, %v18391_v48 }
 0xb1b   : > { %9519 = vmatmul.mubr.f32.gmra.mrb[34].mxu1 %v6740_v28  ;;  %v18442_v28 = vld [vmem:[#allocation27_spill] sm:$0xff] }
 0xb1c   : > { %9521 = vmatprep.mubr.msk.f32.mxu1 %vm18392_vm1, %v18391_v48  ;;  %vm18443_vm4 = vcmp.lt.s32.totalorder %v18442_v28, 16 }
 0xb1f   : > { %9522 = vmatmul.mubr.f32.gmra.mrb[36].mxu1 %v6743_v35 }
 0xb20   : > { %9524 = vmatprep.mubr.msk.f32.mxu1 %vm18392_vm1, %v18391_v48 }
 0xb23   : > { %9525 = vmatmul.mubr.f32.gmra.mrb[38].mxu1 %v6746_v6 }
 0xb24   : > { %9527 = vmatprep.mubr.msk.f32.mxu1 %vm18392_vm1, %v18391_v48 }
 0xb27   : > { %9528 = vmatmul.mubr.f32.gmra.mrb[40].mxu1 %v6749_v56 }
 0xb28   : > { %9530 = vmatprep.mubr.msk.f32.mxu1 %vm18392_vm1, %v18391_v48 }
 0xb2b   : > { %9531 = vmatmul.mubr.f32.gmra.mrb[42].mxu1 %v6752_v5 }
 0xb2c   : > { %9533 = vmatprep.mubr.msk.f32.mxu1 %vm18392_vm1, %v18391_v48 }
 0xb2f   : > { %9534 = vmatmul.mubr.f32.gmra.mrb[44].mxu1 %v6755_v7 }
 0xb30   : > { %9536 = vmatprep.mubr.msk.f32.mxu1 %vm18392_vm1, %v18391_v48 }
 0xb33   : > { %9537 = vmatmul.mubr.f32.gmra.mrb[46].mxu1 %v6758_v18 }
 0xb34   : > { %9539 = vmatprep.mubr.msk.f32.mxu1 %vm18392_vm1, %v18391_v48 }
 0xb37   : > { %9540 = vmatmul.mubr.f32.gmra.mrb[48].mxu1 %v6761_v13  ;;  %v18444_v13 = vld [vmem:[#allocation28_spill] sm:$0xff] }
 0xb38   : > { %9542 = vmatprep.mubr.msk.f32.mxu1 %vm18392_vm1, %v18391_v48  ;;  %vm18445_vm9 = vcmp.lt.s32.totalorder %v18444_v13, 16 }
 0xb3b   : > { %9543 = vmatmul.mubr.f32.gmra.mrb[50].mxu1 %v6764_v54 }
 0xb3c   : > { %9545 = vmatprep.mubr.msk.f32.mxu1 %vm18392_vm1, %v18391_v48 }
 0xb3f   : > { %9546 = vmatmul.mubr.f32.gmra.mrb[52].mxu1 %v6767_v32 }
 0xb40   : > { %9548 = vmatprep.mubr.msk.f32.mxu1 %vm18392_vm1, %v18391_v48 }
 0xb43   : > { %9549 = vmatmul.mubr.f32.gmra.mrb[54].mxu1 %v6770_v41 }
 0xb44   : > { %9551 = vmatprep.mubr.msk.f32.mxu1 %vm18392_vm1, %v18391_v48 }
 0xb47   : > { %9552 = vmatmul.mubr.f32.gmra.mrb[56].mxu1 %v6773_v39 }
 0xb48   : > { %9554 = vmatprep.mubr.msk.f32.mxu1 %vm18392_vm1, %v18391_v48 }
 0xb4b   : > { %9555 = vmatmul.mubr.f32.gmra.mrb[58].mxu1 %v6776_v51 }
 0xb4c   : > { %9557 = vmatprep.mubr.msk.f32.mxu1 %vm18392_vm1, %v18391_v48 }
 0xb4f   : > { %9558 = vmatmul.mubr.f32.gmra.mrb[60].mxu1 %v6779_v14 }
 0xb50   : > { %9560 = vmatprep.mubr.msk.f32.mxu1 %vm18392_vm1, %v18391_v48 }
 0xb53   : > { %9561 = vmatmul.mubr.f32.gmra.mrb[62].mxu1 %v6782_v36  ;;  %v18446_v36 = vld [vmem:[#allocation30_spill] sm:$0xff] }
 0xb54   : > { %9563 = vmatprep.mubr.msk.f32.mxu1 %vm18392_vm1, %v18391_v48  ;;  %vm18447_vm5 = vcmp.lt.s32.totalorder %v18446_v36, 16  ;;  %v18462_v36 = vld [vmem:[#allocation37_spill] sm:$0xff] }
 0xb57   : > { %9564 = vmatmul.mubr.f32.gmra.mrb[64].mxu1 %v6785_v59 }
 0xb58   : > { %9566 = vmatprep.mubr.msk.f32.mxu1 %vm18392_vm1, %v18391_v48 }
 0xb5b   : > { %9567 = vmatmul.mubr.f32.gmra.mrb[66].mxu1 %v6788_v63 }
 0xb5c   : > { %9569 = vmatprep.mubr.msk.f32.mxu1 %vm18392_vm1, %v18391_v48 }
 0xb5f   : > { %9570 = vmatmul.mubr.f32.gmra.mrb[68].mxu1 %v6791_v10 }
 0xb60   : > { %9572 = vmatprep.mubr.msk.f32.mxu1 %vm18392_vm1, %v18391_v48 }
 0xb63   : > { %9573 = vmatmul.mubr.f32.gmra.mrb[70].mxu1 %v6794_v62 }
 0xb64   : > { %9575 = vmatprep.mubr.msk.f32.mxu1 %vm18392_vm1, %v18391_v48 }
 0xb67   : > { %9576 = vmatmul.mubr.f32.gmra.mrb[72].mxu1 %v6797_v8 }
 0xb68   : > { %9578 = vmatprep.mubr.msk.f32.mxu1 %vm18392_vm1, %v18391_v48 }
 0xb6b   : > { %9579 = vmatmul.mubr.f32.gmra.mrb[74].mxu1 %v6800_v4 }
 0xb6c   : > { %9581 = vmatprep.mubr.msk.f32.mxu1 %vm18392_vm1, %v18391_v48 }
 0xb6f   : > { %9582 = vmatmul.mubr.f32.gmra.mrb[76].mxu1 %v6803_v50  ;;  %v18448_v50 = vld [vmem:[#allocation32_spill] sm:$0xff] }
 0xb70   : > { %9584 = vmatprep.mubr.msk.f32.mxu1 %vm18392_vm1, %v18391_v48  ;;  %vm18449_vm0 = vcmp.lt.s32.totalorder %v18448_v50, 16 }
 0xb73   : > { %9585 = vmatmul.mubr.f32.gmra.mrb[78].mxu1 %v6806_v25 }
 0xb74   : > { %9587 = vmatprep.mubr.msk.f32.mxu1 %vm18392_vm1, %v18391_v48 }
 0xb77   : > { %9588 = vmatmul.mubr.f32.gmra.mrb[80].mxu1 %v6809_v24 }
 0xb78   : > { %9590 = vmatprep.mubr.msk.f32.mxu1 %vm18392_vm1, %v18391_v48 }
 0xb7b   : > { %9591 = vmatmul.mubr.f32.gmra.mrb[82].mxu1 %v6812_v22 }
 0xb7c   : > { %9593 = vmatprep.mubr.msk.f32.mxu1 %vm18392_vm1, %v18391_v48 }
 0xb7f   : > { %9594 = vmatmul.mubr.f32.gmra.mrb[84].mxu1 %v6815_v47 }
 0xb80   : > { %9596 = vmatprep.mubr.msk.f32.mxu1 %vm18392_vm1, %v18391_v48 }
 0xb83   : > { %9597 = vmatmul.mubr.f32.gmra.mrb[86].mxu1 %v6818_v21 }
 0xb84   : > { %9599 = vmatprep.mubr.msk.f32.mxu1 %vm18392_vm1, %v18391_v48 }
 0xb87   : > { %9600 = vmatmul.mubr.f32.gmra.mrb[88].mxu1 %v11439_v23 }
 0xb88   : > { %9602 = vmatprep.mubr.msk.f32.mxu1 %vm18392_vm1, %v18391_v48 }
 0xb8b   : > { %9603 = vmatmul.mubr.f32.gmra.mrb[90].mxu1 %v11440_v27  ;;  %v18450_v27 = vld [vmem:[#allocation34_spill] sm:$0xff] }
 0xb8c   : > { %9605 = vmatprep.mubr.msk.f32.mxu1 %vm18392_vm1, %v18391_v48  ;;  %vm18451_vm10 = vcmp.lt.s32.totalorder %v18450_v27, 16  ;;  %vm18463_vm1 = vcmp.lt.s32.totalorder %v18462_v36, 16 }
 0xb8f   : > { %9606 = vmatmul.mubr.f32.gmra.mrb[92].mxu1 %v11441_v15 }
 0xbaa   : > { %v16494_v33 = vpop.f32.mrb[0].mxu1 }
 0xbab   : > { %v9469_v31 = vpop.f32.mrb[1].mxu1  ;;  %v7524_v61 = vsel %vm18433_vm15, %v16494_v33, 0.0 }
 0xbac   : > { %v7624_v30 = vmul.f32 %v7524_v61, %v7524_v61 }
 0xbae   : > { %v16499_v42 = vpop.f32.mrb[2].mxu1 }
 0xbaf   : > { %v7525_v37 = vsel %vm18435_vm7, %v16499_v42, 0.0  ;;  %v9472_v2 = vpop.f32.mrb[3].mxu1 }
 0xbb0   : > { %v7571_v34 = vadd.f32 %v7525_v37, %v7524_v61  ;;  %v7625_v29 = vmul.f32 %v7525_v37, %v7525_v37  ;;  %v18452_v2 = vld [vmem:[#allocation29_spill] sm:$0xff] }
 0xbb1   : > { %vm18453_vm8 = vcmp.lt.s32.totalorder %v18452_v2, 16 }
 0xbb2   : > { %v7671_v48 = vadd.f32 %v7625_v29, %v7624_v30  ;;  %v16504_v49 = vpop.f32.mrb[4].mxu1 }
 0xbb3   : > { %v7526_v40 = vsel %vm18437_vm11, %v16504_v49, 0.0  ;;  %v9475_v16 = vpop.f32.mrb[5].mxu1 }
 0xbb4   : > { %v7572_v46 = vadd.f32 %v7571_v34, %v7526_v40  ;;  %v7626_v52 = vmul.f32 %v7526_v40, %v7526_v40  ;;  %v18454_v16 = vld [vmem:[#allocation31_spill] sm:$0xff] }
 0xbb5   : > { %vm18455_vm2 = vcmp.lt.s32.totalorder %v18454_v16, 16 }
 0xbb6   : > { %v7672_v44 = vadd.f32 %v7671_v48, %v7626_v52  ;;  %v16509_v3 = vpop.f32.mrb[6].mxu1 }
 0xbb7   : > { %v7527_v17 = vsel %vm18439_vm3, %v16509_v3, 0.0  ;;  %v9478_v26 = vpop.f32.mrb[7].mxu1 }
 0xbb8   : > { %v7573_v9 = vadd.f32 %v7572_v46, %v7527_v17  ;;  %v7627_v11 = vmul.f32 %v7527_v17, %v7527_v17 }
 0xbba   : > { %v7673_v55 = vadd.f32 %v7672_v44, %v7627_v11  ;;  %v16514_v38 = vpop.f32.mrb[8].mxu1 }
 0xbbb   : > { %v7528_v60 = vsel %vm18441_vm12, %v16514_v38, 0.0  ;;  %v9481_v1 = vpop.f32.mrb[9].mxu1 }
 0xbbc   : > { %v7574_v53 = vadd.f32 %v7573_v9, %v7528_v60  ;;  %v7628_v12 = vmul.f32 %v7528_v60, %v7528_v60  ;;  %v18456_v9 = vld [vmem:[#allocation33_spill] sm:$0xff] }
 0xbbd   : > { %vm18457_vm13 = vcmp.lt.s32.totalorder %v18456_v9, 16 }
 0xbbe   : > { %v7674_v57 = vadd.f32 %v7673_v55, %v7628_v12  ;;  %v16519_v20 = vpop.f32.mrb[10].mxu1  ;;  %v18458_v12 = vld [vmem:[#allocation35_spill] sm:$0xff] }
 0xbbf   : > { %v7529_v35 = vsel %vm18443_vm4, %v16519_v20, 0.0  ;;  %v9484_v6 = vpop.f32.mrb[11].mxu1  ;;  %vm18459_vm6 = vcmp.lt.s32.totalorder %v18458_v12, 16 }
 0xbc0   : > { %v7575_v56 = vadd.f32 %v7574_v53, %v7529_v35  ;;  %v7629_v5 = vmul.f32 %v7529_v35, %v7529_v35 }
 0xbc2   : > { %v7675_v7 = vadd.f32 %v7674_v57, %v7629_v5  ;;  %v16524_v18 = vpop.f32.mrb[12].mxu1 }
 0xbc3   : > { %v7530_v54 = vsel %vm18445_vm9, %v16524_v18, 0.0  ;;  %v9487_v32 = vpop.f32.mrb[13].mxu1 }
 0xbc4   : > { %v7576_v41 = vadd.f32 %v7575_v56, %v7530_v54  ;;  %v7630_v39 = vmul.f32 %v7530_v54, %v7530_v54 }
 0xbc6   : > { %v7676_v51 = vadd.f32 %v7675_v7, %v7630_v39  ;;  %v16529_v14 = vpop.f32.mrb[14].mxu1  ;;  %v18460_v7 = vld [vmem:[#allocation36_spill] sm:$0xff] }
 0xbc7   : > { %v7531_v59 = vsel %vm18447_vm5, %v16529_v14, 0.0  ;;  %v9490_v63 = vpop.f32.mrb[15].mxu1  ;;  %vm18461_vm14 = vcmp.lt.s32.totalorder %v18460_v7, 16  ;;  %v18474_v7 = vld [vmem:[#allocation43_spill] sm:$0xff] }
 0xbc8   : > { %v7577_v10 = vadd.f32 %v7576_v41, %v7531_v59  ;;  %v7631_v62 = vmul.f32 %v7531_v59, %v7531_v59  ;;  %vm18475_vm4 = vcmp.lt.s32.totalorder %v18474_v7, 16  ;;  %v18486_v7 = vld [vmem:[#allocation49_spill] sm:$0xff] }
 0xbca   : > { %v7677_v8 = vadd.f32 %v7676_v51, %v7631_v62  ;;  %v16534_v4 = vpop.f32.mrb[16].mxu1 }
 0xbcb   : > { %v7532_v25 = vsel %vm18449_vm0, %v16534_v4, 0.0  ;;  %v9493_v24 = vpop.f32.mrb[17].mxu1 }
 0xbcc   : > { %v7578_v22 = vadd.f32 %v7577_v10, %v7532_v25  ;;  %v7632_v47 = vmul.f32 %v7532_v25, %v7532_v25  ;;  %v18464_v25 = vld [vmem:[#allocation38_spill] sm:$0xff] }
 0xbcd   : > { %vm18465_vm15 = vcmp.lt.s32.totalorder %v18464_v25, 16 }
 0xbce   : > { %v7678_v21 = vadd.f32 %v7677_v8, %v7632_v47  ;;  %v16539_v23 = vpop.f32.mrb[18].mxu1 }
 0xbcf   : > { %v7533_v15 = vsel %vm18451_vm10, %v16539_v23, 0.0  ;;  %v9496_v31 = vpop.f32.mrb[19].mxu1 }
 0xbd0   : > { %v7579_v58 = vadd.f32 %v7578_v22, %v7533_v15  ;;  %v7633_v61 = vmul.f32 %v7533_v15, %v7533_v15  ;;  %v18466_v31 = vld [vmem:[#allocation39_spill] sm:$0xff] }
 0xbd1   : > { %vm18467_vm7 = vcmp.lt.s32.totalorder %v18466_v31, 16 }
 0xbd2   : > { %v7679_v0 = vadd.f32 %v7678_v21, %v7633_v61  ;;  %v16544_v37 = vpop.f32.mrb[20].mxu1 }
 0xbd3   : > { %v7534_v30 = vsel %vm18453_vm8, %v16544_v37, 0.0  ;;  %v9499_v34 = vpop.f32.mrb[21].mxu1 }
 0xbd4   : > { %v7580_v29 = vadd.f32 %v7579_v58, %v7534_v30  ;;  %v7634_v48 = vmul.f32 %v7534_v30, %v7534_v30 }
 0xbd6   : > { %v7680_v43 = vadd.f32 %v7679_v0, %v7634_v48  ;;  %v16549_v40 = vpop.f32.mrb[22].mxu1 }
 0xbd7   : > { %v7535_v46 = vsel %vm18455_vm2, %v16549_v40, 0.0  ;;  %v9502_v52 = vpop.f32.mrb[23].mxu1  ;;  %vm18487_vm2 = vcmp.lt.s32.totalorder %v18486_v7, 16 }
 0xbd8   : > { %v7581_v44 = vadd.f32 %v7580_v29, %v7535_v46  ;;  %v7635_v19 = vmul.f32 %v7535_v46, %v7535_v46  ;;  %v18468_v29 = vld [vmem:[#allocation40_spill] sm:$0xff] }
 0xbd9   : > { %vm18469_vm11 = vcmp.lt.s32.totalorder %v18468_v29, 16 }
 0xbda   : > { %v7681_v17 = vadd.f32 %v7680_v43, %v7635_v19  ;;  %v16554_v26 = vpop.f32.mrb[24].mxu1  ;;  %v18470_v19 = vld [vmem:[#allocation41_spill] sm:$0xff] }
 0xbdb   : > { %v7536_v11 = vsel %vm18457_vm13, %v16554_v26, 0.0  ;;  %v9505_v55 = vpop.f32.mrb[25].mxu1  ;;  %vm18471_vm3 = vcmp.lt.s32.totalorder %v18470_v19, 16 }
 0xbdc   : > { %v7582_v45 = vadd.f32 %v7581_v44, %v7536_v11  ;;  %v7636_v60 = vmul.f32 %v7536_v11, %v7536_v11 }
 0xbde   : > { %v7682_v1 = vadd.f32 %v7681_v17, %v7636_v60  ;;  %v16559_v53 = vpop.f32.mrb[26].mxu1 }
 0xbdf   : > { %v7537_v57 = vsel %vm18459_vm6, %v16559_v53, 0.0  ;;  %v9508_v28 = vpop.f32.mrb[27].mxu1 }
 0xbe0   : > { %v7583_v35 = vadd.f32 %v7582_v45, %v7537_v57  ;;  %v7637_v6 = vmul.f32 %v7537_v57, %v7537_v57 }
 0xbe2   : > { %v7683_v56 = vadd.f32 %v7682_v1, %v7637_v6  ;;  %v16564_v5 = vpop.f32.mrb[28].mxu1  ;;  %v18472_v1 = vld [vmem:[#allocation42_spill] sm:$0xff] }
 0xbe3   : > { %v7538_v13 = vsel %vm18461_vm14, %v16564_v5, 0.0  ;;  %v9511_v54 = vpop.f32.mrb[29].mxu1  ;;  %vm18473_vm12 = vcmp.lt.s32.totalorder %v18472_v1, 16 }
 0xbe4   : > { %v7584_v32 = vadd.f32 %v7583_v35, %v7538_v13  ;;  %v7638_v41 = vmul.f32 %v7538_v13, %v7538_v13 }
 0xbe6   : > { %v7684_v39 = vadd.f32 %v7683_v56, %v7638_v41  ;;  %v16569_v51 = vpop.f32.mrb[30].mxu1 }
 0xbe7   : > { %v7539_v59 = vsel %vm18463_vm1, %v16569_v51, 0.0  ;;  %v9514_v63 = vpop.f32.mrb[31].mxu1 }
 0xbe8   : > { %v7585_v10 = vadd.f32 %v7584_v32, %v7539_v59  ;;  %v7639_v62 = vmul.f32 %v7539_v59, %v7539_v59  ;;  %v18476_v59 = vld [vmem:[#allocation44_spill] sm:$0xff] }
 0xbe9   : > { %vm18477_vm9 = vcmp.lt.s32.totalorder %v18476_v59, 16 }
 0xbea   : > { %v7685_v8 = vadd.f32 %v7684_v39, %v7639_v62  ;;  %v16574_v50 = vpop.f32.mrb[32].mxu1 }
 0xbeb   : > { %v7540_v24 = vsel %vm18465_vm15, %v16574_v50, 0.0  ;;  %v9517_v22 = vpop.f32.mrb[33].mxu1 }
 0xbec   : > { %v7586_v47 = vadd.f32 %v7585_v10, %v7540_v24  ;;  %v7640_v21 = vmul.f32 %v7540_v24, %v7540_v24  ;;  %v18478_v22 = vld [vmem:[#allocation45_spill] sm:$0xff] }
 0xbed   : > { %vm18479_vm5 = vcmp.lt.s32.totalorder %v18478_v22, 16 }
 0xbee   : > { %v7686_v27 = vadd.f32 %v7685_v8, %v7640_v21  ;;  %v16579_v15 = vpop.f32.mrb[34].mxu1 }
 0xbef   : > { %v7541_v58 = vsel %vm18467_vm7, %v16579_v15, 0.0  ;;  %v9520_v61 = vpop.f32.mrb[35].mxu1 }
 0xbf0   : > { %v7587_v0 = vadd.f32 %v7586_v47, %v7541_v58  ;;  %v7641_v2 = vmul.f32 %v7541_v58, %v7541_v58 }
 0xbf2   : > { %v7687_v30 = vadd.f32 %v7686_v27, %v7641_v2  ;;  %v16584_v34 = vpop.f32.mrb[36].mxu1 }
 0xbf3   : > { %v7542_v48 = vsel %vm18469_vm11, %v16584_v34, 0.0  ;;  %v9523_v43 = vpop.f32.mrb[37].mxu1 }
 0xbf4   : > { %v7588_v16 = vadd.f32 %v7587_v0, %v7542_v48  ;;  %v7642_v46 = vmul.f32 %v7542_v48, %v7542_v48  ;;  %v18480_v0 = vld [vmem:[#allocation46_spill] sm:$0xff] }
 0xbf5   : > { %vm18481_vm0 = vcmp.lt.s32.totalorder %v18480_v0, 16 }
 0xbf6   : > { %v7688_v52 = vadd.f32 %v7687_v30, %v7642_v46  ;;  %v16589_v44 = vpop.f32.mrb[38].mxu1  ;;  %v18482_v46 = vld [vmem:[#allocation47_spill] sm:$0xff] }
 0xbf7   : > { %v7543_v17 = vsel %vm18471_vm3, %v16589_v44, 0.0  ;;  %v9526_v9 = vpop.f32.mrb[39].mxu1  ;;  %vm18483_vm10 = vcmp.lt.s32.totalorder %v18482_v46, 16 }
 0xbf8   : > { %v7589_v11 = vadd.f32 %v7588_v16, %v7543_v17  ;;  %v7643_v55 = vmul.f32 %v7543_v17, %v7543_v17 }
 0xbfa   : > { %v7689_v45 = vadd.f32 %v7688_v52, %v7643_v55  ;;  %v16594_v60 = vpop.f32.mrb[40].mxu1 }
 0xbfb   : > { %v7544_v12 = vsel %vm18473_vm12, %v16594_v60, 0.0  ;;  %v9529_v57 = vpop.f32.mrb[41].mxu1 }
 0xbfc   : > { %v7590_v28 = vadd.f32 %v7589_v11, %v7544_v12  ;;  %v7644_v35 = vmul.f32 %v7544_v12, %v7544_v12 }
 0xbfe   : > { %v7690_v6 = vadd.f32 %v7689_v45, %v7644_v35  ;;  %v16599_v56 = vpop.f32.mrb[42].mxu1  ;;  %v18484_v45 = vld [vmem:[#allocation48_spill] sm:$0xff] }
 0xbff   : > { %v7545_v13 = vsel %vm18475_vm4, %v16599_v56, 0.0  ;;  %v9532_v54 = vpop.f32.mrb[43].mxu1  ;;  %vm18485_vm8 = vcmp.lt.s32.totalorder %v18484_v45, 16 }
 0xc00   : > { %v7591_v32 = vadd.f32 %v7590_v28, %v7545_v13  ;;  %v7645_v41 = vmul.f32 %v7545_v13, %v7545_v13 }
 0xc02   : > { %v7691_v39 = vadd.f32 %v7690_v6, %v7645_v41  ;;  %v16604_v36 = vpop.f32.mrb[44].mxu1 }
 0xc03   : > { %v7546_v63 = vsel %vm18477_vm9, %v16604_v36, 0.0  ;;  %v9535_v10 = vpop.f32.mrb[45].mxu1 }
 0xc04   : > { %v7592_v62 = vadd.f32 %v7591_v32, %v7546_v63  ;;  %v7646_v8 = vmul.f32 %v7546_v63, %v7546_v63  ;;  %v18488_v63 = vld [vmem:[#allocation50_spill] sm:$0xff] }
 0xc05   : > { %vm18489_vm13 = vcmp.lt.s32.totalorder %v18488_v63, 16  ;;  %v18498_v63 = vld [vmem:[#allocation55_spill] sm:$0xff] }
 0xc06   : > { %v7692_v25 = vadd.f32 %v7691_v39, %v7646_v8  ;;  %v16609_v24 = vpop.f32.mrb[46].mxu1  ;;  %vm18499_vm7 = vcmp.lt.s32.totalorder %v18498_v63, 16 }
 0xc07   : > { %v7547_v47 = vsel %vm18479_vm5, %v16609_v24, 0.0  ;;  %v9538_v21 = vpop.f32.mrb[47].mxu1 }
 0xc08   : > { %v7593_v27 = vadd.f32 %v7592_v62, %v7547_v47  ;;  %v7647_v31 = vmul.f32 %v7547_v47, %v7547_v47  ;;  %v18490_v21 = vld [vmem:[#allocation51_spill] sm:$0xff] }
 0xc09   : > { %vm18491_vm6 = vcmp.lt.s32.totalorder %v18490_v21, 16 }
 0xc0a   : > { %v7693_v58 = vadd.f32 %v7692_v25, %v7647_v31  ;;  %v16614_v61 = vpop.f32.mrb[48].mxu1 }
 0xc0b   : > { %v7548_v2 = vsel %vm18481_vm0, %v16614_v61, 0.0  ;;  %v9541_v30 = vpop.f32.mrb[49].mxu1 }
 0xc0c   : > { %v7594_v29 = vadd.f32 %v7593_v27, %v7548_v2  ;;  %v7648_v48 = vmul.f32 %v7548_v2, %v7548_v2 }
 0xc0e   : > { %v7694_v43 = vadd.f32 %v7693_v58, %v7648_v48  ;;  %v16619_v16 = vpop.f32.mrb[50].mxu1 }
 0xc0f   : > { %v7549_v52 = vsel %vm18483_vm10, %v16619_v16, 0.0  ;;  %v9544_v19 = vpop.f32.mrb[51].mxu1 }
 0xc10   : > { %v7595_v17 = vadd.f32 %v7594_v29, %v7549_v52  ;;  %v7649_v9 = vmul.f32 %v7549_v52, %v7549_v52  ;;  %v18492_v29 = vld [vmem:[#allocation52_spill] sm:$0xff] }
 0xc11   : > { %vm18493_vm14 = vcmp.lt.s32.totalorder %v18492_v29, 16 }
 0xc12   : > { %v7695_v11 = vadd.f32 %v7694_v43, %v7649_v9  ;;  %v16624_v55 = vpop.f32.mrb[52].mxu1  ;;  %v18494_v9 = vld [vmem:[#allocation53_spill] sm:$0xff] }
 0xc13   : > { %v7550_v1 = vsel %vm18485_vm8, %v16624_v55, 0.0  ;;  %v9547_v12 = vpop.f32.mrb[53].mxu1  ;;  %vm18495_vm1 = vcmp.lt.s32.totalorder %v18494_v9, 16 }
 0xc14   : > { %v7596_v57 = vadd.f32 %v7595_v17, %v7550_v1  ;;  %v7650_v28 = vmul.f32 %v7550_v1, %v7550_v1 }
 0xc16   : > { %v7696_v35 = vadd.f32 %v7695_v11, %v7650_v28  ;;  %v16629_v6 = vpop.f32.mrb[54].mxu1 }
 0xc17   : > { %v7551_v13 = vsel %vm18487_vm2, %v16629_v6, 0.0  ;;  %v9550_v54 = vpop.f32.mrb[55].mxu1 }
 0xc18   : > { %v7597_v32 = vadd.f32 %v7596_v57, %v7551_v13  ;;  %v7651_v41 = vmul.f32 %v7551_v13, %v7551_v13 }
 0xc1a   : > { %v7697_v39 = vadd.f32 %v7696_v35, %v7651_v41  ;;  %v16634_v59 = vpop.f32.mrb[56].mxu1  ;;  %v18496_v35 = vld [vmem:[#allocation54_spill] sm:$0xff] }
 0xc1b   : > { %v7552_v10 = vsel %vm18489_vm13, %v16634_v59, 0.0  ;;  %v9553_v62 = vpop.f32.mrb[57].mxu1  ;;  %vm18497_vm15 = vcmp.lt.s32.totalorder %v18496_v35, 16 }
 0xc1c   : > { %v7598_v8 = vadd.f32 %v7597_v32, %v7552_v10  ;;  %v7652_v25 = vmul.f32 %v7552_v10, %v7552_v10 }
 0xc1e   : > { %v7698_v22 = vadd.f32 %v7697_v39, %v7652_v25  ;;  %v16639_v47 = vpop.f32.mrb[58].mxu1 }
 0xc1f   : > { %v7553_v27 = vsel %vm18491_vm6, %v16639_v47, 0.0  ;;  %v9556_v31 = vpop.f32.mrb[59].mxu1 }
 0xc20   : > { %v7599_v58 = vadd.f32 %v7598_v8, %v7553_v27  ;;  %v7653_v0 = vmul.f32 %v7553_v27, %v7553_v27  ;;  %v18500_v27 = vld [vmem:[#allocation58_spill] sm:$0xff] }
 0xc21   : > { %vm18501_vm11 = vcmp.lt.s32.totalorder %v18500_v27, 16 }
 0xc22   : > { %v7699_v2 = vadd.f32 %v7698_v22, %v7653_v0  ;;  %v16644_v30 = vpop.f32.mrb[60].mxu1 }
 0xc23   : > { %v7554_v48 = vsel %vm18493_vm14, %v16644_v30, 0.0  ;;  %v9559_v43 = vpop.f32.mrb[61].mxu1 }
 0xc24   : > { %v7600_v46 = vadd.f32 %v7599_v58, %v7554_v48  ;;  %v7654_v52 = vmul.f32 %v7554_v48, %v7554_v48  ;;  %v18502_v43 = vld [vmem:[#allocation60_spill] sm:$0xff] }
 0xc25   : > { %vm18503_vm3 = vcmp.lt.s32.totalorder %v18502_v43, 16  ;;  %v18510_v43 = vld [vmem:[#allocation68_spill] sm:$0xff] }
 0xc26   : > { %v7700_v19 = vadd.f32 %v7699_v2, %v7654_v52  ;;  %v16649_v17 = vpop.f32.mrb[62].mxu1  ;;  %vm18511_vm5 = vcmp.lt.s32.totalorder %v18510_v43, 16 }
 0xc27   : > { %v7555_v11 = vsel %vm18495_vm1, %v16649_v17, 0.0  ;;  %v9562_v45 = vpop.f32.mrb[63].mxu1 }
 0xc28   : > { %v7601_v1 = vadd.f32 %v7600_v46, %v7555_v11  ;;  %v7655_v12 = vmul.f32 %v7555_v11, %v7555_v11 }
 0xc2a   : > { %v7701_v57 = vadd.f32 %v7700_v19, %v7655_v12  ;;  %v16654_v28 = vpop.f32.mrb[64].mxu1 }
 0xc2b   : > { %v7556_v7 = vsel %vm18497_vm15, %v16654_v28, 0.0  ;;  %v9565_v13 = vpop.f32.mrb[65].mxu1 }
 0xc2c   : > { %v7602_v54 = vadd.f32 %v7601_v1, %v7556_v7  ;;  %v7656_v32 = vmul.f32 %v7556_v7, %v7556_v7  ;;  %v18504_v1 = vld [vmem:[#allocation62_spill] sm:$0xff] }
 0xc2d   : > { %vm18505_vm12 = vcmp.lt.s32.totalorder %v18504_v1, 16 }
 0xc2e   : > { %v7702_v41 = vadd.f32 %v7701_v57, %v7656_v32  ;;  %v16659_v39 = vpop.f32.mrb[66].mxu1  ;;  %v18506_v32 = vld [vmem:[#allocation64_spill] sm:$0xff] }
 0xc2f   : > { %v7557_v10 = vsel %vm18499_vm7, %v16659_v39, 0.0  ;;  %v9568_v62 = vpop.f32.mrb[67].mxu1  ;;  %vm18507_vm4 = vcmp.lt.s32.totalorder %v18506_v32, 16 }
 0xc30   : > { %v7603_v8 = vadd.f32 %v7602_v54, %v7557_v10  ;;  %v7657_v25 = vmul.f32 %v7557_v10, %v7557_v10 }
 0xc32   : > { %v7703_v22 = vadd.f32 %v7702_v41, %v7657_v25  ;;  %v16664_v21 = vpop.f32.mrb[68].mxu1 }
 0xc33   : > { %v7558_v31 = vsel %vm18501_vm11, %v16664_v21, 0.0  ;;  %v9571_v58 = vpop.f32.mrb[69].mxu1 }
 0xc34   : > { %v7604_v0 = vadd.f32 %v7603_v8, %v7558_v31  ;;  %v7658_v2 = vmul.f32 %v7558_v31, %v7558_v31 }
 0xc36   : > { %v7704_v29 = vadd.f32 %v7703_v22, %v7658_v2  ;;  %v16669_v48 = vpop.f32.mrb[70].mxu1  ;;  %v18508_v22 = vld [vmem:[#allocation66_spill] sm:$0xff] }
 0xc37   : > { %v7559_v46 = vsel %vm18503_vm3, %v16669_v48, 0.0  ;;  %v9574_v52 = vpop.f32.mrb[71].mxu1  ;;  %vm18509_vm9 = vcmp.lt.s32.totalorder %v18508_v22, 16 }
 0xc38   : > { %v7605_v19 = vadd.f32 %v7604_v0, %v7559_v46  ;;  %v7659_v9 = vmul.f32 %v7559_v46, %v7559_v46 }
 0xc3a   : > { %v7705_v11 = vadd.f32 %v7704_v29, %v7659_v9  ;;  %v16674_v45 = vpop.f32.mrb[72].mxu1 }
 0xc3b   : > { %v7560_v12 = vsel %vm18505_vm12, %v16674_v45, 0.0  ;;  %v9577_v57 = vpop.f32.mrb[73].mxu1 }
 0xc3c   : > { %v7606_v35 = vadd.f32 %v7605_v19, %v7560_v12  ;;  %v7660_v7 = vmul.f32 %v7560_v12, %v7560_v12  ;;  %v18513_v12 = vld [vmem:[#allocation69_spill] sm:$0xff] }
 0xc3d   : > { %vm18514_vm0 = vcmp.lt.s32.totalorder %v18513_v12, 16 }
 0xc3e   : > { %v7706_v13 = vadd.f32 %v7705_v11, %v7660_v7  ;;  %v16679_v54 = vpop.f32.mrb[74].mxu1 }
 0xc3f   : > { %v7561_v41 = vsel %vm18507_vm4, %v16679_v54, 0.0  ;;  %v9580_v63 = vpop.f32.mrb[75].mxu1 }
 0xc40   : > { %v7607_v10 = vadd.f32 %v7606_v35, %v7561_v41  ;;  %v7661_v62 = vmul.f32 %v7561_v41, %v7561_v41  ;;  %v18516_v63 = vld [vmem:[#allocation70_spill] sm:$0xff] }
 0xc41   : > { %vm18517_vm10 = vcmp.lt.s32.totalorder %v18516_v63, 16 }
 0xc42   : > { %v7707_v8 = vadd.f32 %v7706_v13, %v7661_v62  ;;  %v16684_v25 = vpop.f32.mrb[76].mxu1 }
 0xc43   : > { %v7562_v27 = vsel %vm18509_vm9, %v16684_v25, 0.0  ;;  %v9583_v31 = vpop.f32.mrb[77].mxu1 }
 0xc44   : > { %v7608_v58 = vadd.f32 %v7607_v10, %v7562_v27  ;;  %v7662_v0 = vmul.f32 %v7562_v27, %v7562_v27 }
 0xc46   : > { %v7708_v2 = vadd.f32 %v7707_v8, %v7662_v0  ;;  %v16689_v29 = vpop.f32.mrb[78].mxu1 }
 0xc47   : > { %v7563_v46 = vsel %vm18511_vm5, %v16689_v29, 0.0  ;;  %v9586_v52 = vpop.f32.mrb[79].mxu1 }
 0xc48   : > { %v7609_v19 = vadd.f32 %v7608_v58, %v7563_v46  ;;  %v7663_v9 = vmul.f32 %v7563_v46, %v7563_v46  ;;  %v18519_v58 = vld [vmem:[#allocation71_spill] sm:$0xff] }
 0xc49   : > { %vm18520_vm8 = vcmp.lt.s32.totalorder %v18519_v58, 16  ;;  %v18528_v58 = vld [vmem:[#allocation75_spill] sm:$0xff] }
 0xc4a   : > { %v7709_v11 = vadd.f32 %v7708_v2, %v7663_v9  ;;  %v16694_v1 = vpop.f32.mrb[80].mxu1  ;;  %v18522_v9 = vld [vmem:[#allocation72_spill] sm:$0xff]  ;;  %vm18529_vm6 = vcmp.lt.s32.totalorder %v18528_v58, 16 }
 0xc4b   : > { %18512 = vst [vmem:[#allocation100_spill] sm:$0xff] %v16694_v1  ;;  %v7564_v57 = vsel %vm18514_vm0, %v16694_v1, 0.0  ;;  %v9589_v35 = vpop.f32.mrb[81].mxu1  ;;  %vm18523_vm2 = vcmp.lt.s32.totalorder %v18522_v9, 16 }
 0xc4c   : > { %v7610_v7 = vadd.f32 %v7609_v19, %v7564_v57  ;;  %v7664_v13 = vmul.f32 %v7564_v57, %v7564_v57 }
 0xc4e   : > { %v7710_v32 = vadd.f32 %v7709_v11, %v7664_v13  ;;  %v16699_v41 = vpop.f32.mrb[82].mxu1 }
 0xc4f   : > { %18515 = vst [vmem:[#allocation87_spill] sm:$0xff] %v16699_v41  ;;  %v7565_v10 = vsel %vm18517_vm10, %v16699_v41, 0.0  ;;  %v9592_v62 = vpop.f32.mrb[83].mxu1 }
 0xc50   : > { %v7611_v8 = vadd.f32 %v7610_v7, %v7565_v10  ;;  %v7665_v22 = vmul.f32 %v7565_v10, %v7565_v10 }
 0xc52   : > { %v7711_v27 = vadd.f32 %v7710_v32, %v7665_v22  ;;  %v16704_v31 = vpop.f32.mrb[84].mxu1  ;;  %v18525_v32 = vld [vmem:[#allocation73_spill] sm:$0xff] }
 0xc53   : > { %18518 = vst [vmem:[#allocation56_spill] sm:$0xff] %v16704_v31  ;;  %v7566_v0 = vsel %vm18520_vm8, %v16704_v31, 0.0  ;;  %v9595_v2 = vpop.f32.mrb[85].mxu1  ;;  %vm18526_vm13 = vcmp.lt.s32.totalorder %v18525_v32, 16 }
 0xc54   : > { %v7612_v43 = vadd.f32 %v7611_v8, %v7566_v0  ;;  %v7666_v46 = vmul.f32 %v7566_v0, %v7566_v0 }
 0xc56   : > { %v7712_v52 = vadd.f32 %v7711_v27, %v7666_v46  ;;  %v16709_v19 = vpop.f32.mrb[86].mxu1 }
 0xc57   : > { %18521 = vst [vmem:[#allocation96_spill] sm:$0xff] %v16709_v19  ;;  %v7567_v11 = vsel %vm18523_vm2, %v16709_v19, 0.0  ;;  %v9598_v12 = vpop.f32.mrb[87].mxu1 }
 0xc58   : > { %v7613_v57 = vadd.f32 %v7612_v43, %v7567_v11  ;;  %v7667_v35 = vmul.f32 %v7567_v11, %v7567_v11  ;;  %v18530_v11 = vld [vmem:[#allocation76_spill] sm:$0xff] }
 0xc59   : > { %vm18531_vm14 = vcmp.lt.s32.totalorder %v18530_v11, 16 }
 0xc5a   : > { %v7713_v7 = vadd.f32 %v7712_v52, %v7667_v35  ;;  %v16714_v13 = vpop.f32.mrb[88].mxu1 }
 0xc5b   : > { %18524 = vst [vmem:[#allocation132_spill] sm:$0xff] %v16714_v13  ;;  %v7568_v63 = vsel %vm18526_vm13, %v16714_v13, 0.0  ;;  %v9601_v10 = vpop.f32.mrb[89].mxu1 }
 0xc5c   : > { %v7614_v62 = vadd.f32 %v7613_v57, %v7568_v63  ;;  %v7668_v8 = vmul.f32 %v7568_v63, %v7568_v63 }
 0xc5e   : > { %v7714_v22 = vadd.f32 %v7713_v7, %v7668_v8  ;;  %v16719_v27 = vpop.f32.mrb[90].mxu1 }
 0xc5f   : > { %18527 = vst [vmem:[#allocation101_spill] sm:$0xff] %v16719_v27  ;;  %v7569_v0 = vsel %vm18529_vm6, %v16719_v27, 0.0  ;;  %v9604_v2 = vpop.f32.mrb[91].mxu1 }
 0xc60   : > { %v7615_v43 = vadd.f32 %v7614_v62, %v7569_v0  ;;  %v7669_v46 = vmul.f32 %v7569_v0, %v7569_v0 }
 0xc62   : > { %v7715_v52 = vadd.f32 %v7714_v22, %v7669_v46  ;;  %v7473_v9 = vpop.f32.mrb[92].mxu1 }
 0xc63   : > { %v7570_v12 = vsel %vm18531_vm14, %v7473_v9, 0.0  ;;  %v9607_v35 = vpop.f32.mrb[93].mxu1 }
 0xc64   : > { %v7616_v32 = vadd.f32 %v7615_v43, %v7570_v12  ;;  %v7670_v10 = vmul.f32 %v7570_v12, %v7570_v12  ;;  %v7727_v12 = vld [vmem:[#allocation13] sm:$0x1] }
 0xc66   : > { %v7617_v57 = vrot.slane %v7616_v32, 4  ;;  %v7716_v63 = vadd.f32 %v7715_v52, %v7670_v10  ;;  %v7731_v10 = vld [vmem:[#allocation15] sm:$0x1] }
 0xc68   : > { %v7618_v7 = vadd.f32 %v7617_v57, %v7616_v32  ;;  %v7717_v8 = vrot.slane %v7716_v63, 4  ;;  %v18532_v57 = vld [vmem:[#allocation77_spill] sm:$0xff] }
 0xc6a   : > { %v7619_v13 = vrot.slane %v7618_v7, 2  ;;  %v7718_v19 = vadd.f32 %v7717_v8, %v7716_v63 }
 0xc6c   : > { %v7620_v31 = vadd.f32 %v7619_v13, %v7618_v7  ;;  %v7719_v58 = vrot.slane %v7718_v19, 2 }
 0xc6e   : > { %v7621_v27 = vrot.slane %v7620_v31, 1  ;;  %v7720_v2 = vadd.f32 %v7719_v58, %v7718_v19 }
 0xc70   : > { %v7622_v62 = vadd.f32 %v7621_v27, %v7620_v31  ;;  %v7721_v0 = vrot.slane %v7720_v2, 1 }
 0xc72   : > { %v7623_v22 = vmul.f32 0.00390625, %v7622_v62  ;;  %v7722_v46 = vadd.f32 %v7721_v0, %v7720_v2 }
 0xc74   : > { %v7723_v41 = vmul.f32 0.00390625, %v7722_v46  ;;  %v7724_v11 = vmul.f32 %v7623_v22, %v7623_v22 }
 0xc76   : > { %v7725_v1 = vsub.f32 %v7723_v41, %v7724_v11 }
 0xc78   : > { %v7726_v35 = vmax.f32 %v7725_v1, 0.0 }
 0xc7a   : > { %v7728_v43 = vadd.f32 1e-05, %v7726_v35 }
 0xc7c   : > { %11195 = vrsqrt.f32 %v7728_v43 }
 0xc86   : > { %v11196_v52 = vpop.eup %11195 }
 0xc87   : > { %v7730_v32 = vmul.f32 %v11196_v52, %v7727_v12  ;;  %v18535_v12 = vld [vmem:[#allocation56_spill] sm:$0xff] }
 0xc89   : > { %v7732_v13 = vmul.f32 %v7730_v32, %v7623_v22  ;;  %v7738_v63 = vrot.slane %v7730_v32, %v18532_v57 }
 0xc8b   : > { %v7733_v19 = vsub.f32 %v7731_v10, %v7732_v13  ;;  %v7786_v31 = vmul.f32 %v7738_v63, %v7473_v9  ;;  %v7740_v27 = vmul.f32 %v7738_v63, %v16494_v33  ;;  %v7741_v7 = vmul.f32 %v7738_v63, %v16499_v42  ;;  %v7886_v33 = vld [vmem:[%s12039_s15 + $0x189] sm:$0xff] }
 0xc8c   : > { %v7742_v41 = vmul.f32 %v7738_v63, %v16504_v49  ;;  %v7743_v1 = vmul.f32 %v7738_v63, %v16509_v3  ;;  %v7744_v8 = vmul.f32 %v7738_v63, %v16514_v38  ;;  %v7745_v58 = vmul.f32 %v7738_v63, %v16519_v20 }
 0xc8d   : > { %v16734_v2 = vrot.slane %v7733_v19, %v18532_v57  ;;  %v7746_v62 = vmul.f32 %v7738_v63, %v16524_v18  ;;  %v7747_v0 = vmul.f32 %v7738_v63, %v16529_v14  ;;  %v7748_v9 = vmul.f32 %v7738_v63, %v16534_v4 }
 0xc8e   : > { %v7749_v42 = vmul.f32 %v7738_v63, %v16539_v23  ;;  %v7750_v49 = vmul.f32 %v7738_v63, %v16544_v37  ;;  %v7751_v3 = vmul.f32 %v7738_v63, %v16549_v40  ;;  %v7752_v38 = vmul.f32 %v7738_v63, %v16554_v26 }
 0xc8f   : > { %v7839_v20 = vadd.f32 %v16734_v2, %v7786_v31  ;;  %v7753_v22 = vmul.f32 %v7738_v63, %v16559_v53  ;;  %v7754_v18 = vmul.f32 %v7738_v63, %v16564_v5  ;;  %v7755_v14 = vmul.f32 %v7738_v63, %v16569_v51 }
 0xc90   : > { %v7756_v4 = vmul.f32 %v7738_v63, %v16574_v50  ;;  %v7757_v46 = vmul.f32 %v7738_v63, %v16579_v15  ;;  %v7758_v23 = vmul.f32 %v7738_v63, %v16584_v34  ;;  %v7759_v37 = vmul.f32 %v7738_v63, %v16589_v44 }
 0xc91   : > { %v7933_v11 = vadd.f32 %v7886_v33, %v7839_v20  ;;  %v7760_v40 = vmul.f32 %v7738_v63, %v16594_v60  ;;  %v7761_v26 = vmul.f32 %v7738_v63, %v16599_v56  ;;  %v7762_v35 = vmul.f32 %v7738_v63, %v16604_v36 }
 0xc92   : > { %v7763_v53 = vmul.f32 %v7738_v63, %v16609_v24  ;;  %v7764_v5 = vmul.f32 %v7738_v63, %v16614_v61  ;;  %v7765_v51 = vmul.f32 %v7738_v63, %v16619_v16  ;;  %v7766_v50 = vmul.f32 %v7738_v63, %v16624_v55 }
 0xc93   : > { %v7980_v15 = vmax.f32 %v7933_v11, 0.0  ;;  %v7767_v34 = vmul.f32 %v7738_v63, %v16629_v6  ;;  %v7768_v44 = vmul.f32 %v7738_v63, %v16634_v59  ;;  %v7769_v43 = vmul.f32 %v7738_v63, %v16639_v47 }
 0xc94   : > { %v7770_v60 = vmul.f32 %v7738_v63, %v16644_v30  ;;  %v7771_v56 = vmul.f32 %v7738_v63, %v16649_v17  ;;  %v7772_v36 = vmul.f32 %v7738_v63, %v16654_v28  ;;  %v7773_v24 = vmul.f32 %v7738_v63, %v16659_v39  ;;  %v18533_v30 = vld [vmem:[#allocation100_spill] sm:$0xff]  ;;  %v18534_v28 = vld [vmem:[#allocation87_spill] sm:$0xff] }
 0xc95   : > { %8027 = vst [vmem:[%s16767_s20 + $0x170] sm:$0xff] %v7980_v15  ;;  %v7774_v61 = vmul.f32 %v7738_v63, %v16664_v21  ;;  %v7775_v16 = vmul.f32 %v7738_v63, %v16669_v48  ;;  %v7776_v55 = vmul.f32 %v7738_v63, %v16674_v45  ;;  %v7777_v6 = vmul.f32 %v7738_v63, %v16679_v54  ;;  %v18536_v21 = vld [vmem:[#allocation96_spill] sm:$0xff]  ;;  %v18538_v54 = vld [vmem:[#allocation101_spill] sm:$0xff] }
 0xc96   : > { %v7778_v59 = vmul.f32 %v7738_v63, %v16684_v25  ;;  %v7779_v47 = vmul.f32 %v7738_v63, %v16689_v29  ;;  %v16777_v17 = vmul.f32 %v7738_v63, %v18533_v30  ;;  %v16780_v39 = vmul.f32 %v7738_v63, %v18534_v28  ;;  %v18537_v48 = vld [vmem:[#allocation132_spill] sm:$0xff] }
 0xc97   : > { %v16783_v52 = vmul.f32 %v7738_v63, %v18535_v12  ;;  %v16786_v32 = vmul.f32 %v7738_v63, %v18536_v21  ;;  %v16789_v45 = vmul.f32 %v7738_v63, %v18537_v48  ;;  %v16792_v10 = vmul.f32 %v7738_v63, %v18538_v54  ;;  %v7847_v30 = vld [vmem:[%s12039_s15 + $0x51] sm:$0xff]  ;;  %v7848_v28 = vld [vmem:[%s12039_s15 + $0x59] sm:$0xff]  ;;  %v7849_v12 = vld [vmem:[%s12039_s15 + $0x61] sm:$0xff] }
 0xc98   : > { %v16795_v25 = vadd.f32 %v16734_v2, %v7740_v27  ;;  %v16798_v29 = vadd.f32 %v16734_v2, %v7741_v7  ;;  %v16801_v13 = vadd.f32 %v16734_v2, %v7742_v41  ;;  %v16804_v57 = vadd.f32 %v16734_v2, %v7743_v1  ;;  %v7850_v21 = vld [vmem:[%s12039_s15 + $0x69] sm:$0xff]  ;;  %v7851_v48 = vld [vmem:[%s12039_s15 + $0x71] sm:$0xff]  ;;  %v7852_v54 = vld [vmem:[%s12039_s15 + $0x79] sm:$0xff] }
 0xc99   : > { %v16807_v19 = vadd.f32 %v16734_v2, %v7744_v8  ;;  %v16810_v31 = vadd.f32 %v16734_v2, %v7745_v58  ;;  %v16813_v63 = vadd.f32 %v16734_v2, %v7746_v62  ;;  %v16816_v27 = vadd.f32 %v16734_v2, %v7747_v0 }
 0xc9a   : > { %v16819_v7 = vadd.f32 %v16734_v2, %v7748_v9  ;;  %v16822_v41 = vadd.f32 %v16734_v2, %v7749_v42  ;;  %v16825_v1 = vadd.f32 %v16734_v2, %v7750_v49  ;;  %v16828_v8 = vadd.f32 %v16734_v2, %v7751_v3 }
 0xc9b   : > { %v16831_v58 = vadd.f32 %v16734_v2, %v7752_v38  ;;  %v16834_v62 = vadd.f32 %v16734_v2, %v7753_v22  ;;  %v16837_v0 = vadd.f32 %v16734_v2, %v7754_v18  ;;  %v16840_v9 = vadd.f32 %v16734_v2, %v7755_v14  ;;  %v7840_v14 = vld [vmem:[%s12039_s15 + $0x19] sm:$0xff] }
 0xc9c   : > { %v16843_v33 = vadd.f32 %v16734_v2, %v7756_v4  ;;  %v16846_v42 = vadd.f32 %v16734_v2, %v7757_v46  ;;  %v16849_v49 = vadd.f32 %v16734_v2, %v7758_v23  ;;  %v16852_v3 = vadd.f32 %v16734_v2, %v7759_v37  ;;  %v7841_v4 = vld [vmem:[%s12039_s15 + $0x21] sm:$0xff] }
 0xc9d   : > { %v16855_v38 = vadd.f32 %v16734_v2, %v7760_v40  ;;  %v16858_v20 = vadd.f32 %v16734_v2, %v7761_v26  ;;  %v16861_v22 = vadd.f32 %v16734_v2, %v7762_v35  ;;  %v16864_v18 = vadd.f32 %v16734_v2, %v7763_v53  ;;  %v7842_v40 = vld [vmem:[%s12039_s15 + $0x29] sm:$0xff]  ;;  %v7843_v26 = vld [vmem:[%s12039_s15 + $0x31] sm:$0xff]  ;;  %v7844_v35 = vld [vmem:[%s12039_s15 + $0x39] sm:$0xff] }
 0xc9e   : > { %v16869_v46 = vadd.f32 %v16734_v2, %v7764_v5  ;;  %v16872_v23 = vadd.f32 %v16734_v2, %v7765_v51  ;;  %v16875_v37 = vadd.f32 %v16734_v2, %v7766_v50  ;;  %v16878_v11 = vadd.f32 %v16734_v2, %v7767_v34  ;;  %v7845_v53 = vld [vmem:[%s12039_s15 + $0x41] sm:$0xff]  ;;  %v7846_v34 = vld [vmem:[%s12039_s15 + $0x49] sm:$0xff] }
 0xc9f   : > { %v16885_v5 = vadd.f32 %v16734_v2, %v7768_v44  ;;  %v16888_v51 = vadd.f32 %v16734_v2, %v7769_v43  ;;  %v16891_v50 = vadd.f32 %v16734_v2, %v7770_v60  ;;  %v16894_v15 = vadd.f32 %v16734_v2, %v7771_v56 }
 0xca0   : > { %v16901_v44 = vadd.f32 %v16734_v2, %v7772_v36  ;;  %v16904_v43 = vadd.f32 %v16734_v2, %v7773_v24  ;;  %v16907_v60 = vadd.f32 %v16734_v2, %v7774_v61  ;;  %v16910_v56 = vadd.f32 %v16734_v2, %v7775_v16 }
 0xca1   : > { %18539 = vst [vmem:[#allocation134_spill] sm:$0xff] %v16894_v15  ;;  %v7853_v15 = vld [vmem:[%s12039_s15 + $0x81] sm:$0xff]  ;;  %v16917_v36 = vadd.f32 %v16734_v2, %v7776_v55  ;;  %v16920_v24 = vadd.f32 %v16734_v2, %v7777_v6  ;;  %v16923_v61 = vadd.f32 %v16734_v2, %v7778_v59  ;;  %v16926_v16 = vadd.f32 %v16734_v2, %v7779_v47 }
 0xca2   : > { %18540 = vst [vmem:[#allocation97_spill] sm:$0xff] %v16901_v44  ;;  %18541 = vst [vmem:[#allocation135_spill] sm:$0xff] %v16904_v43  ;;  %v7856_v43 = vld [vmem:[%s12039_s15 + $0x99] sm:$0xff]  ;;  %v7857_v44 = vld [vmem:[%s12039_s15 + $0xa1] sm:$0xff]  ;;  %v16934_v55 = vadd.f32 %v16734_v2, %v16777_v17  ;;  %v16938_v6 = vadd.f32 %v16734_v2, %v16780_v39  ;;  %v16942_v59 = vadd.f32 %v16734_v2, %v16783_v52 }
 0xca3   : > { %18542 = vst [vmem:[#allocation106_spill] sm:$0xff] %v16907_v60  ;;  %18543 = vst [vmem:[#allocation79_spill] sm:$0xff] %v16910_v56  ;;  %v7854_v56 = vld [vmem:[%s12039_s15 + $0x89] sm:$0xff]  ;;  %v7855_v60 = vld [vmem:[%s12039_s15 + $0x91] sm:$0xff]  ;;  %v16946_v47 = vadd.f32 %v16734_v2, %v16786_v32  ;;  %v16958_v39 = vadd.f32 %v16734_v2, %v16792_v10  ;;  %v16961_v52 = vadd.f32 %v7840_v14, %v16795_v25 }
 0xca4   : > { %18544 = vst [vmem:[#allocation105_spill] sm:$0xff] %v16917_v36  ;;  %18545 = vst [vmem:[#allocation122_spill] sm:$0xff] %v16920_v24  ;;  %v7860_v24 = vld [vmem:[%s12039_s15 + $0xb9] sm:$0xff]  ;;  %v7861_v17 = vld [vmem:[%s12039_s15 + $0xc1] sm:$0xff]  ;;  %v16964_v32 = vadd.f32 %v7841_v4, %v16798_v29  ;;  %v16970_v36 = vadd.f32 %v7842_v40, %v16801_v13  ;;  %v16979_v10 = vadd.f32 %v7845_v53, %v16810_v31 }
 0xca5   : > { %18546 = vst [vmem:[#allocation136_spill] sm:$0xff] %v16923_v61  ;;  %18547 = vst [vmem:[#allocation123_spill] sm:$0xff] %v16926_v16  ;;  %v7858_v16 = vld [vmem:[%s12039_s15 + $0xa9] sm:$0xff]  ;;  %v7859_v61 = vld [vmem:[%s12039_s15 + $0xb1] sm:$0xff]  ;;  %v16985_v4 = vadd.f32 %v7846_v34, %v16813_v63  ;;  %v16988_v13 = vadd.f32 %v7847_v30, %v16816_v27  ;;  %v17003_v63 = vadd.f32 %v7851_v48, %v16828_v8 }
 0xca6   : > { %18548 = vst [vmem:[#allocation137_spill] sm:$0xff] %v16934_v55  ;;  %18549 = vst [vmem:[#allocation124_spill] sm:$0xff] %v16938_v6  ;;  %v16954_v55 = vadd.f32 %v16734_v2, %v16789_v45  ;;  %v7864_v6 = vld [vmem:[%s12039_s15 + $0xd9] sm:$0xff]  ;;  %v16973_v45 = vadd.f32 %v7843_v26, %v16804_v57  ;;  %v16976_v2 = vadd.f32 %v7844_v35, %v16807_v19  ;;  %v7865_v25 = vld [vmem:[%s12039_s15 + $0xe1] sm:$0xff] }
 0xca7   : > { %18550 = vst [vmem:[#allocation138_spill] sm:$0xff] %v16942_v59  ;;  %18551 = vst [vmem:[#allocation121_spill] sm:$0xff] %v16946_v47  ;;  %v7862_v47 = vld [vmem:[%s12039_s15 + $0xc9] sm:$0xff]  ;;  %v7863_v59 = vld [vmem:[%s12039_s15 + $0xd1] sm:$0xff]  ;;  %v16991_v57 = vadd.f32 %v7848_v28, %v16819_v7  ;;  %v16994_v19 = vadd.f32 %v7849_v12, %v16822_v41  ;;  %v17000_v35 = vadd.f32 %v7850_v21, %v16825_v1 }
 0xca8   : > { %v7866_v29 = vld [vmem:[%s12039_s15 + $0xe9] sm:$0xff]  ;;  %v7867_v14 = vld [vmem:[%s12039_s15 + $0xf1] sm:$0xff]  ;;  %v7868_v31 = vld [vmem:[%s12039_s15 + $0xf9] sm:$0xff]  ;;  %v17006_v27 = vadd.f32 %v7852_v54, %v16831_v58  ;;  %v17009_v7 = vadd.f32 %v7853_v15, %v16834_v62  ;;  %v17015_v30 = vadd.f32 %v7854_v56, %v16837_v0  ;;  %v17018_v1 = vadd.f32 %v7855_v60, %v16840_v9 }
 0xca9   : > { %v7869_v40 = vld [vmem:[%s12039_s15 + $0x101] sm:$0xff]  ;;  %v7870_v26 = vld [vmem:[%s12039_s15 + $0x109] sm:$0xff]  ;;  %v7871_v41 = vld [vmem:[%s12039_s15 + $0x111] sm:$0xff]  ;;  %v17021_v8 = vadd.f32 %v7856_v43, %v16843_v33  ;;  %v17024_v58 = vadd.f32 %v7857_v44, %v16846_v42  ;;  %v17030_v12 = vadd.f32 %v7858_v16, %v16849_v49  ;;  %v17033_v0 = vadd.f32 %v7859_v61, %v16852_v3 }
 0xcaa   : > { %v7872_v53 = vld [vmem:[%s12039_s15 + $0x119] sm:$0xff]  ;;  %v7873_v34 = vld [vmem:[%s12039_s15 + $0x121] sm:$0xff]  ;;  %v7874_v62 = vld [vmem:[%s12039_s15 + $0x129] sm:$0xff]  ;;  %v17036_v9 = vadd.f32 %v7860_v24, %v16855_v38  ;;  %v17039_v33 = vadd.f32 %v7861_v17, %v16858_v20  ;;  %v17045_v60 = vadd.f32 %v7862_v47, %v16861_v22  ;;  %v17048_v49 = vadd.f32 %v7863_v59, %v16864_v18 }
 0xcab   : > { %v7875_v15 = vld [vmem:[%s12039_s15 + $0x131] sm:$0xff]  ;;  %v7876_v28 = vld [vmem:[%s12039_s15 + $0x139] sm:$0xff]  ;;  %v7877_v42 = vld [vmem:[%s12039_s15 + $0x141] sm:$0xff]  ;;  %v17051_v3 = vadd.f32 %v7864_v6, %v16869_v46  ;;  %v17054_v38 = vadd.f32 %v7865_v25, %v16872_v23  ;;  %v17060_v48 = vadd.f32 %v7866_v29, %v16875_v37  ;;  %v17063_v54 = vadd.f32 %v7867_v14, %v16878_v11 }
 0xcac   : > { %v7878_v44 = vld [vmem:[%s12039_s15 + $0x149] sm:$0xff]  ;;  %v7879_v43 = vld [vmem:[%s12039_s15 + $0x151] sm:$0xff]  ;;  %v7880_v56 = vld [vmem:[%s12039_s15 + $0x159] sm:$0xff]  ;;  %v17066_v22 = vadd.f32 %v7868_v31, %v16885_v5  ;;  %v17069_v18 = vadd.f32 %v7869_v40, %v16888_v51  ;;  %v17075_v23 = vadd.f32 %v7870_v26, %v16891_v50 }
 0xcad   : > { %v7881_v20 = vld [vmem:[%s12039_s15 + $0x161] sm:$0xff]  ;;  %v7882_v21 = vld [vmem:[%s12039_s15 + $0x169] sm:$0xff]  ;;  %v7883_v46 = vld [vmem:[%s12039_s15 + $0x171] sm:$0xff] }
 0xcae   : > { %v7884_v24 = vld [vmem:[%s12039_s15 + $0x179] sm:$0xff]  ;;  %v7885_v61 = vld [vmem:[%s12039_s15 + $0x181] sm:$0xff] }
 0xcaf   : > { %v18552_v16 = vld [vmem:[#allocation134_spill] sm:$0xff]  ;;  %v18553_v37 = vld [vmem:[#allocation97_spill] sm:$0xff]  ;;  %v18554_v11 = vld [vmem:[#allocation135_spill] sm:$0xff] }
 0xcb0   : > { %v17078_v6 = vadd.f32 %v7871_v41, %v18552_v16  ;;  %v17081_v59 = vadd.f32 %v7872_v53, %v18553_v37  ;;  %v17084_v47 = vadd.f32 %v7873_v34, %v18554_v11  ;;  %v18555_v5 = vld [vmem:[#allocation106_spill] sm:$0xff]  ;;  %v18556_v51 = vld [vmem:[#allocation79_spill] sm:$0xff]  ;;  %v18557_v29 = vld [vmem:[#allocation105_spill] sm:$0xff] }
 0xcb1   : > { %v17087_v17 = vadd.f32 %v7874_v62, %v18555_v5  ;;  %v17090_v25 = vadd.f32 %v7875_v15, %v18556_v51  ;;  %v17093_v14 = vadd.f32 %v7876_v28, %v18557_v29  ;;  %v18558_v50 = vld [vmem:[#allocation122_spill] sm:$0xff]  ;;  %v18559_v40 = vld [vmem:[#allocation136_spill] sm:$0xff]  ;;  %v18560_v41 = vld [vmem:[#allocation123_spill] sm:$0xff]  ;;  %v7939_v51 = vmax.f32 %v16979_v10, 0.0 }
 0xcb2   : > { %v17096_v31 = vadd.f32 %v7877_v42, %v18558_v50  ;;  %v17099_v26 = vadd.f32 %v7878_v44, %v18559_v40  ;;  %v17102_v53 = vadd.f32 %v7879_v43, %v18560_v41  ;;  %v18561_v34 = vld [vmem:[#allocation137_spill] sm:$0xff]  ;;  %v18562_v62 = vld [vmem:[#allocation124_spill] sm:$0xff]  ;;  %v18563_v15 = vld [vmem:[#allocation138_spill] sm:$0xff]  ;;  %v17117_v42 = vadd.f32 %v7884_v24, %v16954_v55 }
 0xcb3   : > { %v17105_v16 = vadd.f32 %v7880_v56, %v18561_v34  ;;  %v17108_v37 = vadd.f32 %v7881_v20, %v18562_v62  ;;  %v17111_v11 = vadd.f32 %v7882_v21, %v18563_v15  ;;  %v18564_v28 = vld [vmem:[#allocation121_spill] sm:$0xff]  ;;  %v17120_v44 = vadd.f32 %v7885_v61, %v16958_v39  ;;  %7986 = vst [vmem:[%s16767_s20 + $0x28] sm:$0xff] %v7939_v51 }
 0xcb4   : > { %v17114_v5 = vadd.f32 %v7883_v46, %v18564_v28  ;;  %v7934_v43 = vmax.f32 %v16961_v52, 0.0  ;;  %v7935_v56 = vmax.f32 %v16964_v32, 0.0  ;;  %v7936_v20 = vmax.f32 %v16970_v36, 0.0 }
 0xcb5   : > { %v7937_v21 = vmax.f32 %v16973_v45, 0.0  ;;  %v7938_v46 = vmax.f32 %v16976_v2, 0.0  ;;  %v7940_v55 = vmax.f32 %v16985_v4, 0.0  ;;  %v7941_v39 = vmax.f32 %v16988_v13, 0.0 }
 0xcb6   : > { %v7942_v52 = vmax.f32 %v16991_v57, 0.0  ;;  %v7943_v32 = vmax.f32 %v16994_v19, 0.0  ;;  %v7944_v36 = vmax.f32 %v17000_v35, 0.0  ;;  %v7945_v45 = vmax.f32 %v17003_v63, 0.0  ;;  %7981 = vst [vmem:[%s16767_s20] sm:$0xff] %v7934_v43  ;;  %7982 = vst [vmem:[%s16767_s20 + $0x8] sm:$0xff] %v7935_v56 }
 0xcb7   : > { %7983 = vst [vmem:[%s16767_s20 + $0x10] sm:$0xff] %v7936_v20  ;;  %7984 = vst [vmem:[%s16767_s20 + $0x18] sm:$0xff] %v7937_v21  ;;  %v7946_v2 = vmax.f32 %v17006_v27, 0.0  ;;  %v7947_v10 = vmax.f32 %v17009_v7, 0.0  ;;  %v7948_v4 = vmax.f32 %v17015_v30, 0.0  ;;  %v7949_v13 = vmax.f32 %v17018_v1, 0.0 }
 0xcb8   : > { %7985 = vst [vmem:[%s16767_s20 + $0x20] sm:$0xff] %v7938_v46  ;;  %7987 = vst [vmem:[%s16767_s20 + $0x30] sm:$0xff] %v7940_v55  ;;  %v7950_v57 = vmax.f32 %v17021_v8, 0.0  ;;  %v7951_v19 = vmax.f32 %v17024_v58, 0.0  ;;  %v7952_v35 = vmax.f32 %v17030_v12, 0.0  ;;  %v7953_v63 = vmax.f32 %v17033_v0, 0.0 }
 0xcb9   : > { %7988 = vst [vmem:[%s16767_s20 + $0x38] sm:$0xff] %v7941_v39  ;;  %7989 = vst [vmem:[%s16767_s20 + $0x40] sm:$0xff] %v7942_v52  ;;  %v7954_v27 = vmax.f32 %v17036_v9, 0.0  ;;  %v7955_v7 = vmax.f32 %v17039_v33, 0.0  ;;  %v7956_v30 = vmax.f32 %v17045_v60, 0.0  ;;  %v7957_v1 = vmax.f32 %v17048_v49, 0.0 }
 0xcba   : > { %7990 = vst [vmem:[%s16767_s20 + $0x48] sm:$0xff] %v7943_v32  ;;  %7991 = vst [vmem:[%s16767_s20 + $0x50] sm:$0xff] %v7944_v36  ;;  %v7958_v8 = vmax.f32 %v17051_v3, 0.0  ;;  %v7959_v58 = vmax.f32 %v17054_v38, 0.0  ;;  %v7960_v12 = vmax.f32 %v17060_v48, 0.0  ;;  %v7961_v0 = vmax.f32 %v17063_v54, 0.0 }
 0xcbb   : > { %7992 = vst [vmem:[%s16767_s20 + $0x58] sm:$0xff] %v7945_v45  ;;  %7993 = vst [vmem:[%s16767_s20 + $0x60] sm:$0xff] %v7946_v2  ;;  %v7962_v9 = vmax.f32 %v17066_v22, 0.0  ;;  %v7963_v33 = vmax.f32 %v17069_v18, 0.0  ;;  %v7964_v60 = vmax.f32 %v17075_v23, 0.0  ;;  %v7965_v49 = vmax.f32 %v17078_v6, 0.0 }
 0xcbc   : > { %7994 = vst [vmem:[%s16767_s20 + $0x68] sm:$0xff] %v7947_v10  ;;  %7995 = vst [vmem:[%s16767_s20 + $0x70] sm:$0xff] %v7948_v4  ;;  %v7966_v3 = vmax.f32 %v17081_v59, 0.0  ;;  %v7967_v38 = vmax.f32 %v17084_v47, 0.0  ;;  %v7968_v48 = vmax.f32 %v17087_v17, 0.0  ;;  %v7969_v54 = vmax.f32 %v17090_v25, 0.0 }
 0xcbd   : > { %7996 = vst [vmem:[%s16767_s20 + $0x78] sm:$0xff] %v7949_v13  ;;  %7997 = vst [vmem:[%s16767_s20 + $0x80] sm:$0xff] %v7950_v57  ;;  %v7970_v22 = vmax.f32 %v17093_v14, 0.0  ;;  %v7971_v18 = vmax.f32 %v17096_v31, 0.0  ;;  %v7972_v24 = vmax.f32 %v17099_v26, 0.0  ;;  %v7973_v61 = vmax.f32 %v17102_v53, 0.0 }
 0xcbe   : > { %7998 = vst [vmem:[%s16767_s20 + $0x88] sm:$0xff] %v7951_v19  ;;  %7999 = vst [vmem:[%s16767_s20 + $0x90] sm:$0xff] %v7952_v35  ;;  %v7974_v23 = vmax.f32 %v17105_v16, 0.0  ;;  %v7975_v6 = vmax.f32 %v17108_v37, 0.0  ;;  %v7976_v59 = vmax.f32 %v17111_v11, 0.0  ;;  %v7977_v47 = vmax.f32 %v17114_v5, 0.0 }
 0xcbf   : > { %8000 = vst [vmem:[%s16767_s20 + $0x98] sm:$0xff] %v7953_v63  ;;  %8001 = vst [vmem:[%s16767_s20 + $0xa0] sm:$0xff] %v7954_v27  ;;  %v7978_v17 = vmax.f32 %v17117_v42, 0.0  ;;  %v7979_v25 = vmax.f32 %v17120_v44, 0.0 }
 0xcc0   : > { %8002 = vst [vmem:[%s16767_s20 + $0xa8] sm:$0xff] %v7955_v7  ;;  %8003 = vst [vmem:[%s16767_s20 + $0xb0] sm:$0xff] %v7956_v30 }
 0xcc1   : > { %8004 = vst [vmem:[%s16767_s20 + $0xb8] sm:$0xff] %v7957_v1  ;;  %8005 = vst [vmem:[%s16767_s20 + $0xc0] sm:$0xff] %v7958_v8 }
 0xcc2   : > { %8006 = vst [vmem:[%s16767_s20 + $0xc8] sm:$0xff] %v7959_v58  ;;  %8007 = vst [vmem:[%s16767_s20 + $0xd0] sm:$0xff] %v7960_v12 }
 0xcc3   : > { %8008 = vst [vmem:[%s16767_s20 + $0xd8] sm:$0xff] %v7961_v0  ;;  %8009 = vst [vmem:[%s16767_s20 + $0xe0] sm:$0xff] %v7962_v9 }
 0xcc4   : > { %8010 = vst [vmem:[%s16767_s20 + $0xe8] sm:$0xff] %v7963_v33  ;;  %8011 = vst [vmem:[%s16767_s20 + $0xf0] sm:$0xff] %v7964_v60 }
 0xcc5   : > { %8012 = vst [vmem:[%s16767_s20 + $0xf8] sm:$0xff] %v7965_v49  ;;  %8013 = vst [vmem:[%s16767_s20 + $0x100] sm:$0xff] %v7966_v3 }
 0xcc6   : > { %8014 = vst [vmem:[%s16767_s20 + $0x108] sm:$0xff] %v7967_v38  ;;  %8015 = vst [vmem:[%s16767_s20 + $0x110] sm:$0xff] %v7968_v48 }
 0xcc7   : > { %8016 = vst [vmem:[%s16767_s20 + $0x118] sm:$0xff] %v7969_v54  ;;  %8017 = vst [vmem:[%s16767_s20 + $0x120] sm:$0xff] %v7970_v22 }
 0xcc8   : > { %8018 = vst [vmem:[%s16767_s20 + $0x128] sm:$0xff] %v7971_v18  ;;  %8019 = vst [vmem:[%s16767_s20 + $0x130] sm:$0xff] %v7972_v24 }
 0xcc9   : > { %8020 = vst [vmem:[%s16767_s20 + $0x138] sm:$0xff] %v7973_v61  ;;  %8021 = vst [vmem:[%s16767_s20 + $0x140] sm:$0xff] %v7974_v23 }
 0xcca   : > { %8022 = vst [vmem:[%s16767_s20 + $0x148] sm:$0xff] %v7975_v6  ;;  %8023 = vst [vmem:[%s16767_s20 + $0x150] sm:$0xff] %v7976_v59 }
 0xccb   : > { %8024 = vst [vmem:[%s16767_s20 + $0x158] sm:$0xff] %v7977_v47  ;;  %8025 = vst [vmem:[%s16767_s20 + $0x160] sm:$0xff] %v7978_v17 }
 0xccc   : > { %8026 = vst [vmem:[%s16767_s20 + $0x168] sm:$0xff] %v7979_v25 }
 0xccd   : > { %11653 = shalt.err (!%p11650_p8)
}
 0xcce   : > { %s11654_s14 = scalar_lea.hbm %s17209_s29, 6016  ;;  %s11658_s8 = scalar_lea.hbm %s17274_s7, 12032 }
 0xccf   : > { %p11655_p4 = scmp.ne.s32.totalorder %s17209_s29, %s11654_s14  ;;  %p11659_p3 = scmp.lt.u32.totalorder %s17209_s29, %s17274_s7 }
 0xcd0   : > { %p11660_p6 = scmp.lt.u32.totalorder %s11658_s8, %s11654_s14  ;;  %p11662_p5 = scmp.lt.u32.totalorder %s11654_s14, %s17209_s29 }
 0xcd1   : > { %p11656_p10 = pnand %p11655_p4, %p18565_p9 }
 0xcd2   : > { %p11661_p7 = por %p11660_p6, %p11659_p3 }
 0xcd3   : > { %p11657_p11 = pneg %p11656_p10 }
 0xcd4   : > { %p11663_p12 = por %p11662_p5, %p11661_p7 }
 0xcd6   : > { %p11664_p1 = pnand %p11663_p12, %p11657_p11 }
 0xcd8   : > { %11667 = shalt.err (!%p11664_p1)
}
 0xcd9   : > { %s11733_s12 = smov 128   ;;  %s11734_s17 = smov 8  }
 0xcda   : > { %11105 = dma.vmem_to_hbm [thread:$0]  (%p18565_p9), %s17217_s9, 6016, %s17209_s29, %s8029_s30, %s11733_s12, %s11733_s12, %s11734_s17  }
 0xcdb PF: > { %s8057_s19 = sand.u32 1, %s11706_s24   ;;  %p18566_p13 = scmp.ne.s32.totalorder %s17623_s10, 0 }
 0xcdc   : > { %p18567_p0 = scmp.ge.s32.totalorder %s11718_s27, 2  ;;  %s8058_s1 = scalar_lea.sflag [#allocation6], %s8057_s19 }
 0xcde   : > { %p11131_p2 = pnand %p18567_p0, %p18566_p13 }
 0xce0   : > { %11701 = dma.done.wait (!%p11131_p2), %s8058_s1, 6016  }
 0xce1   : > { %11703 = vsyncadd (!%p11131_p2), %s8058_s1, 4294961280  ;;  %p23_p8 = scmp.ge.s32.totalorder %s11959_s11, 4   ;;  %s18568_s24 = smov %s11710_s25 }
 0xce2   : > { %s18569_s25 = smov %s11714_s26  ;;  %s18570_s26 = smov %s11970_s18 }
 0xce3   : > { %s18571_s27 = smov %s11959_s11  ;;  %25 = sbr.rel (!%p23_p8) target bundleno = 10 (0xa), region = 121 }
 0xcea   :  { %8063 = vsyncpa [#allocation5], 1 }
 0xceb   :  { %8065 = vsyncpa [#allocation5 + $0x1], 1 }
 0xcec   :  { %8066 = vsyncpa [#allocation8], 1 }
 0xced   :  { %8067 = vsyncpa [#allocation11], 1 }
 0xcee   :  { %8068 = vsyncpa [#allocation14], 1 }
 0xcef   :  { %8069 = vsyncpa [#allocation6], 1 }
 0xcf0   :  { %8071 = vsyncpa [#allocation6 + $0x1], 1 }

</bundles_post_ra>
